<compile_context>
chip_gen: v7x
topology: tpu7x:2x2x1
jax: 0.10.0
libtpu: 0.0.40
codegen_flags: <defaults>
</compile_context>

<pallas_src>
import jax
import jax.numpy as jnp
from jax import lax
from jax.experimental import pallas as pl
from jax.experimental.pallas import tpu as pltpu

# ----- hyperparameters (mirror the PyTorch module defaults) ------------------
NUM_CATEGORIES = (11, 7, 5, 13, 9, 6)     # 6 categorical cols -> S = 6 + 1 = 7
EMB_DIM = 32
NUM_NUMERIC = 1
D_MODEL = 64
NHEAD = 4
HEAD_DIM = D_MODEL // NHEAD               # 16
NUM_LAYERS = 3
DIM_FF = 128
SEQ = len(NUM_CATEGORIES) + 1             # 7
SEQ_PAD = 8                               # pad to a full sublane group / batch
OUT_DIM = EMB_DIM * SEQ                   # 224
OUT_PAD = 256                             # lane-dense output (multiple of 128)
FLAT_DIM = D_MODEL * SEQ                  # 448
LN_EPS = 1e-5
NEG_INF = -1e30


def _layer_norm(x, gamma, beta):
    mu = jnp.mean(x, axis=-1, keepdims=True)
    var = jnp.mean((x - mu) ** 2, axis=-1, keepdims=True)
    return (x - mu) * lax.rsqrt(var + LN_EPS) * gamma + beta


def _mm(a, w):
    # bf16 MXU matmul with f32 accumulation (w is already bf16 from the wrapper)
    return jnp.dot(a.astype(jnp.bfloat16), w, preferred_element_type=jnp.float32)


def transformer_ae_kernel(
        feats_ref, pos_ref, mask_ref,
        w_in_ref, b_in_ref,
        w_qkv_ref, b_qkv_ref, w_o_ref, b_o_ref,
        ln1g_ref, ln1b_ref,
        w_ff1_ref, b_ff1_ref, w_ff2_ref, b_ff2_ref,
        ln2g_ref, ln2b_ref,
        w_d1_ref, b_d1_ref, w_d2_ref, b_d2_ref,
        out_ref):
    T = feats_ref.shape[0]                 # TB * SEQ_PAD  (rows of this tile)
    TB = T // SEQ_PAD                      # batches in this tile

    # input projection + positional embedding (pos is pre-tiled to one tile)
    h = _mm(feats_ref[...], w_in_ref[...]) + b_in_ref[...] + pos_ref[...]   # (T,64) f32

    for l in range(NUM_LAYERS):
        # ---------------- multi-head self attention (post-norm) --------------
        # bf16 once; q-scale already folded into W_qkv / b_qkv in the wrapper.
        qkv = (_mm(h, w_qkv_ref[l]) + b_qkv_ref[l]).astype(jnp.bfloat16)    # (T,192)
        w_o_l = w_o_ref[l]                                                  # (64,64) bf16
        attn = None
        for hd in range(NHEAD):
            c0 = hd * HEAD_DIM
            q = qkv[:, c0:c0 + HEAD_DIM]                                    # (T,16) bf16
            k = qkv[:, D_MODEL + c0:D_MODEL + c0 + HEAD_DIM]
            v = qkv[:, 2 * D_MODEL + c0:2 * D_MODEL + c0 + HEAD_DIM]
            s = lax.dot_general(q, k, (((1,), (1,)), ((), ())),
                                preferred_element_type=jnp.float32)         # (T,T) f32
            s = s + mask_ref[...]          # block-diagonal bias, VMEM-resident
            s = s - jnp.max(s, axis=-1, keepdims=True)
            p = jnp.exp(s)
            p = p * pl.reciprocal(jnp.sum(p, axis=-1, keepdims=True), approx=True)
            hv = jnp.dot(p.astype(jnp.bfloat16), v,
                         preferred_element_type=jnp.float32)                # (T,16)
            # fold the head straight into its W_o row-block (no heads concat)
            contrib = jnp.dot(hv.astype(jnp.bfloat16),
                              w_o_l[c0:c0 + HEAD_DIM, :],
                              preferred_element_type=jnp.float32)           # (T,64)
            attn = contrib if attn is None else attn + contrib
        attn = attn + b_o_ref[l]
        h = _layer_norm(h + attn, ln1g_ref[l], ln1b_ref[l])

        # ---------------- feed-forward ---------------------------------------
        f = _mm(h, w_ff1_ref[l]) + b_ff1_ref[l]
        f = jnp.maximum(f, 0.0)
        f = _mm(f, w_ff2_ref[l]) + b_ff2_ref[l]
        h = _layer_norm(h + f, ln2g_ref[l], ln2b_ref[l])

    # ---------------- decoder: flatten folded into per-position matmuls ------
    # d1[b] = sum_s h[b*8+s] @ W_d1[s]  (pad position s=7 excluded).  The row
    # gather h[b*8+s] is done with an exact 0/1 selection matmul (MXU) instead
    # of a scratch store + sublane-strided reads.
    hb = h.astype(jnp.bfloat16)
    b_ids = lax.broadcasted_iota(jnp.int32, (TB, T), 0)
    r_ids = lax.broadcasted_iota(jnp.int32, (TB, T), 1)
    d1 = jnp.zeros((TB, OUT_PAD), jnp.float32)
    for s_idx in range(SEQ):
        sel = (r_ids == b_ids * SEQ_PAD + s_idx).astype(jnp.bfloat16)       # (TB,T)
        hs = jnp.dot(sel, hb, preferred_element_type=jnp.float32)           # (TB,64)
        d1 = d1 + _mm(hs, w_d1_ref[s_idx])
    d1 = jnp.maximum(d1 + b_d1_ref[...], 0.0)
    out_ref[...] = _mm(d1, w_d2_ref[...]) + b_d2_ref[...]                   # (TB,256)


# ----- deterministic parameter construction (PyTorch (out, in) convention) ---
def init_params(key):
    keys = iter(jax.random.split(key, 32))

    def nrm(shape, scale=0.02):
        return scale * jax.random.normal(next(keys), shape, jnp.float32)

    p = {}
    p["emb_tables"] = [nrm((nc, EMB_DIM), 1.0) for nc in NUM_CATEGORIES]
    p["w_num"] = nrm((EMB_DIM, NUM_NUMERIC))
    p["b_num"] = nrm((EMB_DIM,))
    p["pos"] = nrm((SEQ, D_MODEL), 1.0)                     # torch.randn
    # ad-hoc projection created inside forward() -> fixed deterministic param here
    p["w_in"] = nrm((D_MODEL, EMB_DIM))
    p["b_in"] = nrm((D_MODEL,))
    p["w_qkv"] = nrm((NUM_LAYERS, 3 * D_MODEL, D_MODEL))
    p["b_qkv"] = nrm((NUM_LAYERS, 3 * D_MODEL))
    p["w_o"] = nrm((NUM_LAYERS, D_MODEL, D_MODEL))
    p["b_o"] = nrm((NUM_LAYERS, D_MODEL))
    p["ln1_g"] = jnp.ones((NUM_LAYERS, D_MODEL), jnp.float32)
    p["ln1_b"] = jnp.zeros((NUM_LAYERS, D_MODEL), jnp.float32)
    p["w_ff1"] = nrm((NUM_LAYERS, DIM_FF, D_MODEL))
    p["b_ff1"] = nrm((NUM_LAYERS, DIM_FF))
    p["w_ff2"] = nrm((NUM_LAYERS, D_MODEL, DIM_FF))
    p["b_ff2"] = nrm((NUM_LAYERS, D_MODEL))
    p["ln2_g"] = jnp.ones((NUM_LAYERS, D_MODEL), jnp.float32)
    p["ln2_b"] = jnp.zeros((NUM_LAYERS, D_MODEL), jnp.float32)
    p["w_d1"] = nrm((OUT_DIM, FLAT_DIM))
    p["b_d1"] = nrm((OUT_DIM,))
    p["w_d2"] = nrm((OUT_DIM, OUT_DIM))
    p["b_d2"] = nrm((OUT_DIM,))
    return p


def _pick_tb(B):
    # tb must be a multiple of 8 (output block sublanes) and is capped at 16 so
    # the full (T,T) softmax stays at T <= 128; ~ceil(B/2) for small B so the
    # grid has >= 2 steps and both v7x TensorCores get fed (B <= 8 stays at 1
    # step -- the tile is tiny anyway).  Not a VMEM limit: footprint ~1-2 MiB.
    half = (B + 1) // 2
    return int(min(16, max(8, ((half + 7) // 8) * 8)))


def transformer_autoencoder(params, X_cat, X_num, tb=None):
    """tb = batches per grid step (T = tb*8 token rows per tile)."""
    B = X_cat.shape[0]
    f32, bf16 = jnp.float32, jnp.bfloat16

    if tb is None:
        tb = _pick_tb(B)
    assert tb % 8 == 0, "tb must be a multiple of 8 (aligned sublane blocks)"

    # glue: embedding gathers + tiny numeric projection + stack (stays in XLA)
    cat_emb = [jnp.take(tbl, X_cat[:, i], axis=0)
               for i, tbl in enumerate(params["emb_tables"])]        # each (B, 32)
    num_emb = X_num.astype(f32) @ params["w_num"].T + params["b_num"]
    feats = jnp.stack(cat_emb + [num_emb], axis=1)                   # (B, 7, 32)

    # pad seq 7 -> 8 (dummy position, masked out) and batch to a tile multiple
    n_tiles = -(-B // tb)
    B_pad = n_tiles * tb
    T = tb * SEQ_PAD
    feats = jnp.pad(feats, ((0, B_pad - B), (0, SEQ_PAD - SEQ), (0, 0)))
    feats2d = feats.reshape(B_pad * SEQ_PAD, EMB_DIM).astype(bf16)   # bf16 input DMA

    # positional embedding tiled to exactly ONE tile (constant size, resident)
    pos_pad = jnp.pad(params["pos"], ((0, SEQ_PAD - SEQ), (0, 0)))   # (8, 64)
    pos_tile = jnp.tile(pos_pad, (tb, 1)).astype(f32)                # (T, 64)

    # block-diagonal attention-mask bias, VMEM-resident (not held in vregs):
    # key must belong to the same batch as the query and not be the pad slot.
    ids = jnp.arange(T)
    valid = ((ids[:, None] // SEQ_PAD) == (ids[None, :] // SEQ_PAD)) & \
            ((ids[None, :] % SEQ_PAD) < SEQ)
    mask_bias = jnp.where(valid, 0.0, NEG_INF).astype(f32)           # (T, T)

    t2 = lambda w: jnp.swapaxes(w, -1, -2)        # (out,in) -> (in,out)
    row = lambda b: b[..., None, :]               # bias (...,N) -> (...,1,N)

    # fold 1/sqrt(head_dim) into the q columns of W_qkv and b_qkv
    qscale = jnp.concatenate([jnp.full((D_MODEL,), HEAD_DIM ** -0.5, f32),
                              jnp.ones((2 * D_MODEL,), f32)])        # (192,)
    w_qkv = (t2(params["w_qkv"]) * qscale).astype(bf16)              # (L, 64, 192)
    b_qkv = row(params["b_qkv"] * qscale).astype(f32)                # (L, 1, 192)

    # decoder weights: per-position slabs; output lanes padded 224 -> 256
    wd1 = t2(params["w_d1"]).reshape(SEQ, D_MODEL, OUT_DIM)          # (7, 64, 224)
    wd1 = jnp.pad(wd1, ((0, 0), (0, 0), (0, OUT_PAD - OUT_DIM))).astype(bf16)
    wd2 = jnp.pad(t2(params["w_d2"]),
                  ((0, OUT_PAD - OUT_DIM), (0, OUT_PAD - OUT_DIM))).astype(bf16)
    bd1 = jnp.pad(params["b_d1"], (0, OUT_PAD - OUT_DIM))[None, :].astype(f32)
    bd2 = jnp.pad(params["b_d2"], (0, OUT_PAD - OUT_DIM))[None, :].astype(f32)

    args = (
        feats2d, pos_tile, mask_bias,
        t2(params["w_in"]).astype(bf16), row(params["b_in"]).astype(f32),
        w_qkv, b_qkv,
        t2(params["w_o"]).astype(bf16), row(params["b_o"]).astype(f32),
        row(params["ln1_g"]).astype(f32), row(params["ln1_b"]).astype(f32),
        t2(params["w_ff1"]).astype(bf16), row(params["b_ff1"]).astype(f32),
        t2(params["w_ff2"]).astype(bf16), row(params["b_ff2"]).astype(f32),
        row(params["ln2_g"]).astype(f32), row(params["ln2_b"]).astype(f32),
        wd1, bd1, wd2, bd2,
    )

    def resident(a):
        # full-array block with a constant index_map -> fetched once, stays in VMEM
        nd = a.ndim
        return pl.BlockSpec(a.shape, lambda i, _nd=nd: (0,) * _nd)

    in_specs = ([pl.BlockSpec((T, EMB_DIM), lambda i: (i, 0))]
                + [resident(a) for a in args[1:]])

    out = pl.pallas_call(
        transformer_ae_kernel,
        grid=(n_tiles,),
        in_specs=in_specs,
        out_specs=pl.BlockSpec((tb, OUT_PAD), lambda i: (i, 0)),
        out_shape=jax.ShapeDtypeStruct((B_pad, OUT_PAD), jnp.float32),
        compiler_params=pltpu.CompilerParams(
            dimension_semantics=("parallel",),          # v7x: 2 TCs split tiles
            # generous headroom; actual footprint is ~1-2 MiB, nowhere near any
            # chip's VMEM -- tb is limited by vreg pressure / O(T^2) softmax.
            vmem_limit_bytes=32 * 1024 * 1024),
    )(*args)
    return out[:B, :OUT_DIM]


if __name__ == "__main__":
    key = jax.random.PRNGKey(0)
    kp, kc, kn = jax.random.split(key, 3)
    params = init_params(kp)

    B = 2
    X_cat = jnp.stack(
        [jax.random.randint(jax.random.fold_in(kc, i), (B,), 0, nc)
         for i, nc in enumerate(NUM_CATEGORIES)], axis=1)            # (B, 6) int32
    X_num = jax.random.normal(kn, (B, NUM_NUMERIC), jnp.float32)     # (B, 1)

    out = transformer_autoencoder(params, X_cat, X_num)
    jax.block_until_ready(out)
    assert out.shape == (B, OUT_DIM) and out.dtype == jnp.float32
    assert bool(jnp.all(jnp.isfinite(out)))
    print("KERNEL_OK")
</pallas_src>

<mosaic_0001>
module attributes {stable_mosaic.version = 11 : i64} {
  func.func @transformer_ae_kernel(%arg0: i32, %arg1: memref<64x32xbf16, #tpu.memory_space<vmem>>, %arg2: memref<64x64xf32, #tpu.memory_space<vmem>>, %arg3: memref<64x64xf32, #tpu.memory_space<vmem>>, %arg4: memref<32x64xbf16, #tpu.memory_space<vmem>>, %arg5: memref<1x64xf32, #tpu.memory_space<vmem>>, %arg6: memref<3x64x192xbf16, #tpu.memory_space<vmem>>, %arg7: memref<3x1x192xf32, #tpu.memory_space<vmem>>, %arg8: memref<3x64x64xbf16, #tpu.memory_space<vmem>>, %arg9: memref<3x1x64xf32, #tpu.memory_space<vmem>>, %arg10: memref<3x1x64xf32, #tpu.memory_space<vmem>>, %arg11: memref<3x1x64xf32, #tpu.memory_space<vmem>>, %arg12: memref<3x64x128xbf16, #tpu.memory_space<vmem>>, %arg13: memref<3x1x128xf32, #tpu.memory_space<vmem>>, %arg14: memref<3x128x64xbf16, #tpu.memory_space<vmem>>, %arg15: memref<3x1x64xf32, #tpu.memory_space<vmem>>, %arg16: memref<3x1x64xf32, #tpu.memory_space<vmem>>, %arg17: memref<3x1x64xf32, #tpu.memory_space<vmem>>, %arg18: memref<7x64x256xbf16, #tpu.memory_space<vmem>>, %arg19: memref<1x256xf32, #tpu.memory_space<vmem>>, %arg20: memref<256x256xbf16, #tpu.memory_space<vmem>>, %arg21: memref<1x256xf32, #tpu.memory_space<vmem>>, %arg22: memref<8x256xf32, #tpu.memory_space<vmem>>) attributes {dimension_semantics = [#tpu.dimension_semantics<parallel>], iteration_bounds = array<i64: 1>, scalar_prefetch = 0 : i64, scratch_operands = 0 : i64, tpu.core_type = #tpu.core_type<tc>, window_params = [{transform_indices = @transform_0, window_bounds = array<i64: 64, 32>}, {pipeline_mode = #tpu.pipeline_mode<synchronous>, transform_indices = @transform_1, window_bounds = array<i64: 64, 64>}, {pipeline_mode = #tpu.pipeline_mode<synchronous>, transform_indices = @transform_2, window_bounds = array<i64: 64, 64>}, {pipeline_mode = #tpu.pipeline_mode<synchronous>, transform_indices = @transform_3, window_bounds = array<i64: 32, 64>}, {pipeline_mode = #tpu.pipeline_mode<synchronous>, transform_indices = @transform_4, window_bounds = array<i64: 1, 64>}, {pipeline_mode = #tpu.pipeline_mode<synchronous>, transform_indices = @transform_5, window_bounds = array<i64: 3, 64, 192>}, {pipeline_mode = #tpu.pipeline_mode<synchronous>, transform_indices = @transform_6, window_bounds = array<i64: 3, 1, 192>}, {pipeline_mode = #tpu.pipeline_mode<synchronous>, transform_indices = @transform_7, window_bounds = array<i64: 3, 64, 64>}, {pipeline_mode = #tpu.pipeline_mode<synchronous>, transform_indices = @transform_8, window_bounds = array<i64: 3, 1, 64>}, {pipeline_mode = #tpu.pipeline_mode<synchronous>, transform_indices = @transform_9, window_bounds = array<i64: 3, 1, 64>}, {pipeline_mode = #tpu.pipeline_mode<synchronous>, transform_indices = @transform_10, window_bounds = array<i64: 3, 1, 64>}, {pipeline_mode = #tpu.pipeline_mode<synchronous>, transform_indices = @transform_11, window_bounds = array<i64: 3, 64, 128>}, {pipeline_mode = #tpu.pipeline_mode<synchronous>, transform_indices = @transform_12, window_bounds = array<i64: 3, 1, 128>}, {pipeline_mode = #tpu.pipeline_mode<synchronous>, transform_indices = @transform_13, window_bounds = array<i64: 3, 128, 64>}, {pipeline_mode = #tpu.pipeline_mode<synchronous>, transform_indices = @transform_14, window_bounds = array<i64: 3, 1, 64>}, {pipeline_mode = #tpu.pipeline_mode<synchronous>, transform_indices = @transform_15, window_bounds = array<i64: 3, 1, 64>}, {pipeline_mode = #tpu.pipeline_mode<synchronous>, transform_indices = @transform_16, window_bounds = array<i64: 3, 1, 64>}, {pipeline_mode = #tpu.pipeline_mode<synchronous>, transform_indices = @transform_17, window_bounds = array<i64: 7, 64, 256>}, {pipeline_mode = #tpu.pipeline_mode<synchronous>, transform_indices = @transform_18, window_bounds = array<i64: 1, 256>}, {pipeline_mode = #tpu.pipeline_mode<synchronous>, transform_indices = @transform_19, window_bounds = array<i64: 256, 256>}, {pipeline_mode = #tpu.pipeline_mode<synchronous>, transform_indices = @transform_20, window_bounds = array<i64: 1, 256>}, {transform_indices = @transform_21, window_bounds = array<i64: 8, 256>}]} {
    %c0 = arith.constant 0 : index
    %c0_0 = arith.constant 0 : index
    %0 = vector.load %arg1[%c0, %c0_0] : memref<64x32xbf16, #tpu.memory_space<vmem>>, vector<64x32xbf16>
    %c0_1 = arith.constant 0 : index
    %c0_2 = arith.constant 0 : index
    %1 = vector.load %arg4[%c0_1, %c0_2] : memref<32x64xbf16, #tpu.memory_space<vmem>>, vector<32x64xbf16>
    %cst = arith.constant dense<0.000000e+00> : vector<64x64xf32>
    %2 = tpu.matmul %0, %1, %cst {dimension_numbers = #tpu.dot_dimension_numbers<[1], [0], [0], [1], [0, 0, 1, 1], [], []>} : vector<64x32xbf16>, vector<32x64xbf16>, vector<64x64xf32> -> vector<64x64xf32>
    %c0_3 = arith.constant 0 : index
    %c0_4 = arith.constant 0 : index
    %3 = vector.load %arg5[%c0_3, %c0_4] : memref<1x64xf32, #tpu.memory_space<vmem>>, vector<1x64xf32>
    %4 = vector.broadcast %3 : vector<1x64xf32> to vector<64x64xf32>
    %5 = arith.addf %2, %4 : vector<64x64xf32>
    %c0_5 = arith.constant 0 : index
    %c0_6 = arith.constant 0 : index
    %6 = vector.load %arg2[%c0_5, %c0_6] : memref<64x64xf32, #tpu.memory_space<vmem>>, vector<64x64xf32>
    %7 = arith.addf %5, %6 : vector<64x64xf32>
    %c0_7 = arith.constant 0 : index
    %c0_8 = arith.constant 0 : index
    %c0_9 = arith.constant 0 : index
    %8 = vector.load %arg6[%c0_7, %c0_8, %c0_9] : memref<3x64x192xbf16, #tpu.memory_space<vmem>>, vector<1x64x192xbf16>
    %9 = vector.shape_cast %8 : vector<1x64x192xbf16> to vector<64x192xbf16>
    %10 = arith.truncf %7 : vector<64x64xf32> to vector<64x64xbf16>
    %cst_10 = arith.constant dense<0.000000e+00> : vector<64x192xf32>
    %11 = tpu.matmul %10, %9, %cst_10 {dimension_numbers = #tpu.dot_dimension_numbers<[1], [0], [0], [1], [0, 0, 1, 1], [], []>} : vector<64x64xbf16>, vector<64x192xbf16>, vector<64x192xf32> -> vector<64x192xf32>
    %c0_11 = arith.constant 0 : index
    %c0_12 = arith.constant 0 : index
    %c0_13 = arith.constant 0 : index
    %12 = vector.load %arg7[%c0_11, %c0_12, %c0_13] : memref<3x1x192xf32, #tpu.memory_space<vmem>>, vector<1x1x192xf32>
    %13 = vector.shape_cast %12 : vector<1x1x192xf32> to vector<1x192xf32>
    %14 = vector.broadcast %13 : vector<1x192xf32> to vector<64x192xf32>
    %15 = arith.addf %11, %14 : vector<64x192xf32>
    %16 = arith.truncf %15 : vector<64x192xf32> to vector<64x192xbf16>
    %c0_14 = arith.constant 0 : index
    %c0_15 = arith.constant 0 : index
    %c0_16 = arith.constant 0 : index
    %17 = vector.load %arg8[%c0_14, %c0_15, %c0_16] : memref<3x64x64xbf16, #tpu.memory_space<vmem>>, vector<1x64x64xbf16>
    %18 = vector.shape_cast %17 : vector<1x64x64xbf16> to vector<64x64xbf16>
    %19 = vector.extract_strided_slice %16 {offsets = [0, 0], sizes = [64, 16], strides = [1, 1]} : vector<64x192xbf16> to vector<64x16xbf16>
    %20 = vector.extract_strided_slice %16 {offsets = [0, 64], sizes = [64, 16], strides = [1, 1]} : vector<64x192xbf16> to vector<64x16xbf16>
    %21 = vector.extract_strided_slice %16 {offsets = [0, 128], sizes = [64, 16], strides = [1, 1]} : vector<64x192xbf16> to vector<64x16xbf16>
    %cst_17 = arith.constant dense<0.000000e+00> : vector<64x64xf32>
    %22 = tpu.matmul %19, %20, %cst_17 {dimension_numbers = #tpu.dot_dimension_numbers<[1], [1], [0], [0], [0, 0, 1, 0], [], []>} : vector<64x16xbf16>, vector<64x16xbf16>, vector<64x64xf32> -> vector<64x64xf32>
    %c0_18 = arith.constant 0 : index
    %c0_19 = arith.constant 0 : index
    %23 = vector.load %arg3[%c0_18, %c0_19] : memref<64x64xf32, #tpu.memory_space<vmem>>, vector<64x64xf32>
    %24 = arith.addf %22, %23 : vector<64x64xf32>
    %cst_20 = arith.constant dense<0xFF800000> : vector<64xf32>
    %25 = vector.multi_reduction <maximumf>, %24, %cst_20 [1] : vector<64x64xf32> to vector<64xf32>
    %26 = vector.shape_cast %25 : vector<64xf32> to vector<64x1xf32>
    %27 = vector.broadcast %26 : vector<64x1xf32> to vector<64x64xf32>
    %28 = arith.subf %24, %27 : vector<64x64xf32>
    %29 = math.exp %28 : vector<64x64xf32>
    %cst_21 = arith.constant dense<0.000000e+00> : vector<64xf32>
    %30 = vector.multi_reduction <add>, %29, %cst_21 [1] : vector<64x64xf32> to vector<64xf32>
    %31 = vector.shape_cast %30 : vector<64xf32> to vector<64x1xf32>
    %32 = tpu.reciprocal %31 {approx = true} : vector<64x1xf32> -> vector<64x1xf32>
    %33 = vector.broadcast %32 : vector<64x1xf32> to vector<64x64xf32>
    %34 = arith.mulf %29, %33 : vector<64x64xf32>
    %35 = arith.truncf %34 : vector<64x64xf32> to vector<64x64xbf16>
    %cst_22 = arith.constant dense<0.000000e+00> : vector<64x16xf32>
    %36 = tpu.matmul %35, %21, %cst_22 {dimension_numbers = #tpu.dot_dimension_numbers<[1], [0], [0], [1], [0, 0, 1, 1], [], []>} : vector<64x64xbf16>, vector<64x16xbf16>, vector<64x16xf32> -> vector<64x16xf32>
    %37 = arith.truncf %36 : vector<64x16xf32> to vector<64x16xbf16>
    %38 = vector.extract_strided_slice %18 {offsets = [0, 0], sizes = [16, 64], strides = [1, 1]} : vector<64x64xbf16> to vector<16x64xbf16>
    %cst_23 = arith.constant dense<0.000000e+00> : vector<64x64xf32>
    %39 = tpu.matmul %37, %38, %cst_23 {dimension_numbers = #tpu.dot_dimension_numbers<[1], [0], [0], [1], [0, 0, 1, 1], [], []>} : vector<64x16xbf16>, vector<16x64xbf16>, vector<64x64xf32> -> vector<64x64xf32>
    %40 = vector.extract_strided_slice %16 {offsets = [0, 16], sizes = [64, 16], strides = [1, 1]} : vector<64x192xbf16> to vector<64x16xbf16>
    %41 = vector.extract_strided_slice %16 {offsets = [0, 80], sizes = [64, 16], strides = [1, 1]} : vector<64x192xbf16> to vector<64x16xbf16>
    %42 = vector.extract_strided_slice %16 {offsets = [0, 144], sizes = [64, 16], strides = [1, 1]} : vector<64x192xbf16> to vector<64x16xbf16>
    %cst_24 = arith.constant dense<0.000000e+00> : vector<64x64xf32>
    %43 = tpu.matmul %40, %41, %cst_24 {dimension_numbers = #tpu.dot_dimension_numbers<[1], [1], [0], [0], [0, 0, 1, 0], [], []>} : vector<64x16xbf16>, vector<64x16xbf16>, vector<64x64xf32> -> vector<64x64xf32>
    %c0_25 = arith.constant 0 : index
    %c0_26 = arith.constant 0 : index
    %44 = vector.load %arg3[%c0_25, %c0_26] : memref<64x64xf32, #tpu.memory_space<vmem>>, vector<64x64xf32>
    %45 = arith.addf %43, %44 : vector<64x64xf32>
    %cst_27 = arith.constant dense<0xFF800000> : vector<64xf32>
    %46 = vector.multi_reduction <maximumf>, %45, %cst_27 [1] : vector<64x64xf32> to vector<64xf32>
    %47 = vector.shape_cast %46 : vector<64xf32> to vector<64x1xf32>
    %48 = vector.broadcast %47 : vector<64x1xf32> to vector<64x64xf32>
    %49 = arith.subf %45, %48 : vector<64x64xf32>
    %50 = math.exp %49 : vector<64x64xf32>
    %cst_28 = arith.constant dense<0.000000e+00> : vector<64xf32>
    %51 = vector.multi_reduction <add>, %50, %cst_28 [1] : vector<64x64xf32> to vector<64xf32>
    %52 = vector.shape_cast %51 : vector<64xf32> to vector<64x1xf32>
    %53 = tpu.reciprocal %52 {approx = true} : vector<64x1xf32> -> vector<64x1xf32>
    %54 = vector.broadcast %53 : vector<64x1xf32> to vector<64x64xf32>
    %55 = arith.mulf %50, %54 : vector<64x64xf32>
    %56 = arith.truncf %55 : vector<64x64xf32> to vector<64x64xbf16>
    %cst_29 = arith.constant dense<0.000000e+00> : vector<64x16xf32>
    %57 = tpu.matmul %56, %42, %cst_29 {dimension_numbers = #tpu.dot_dimension_numbers<[1], [0], [0], [1], [0, 0, 1, 1], [], []>} : vector<64x64xbf16>, vector<64x16xbf16>, vector<64x16xf32> -> vector<64x16xf32>
    %58 = arith.truncf %57 : vector<64x16xf32> to vector<64x16xbf16>
    %59 = vector.extract_strided_slice %18 {offsets = [16, 0], sizes = [16, 64], strides = [1, 1]} : vector<64x64xbf16> to vector<16x64xbf16>
    %cst_30 = arith.constant dense<0.000000e+00> : vector<64x64xf32>
    %60 = tpu.matmul %58, %59, %cst_30 {dimension_numbers = #tpu.dot_dimension_numbers<[1], [0], [0], [1], [0, 0, 1, 1], [], []>} : vector<64x16xbf16>, vector<16x64xbf16>, vector<64x64xf32> -> vector<64x64xf32>
    %61 = arith.addf %39, %60 : vector<64x64xf32>
    %62 = vector.extract_strided_slice %16 {offsets = [0, 32], sizes = [64, 16], strides = [1, 1]} : vector<64x192xbf16> to vector<64x16xbf16>
    %63 = vector.extract_strided_slice %16 {offsets = [0, 96], sizes = [64, 16], strides = [1, 1]} : vector<64x192xbf16> to vector<64x16xbf16>
    %64 = vector.extract_strided_slice %16 {offsets = [0, 160], sizes = [64, 16], strides = [1, 1]} : vector<64x192xbf16> to vector<64x16xbf16>
    %cst_31 = arith.constant dense<0.000000e+00> : vector<64x64xf32>
    %65 = tpu.matmul %62, %63, %cst_31 {dimension_numbers = #tpu.dot_dimension_numbers<[1], [1], [0], [0], [0, 0, 1, 0], [], []>} : vector<64x16xbf16>, vector<64x16xbf16>, vector<64x64xf32> -> vector<64x64xf32>
    %c0_32 = arith.constant 0 : index
    %c0_33 = arith.constant 0 : index
    %66 = vector.load %arg3[%c0_32, %c0_33] : memref<64x64xf32, #tpu.memory_space<vmem>>, vector<64x64xf32>
    %67 = arith.addf %65, %66 : vector<64x64xf32>
    %cst_34 = arith.constant dense<0xFF800000> : vector<64xf32>
    %68 = vector.multi_reduction <maximumf>, %67, %cst_34 [1] : vector<64x64xf32> to vector<64xf32>
    %69 = vector.shape_cast %68 : vector<64xf32> to vector<64x1xf32>
    %70 = vector.broadcast %69 : vector<64x1xf32> to vector<64x64xf32>
    %71 = arith.subf %67, %70 : vector<64x64xf32>
    %72 = math.exp %71 : vector<64x64xf32>
    %cst_35 = arith.constant dense<0.000000e+00> : vector<64xf32>
    %73 = vector.multi_reduction <add>, %72, %cst_35 [1] : vector<64x64xf32> to vector<64xf32>
    %74 = vector.shape_cast %73 : vector<64xf32> to vector<64x1xf32>
    %75 = tpu.reciprocal %74 {approx = true} : vector<64x1xf32> -> vector<64x1xf32>
    %76 = vector.broadcast %75 : vector<64x1xf32> to vector<64x64xf32>
    %77 = arith.mulf %72, %76 : vector<64x64xf32>
    %78 = arith.truncf %77 : vector<64x64xf32> to vector<64x64xbf16>
    %cst_36 = arith.constant dense<0.000000e+00> : vector<64x16xf32>
    %79 = tpu.matmul %78, %64, %cst_36 {dimension_numbers = #tpu.dot_dimension_numbers<[1], [0], [0], [1], [0, 0, 1, 1], [], []>} : vector<64x64xbf16>, vector<64x16xbf16>, vector<64x16xf32> -> vector<64x16xf32>
    %80 = arith.truncf %79 : vector<64x16xf32> to vector<64x16xbf16>
    %81 = vector.extract_strided_slice %18 {offsets = [32, 0], sizes = [16, 64], strides = [1, 1]} : vector<64x64xbf16> to vector<16x64xbf16>
    %cst_37 = arith.constant dense<0.000000e+00> : vector<64x64xf32>
    %82 = tpu.matmul %80, %81, %cst_37 {dimension_numbers = #tpu.dot_dimension_numbers<[1], [0], [0], [1], [0, 0, 1, 1], [], []>} : vector<64x16xbf16>, vector<16x64xbf16>, vector<64x64xf32> -> vector<64x64xf32>
    %83 = arith.addf %61, %82 : vector<64x64xf32>
    %84 = vector.extract_strided_slice %16 {offsets = [0, 48], sizes = [64, 16], strides = [1, 1]} : vector<64x192xbf16> to vector<64x16xbf16>
    %85 = vector.extract_strided_slice %16 {offsets = [0, 112], sizes = [64, 16], strides = [1, 1]} : vector<64x192xbf16> to vector<64x16xbf16>
    %86 = vector.extract_strided_slice %16 {offsets = [0, 176], sizes = [64, 16], strides = [1, 1]} : vector<64x192xbf16> to vector<64x16xbf16>
    %cst_38 = arith.constant dense<0.000000e+00> : vector<64x64xf32>
    %87 = tpu.matmul %84, %85, %cst_38 {dimension_numbers = #tpu.dot_dimension_numbers<[1], [1], [0], [0], [0, 0, 1, 0], [], []>} : vector<64x16xbf16>, vector<64x16xbf16>, vector<64x64xf32> -> vector<64x64xf32>
    %c0_39 = arith.constant 0 : index
    %c0_40 = arith.constant 0 : index
    %88 = vector.load %arg3[%c0_39, %c0_40] : memref<64x64xf32, #tpu.memory_space<vmem>>, vector<64x64xf32>
    %89 = arith.addf %87, %88 : vector<64x64xf32>
    %cst_41 = arith.constant dense<0xFF800000> : vector<64xf32>
    %90 = vector.multi_reduction <maximumf>, %89, %cst_41 [1] : vector<64x64xf32> to vector<64xf32>
    %91 = vector.shape_cast %90 : vector<64xf32> to vector<64x1xf32>
    %92 = vector.broadcast %91 : vector<64x1xf32> to vector<64x64xf32>
    %93 = arith.subf %89, %92 : vector<64x64xf32>
    %94 = math.exp %93 : vector<64x64xf32>
    %cst_42 = arith.constant dense<0.000000e+00> : vector<64xf32>
    %95 = vector.multi_reduction <add>, %94, %cst_42 [1] : vector<64x64xf32> to vector<64xf32>
    %96 = vector.shape_cast %95 : vector<64xf32> to vector<64x1xf32>
    %97 = tpu.reciprocal %96 {approx = true} : vector<64x1xf32> -> vector<64x1xf32>
    %98 = vector.broadcast %97 : vector<64x1xf32> to vector<64x64xf32>
    %99 = arith.mulf %94, %98 : vector<64x64xf32>
    %100 = arith.truncf %99 : vector<64x64xf32> to vector<64x64xbf16>
    %cst_43 = arith.constant dense<0.000000e+00> : vector<64x16xf32>
    %101 = tpu.matmul %100, %86, %cst_43 {dimension_numbers = #tpu.dot_dimension_numbers<[1], [0], [0], [1], [0, 0, 1, 1], [], []>} : vector<64x64xbf16>, vector<64x16xbf16>, vector<64x16xf32> -> vector<64x16xf32>
    %102 = arith.truncf %101 : vector<64x16xf32> to vector<64x16xbf16>
    %103 = vector.extract_strided_slice %18 {offsets = [48, 0], sizes = [16, 64], strides = [1, 1]} : vector<64x64xbf16> to vector<16x64xbf16>
    %cst_44 = arith.constant dense<0.000000e+00> : vector<64x64xf32>
    %104 = tpu.matmul %102, %103, %cst_44 {dimension_numbers = #tpu.dot_dimension_numbers<[1], [0], [0], [1], [0, 0, 1, 1], [], []>} : vector<64x16xbf16>, vector<16x64xbf16>, vector<64x64xf32> -> vector<64x64xf32>
    %105 = arith.addf %83, %104 : vector<64x64xf32>
    %c0_45 = arith.constant 0 : index
    %c0_46 = arith.constant 0 : index
    %c0_47 = arith.constant 0 : index
    %106 = vector.load %arg9[%c0_45, %c0_46, %c0_47] : memref<3x1x64xf32, #tpu.memory_space<vmem>>, vector<1x1x64xf32>
    %107 = vector.shape_cast %106 : vector<1x1x64xf32> to vector<1x64xf32>
    %108 = vector.broadcast %107 : vector<1x64xf32> to vector<64x64xf32>
    %109 = arith.addf %105, %108 : vector<64x64xf32>
    %110 = arith.addf %7, %109 : vector<64x64xf32>
    %c0_48 = arith.constant 0 : index
    %c0_49 = arith.constant 0 : index
    %c0_50 = arith.constant 0 : index
    %111 = vector.load %arg10[%c0_48, %c0_49, %c0_50] : memref<3x1x64xf32, #tpu.memory_space<vmem>>, vector<1x1x64xf32>
    %112 = vector.shape_cast %111 : vector<1x1x64xf32> to vector<1x64xf32>
    %c0_51 = arith.constant 0 : index
    %c0_52 = arith.constant 0 : index
    %c0_53 = arith.constant 0 : index
    %113 = vector.load %arg11[%c0_51, %c0_52, %c0_53] : memref<3x1x64xf32, #tpu.memory_space<vmem>>, vector<1x1x64xf32>
    %114 = vector.shape_cast %113 : vector<1x1x64xf32> to vector<1x64xf32>
    %cst_54 = arith.constant dense<0.000000e+00> : vector<64xf32>
    %115 = vector.multi_reduction <add>, %110, %cst_54 [1] : vector<64x64xf32> to vector<64xf32>
    %116 = vector.shape_cast %115 : vector<64xf32> to vector<64x1xf32>
    %cst_55 = arith.constant 6.400000e+01 : f32
    %117 = vector.broadcast %cst_55 : f32 to vector<64x1xf32>
    %118 = arith.divf %116, %117 : vector<64x1xf32>
    %119 = vector.broadcast %118 : vector<64x1xf32> to vector<64x64xf32>
    %120 = arith.subf %110, %119 : vector<64x64xf32>
    %121 = arith.mulf %120, %120 : vector<64x64xf32>
    %cst_56 = arith.constant dense<0.000000e+00> : vector<64xf32>
    %122 = vector.multi_reduction <add>, %121, %cst_56 [1] : vector<64x64xf32> to vector<64xf32>
    %123 = vector.shape_cast %122 : vector<64xf32> to vector<64x1xf32>
    %cst_57 = arith.constant 6.400000e+01 : f32
    %124 = vector.broadcast %cst_57 : f32 to vector<64x1xf32>
    %125 = arith.divf %123, %124 : vector<64x1xf32>
    %126 = vector.broadcast %118 : vector<64x1xf32> to vector<64x64xf32>
    %127 = arith.subf %110, %126 : vector<64x64xf32>
    %cst_58 = arith.constant 9.99999974E-6 : f32
    %128 = vector.broadcast %cst_58 : f32 to vector<64x1xf32>
    %129 = arith.addf %125, %128 : vector<64x1xf32>
    %130 = math.rsqrt %129 : vector<64x1xf32>
    %131 = vector.broadcast %130 : vector<64x1xf32> to vector<64x64xf32>
    %132 = arith.mulf %127, %131 : vector<64x64xf32>
    %133 = vector.broadcast %112 : vector<1x64xf32> to vector<64x64xf32>
    %134 = arith.mulf %132, %133 : vector<64x64xf32>
    %135 = vector.broadcast %114 : vector<1x64xf32> to vector<64x64xf32>
    %136 = arith.addf %134, %135 : vector<64x64xf32>
    %c0_59 = arith.constant 0 : index
    %c0_60 = arith.constant 0 : index
    %c0_61 = arith.constant 0 : index
    %137 = vector.load %arg12[%c0_59, %c0_60, %c0_61] : memref<3x64x128xbf16, #tpu.memory_space<vmem>>, vector<1x64x128xbf16>
    %138 = vector.shape_cast %137 : vector<1x64x128xbf16> to vector<64x128xbf16>
    %139 = arith.truncf %136 : vector<64x64xf32> to vector<64x64xbf16>
    %cst_62 = arith.constant dense<0.000000e+00> : vector<64x128xf32>
    %140 = tpu.matmul %139, %138, %cst_62 {dimension_numbers = #tpu.dot_dimension_numbers<[1], [0], [0], [1], [0, 0, 1, 1], [], []>} : vector<64x64xbf16>, vector<64x128xbf16>, vector<64x128xf32> -> vector<64x128xf32>
    %c0_63 = arith.constant 0 : index
    %c0_64 = arith.constant 0 : index
    %c0_65 = arith.constant 0 : index
    %141 = vector.load %arg13[%c0_63, %c0_64, %c0_65] : memref<3x1x128xf32, #tpu.memory_space<vmem>>, vector<1x1x128xf32>
    %142 = vector.shape_cast %141 : vector<1x1x128xf32> to vector<1x128xf32>
    %143 = vector.broadcast %142 : vector<1x128xf32> to vector<64x128xf32>
    %144 = arith.addf %140, %143 : vector<64x128xf32>
    %cst_66 = arith.constant 0.000000e+00 : f32
    %145 = vector.broadcast %cst_66 : f32 to vector<64x128xf32>
    %146 = arith.maximumf %144, %145 : vector<64x128xf32>
    %c0_67 = arith.constant 0 : index
    %c0_68 = arith.constant 0 : index
    %c0_69 = arith.constant 0 : index
    %147 = vector.load %arg14[%c0_67, %c0_68, %c0_69] : memref<3x128x64xbf16, #tpu.memory_space<vmem>>, vector<1x128x64xbf16>
    %148 = vector.shape_cast %147 : vector<1x128x64xbf16> to vector<128x64xbf16>
    %149 = arith.truncf %146 : vector<64x128xf32> to vector<64x128xbf16>
    %cst_70 = arith.constant dense<0.000000e+00> : vector<64x64xf32>
    %150 = tpu.matmul %149, %148, %cst_70 {dimension_numbers = #tpu.dot_dimension_numbers<[1], [0], [0], [1], [0, 0, 1, 1], [], []>} : vector<64x128xbf16>, vector<128x64xbf16>, vector<64x64xf32> -> vector<64x64xf32>
    %c0_71 = arith.constant 0 : index
    %c0_72 = arith.constant 0 : index
    %c0_73 = arith.constant 0 : index
    %151 = vector.load %arg15[%c0_71, %c0_72, %c0_73] : memref<3x1x64xf32, #tpu.memory_space<vmem>>, vector<1x1x64xf32>
    %152 = vector.shape_cast %151 : vector<1x1x64xf32> to vector<1x64xf32>
    %153 = vector.broadcast %152 : vector<1x64xf32> to vector<64x64xf32>
    %154 = arith.addf %150, %153 : vector<64x64xf32>
    %155 = arith.addf %136, %154 : vector<64x64xf32>
    %c0_74 = arith.constant 0 : index
    %c0_75 = arith.constant 0 : index
    %c0_76 = arith.constant 0 : index
    %156 = vector.load %arg16[%c0_74, %c0_75, %c0_76] : memref<3x1x64xf32, #tpu.memory_space<vmem>>, vector<1x1x64xf32>
    %157 = vector.shape_cast %156 : vector<1x1x64xf32> to vector<1x64xf32>
    %c0_77 = arith.constant 0 : index
    %c0_78 = arith.constant 0 : index
    %c0_79 = arith.constant 0 : index
    %158 = vector.load %arg17[%c0_77, %c0_78, %c0_79] : memref<3x1x64xf32, #tpu.memory_space<vmem>>, vector<1x1x64xf32>
    %159 = vector.shape_cast %158 : vector<1x1x64xf32> to vector<1x64xf32>
    %cst_80 = arith.constant dense<0.000000e+00> : vector<64xf32>
    %160 = vector.multi_reduction <add>, %155, %cst_80 [1] : vector<64x64xf32> to vector<64xf32>
    %161 = vector.shape_cast %160 : vector<64xf32> to vector<64x1xf32>
    %cst_81 = arith.constant 6.400000e+01 : f32
    %162 = vector.broadcast %cst_81 : f32 to vector<64x1xf32>
    %163 = arith.divf %161, %162 : vector<64x1xf32>
    %164 = vector.broadcast %163 : vector<64x1xf32> to vector<64x64xf32>
    %165 = arith.subf %155, %164 : vector<64x64xf32>
    %166 = arith.mulf %165, %165 : vector<64x64xf32>
    %cst_82 = arith.constant dense<0.000000e+00> : vector<64xf32>
    %167 = vector.multi_reduction <add>, %166, %cst_82 [1] : vector<64x64xf32> to vector<64xf32>
    %168 = vector.shape_cast %167 : vector<64xf32> to vector<64x1xf32>
    %cst_83 = arith.constant 6.400000e+01 : f32
    %169 = vector.broadcast %cst_83 : f32 to vector<64x1xf32>
    %170 = arith.divf %168, %169 : vector<64x1xf32>
    %171 = vector.broadcast %163 : vector<64x1xf32> to vector<64x64xf32>
    %172 = arith.subf %155, %171 : vector<64x64xf32>
    %cst_84 = arith.constant 9.99999974E-6 : f32
    %173 = vector.broadcast %cst_84 : f32 to vector<64x1xf32>
    %174 = arith.addf %170, %173 : vector<64x1xf32>
    %175 = math.rsqrt %174 : vector<64x1xf32>
    %176 = vector.broadcast %175 : vector<64x1xf32> to vector<64x64xf32>
    %177 = arith.mulf %172, %176 : vector<64x64xf32>
    %178 = vector.broadcast %157 : vector<1x64xf32> to vector<64x64xf32>
    %179 = arith.mulf %177, %178 : vector<64x64xf32>
    %180 = vector.broadcast %159 : vector<1x64xf32> to vector<64x64xf32>
    %181 = arith.addf %179, %180 : vector<64x64xf32>
    %c1 = arith.constant 1 : index
    %c0_85 = arith.constant 0 : index
    %c0_86 = arith.constant 0 : index
    %182 = vector.load %arg6[%c1, %c0_85, %c0_86] : memref<3x64x192xbf16, #tpu.memory_space<vmem>>, vector<1x64x192xbf16>
    %183 = vector.shape_cast %182 : vector<1x64x192xbf16> to vector<64x192xbf16>
    %184 = arith.truncf %181 : vector<64x64xf32> to vector<64x64xbf16>
    %cst_87 = arith.constant dense<0.000000e+00> : vector<64x192xf32>
    %185 = tpu.matmul %184, %183, %cst_87 {dimension_numbers = #tpu.dot_dimension_numbers<[1], [0], [0], [1], [0, 0, 1, 1], [], []>} : vector<64x64xbf16>, vector<64x192xbf16>, vector<64x192xf32> -> vector<64x192xf32>
    %c1_88 = arith.constant 1 : index
    %c0_89 = arith.constant 0 : index
    %c0_90 = arith.constant 0 : index
    %186 = vector.load %arg7[%c1_88, %c0_89, %c0_90] : memref<3x1x192xf32, #tpu.memory_space<vmem>>, vector<1x1x192xf32>
    %187 = vector.shape_cast %186 : vector<1x1x192xf32> to vector<1x192xf32>
    %188 = vector.broadcast %187 : vector<1x192xf32> to vector<64x192xf32>
    %189 = arith.addf %185, %188 : vector<64x192xf32>
    %190 = arith.truncf %189 : vector<64x192xf32> to vector<64x192xbf16>
    %c1_91 = arith.constant 1 : index
    %c0_92 = arith.constant 0 : index
    %c0_93 = arith.constant 0 : index
    %191 = vector.load %arg8[%c1_91, %c0_92, %c0_93] : memref<3x64x64xbf16, #tpu.memory_space<vmem>>, vector<1x64x64xbf16>
    %192 = vector.shape_cast %191 : vector<1x64x64xbf16> to vector<64x64xbf16>
    %193 = vector.extract_strided_slice %190 {offsets = [0, 0], sizes = [64, 16], strides = [1, 1]} : vector<64x192xbf16> to vector<64x16xbf16>
    %194 = vector.extract_strided_slice %190 {offsets = [0, 64], sizes = [64, 16], strides = [1, 1]} : vector<64x192xbf16> to vector<64x16xbf16>
    %195 = vector.extract_strided_slice %190 {offsets = [0, 128], sizes = [64, 16], strides = [1, 1]} : vector<64x192xbf16> to vector<64x16xbf16>
    %cst_94 = arith.constant dense<0.000000e+00> : vector<64x64xf32>
    %196 = tpu.matmul %193, %194, %cst_94 {dimension_numbers = #tpu.dot_dimension_numbers<[1], [1], [0], [0], [0, 0, 1, 0], [], []>} : vector<64x16xbf16>, vector<64x16xbf16>, vector<64x64xf32> -> vector<64x64xf32>
    %c0_95 = arith.constant 0 : index
    %c0_96 = arith.constant 0 : index
    %197 = vector.load %arg3[%c0_95, %c0_96] : memref<64x64xf32, #tpu.memory_space<vmem>>, vector<64x64xf32>
    %198 = arith.addf %196, %197 : vector<64x64xf32>
    %cst_97 = arith.constant dense<0xFF800000> : vector<64xf32>
    %199 = vector.multi_reduction <maximumf>, %198, %cst_97 [1] : vector<64x64xf32> to vector<64xf32>
    %200 = vector.shape_cast %199 : vector<64xf32> to vector<64x1xf32>
    %201 = vector.broadcast %200 : vector<64x1xf32> to vector<64x64xf32>
    %202 = arith.subf %198, %201 : vector<64x64xf32>
    %203 = math.exp %202 : vector<64x64xf32>
    %cst_98 = arith.constant dense<0.000000e+00> : vector<64xf32>
    %204 = vector.multi_reduction <add>, %203, %cst_98 [1] : vector<64x64xf32> to vector<64xf32>
    %205 = vector.shape_cast %204 : vector<64xf32> to vector<64x1xf32>
    %206 = tpu.reciprocal %205 {approx = true} : vector<64x1xf32> -> vector<64x1xf32>
    %207 = vector.broadcast %206 : vector<64x1xf32> to vector<64x64xf32>
    %208 = arith.mulf %203, %207 : vector<64x64xf32>
    %209 = arith.truncf %208 : vector<64x64xf32> to vector<64x64xbf16>
    %cst_99 = arith.constant dense<0.000000e+00> : vector<64x16xf32>
    %210 = tpu.matmul %209, %195, %cst_99 {dimension_numbers = #tpu.dot_dimension_numbers<[1], [0], [0], [1], [0, 0, 1, 1], [], []>} : vector<64x64xbf16>, vector<64x16xbf16>, vector<64x16xf32> -> vector<64x16xf32>
    %211 = arith.truncf %210 : vector<64x16xf32> to vector<64x16xbf16>
    %212 = vector.extract_strided_slice %192 {offsets = [0, 0], sizes = [16, 64], strides = [1, 1]} : vector<64x64xbf16> to vector<16x64xbf16>
    %cst_100 = arith.constant dense<0.000000e+00> : vector<64x64xf32>
    %213 = tpu.matmul %211, %212, %cst_100 {dimension_numbers = #tpu.dot_dimension_numbers<[1], [0], [0], [1], [0, 0, 1, 1], [], []>} : vector<64x16xbf16>, vector<16x64xbf16>, vector<64x64xf32> -> vector<64x64xf32>
    %214 = vector.extract_strided_slice %190 {offsets = [0, 16], sizes = [64, 16], strides = [1, 1]} : vector<64x192xbf16> to vector<64x16xbf16>
    %215 = vector.extract_strided_slice %190 {offsets = [0, 80], sizes = [64, 16], strides = [1, 1]} : vector<64x192xbf16> to vector<64x16xbf16>
    %216 = vector.extract_strided_slice %190 {offsets = [0, 144], sizes = [64, 16], strides = [1, 1]} : vector<64x192xbf16> to vector<64x16xbf16>
    %cst_101 = arith.constant dense<0.000000e+00> : vector<64x64xf32>
    %217 = tpu.matmul %214, %215, %cst_101 {dimension_numbers = #tpu.dot_dimension_numbers<[1], [1], [0], [0], [0, 0, 1, 0], [], []>} : vector<64x16xbf16>, vector<64x16xbf16>, vector<64x64xf32> -> vector<64x64xf32>
    %c0_102 = arith.constant 0 : index
    %c0_103 = arith.constant 0 : index
    %218 = vector.load %arg3[%c0_102, %c0_103] : memref<64x64xf32, #tpu.memory_space<vmem>>, vector<64x64xf32>
    %219 = arith.addf %217, %218 : vector<64x64xf32>
    %cst_104 = arith.constant dense<0xFF800000> : vector<64xf32>
    %220 = vector.multi_reduction <maximumf>, %219, %cst_104 [1] : vector<64x64xf32> to vector<64xf32>
    %221 = vector.shape_cast %220 : vector<64xf32> to vector<64x1xf32>
    %222 = vector.broadcast %221 : vector<64x1xf32> to vector<64x64xf32>
    %223 = arith.subf %219, %222 : vector<64x64xf32>
    %224 = math.exp %223 : vector<64x64xf32>
    %cst_105 = arith.constant dense<0.000000e+00> : vector<64xf32>
    %225 = vector.multi_reduction <add>, %224, %cst_105 [1] : vector<64x64xf32> to vector<64xf32>
    %226 = vector.shape_cast %225 : vector<64xf32> to vector<64x1xf32>
    %227 = tpu.reciprocal %226 {approx = true} : vector<64x1xf32> -> vector<64x1xf32>
    %228 = vector.broadcast %227 : vector<64x1xf32> to vector<64x64xf32>
    %229 = arith.mulf %224, %228 : vector<64x64xf32>
    %230 = arith.truncf %229 : vector<64x64xf32> to vector<64x64xbf16>
    %cst_106 = arith.constant dense<0.000000e+00> : vector<64x16xf32>
    %231 = tpu.matmul %230, %216, %cst_106 {dimension_numbers = #tpu.dot_dimension_numbers<[1], [0], [0], [1], [0, 0, 1, 1], [], []>} : vector<64x64xbf16>, vector<64x16xbf16>, vector<64x16xf32> -> vector<64x16xf32>
    %232 = arith.truncf %231 : vector<64x16xf32> to vector<64x16xbf16>
    %233 = vector.extract_strided_slice %192 {offsets = [16, 0], sizes = [16, 64], strides = [1, 1]} : vector<64x64xbf16> to vector<16x64xbf16>
    %cst_107 = arith.constant dense<0.000000e+00> : vector<64x64xf32>
    %234 = tpu.matmul %232, %233, %cst_107 {dimension_numbers = #tpu.dot_dimension_numbers<[1], [0], [0], [1], [0, 0, 1, 1], [], []>} : vector<64x16xbf16>, vector<16x64xbf16>, vector<64x64xf32> -> vector<64x64xf32>
    %235 = arith.addf %213, %234 : vector<64x64xf32>
    %236 = vector.extract_strided_slice %190 {offsets = [0, 32], sizes = [64, 16], strides = [1, 1]} : vector<64x192xbf16> to vector<64x16xbf16>
    %237 = vector.extract_strided_slice %190 {offsets = [0, 96], sizes = [64, 16], strides = [1, 1]} : vector<64x192xbf16> to vector<64x16xbf16>
    %238 = vector.extract_strided_slice %190 {offsets = [0, 160], sizes = [64, 16], strides = [1, 1]} : vector<64x192xbf16> to vector<64x16xbf16>
    %cst_108 = arith.constant dense<0.000000e+00> : vector<64x64xf32>
    %239 = tpu.matmul %236, %237, %cst_108 {dimension_numbers = #tpu.dot_dimension_numbers<[1], [1], [0], [0], [0, 0, 1, 0], [], []>} : vector<64x16xbf16>, vector<64x16xbf16>, vector<64x64xf32> -> vector<64x64xf32>
    %c0_109 = arith.constant 0 : index
    %c0_110 = arith.constant 0 : index
    %240 = vector.load %arg3[%c0_109, %c0_110] : memref<64x64xf32, #tpu.memory_space<vmem>>, vector<64x64xf32>
    %241 = arith.addf %239, %240 : vector<64x64xf32>
    %cst_111 = arith.constant dense<0xFF800000> : vector<64xf32>
    %242 = vector.multi_reduction <maximumf>, %241, %cst_111 [1] : vector<64x64xf32> to vector<64xf32>
    %243 = vector.shape_cast %242 : vector<64xf32> to vector<64x1xf32>
    %244 = vector.broadcast %243 : vector<64x1xf32> to vector<64x64xf32>
    %245 = arith.subf %241, %244 : vector<64x64xf32>
    %246 = math.exp %245 : vector<64x64xf32>
    %cst_112 = arith.constant dense<0.000000e+00> : vector<64xf32>
    %247 = vector.multi_reduction <add>, %246, %cst_112 [1] : vector<64x64xf32> to vector<64xf32>
    %248 = vector.shape_cast %247 : vector<64xf32> to vector<64x1xf32>
    %249 = tpu.reciprocal %248 {approx = true} : vector<64x1xf32> -> vector<64x1xf32>
    %250 = vector.broadcast %249 : vector<64x1xf32> to vector<64x64xf32>
    %251 = arith.mulf %246, %250 : vector<64x64xf32>
    %252 = arith.truncf %251 : vector<64x64xf32> to vector<64x64xbf16>
    %cst_113 = arith.constant dense<0.000000e+00> : vector<64x16xf32>
    %253 = tpu.matmul %252, %238, %cst_113 {dimension_numbers = #tpu.dot_dimension_numbers<[1], [0], [0], [1], [0, 0, 1, 1], [], []>} : vector<64x64xbf16>, vector<64x16xbf16>, vector<64x16xf32> -> vector<64x16xf32>
    %254 = arith.truncf %253 : vector<64x16xf32> to vector<64x16xbf16>
    %255 = vector.extract_strided_slice %192 {offsets = [32, 0], sizes = [16, 64], strides = [1, 1]} : vector<64x64xbf16> to vector<16x64xbf16>
    %cst_114 = arith.constant dense<0.000000e+00> : vector<64x64xf32>
    %256 = tpu.matmul %254, %255, %cst_114 {dimension_numbers = #tpu.dot_dimension_numbers<[1], [0], [0], [1], [0, 0, 1, 1], [], []>} : vector<64x16xbf16>, vector<16x64xbf16>, vector<64x64xf32> -> vector<64x64xf32>
    %257 = arith.addf %235, %256 : vector<64x64xf32>
    %258 = vector.extract_strided_slice %190 {offsets = [0, 48], sizes = [64, 16], strides = [1, 1]} : vector<64x192xbf16> to vector<64x16xbf16>
    %259 = vector.extract_strided_slice %190 {offsets = [0, 112], sizes = [64, 16], strides = [1, 1]} : vector<64x192xbf16> to vector<64x16xbf16>
    %260 = vector.extract_strided_slice %190 {offsets = [0, 176], sizes = [64, 16], strides = [1, 1]} : vector<64x192xbf16> to vector<64x16xbf16>
    %cst_115 = arith.constant dense<0.000000e+00> : vector<64x64xf32>
    %261 = tpu.matmul %258, %259, %cst_115 {dimension_numbers = #tpu.dot_dimension_numbers<[1], [1], [0], [0], [0, 0, 1, 0], [], []>} : vector<64x16xbf16>, vector<64x16xbf16>, vector<64x64xf32> -> vector<64x64xf32>
    %c0_116 = arith.constant 0 : index
    %c0_117 = arith.constant 0 : index
    %262 = vector.load %arg3[%c0_116, %c0_117] : memref<64x64xf32, #tpu.memory_space<vmem>>, vector<64x64xf32>
    %263 = arith.addf %261, %262 : vector<64x64xf32>
    %cst_118 = arith.constant dense<0xFF800000> : vector<64xf32>
    %264 = vector.multi_reduction <maximumf>, %263, %cst_118 [1] : vector<64x64xf32> to vector<64xf32>
    %265 = vector.shape_cast %264 : vector<64xf32> to vector<64x1xf32>
    %266 = vector.broadcast %265 : vector<64x1xf32> to vector<64x64xf32>
    %267 = arith.subf %263, %266 : vector<64x64xf32>
    %268 = math.exp %267 : vector<64x64xf32>
    %cst_119 = arith.constant dense<0.000000e+00> : vector<64xf32>
    %269 = vector.multi_reduction <add>, %268, %cst_119 [1] : vector<64x64xf32> to vector<64xf32>
    %270 = vector.shape_cast %269 : vector<64xf32> to vector<64x1xf32>
    %271 = tpu.reciprocal %270 {approx = true} : vector<64x1xf32> -> vector<64x1xf32>
    %272 = vector.broadcast %271 : vector<64x1xf32> to vector<64x64xf32>
    %273 = arith.mulf %268, %272 : vector<64x64xf32>
    %274 = arith.truncf %273 : vector<64x64xf32> to vector<64x64xbf16>
    %cst_120 = arith.constant dense<0.000000e+00> : vector<64x16xf32>
    %275 = tpu.matmul %274, %260, %cst_120 {dimension_numbers = #tpu.dot_dimension_numbers<[1], [0], [0], [1], [0, 0, 1, 1], [], []>} : vector<64x64xbf16>, vector<64x16xbf16>, vector<64x16xf32> -> vector<64x16xf32>
    %276 = arith.truncf %275 : vector<64x16xf32> to vector<64x16xbf16>
    %277 = vector.extract_strided_slice %192 {offsets = [48, 0], sizes = [16, 64], strides = [1, 1]} : vector<64x64xbf16> to vector<16x64xbf16>
    %cst_121 = arith.constant dense<0.000000e+00> : vector<64x64xf32>
    %278 = tpu.matmul %276, %277, %cst_121 {dimension_numbers = #tpu.dot_dimension_numbers<[1], [0], [0], [1], [0, 0, 1, 1], [], []>} : vector<64x16xbf16>, vector<16x64xbf16>, vector<64x64xf32> -> vector<64x64xf32>
    %279 = arith.addf %257, %278 : vector<64x64xf32>
    %c1_122 = arith.constant 1 : index
    %c0_123 = arith.constant 0 : index
    %c0_124 = arith.constant 0 : index
    %280 = vector.load %arg9[%c1_122, %c0_123, %c0_124] : memref<3x1x64xf32, #tpu.memory_space<vmem>>, vector<1x1x64xf32>
    %281 = vector.shape_cast %280 : vector<1x1x64xf32> to vector<1x64xf32>
    %282 = vector.broadcast %281 : vector<1x64xf32> to vector<64x64xf32>
    %283 = arith.addf %279, %282 : vector<64x64xf32>
    %284 = arith.addf %181, %283 : vector<64x64xf32>
    %c1_125 = arith.constant 1 : index
    %c0_126 = arith.constant 0 : index
    %c0_127 = arith.constant 0 : index
    %285 = vector.load %arg10[%c1_125, %c0_126, %c0_127] : memref<3x1x64xf32, #tpu.memory_space<vmem>>, vector<1x1x64xf32>
    %286 = vector.shape_cast %285 : vector<1x1x64xf32> to vector<1x64xf32>
    %c1_128 = arith.constant 1 : index
    %c0_129 = arith.constant 0 : index
    %c0_130 = arith.constant 0 : index
    %287 = vector.load %arg11[%c1_128, %c0_129, %c0_130] : memref<3x1x64xf32, #tpu.memory_space<vmem>>, vector<1x1x64xf32>
    %288 = vector.shape_cast %287 : vector<1x1x64xf32> to vector<1x64xf32>
    %cst_131 = arith.constant dense<0.000000e+00> : vector<64xf32>
    %289 = vector.multi_reduction <add>, %284, %cst_131 [1] : vector<64x64xf32> to vector<64xf32>
    %290 = vector.shape_cast %289 : vector<64xf32> to vector<64x1xf32>
    %cst_132 = arith.constant 6.400000e+01 : f32
    %291 = vector.broadcast %cst_132 : f32 to vector<64x1xf32>
    %292 = arith.divf %290, %291 : vector<64x1xf32>
    %293 = vector.broadcast %292 : vector<64x1xf32> to vector<64x64xf32>
    %294 = arith.subf %284, %293 : vector<64x64xf32>
    %295 = arith.mulf %294, %294 : vector<64x64xf32>
    %cst_133 = arith.constant dense<0.000000e+00> : vector<64xf32>
    %296 = vector.multi_reduction <add>, %295, %cst_133 [1] : vector<64x64xf32> to vector<64xf32>
    %297 = vector.shape_cast %296 : vector<64xf32> to vector<64x1xf32>
    %cst_134 = arith.constant 6.400000e+01 : f32
    %298 = vector.broadcast %cst_134 : f32 to vector<64x1xf32>
    %299 = arith.divf %297, %298 : vector<64x1xf32>
    %300 = vector.broadcast %292 : vector<64x1xf32> to vector<64x64xf32>
    %301 = arith.subf %284, %300 : vector<64x64xf32>
    %cst_135 = arith.constant 9.99999974E-6 : f32
    %302 = vector.broadcast %cst_135 : f32 to vector<64x1xf32>
    %303 = arith.addf %299, %302 : vector<64x1xf32>
    %304 = math.rsqrt %303 : vector<64x1xf32>
    %305 = vector.broadcast %304 : vector<64x1xf32> to vector<64x64xf32>
    %306 = arith.mulf %301, %305 : vector<64x64xf32>
    %307 = vector.broadcast %286 : vector<1x64xf32> to vector<64x64xf32>
    %308 = arith.mulf %306, %307 : vector<64x64xf32>
    %309 = vector.broadcast %288 : vector<1x64xf32> to vector<64x64xf32>
    %310 = arith.addf %308, %309 : vector<64x64xf32>
    %c1_136 = arith.constant 1 : index
    %c0_137 = arith.constant 0 : index
    %c0_138 = arith.constant 0 : index
    %311 = vector.load %arg12[%c1_136, %c0_137, %c0_138] : memref<3x64x128xbf16, #tpu.memory_space<vmem>>, vector<1x64x128xbf16>
    %312 = vector.shape_cast %311 : vector<1x64x128xbf16> to vector<64x128xbf16>
    %313 = arith.truncf %310 : vector<64x64xf32> to vector<64x64xbf16>
    %cst_139 = arith.constant dense<0.000000e+00> : vector<64x128xf32>
    %314 = tpu.matmul %313, %312, %cst_139 {dimension_numbers = #tpu.dot_dimension_numbers<[1], [0], [0], [1], [0, 0, 1, 1], [], []>} : vector<64x64xbf16>, vector<64x128xbf16>, vector<64x128xf32> -> vector<64x128xf32>
    %c1_140 = arith.constant 1 : index
    %c0_141 = arith.constant 0 : index
    %c0_142 = arith.constant 0 : index
    %315 = vector.load %arg13[%c1_140, %c0_141, %c0_142] : memref<3x1x128xf32, #tpu.memory_space<vmem>>, vector<1x1x128xf32>
    %316 = vector.shape_cast %315 : vector<1x1x128xf32> to vector<1x128xf32>
    %317 = vector.broadcast %316 : vector<1x128xf32> to vector<64x128xf32>
    %318 = arith.addf %314, %317 : vector<64x128xf32>
    %cst_143 = arith.constant 0.000000e+00 : f32
    %319 = vector.broadcast %cst_143 : f32 to vector<64x128xf32>
    %320 = arith.maximumf %318, %319 : vector<64x128xf32>
    %c1_144 = arith.constant 1 : index
    %c0_145 = arith.constant 0 : index
    %c0_146 = arith.constant 0 : index
    %321 = vector.load %arg14[%c1_144, %c0_145, %c0_146] : memref<3x128x64xbf16, #tpu.memory_space<vmem>>, vector<1x128x64xbf16>
    %322 = vector.shape_cast %321 : vector<1x128x64xbf16> to vector<128x64xbf16>
    %323 = arith.truncf %320 : vector<64x128xf32> to vector<64x128xbf16>
    %cst_147 = arith.constant dense<0.000000e+00> : vector<64x64xf32>
    %324 = tpu.matmul %323, %322, %cst_147 {dimension_numbers = #tpu.dot_dimension_numbers<[1], [0], [0], [1], [0, 0, 1, 1], [], []>} : vector<64x128xbf16>, vector<128x64xbf16>, vector<64x64xf32> -> vector<64x64xf32>
    %c1_148 = arith.constant 1 : index
    %c0_149 = arith.constant 0 : index
    %c0_150 = arith.constant 0 : index
    %325 = vector.load %arg15[%c1_148, %c0_149, %c0_150] : memref<3x1x64xf32, #tpu.memory_space<vmem>>, vector<1x1x64xf32>
    %326 = vector.shape_cast %325 : vector<1x1x64xf32> to vector<1x64xf32>
    %327 = vector.broadcast %326 : vector<1x64xf32> to vector<64x64xf32>
    %328 = arith.addf %324, %327 : vector<64x64xf32>
    %329 = arith.addf %310, %328 : vector<64x64xf32>
    %c1_151 = arith.constant 1 : index
    %c0_152 = arith.constant 0 : index
    %c0_153 = arith.constant 0 : index
    %330 = vector.load %arg16[%c1_151, %c0_152, %c0_153] : memref<3x1x64xf32, #tpu.memory_space<vmem>>, vector<1x1x64xf32>
    %331 = vector.shape_cast %330 : vector<1x1x64xf32> to vector<1x64xf32>
    %c1_154 = arith.constant 1 : index
    %c0_155 = arith.constant 0 : index
    %c0_156 = arith.constant 0 : index
    %332 = vector.load %arg17[%c1_154, %c0_155, %c0_156] : memref<3x1x64xf32, #tpu.memory_space<vmem>>, vector<1x1x64xf32>
    %333 = vector.shape_cast %332 : vector<1x1x64xf32> to vector<1x64xf32>
    %cst_157 = arith.constant dense<0.000000e+00> : vector<64xf32>
    %334 = vector.multi_reduction <add>, %329, %cst_157 [1] : vector<64x64xf32> to vector<64xf32>
    %335 = vector.shape_cast %334 : vector<64xf32> to vector<64x1xf32>
    %cst_158 = arith.constant 6.400000e+01 : f32
    %336 = vector.broadcast %cst_158 : f32 to vector<64x1xf32>
    %337 = arith.divf %335, %336 : vector<64x1xf32>
    %338 = vector.broadcast %337 : vector<64x1xf32> to vector<64x64xf32>
    %339 = arith.subf %329, %338 : vector<64x64xf32>
    %340 = arith.mulf %339, %339 : vector<64x64xf32>
    %cst_159 = arith.constant dense<0.000000e+00> : vector<64xf32>
    %341 = vector.multi_reduction <add>, %340, %cst_159 [1] : vector<64x64xf32> to vector<64xf32>
    %342 = vector.shape_cast %341 : vector<64xf32> to vector<64x1xf32>
    %cst_160 = arith.constant 6.400000e+01 : f32
    %343 = vector.broadcast %cst_160 : f32 to vector<64x1xf32>
    %344 = arith.divf %342, %343 : vector<64x1xf32>
    %345 = vector.broadcast %337 : vector<64x1xf32> to vector<64x64xf32>
    %346 = arith.subf %329, %345 : vector<64x64xf32>
    %cst_161 = arith.constant 9.99999974E-6 : f32
    %347 = vector.broadcast %cst_161 : f32 to vector<64x1xf32>
    %348 = arith.addf %344, %347 : vector<64x1xf32>
    %349 = math.rsqrt %348 : vector<64x1xf32>
    %350 = vector.broadcast %349 : vector<64x1xf32> to vector<64x64xf32>
    %351 = arith.mulf %346, %350 : vector<64x64xf32>
    %352 = vector.broadcast %331 : vector<1x64xf32> to vector<64x64xf32>
    %353 = arith.mulf %351, %352 : vector<64x64xf32>
    %354 = vector.broadcast %333 : vector<1x64xf32> to vector<64x64xf32>
    %355 = arith.addf %353, %354 : vector<64x64xf32>
    %c2 = arith.constant 2 : index
    %c0_162 = arith.constant 0 : index
    %c0_163 = arith.constant 0 : index
    %356 = vector.load %arg6[%c2, %c0_162, %c0_163] : memref<3x64x192xbf16, #tpu.memory_space<vmem>>, vector<1x64x192xbf16>
    %357 = vector.shape_cast %356 : vector<1x64x192xbf16> to vector<64x192xbf16>
    %358 = arith.truncf %355 : vector<64x64xf32> to vector<64x64xbf16>
    %cst_164 = arith.constant dense<0.000000e+00> : vector<64x192xf32>
    %359 = tpu.matmul %358, %357, %cst_164 {dimension_numbers = #tpu.dot_dimension_numbers<[1], [0], [0], [1], [0, 0, 1, 1], [], []>} : vector<64x64xbf16>, vector<64x192xbf16>, vector<64x192xf32> -> vector<64x192xf32>
    %c2_165 = arith.constant 2 : index
    %c0_166 = arith.constant 0 : index
    %c0_167 = arith.constant 0 : index
    %360 = vector.load %arg7[%c2_165, %c0_166, %c0_167] : memref<3x1x192xf32, #tpu.memory_space<vmem>>, vector<1x1x192xf32>
    %361 = vector.shape_cast %360 : vector<1x1x192xf32> to vector<1x192xf32>
    %362 = vector.broadcast %361 : vector<1x192xf32> to vector<64x192xf32>
    %363 = arith.addf %359, %362 : vector<64x192xf32>
    %364 = arith.truncf %363 : vector<64x192xf32> to vector<64x192xbf16>
    %c2_168 = arith.constant 2 : index
    %c0_169 = arith.constant 0 : index
    %c0_170 = arith.constant 0 : index
    %365 = vector.load %arg8[%c2_168, %c0_169, %c0_170] : memref<3x64x64xbf16, #tpu.memory_space<vmem>>, vector<1x64x64xbf16>
    %366 = vector.shape_cast %365 : vector<1x64x64xbf16> to vector<64x64xbf16>
    %367 = vector.extract_strided_slice %364 {offsets = [0, 0], sizes = [64, 16], strides = [1, 1]} : vector<64x192xbf16> to vector<64x16xbf16>
    %368 = vector.extract_strided_slice %364 {offsets = [0, 64], sizes = [64, 16], strides = [1, 1]} : vector<64x192xbf16> to vector<64x16xbf16>
    %369 = vector.extract_strided_slice %364 {offsets = [0, 128], sizes = [64, 16], strides = [1, 1]} : vector<64x192xbf16> to vector<64x16xbf16>
    %cst_171 = arith.constant dense<0.000000e+00> : vector<64x64xf32>
    %370 = tpu.matmul %367, %368, %cst_171 {dimension_numbers = #tpu.dot_dimension_numbers<[1], [1], [0], [0], [0, 0, 1, 0], [], []>} : vector<64x16xbf16>, vector<64x16xbf16>, vector<64x64xf32> -> vector<64x64xf32>
    %c0_172 = arith.constant 0 : index
    %c0_173 = arith.constant 0 : index
    %371 = vector.load %arg3[%c0_172, %c0_173] : memref<64x64xf32, #tpu.memory_space<vmem>>, vector<64x64xf32>
    %372 = arith.addf %370, %371 : vector<64x64xf32>
    %cst_174 = arith.constant dense<0xFF800000> : vector<64xf32>
    %373 = vector.multi_reduction <maximumf>, %372, %cst_174 [1] : vector<64x64xf32> to vector<64xf32>
    %374 = vector.shape_cast %373 : vector<64xf32> to vector<64x1xf32>
    %375 = vector.broadcast %374 : vector<64x1xf32> to vector<64x64xf32>
    %376 = arith.subf %372, %375 : vector<64x64xf32>
    %377 = math.exp %376 : vector<64x64xf32>
    %cst_175 = arith.constant dense<0.000000e+00> : vector<64xf32>
    %378 = vector.multi_reduction <add>, %377, %cst_175 [1] : vector<64x64xf32> to vector<64xf32>
    %379 = vector.shape_cast %378 : vector<64xf32> to vector<64x1xf32>
    %380 = tpu.reciprocal %379 {approx = true} : vector<64x1xf32> -> vector<64x1xf32>
    %381 = vector.broadcast %380 : vector<64x1xf32> to vector<64x64xf32>
    %382 = arith.mulf %377, %381 : vector<64x64xf32>
    %383 = arith.truncf %382 : vector<64x64xf32> to vector<64x64xbf16>
    %cst_176 = arith.constant dense<0.000000e+00> : vector<64x16xf32>
    %384 = tpu.matmul %383, %369, %cst_176 {dimension_numbers = #tpu.dot_dimension_numbers<[1], [0], [0], [1], [0, 0, 1, 1], [], []>} : vector<64x64xbf16>, vector<64x16xbf16>, vector<64x16xf32> -> vector<64x16xf32>
    %385 = arith.truncf %384 : vector<64x16xf32> to vector<64x16xbf16>
    %386 = vector.extract_strided_slice %366 {offsets = [0, 0], sizes = [16, 64], strides = [1, 1]} : vector<64x64xbf16> to vector<16x64xbf16>
    %cst_177 = arith.constant dense<0.000000e+00> : vector<64x64xf32>
    %387 = tpu.matmul %385, %386, %cst_177 {dimension_numbers = #tpu.dot_dimension_numbers<[1], [0], [0], [1], [0, 0, 1, 1], [], []>} : vector<64x16xbf16>, vector<16x64xbf16>, vector<64x64xf32> -> vector<64x64xf32>
    %388 = vector.extract_strided_slice %364 {offsets = [0, 16], sizes = [64, 16], strides = [1, 1]} : vector<64x192xbf16> to vector<64x16xbf16>
    %389 = vector.extract_strided_slice %364 {offsets = [0, 80], sizes = [64, 16], strides = [1, 1]} : vector<64x192xbf16> to vector<64x16xbf16>
    %390 = vector.extract_strided_slice %364 {offsets = [0, 144], sizes = [64, 16], strides = [1, 1]} : vector<64x192xbf16> to vector<64x16xbf16>
    %cst_178 = arith.constant dense<0.000000e+00> : vector<64x64xf32>
    %391 = tpu.matmul %388, %389, %cst_178 {dimension_numbers = #tpu.dot_dimension_numbers<[1], [1], [0], [0], [0, 0, 1, 0], [], []>} : vector<64x16xbf16>, vector<64x16xbf16>, vector<64x64xf32> -> vector<64x64xf32>
    %c0_179 = arith.constant 0 : index
    %c0_180 = arith.constant 0 : index
    %392 = vector.load %arg3[%c0_179, %c0_180] : memref<64x64xf32, #tpu.memory_space<vmem>>, vector<64x64xf32>
    %393 = arith.addf %391, %392 : vector<64x64xf32>
    %cst_181 = arith.constant dense<0xFF800000> : vector<64xf32>
    %394 = vector.multi_reduction <maximumf>, %393, %cst_181 [1] : vector<64x64xf32> to vector<64xf32>
    %395 = vector.shape_cast %394 : vector<64xf32> to vector<64x1xf32>
    %396 = vector.broadcast %395 : vector<64x1xf32> to vector<64x64xf32>
    %397 = arith.subf %393, %396 : vector<64x64xf32>
    %398 = math.exp %397 : vector<64x64xf32>
    %cst_182 = arith.constant dense<0.000000e+00> : vector<64xf32>
    %399 = vector.multi_reduction <add>, %398, %cst_182 [1] : vector<64x64xf32> to vector<64xf32>
    %400 = vector.shape_cast %399 : vector<64xf32> to vector<64x1xf32>
    %401 = tpu.reciprocal %400 {approx = true} : vector<64x1xf32> -> vector<64x1xf32>
    %402 = vector.broadcast %401 : vector<64x1xf32> to vector<64x64xf32>
    %403 = arith.mulf %398, %402 : vector<64x64xf32>
    %404 = arith.truncf %403 : vector<64x64xf32> to vector<64x64xbf16>
    %cst_183 = arith.constant dense<0.000000e+00> : vector<64x16xf32>
    %405 = tpu.matmul %404, %390, %cst_183 {dimension_numbers = #tpu.dot_dimension_numbers<[1], [0], [0], [1], [0, 0, 1, 1], [], []>} : vector<64x64xbf16>, vector<64x16xbf16>, vector<64x16xf32> -> vector<64x16xf32>
    %406 = arith.truncf %405 : vector<64x16xf32> to vector<64x16xbf16>
    %407 = vector.extract_strided_slice %366 {offsets = [16, 0], sizes = [16, 64], strides = [1, 1]} : vector<64x64xbf16> to vector<16x64xbf16>
    %cst_184 = arith.constant dense<0.000000e+00> : vector<64x64xf32>
    %408 = tpu.matmul %406, %407, %cst_184 {dimension_numbers = #tpu.dot_dimension_numbers<[1], [0], [0], [1], [0, 0, 1, 1], [], []>} : vector<64x16xbf16>, vector<16x64xbf16>, vector<64x64xf32> -> vector<64x64xf32>
    %409 = arith.addf %387, %408 : vector<64x64xf32>
    %410 = vector.extract_strided_slice %364 {offsets = [0, 32], sizes = [64, 16], strides = [1, 1]} : vector<64x192xbf16> to vector<64x16xbf16>
    %411 = vector.extract_strided_slice %364 {offsets = [0, 96], sizes = [64, 16], strides = [1, 1]} : vector<64x192xbf16> to vector<64x16xbf16>
    %412 = vector.extract_strided_slice %364 {offsets = [0, 160], sizes = [64, 16], strides = [1, 1]} : vector<64x192xbf16> to vector<64x16xbf16>
    %cst_185 = arith.constant dense<0.000000e+00> : vector<64x64xf32>
    %413 = tpu.matmul %410, %411, %cst_185 {dimension_numbers = #tpu.dot_dimension_numbers<[1], [1], [0], [0], [0, 0, 1, 0], [], []>} : vector<64x16xbf16>, vector<64x16xbf16>, vector<64x64xf32> -> vector<64x64xf32>
    %c0_186 = arith.constant 0 : index
    %c0_187 = arith.constant 0 : index
    %414 = vector.load %arg3[%c0_186, %c0_187] : memref<64x64xf32, #tpu.memory_space<vmem>>, vector<64x64xf32>
    %415 = arith.addf %413, %414 : vector<64x64xf32>
    %cst_188 = arith.constant dense<0xFF800000> : vector<64xf32>
    %416 = vector.multi_reduction <maximumf>, %415, %cst_188 [1] : vector<64x64xf32> to vector<64xf32>
    %417 = vector.shape_cast %416 : vector<64xf32> to vector<64x1xf32>
    %418 = vector.broadcast %417 : vector<64x1xf32> to vector<64x64xf32>
    %419 = arith.subf %415, %418 : vector<64x64xf32>
    %420 = math.exp %419 : vector<64x64xf32>
    %cst_189 = arith.constant dense<0.000000e+00> : vector<64xf32>
    %421 = vector.multi_reduction <add>, %420, %cst_189 [1] : vector<64x64xf32> to vector<64xf32>
    %422 = vector.shape_cast %421 : vector<64xf32> to vector<64x1xf32>
    %423 = tpu.reciprocal %422 {approx = true} : vector<64x1xf32> -> vector<64x1xf32>
    %424 = vector.broadcast %423 : vector<64x1xf32> to vector<64x64xf32>
    %425 = arith.mulf %420, %424 : vector<64x64xf32>
    %426 = arith.truncf %425 : vector<64x64xf32> to vector<64x64xbf16>
    %cst_190 = arith.constant dense<0.000000e+00> : vector<64x16xf32>
    %427 = tpu.matmul %426, %412, %cst_190 {dimension_numbers = #tpu.dot_dimension_numbers<[1], [0], [0], [1], [0, 0, 1, 1], [], []>} : vector<64x64xbf16>, vector<64x16xbf16>, vector<64x16xf32> -> vector<64x16xf32>
    %428 = arith.truncf %427 : vector<64x16xf32> to vector<64x16xbf16>
    %429 = vector.extract_strided_slice %366 {offsets = [32, 0], sizes = [16, 64], strides = [1, 1]} : vector<64x64xbf16> to vector<16x64xbf16>
    %cst_191 = arith.constant dense<0.000000e+00> : vector<64x64xf32>
    %430 = tpu.matmul %428, %429, %cst_191 {dimension_numbers = #tpu.dot_dimension_numbers<[1], [0], [0], [1], [0, 0, 1, 1], [], []>} : vector<64x16xbf16>, vector<16x64xbf16>, vector<64x64xf32> -> vector<64x64xf32>
    %431 = arith.addf %409, %430 : vector<64x64xf32>
    %432 = vector.extract_strided_slice %364 {offsets = [0, 48], sizes = [64, 16], strides = [1, 1]} : vector<64x192xbf16> to vector<64x16xbf16>
    %433 = vector.extract_strided_slice %364 {offsets = [0, 112], sizes = [64, 16], strides = [1, 1]} : vector<64x192xbf16> to vector<64x16xbf16>
    %434 = vector.extract_strided_slice %364 {offsets = [0, 176], sizes = [64, 16], strides = [1, 1]} : vector<64x192xbf16> to vector<64x16xbf16>
    %cst_192 = arith.constant dense<0.000000e+00> : vector<64x64xf32>
    %435 = tpu.matmul %432, %433, %cst_192 {dimension_numbers = #tpu.dot_dimension_numbers<[1], [1], [0], [0], [0, 0, 1, 0], [], []>} : vector<64x16xbf16>, vector<64x16xbf16>, vector<64x64xf32> -> vector<64x64xf32>
    %c0_193 = arith.constant 0 : index
    %c0_194 = arith.constant 0 : index
    %436 = vector.load %arg3[%c0_193, %c0_194] : memref<64x64xf32, #tpu.memory_space<vmem>>, vector<64x64xf32>
    %437 = arith.addf %435, %436 : vector<64x64xf32>
    %cst_195 = arith.constant dense<0xFF800000> : vector<64xf32>
    %438 = vector.multi_reduction <maximumf>, %437, %cst_195 [1] : vector<64x64xf32> to vector<64xf32>
    %439 = vector.shape_cast %438 : vector<64xf32> to vector<64x1xf32>
    %440 = vector.broadcast %439 : vector<64x1xf32> to vector<64x64xf32>
    %441 = arith.subf %437, %440 : vector<64x64xf32>
    %442 = math.exp %441 : vector<64x64xf32>
    %cst_196 = arith.constant dense<0.000000e+00> : vector<64xf32>
    %443 = vector.multi_reduction <add>, %442, %cst_196 [1] : vector<64x64xf32> to vector<64xf32>
    %444 = vector.shape_cast %443 : vector<64xf32> to vector<64x1xf32>
    %445 = tpu.reciprocal %444 {approx = true} : vector<64x1xf32> -> vector<64x1xf32>
    %446 = vector.broadcast %445 : vector<64x1xf32> to vector<64x64xf32>
    %447 = arith.mulf %442, %446 : vector<64x64xf32>
    %448 = arith.truncf %447 : vector<64x64xf32> to vector<64x64xbf16>
    %cst_197 = arith.constant dense<0.000000e+00> : vector<64x16xf32>
    %449 = tpu.matmul %448, %434, %cst_197 {dimension_numbers = #tpu.dot_dimension_numbers<[1], [0], [0], [1], [0, 0, 1, 1], [], []>} : vector<64x64xbf16>, vector<64x16xbf16>, vector<64x16xf32> -> vector<64x16xf32>
    %450 = arith.truncf %449 : vector<64x16xf32> to vector<64x16xbf16>
    %451 = vector.extract_strided_slice %366 {offsets = [48, 0], sizes = [16, 64], strides = [1, 1]} : vector<64x64xbf16> to vector<16x64xbf16>
    %cst_198 = arith.constant dense<0.000000e+00> : vector<64x64xf32>
    %452 = tpu.matmul %450, %451, %cst_198 {dimension_numbers = #tpu.dot_dimension_numbers<[1], [0], [0], [1], [0, 0, 1, 1], [], []>} : vector<64x16xbf16>, vector<16x64xbf16>, vector<64x64xf32> -> vector<64x64xf32>
    %453 = arith.addf %431, %452 : vector<64x64xf32>
    %c2_199 = arith.constant 2 : index
    %c0_200 = arith.constant 0 : index
    %c0_201 = arith.constant 0 : index
    %454 = vector.load %arg9[%c2_199, %c0_200, %c0_201] : memref<3x1x64xf32, #tpu.memory_space<vmem>>, vector<1x1x64xf32>
    %455 = vector.shape_cast %454 : vector<1x1x64xf32> to vector<1x64xf32>
    %456 = vector.broadcast %455 : vector<1x64xf32> to vector<64x64xf32>
    %457 = arith.addf %453, %456 : vector<64x64xf32>
    %458 = arith.addf %355, %457 : vector<64x64xf32>
    %c2_202 = arith.constant 2 : index
    %c0_203 = arith.constant 0 : index
    %c0_204 = arith.constant 0 : index
    %459 = vector.load %arg10[%c2_202, %c0_203, %c0_204] : memref<3x1x64xf32, #tpu.memory_space<vmem>>, vector<1x1x64xf32>
    %460 = vector.shape_cast %459 : vector<1x1x64xf32> to vector<1x64xf32>
    %c2_205 = arith.constant 2 : index
    %c0_206 = arith.constant 0 : index
    %c0_207 = arith.constant 0 : index
    %461 = vector.load %arg11[%c2_205, %c0_206, %c0_207] : memref<3x1x64xf32, #tpu.memory_space<vmem>>, vector<1x1x64xf32>
    %462 = vector.shape_cast %461 : vector<1x1x64xf32> to vector<1x64xf32>
    %cst_208 = arith.constant dense<0.000000e+00> : vector<64xf32>
    %463 = vector.multi_reduction <add>, %458, %cst_208 [1] : vector<64x64xf32> to vector<64xf32>
    %464 = vector.shape_cast %463 : vector<64xf32> to vector<64x1xf32>
    %cst_209 = arith.constant 6.400000e+01 : f32
    %465 = vector.broadcast %cst_209 : f32 to vector<64x1xf32>
    %466 = arith.divf %464, %465 : vector<64x1xf32>
    %467 = vector.broadcast %466 : vector<64x1xf32> to vector<64x64xf32>
    %468 = arith.subf %458, %467 : vector<64x64xf32>
    %469 = arith.mulf %468, %468 : vector<64x64xf32>
    %cst_210 = arith.constant dense<0.000000e+00> : vector<64xf32>
    %470 = vector.multi_reduction <add>, %469, %cst_210 [1] : vector<64x64xf32> to vector<64xf32>
    %471 = vector.shape_cast %470 : vector<64xf32> to vector<64x1xf32>
    %cst_211 = arith.constant 6.400000e+01 : f32
    %472 = vector.broadcast %cst_211 : f32 to vector<64x1xf32>
    %473 = arith.divf %471, %472 : vector<64x1xf32>
    %474 = vector.broadcast %466 : vector<64x1xf32> to vector<64x64xf32>
    %475 = arith.subf %458, %474 : vector<64x64xf32>
    %cst_212 = arith.constant 9.99999974E-6 : f32
    %476 = vector.broadcast %cst_212 : f32 to vector<64x1xf32>
    %477 = arith.addf %473, %476 : vector<64x1xf32>
    %478 = math.rsqrt %477 : vector<64x1xf32>
    %479 = vector.broadcast %478 : vector<64x1xf32> to vector<64x64xf32>
    %480 = arith.mulf %475, %479 : vector<64x64xf32>
    %481 = vector.broadcast %460 : vector<1x64xf32> to vector<64x64xf32>
    %482 = arith.mulf %480, %481 : vector<64x64xf32>
    %483 = vector.broadcast %462 : vector<1x64xf32> to vector<64x64xf32>
    %484 = arith.addf %482, %483 : vector<64x64xf32>
    %c2_213 = arith.constant 2 : index
    %c0_214 = arith.constant 0 : index
    %c0_215 = arith.constant 0 : index
    %485 = vector.load %arg12[%c2_213, %c0_214, %c0_215] : memref<3x64x128xbf16, #tpu.memory_space<vmem>>, vector<1x64x128xbf16>
    %486 = vector.shape_cast %485 : vector<1x64x128xbf16> to vector<64x128xbf16>
    %487 = arith.truncf %484 : vector<64x64xf32> to vector<64x64xbf16>
    %cst_216 = arith.constant dense<0.000000e+00> : vector<64x128xf32>
    %488 = tpu.matmul %487, %486, %cst_216 {dimension_numbers = #tpu.dot_dimension_numbers<[1], [0], [0], [1], [0, 0, 1, 1], [], []>} : vector<64x64xbf16>, vector<64x128xbf16>, vector<64x128xf32> -> vector<64x128xf32>
    %c2_217 = arith.constant 2 : index
    %c0_218 = arith.constant 0 : index
    %c0_219 = arith.constant 0 : index
    %489 = vector.load %arg13[%c2_217, %c0_218, %c0_219] : memref<3x1x128xf32, #tpu.memory_space<vmem>>, vector<1x1x128xf32>
    %490 = vector.shape_cast %489 : vector<1x1x128xf32> to vector<1x128xf32>
    %491 = vector.broadcast %490 : vector<1x128xf32> to vector<64x128xf32>
    %492 = arith.addf %488, %491 : vector<64x128xf32>
    %cst_220 = arith.constant 0.000000e+00 : f32
    %493 = vector.broadcast %cst_220 : f32 to vector<64x128xf32>
    %494 = arith.maximumf %492, %493 : vector<64x128xf32>
    %c2_221 = arith.constant 2 : index
    %c0_222 = arith.constant 0 : index
    %c0_223 = arith.constant 0 : index
    %495 = vector.load %arg14[%c2_221, %c0_222, %c0_223] : memref<3x128x64xbf16, #tpu.memory_space<vmem>>, vector<1x128x64xbf16>
    %496 = vector.shape_cast %495 : vector<1x128x64xbf16> to vector<128x64xbf16>
    %497 = arith.truncf %494 : vector<64x128xf32> to vector<64x128xbf16>
    %cst_224 = arith.constant dense<0.000000e+00> : vector<64x64xf32>
    %498 = tpu.matmul %497, %496, %cst_224 {dimension_numbers = #tpu.dot_dimension_numbers<[1], [0], [0], [1], [0, 0, 1, 1], [], []>} : vector<64x128xbf16>, vector<128x64xbf16>, vector<64x64xf32> -> vector<64x64xf32>
    %c2_225 = arith.constant 2 : index
    %c0_226 = arith.constant 0 : index
    %c0_227 = arith.constant 0 : index
    %499 = vector.load %arg15[%c2_225, %c0_226, %c0_227] : memref<3x1x64xf32, #tpu.memory_space<vmem>>, vector<1x1x64xf32>
    %500 = vector.shape_cast %499 : vector<1x1x64xf32> to vector<1x64xf32>
    %501 = vector.broadcast %500 : vector<1x64xf32> to vector<64x64xf32>
    %502 = arith.addf %498, %501 : vector<64x64xf32>
    %503 = arith.addf %484, %502 : vector<64x64xf32>
    %c2_228 = arith.constant 2 : index
    %c0_229 = arith.constant 0 : index
    %c0_230 = arith.constant 0 : index
    %504 = vector.load %arg16[%c2_228, %c0_229, %c0_230] : memref<3x1x64xf32, #tpu.memory_space<vmem>>, vector<1x1x64xf32>
    %505 = vector.shape_cast %504 : vector<1x1x64xf32> to vector<1x64xf32>
    %c2_231 = arith.constant 2 : index
    %c0_232 = arith.constant 0 : index
    %c0_233 = arith.constant 0 : index
    %506 = vector.load %arg17[%c2_231, %c0_232, %c0_233] : memref<3x1x64xf32, #tpu.memory_space<vmem>>, vector<1x1x64xf32>
    %507 = vector.shape_cast %506 : vector<1x1x64xf32> to vector<1x64xf32>
    %cst_234 = arith.constant dense<0.000000e+00> : vector<64xf32>
    %508 = vector.multi_reduction <add>, %503, %cst_234 [1] : vector<64x64xf32> to vector<64xf32>
    %509 = vector.shape_cast %508 : vector<64xf32> to vector<64x1xf32>
    %cst_235 = arith.constant 6.400000e+01 : f32
    %510 = vector.broadcast %cst_235 : f32 to vector<64x1xf32>
    %511 = arith.divf %509, %510 : vector<64x1xf32>
    %512 = vector.broadcast %511 : vector<64x1xf32> to vector<64x64xf32>
    %513 = arith.subf %503, %512 : vector<64x64xf32>
    %514 = arith.mulf %513, %513 : vector<64x64xf32>
    %cst_236 = arith.constant dense<0.000000e+00> : vector<64xf32>
    %515 = vector.multi_reduction <add>, %514, %cst_236 [1] : vector<64x64xf32> to vector<64xf32>
    %516 = vector.shape_cast %515 : vector<64xf32> to vector<64x1xf32>
    %cst_237 = arith.constant 6.400000e+01 : f32
    %517 = vector.broadcast %cst_237 : f32 to vector<64x1xf32>
    %518 = arith.divf %516, %517 : vector<64x1xf32>
    %519 = vector.broadcast %511 : vector<64x1xf32> to vector<64x64xf32>
    %520 = arith.subf %503, %519 : vector<64x64xf32>
    %cst_238 = arith.constant 9.99999974E-6 : f32
    %521 = vector.broadcast %cst_238 : f32 to vector<64x1xf32>
    %522 = arith.addf %518, %521 : vector<64x1xf32>
    %523 = math.rsqrt %522 : vector<64x1xf32>
    %524 = vector.broadcast %523 : vector<64x1xf32> to vector<64x64xf32>
    %525 = arith.mulf %520, %524 : vector<64x64xf32>
    %526 = vector.broadcast %505 : vector<1x64xf32> to vector<64x64xf32>
    %527 = arith.mulf %525, %526 : vector<64x64xf32>
    %528 = vector.broadcast %507 : vector<1x64xf32> to vector<64x64xf32>
    %529 = arith.addf %527, %528 : vector<64x64xf32>
    %530 = arith.truncf %529 : vector<64x64xf32> to vector<64x64xbf16>
    %531 = tpu.iota {dimensions = array<i32: 0>} : vector<8x64xi32>
    %532 = tpu.iota {dimensions = array<i32: 1>} : vector<8x64xi32>
    %cst_239 = arith.constant 0.000000e+00 : f32
    %533 = vector.broadcast %cst_239 : f32 to vector<8x256xf32>
    %c8_i32 = arith.constant 8 : i32
    %534 = vector.broadcast %c8_i32 : i32 to vector<8x64xi32>
    %535 = arith.muli %531, %534 : vector<8x64xi32>
    %c0_i32 = arith.constant 0 : i32
    %536 = vector.broadcast %c0_i32 : i32 to vector<8x64xi32>
    %537 = arith.addi %535, %536 : vector<8x64xi32>
    %538 = arith.cmpi eq, %532, %537 : vector<8x64xi32>
    %539 = arith.extui %538 : vector<8x64xi1> to vector<8x64xi32>
    %540 = arith.sitofp %539 : vector<8x64xi32> to vector<8x64xf32>
    %541 = arith.truncf %540 : vector<8x64xf32> to vector<8x64xbf16>
    %cst_240 = arith.constant dense<0.000000e+00> : vector<8x64xf32>
    %542 = tpu.matmul %541, %530, %cst_240 {dimension_numbers = #tpu.dot_dimension_numbers<[1], [0], [0], [1], [0, 0, 1, 1], [], []>} : vector<8x64xbf16>, vector<64x64xbf16>, vector<8x64xf32> -> vector<8x64xf32>
    %c0_241 = arith.constant 0 : index
    %c0_242 = arith.constant 0 : index
    %c0_243 = arith.constant 0 : index
    %543 = vector.load %arg18[%c0_241, %c0_242, %c0_243] : memref<7x64x256xbf16, #tpu.memory_space<vmem>>, vector<1x64x256xbf16>
    %544 = vector.shape_cast %543 : vector<1x64x256xbf16> to vector<64x256xbf16>
    %545 = arith.truncf %542 : vector<8x64xf32> to vector<8x64xbf16>
    %cst_244 = arith.constant dense<0.000000e+00> : vector<8x256xf32>
    %546 = tpu.matmul %545, %544, %cst_244 {dimension_numbers = #tpu.dot_dimension_numbers<[1], [0], [0], [1], [0, 0, 1, 1], [], []>} : vector<8x64xbf16>, vector<64x256xbf16>, vector<8x256xf32> -> vector<8x256xf32>
    %547 = arith.addf %533, %546 : vector<8x256xf32>
    %c8_i32_245 = arith.constant 8 : i32
    %548 = vector.broadcast %c8_i32_245 : i32 to vector<8x64xi32>
    %549 = arith.muli %531, %548 : vector<8x64xi32>
    %c1_i32 = arith.constant 1 : i32
    %550 = vector.broadcast %c1_i32 : i32 to vector<8x64xi32>
    %551 = arith.addi %549, %550 : vector<8x64xi32>
    %552 = arith.cmpi eq, %532, %551 : vector<8x64xi32>
    %553 = arith.extui %552 : vector<8x64xi1> to vector<8x64xi32>
    %554 = arith.sitofp %553 : vector<8x64xi32> to vector<8x64xf32>
    %555 = arith.truncf %554 : vector<8x64xf32> to vector<8x64xbf16>
    %cst_246 = arith.constant dense<0.000000e+00> : vector<8x64xf32>
    %556 = tpu.matmul %555, %530, %cst_246 {dimension_numbers = #tpu.dot_dimension_numbers<[1], [0], [0], [1], [0, 0, 1, 1], [], []>} : vector<8x64xbf16>, vector<64x64xbf16>, vector<8x64xf32> -> vector<8x64xf32>
    %c1_247 = arith.constant 1 : index
    %c0_248 = arith.constant 0 : index
    %c0_249 = arith.constant 0 : index
    %557 = vector.load %arg18[%c1_247, %c0_248, %c0_249] : memref<7x64x256xbf16, #tpu.memory_space<vmem>>, vector<1x64x256xbf16>
    %558 = vector.shape_cast %557 : vector<1x64x256xbf16> to vector<64x256xbf16>
    %559 = arith.truncf %556 : vector<8x64xf32> to vector<8x64xbf16>
    %cst_250 = arith.constant dense<0.000000e+00> : vector<8x256xf32>
    %560 = tpu.matmul %559, %558, %cst_250 {dimension_numbers = #tpu.dot_dimension_numbers<[1], [0], [0], [1], [0, 0, 1, 1], [], []>} : vector<8x64xbf16>, vector<64x256xbf16>, vector<8x256xf32> -> vector<8x256xf32>
    %561 = arith.addf %547, %560 : vector<8x256xf32>
    %c8_i32_251 = arith.constant 8 : i32
    %562 = vector.broadcast %c8_i32_251 : i32 to vector<8x64xi32>
    %563 = arith.muli %531, %562 : vector<8x64xi32>
    %c2_i32 = arith.constant 2 : i32
    %564 = vector.broadcast %c2_i32 : i32 to vector<8x64xi32>
    %565 = arith.addi %563, %564 : vector<8x64xi32>
    %566 = arith.cmpi eq, %532, %565 : vector<8x64xi32>
    %567 = arith.extui %566 : vector<8x64xi1> to vector<8x64xi32>
    %568 = arith.sitofp %567 : vector<8x64xi32> to vector<8x64xf32>
    %569 = arith.truncf %568 : vector<8x64xf32> to vector<8x64xbf16>
    %cst_252 = arith.constant dense<0.000000e+00> : vector<8x64xf32>
    %570 = tpu.matmul %569, %530, %cst_252 {dimension_numbers = #tpu.dot_dimension_numbers<[1], [0], [0], [1], [0, 0, 1, 1], [], []>} : vector<8x64xbf16>, vector<64x64xbf16>, vector<8x64xf32> -> vector<8x64xf32>
    %c2_253 = arith.constant 2 : index
    %c0_254 = arith.constant 0 : index
    %c0_255 = arith.constant 0 : index
    %571 = vector.load %arg18[%c2_253, %c0_254, %c0_255] : memref<7x64x256xbf16, #tpu.memory_space<vmem>>, vector<1x64x256xbf16>
    %572 = vector.shape_cast %571 : vector<1x64x256xbf16> to vector<64x256xbf16>
    %573 = arith.truncf %570 : vector<8x64xf32> to vector<8x64xbf16>
    %cst_256 = arith.constant dense<0.000000e+00> : vector<8x256xf32>
    %574 = tpu.matmul %573, %572, %cst_256 {dimension_numbers = #tpu.dot_dimension_numbers<[1], [0], [0], [1], [0, 0, 1, 1], [], []>} : vector<8x64xbf16>, vector<64x256xbf16>, vector<8x256xf32> -> vector<8x256xf32>
    %575 = arith.addf %561, %574 : vector<8x256xf32>
    %c8_i32_257 = arith.constant 8 : i32
    %576 = vector.broadcast %c8_i32_257 : i32 to vector<8x64xi32>
    %577 = arith.muli %531, %576 : vector<8x64xi32>
    %c3_i32 = arith.constant 3 : i32
    %578 = vector.broadcast %c3_i32 : i32 to vector<8x64xi32>
    %579 = arith.addi %577, %578 : vector<8x64xi32>
    %580 = arith.cmpi eq, %532, %579 : vector<8x64xi32>
    %581 = arith.extui %580 : vector<8x64xi1> to vector<8x64xi32>
    %582 = arith.sitofp %581 : vector<8x64xi32> to vector<8x64xf32>
    %583 = arith.truncf %582 : vector<8x64xf32> to vector<8x64xbf16>
    %cst_258 = arith.constant dense<0.000000e+00> : vector<8x64xf32>
    %584 = tpu.matmul %583, %530, %cst_258 {dimension_numbers = #tpu.dot_dimension_numbers<[1], [0], [0], [1], [0, 0, 1, 1], [], []>} : vector<8x64xbf16>, vector<64x64xbf16>, vector<8x64xf32> -> vector<8x64xf32>
    %c3 = arith.constant 3 : index
    %c0_259 = arith.constant 0 : index
    %c0_260 = arith.constant 0 : index
    %585 = vector.load %arg18[%c3, %c0_259, %c0_260] : memref<7x64x256xbf16, #tpu.memory_space<vmem>>, vector<1x64x256xbf16>
    %586 = vector.shape_cast %585 : vector<1x64x256xbf16> to vector<64x256xbf16>
    %587 = arith.truncf %584 : vector<8x64xf32> to vector<8x64xbf16>
    %cst_261 = arith.constant dense<0.000000e+00> : vector<8x256xf32>
    %588 = tpu.matmul %587, %586, %cst_261 {dimension_numbers = #tpu.dot_dimension_numbers<[1], [0], [0], [1], [0, 0, 1, 1], [], []>} : vector<8x64xbf16>, vector<64x256xbf16>, vector<8x256xf32> -> vector<8x256xf32>
    %589 = arith.addf %575, %588 : vector<8x256xf32>
    %c8_i32_262 = arith.constant 8 : i32
    %590 = vector.broadcast %c8_i32_262 : i32 to vector<8x64xi32>
    %591 = arith.muli %531, %590 : vector<8x64xi32>
    %c4_i32 = arith.constant 4 : i32
    %592 = vector.broadcast %c4_i32 : i32 to vector<8x64xi32>
    %593 = arith.addi %591, %592 : vector<8x64xi32>
    %594 = arith.cmpi eq, %532, %593 : vector<8x64xi32>
    %595 = arith.extui %594 : vector<8x64xi1> to vector<8x64xi32>
    %596 = arith.sitofp %595 : vector<8x64xi32> to vector<8x64xf32>
    %597 = arith.truncf %596 : vector<8x64xf32> to vector<8x64xbf16>
    %cst_263 = arith.constant dense<0.000000e+00> : vector<8x64xf32>
    %598 = tpu.matmul %597, %530, %cst_263 {dimension_numbers = #tpu.dot_dimension_numbers<[1], [0], [0], [1], [0, 0, 1, 1], [], []>} : vector<8x64xbf16>, vector<64x64xbf16>, vector<8x64xf32> -> vector<8x64xf32>
    %c4 = arith.constant 4 : index
    %c0_264 = arith.constant 0 : index
    %c0_265 = arith.constant 0 : index
    %599 = vector.load %arg18[%c4, %c0_264, %c0_265] : memref<7x64x256xbf16, #tpu.memory_space<vmem>>, vector<1x64x256xbf16>
    %600 = vector.shape_cast %599 : vector<1x64x256xbf16> to vector<64x256xbf16>
    %601 = arith.truncf %598 : vector<8x64xf32> to vector<8x64xbf16>
    %cst_266 = arith.constant dense<0.000000e+00> : vector<8x256xf32>
    %602 = tpu.matmul %601, %600, %cst_266 {dimension_numbers = #tpu.dot_dimension_numbers<[1], [0], [0], [1], [0, 0, 1, 1], [], []>} : vector<8x64xbf16>, vector<64x256xbf16>, vector<8x256xf32> -> vector<8x256xf32>
    %603 = arith.addf %589, %602 : vector<8x256xf32>
    %c8_i32_267 = arith.constant 8 : i32
    %604 = vector.broadcast %c8_i32_267 : i32 to vector<8x64xi32>
    %605 = arith.muli %531, %604 : vector<8x64xi32>
    %c5_i32 = arith.constant 5 : i32
    %606 = vector.broadcast %c5_i32 : i32 to vector<8x64xi32>
    %607 = arith.addi %605, %606 : vector<8x64xi32>
    %608 = arith.cmpi eq, %532, %607 : vector<8x64xi32>
    %609 = arith.extui %608 : vector<8x64xi1> to vector<8x64xi32>
    %610 = arith.sitofp %609 : vector<8x64xi32> to vector<8x64xf32>
    %611 = arith.truncf %610 : vector<8x64xf32> to vector<8x64xbf16>
    %cst_268 = arith.constant dense<0.000000e+00> : vector<8x64xf32>
    %612 = tpu.matmul %611, %530, %cst_268 {dimension_numbers = #tpu.dot_dimension_numbers<[1], [0], [0], [1], [0, 0, 1, 1], [], []>} : vector<8x64xbf16>, vector<64x64xbf16>, vector<8x64xf32> -> vector<8x64xf32>
    %c5 = arith.constant 5 : index
    %c0_269 = arith.constant 0 : index
    %c0_270 = arith.constant 0 : index
    %613 = vector.load %arg18[%c5, %c0_269, %c0_270] : memref<7x64x256xbf16, #tpu.memory_space<vmem>>, vector<1x64x256xbf16>
    %614 = vector.shape_cast %613 : vector<1x64x256xbf16> to vector<64x256xbf16>
    %615 = arith.truncf %612 : vector<8x64xf32> to vector<8x64xbf16>
    %cst_271 = arith.constant dense<0.000000e+00> : vector<8x256xf32>
    %616 = tpu.matmul %615, %614, %cst_271 {dimension_numbers = #tpu.dot_dimension_numbers<[1], [0], [0], [1], [0, 0, 1, 1], [], []>} : vector<8x64xbf16>, vector<64x256xbf16>, vector<8x256xf32> -> vector<8x256xf32>
    %617 = arith.addf %603, %616 : vector<8x256xf32>
    %c8_i32_272 = arith.constant 8 : i32
    %618 = vector.broadcast %c8_i32_272 : i32 to vector<8x64xi32>
    %619 = arith.muli %531, %618 : vector<8x64xi32>
    %c6_i32 = arith.constant 6 : i32
    %620 = vector.broadcast %c6_i32 : i32 to vector<8x64xi32>
    %621 = arith.addi %619, %620 : vector<8x64xi32>
    %622 = arith.cmpi eq, %532, %621 : vector<8x64xi32>
    %623 = arith.extui %622 : vector<8x64xi1> to vector<8x64xi32>
    %624 = arith.sitofp %623 : vector<8x64xi32> to vector<8x64xf32>
    %625 = arith.truncf %624 : vector<8x64xf32> to vector<8x64xbf16>
    %cst_273 = arith.constant dense<0.000000e+00> : vector<8x64xf32>
    %626 = tpu.matmul %625, %530, %cst_273 {dimension_numbers = #tpu.dot_dimension_numbers<[1], [0], [0], [1], [0, 0, 1, 1], [], []>} : vector<8x64xbf16>, vector<64x64xbf16>, vector<8x64xf32> -> vector<8x64xf32>
    %c6 = arith.constant 6 : index
    %c0_274 = arith.constant 0 : index
    %c0_275 = arith.constant 0 : index
    %627 = vector.load %arg18[%c6, %c0_274, %c0_275] : memref<7x64x256xbf16, #tpu.memory_space<vmem>>, vector<1x64x256xbf16>
    %628 = vector.shape_cast %627 : vector<1x64x256xbf16> to vector<64x256xbf16>
    %629 = arith.truncf %626 : vector<8x64xf32> to vector<8x64xbf16>
    %cst_276 = arith.constant dense<0.000000e+00> : vector<8x256xf32>
    %630 = tpu.matmul %629, %628, %cst_276 {dimension_numbers = #tpu.dot_dimension_numbers<[1], [0], [0], [1], [0, 0, 1, 1], [], []>} : vector<8x64xbf16>, vector<64x256xbf16>, vector<8x256xf32> -> vector<8x256xf32>
    %631 = arith.addf %617, %630 : vector<8x256xf32>
    %c0_277 = arith.constant 0 : index
    %c0_278 = arith.constant 0 : index
    %632 = vector.load %arg19[%c0_277, %c0_278] : memref<1x256xf32, #tpu.memory_space<vmem>>, vector<1x256xf32>
    %633 = vector.broadcast %632 : vector<1x256xf32> to vector<8x256xf32>
    %634 = arith.addf %631, %633 : vector<8x256xf32>
    %cst_279 = arith.constant 0.000000e+00 : f32
    %635 = vector.broadcast %cst_279 : f32 to vector<8x256xf32>
    %636 = arith.maximumf %634, %635 : vector<8x256xf32>
    %c0_280 = arith.constant 0 : index
    %c0_281 = arith.constant 0 : index
    %637 = vector.load %arg20[%c0_280, %c0_281] : memref<256x256xbf16, #tpu.memory_space<vmem>>, vector<256x256xbf16>
    %638 = arith.truncf %636 : vector<8x256xf32> to vector<8x256xbf16>
    %cst_282 = arith.constant dense<0.000000e+00> : vector<8x256xf32>
    %639 = tpu.matmul %638, %637, %cst_282 {dimension_numbers = #tpu.dot_dimension_numbers<[1], [0], [0], [1], [0, 0, 1, 1], [], []>} : vector<8x256xbf16>, vector<256x256xbf16>, vector<8x256xf32> -> vector<8x256xf32>
    %c0_283 = arith.constant 0 : index
    %c0_284 = arith.constant 0 : index
    %640 = vector.load %arg21[%c0_283, %c0_284] : memref<1x256xf32, #tpu.memory_space<vmem>>, vector<1x256xf32>
    %641 = vector.broadcast %640 : vector<1x256xf32> to vector<8x256xf32>
    %642 = arith.addf %639, %641 : vector<8x256xf32>
    %c0_285 = arith.constant 0 : index
    %c0_286 = arith.constant 0 : index
    %643 = vector.load %arg22[%c0_285, %c0_286] : memref<8x256xf32, #tpu.memory_space<vmem>>, vector<8x256xf32>
    tpu.vector_store %arg22[%c0_285, %c0_286], %642 {strides = array<i32>} : memref<8x256xf32, #tpu.memory_space<vmem>>, vector<8x256xf32>,
    return
  }
  func.func @transform_0(%arg0: i32) -> (i32, i32) {
    %c0_i32 = arith.constant 0 : i32
    %c0_i32_0 = arith.constant 0 : i32
    return %arg0, %c0_i32 : i32, i32
  }
  func.func @transform_1(%arg0: i32) -> (i32, i32) {
    %c0_i32 = arith.constant 0 : i32
    %c0_i32_0 = arith.constant 0 : i32
    %c0_i32_1 = arith.constant 0 : i32
    return %c0_i32, %c0_i32_0 : i32, i32
  }
  func.func @transform_2(%arg0: i32) -> (i32, i32) {
    %c0_i32 = arith.constant 0 : i32
    %c0_i32_0 = arith.constant 0 : i32
    %c0_i32_1 = arith.constant 0 : i32
    return %c0_i32, %c0_i32_0 : i32, i32
  }
  func.func @transform_3(%arg0: i32) -> (i32, i32) {
    %c0_i32 = arith.constant 0 : i32
    %c0_i32_0 = arith.constant 0 : i32
    %c0_i32_1 = arith.constant 0 : i32
    return %c0_i32, %c0_i32_0 : i32, i32
  }
  func.func @transform_4(%arg0: i32) -> (i32, i32) {
    %c0_i32 = arith.constant 0 : i32
    %c0_i32_0 = arith.constant 0 : i32
    %c0_i32_1 = arith.constant 0 : i32
    return %c0_i32, %c0_i32_0 : i32, i32
  }
  func.func @transform_5(%arg0: i32) -> (i32, i32, i32) {
    %c0_i32 = arith.constant 0 : i32
    %c0_i32_0 = arith.constant 0 : i32
    %c0_i32_1 = arith.constant 0 : i32
    %c0_i32_2 = arith.constant 0 : i32
    return %c0_i32, %c0_i32_0, %c0_i32_1 : i32, i32, i32
  }
  func.func @transform_6(%arg0: i32) -> (i32, i32, i32) {
    %c0_i32 = arith.constant 0 : i32
    %c0_i32_0 = arith.constant 0 : i32
    %c0_i32_1 = arith.constant 0 : i32
    %c0_i32_2 = arith.constant 0 : i32
    return %c0_i32, %c0_i32_0, %c0_i32_1 : i32, i32, i32
  }
  func.func @transform_7(%arg0: i32) -> (i32, i32, i32) {
    %c0_i32 = arith.constant 0 : i32
    %c0_i32_0 = arith.constant 0 : i32
    %c0_i32_1 = arith.constant 0 : i32
    %c0_i32_2 = arith.constant 0 : i32
    return %c0_i32, %c0_i32_0, %c0_i32_1 : i32, i32, i32
  }
  func.func @transform_8(%arg0: i32) -> (i32, i32, i32) {
    %c0_i32 = arith.constant 0 : i32
    %c0_i32_0 = arith.constant 0 : i32
    %c0_i32_1 = arith.constant 0 : i32
    %c0_i32_2 = arith.constant 0 : i32
    return %c0_i32, %c0_i32_0, %c0_i32_1 : i32, i32, i32
  }
  func.func @transform_9(%arg0: i32) -> (i32, i32, i32) {
    %c0_i32 = arith.constant 0 : i32
    %c0_i32_0 = arith.constant 0 : i32
    %c0_i32_1 = arith.constant 0 : i32
    %c0_i32_2 = arith.constant 0 : i32
    return %c0_i32, %c0_i32_0, %c0_i32_1 : i32, i32, i32
  }
  func.func @transform_10(%arg0: i32) -> (i32, i32, i32) {
    %c0_i32 = arith.constant 0 : i32
    %c0_i32_0 = arith.constant 0 : i32
    %c0_i32_1 = arith.constant 0 : i32
    %c0_i32_2 = arith.constant 0 : i32
    return %c0_i32, %c0_i32_0, %c0_i32_1 : i32, i32, i32
  }
  func.func @transform_11(%arg0: i32) -> (i32, i32, i32) {
    %c0_i32 = arith.constant 0 : i32
    %c0_i32_0 = arith.constant 0 : i32
    %c0_i32_1 = arith.constant 0 : i32
    %c0_i32_2 = arith.constant 0 : i32
    return %c0_i32, %c0_i32_0, %c0_i32_1 : i32, i32, i32
  }
  func.func @transform_12(%arg0: i32) -> (i32, i32, i32) {
    %c0_i32 = arith.constant 0 : i32
    %c0_i32_0 = arith.constant 0 : i32
    %c0_i32_1 = arith.constant 0 : i32
    %c0_i32_2 = arith.constant 0 : i32
    return %c0_i32, %c0_i32_0, %c0_i32_1 : i32, i32, i32
  }
  func.func @transform_13(%arg0: i32) -> (i32, i32, i32) {
    %c0_i32 = arith.constant 0 : i32
    %c0_i32_0 = arith.constant 0 : i32
    %c0_i32_1 = arith.constant 0 : i32
    %c0_i32_2 = arith.constant 0 : i32
    return %c0_i32, %c0_i32_0, %c0_i32_1 : i32, i32, i32
  }
  func.func @transform_14(%arg0: i32) -> (i32, i32, i32) {
    %c0_i32 = arith.constant 0 : i32
    %c0_i32_0 = arith.constant 0 : i32
    %c0_i32_1 = arith.constant 0 : i32
    %c0_i32_2 = arith.constant 0 : i32
    return %c0_i32, %c0_i32_0, %c0_i32_1 : i32, i32, i32
  }
  func.func @transform_15(%arg0: i32) -> (i32, i32, i32) {
    %c0_i32 = arith.constant 0 : i32
    %c0_i32_0 = arith.constant 0 : i32
    %c0_i32_1 = arith.constant 0 : i32
    %c0_i32_2 = arith.constant 0 : i32
    return %c0_i32, %c0_i32_0, %c0_i32_1 : i32, i32, i32
  }
  func.func @transform_16(%arg0: i32) -> (i32, i32, i32) {
    %c0_i32 = arith.constant 0 : i32
    %c0_i32_0 = arith.constant 0 : i32
    %c0_i32_1 = arith.constant 0 : i32
    %c0_i32_2 = arith.constant 0 : i32
    return %c0_i32, %c0_i32_0, %c0_i32_1 : i32, i32, i32
  }
  func.func @transform_17(%arg0: i32) -> (i32, i32, i32) {
    %c0_i32 = arith.constant 0 : i32
    %c0_i32_0 = arith.constant 0 : i32
    %c0_i32_1 = arith.constant 0 : i32
    %c0_i32_2 = arith.constant 0 : i32
    return %c0_i32, %c0_i32_0, %c0_i32_1 : i32, i32, i32
  }
  func.func @transform_18(%arg0: i32) -> (i32, i32) {
    %c0_i32 = arith.constant 0 : i32
    %c0_i32_0 = arith.constant 0 : i32
    %c0_i32_1 = arith.constant 0 : i32
    return %c0_i32, %c0_i32_0 : i32, i32
  }
  func.func @transform_19(%arg0: i32) -> (i32, i32) {
    %c0_i32 = arith.constant 0 : i32
    %c0_i32_0 = arith.constant 0 : i32
    %c0_i32_1 = arith.constant 0 : i32
    return %c0_i32, %c0_i32_0 : i32, i32
  }
  func.func @transform_20(%arg0: i32) -> (i32, i32) {
    %c0_i32 = arith.constant 0 : i32
    %c0_i32_0 = arith.constant 0 : i32
    %c0_i32_1 = arith.constant 0 : i32
    return %c0_i32, %c0_i32_0 : i32, i32
  }
  func.func @transform_21(%arg0: i32) -> (i32, i32) {
    %c0_i32 = arith.constant 0 : i32
    %c0_i32_0 = arith.constant 0 : i32
    return %arg0, %c0_i32 : i32, i32
  }
}

</mosaic_0001>

<bundles_post_ra>
// kernel: tpu_custom_call.1
= control target key start
LH: loop header
LB: loop body
LE: loop exit
PB: predicated region body
PF: predicated region fallthrough
CT: control target
= control target key end

     0   :  { %s13705_s0 = inlined_call_operand.vmem [shape: bf16[64,32], index: 0, kind: input, shape index: {}]   ;;  %s13706_s1 = inlined_call_operand.hbm [shape: f32[64,64], index: 1, kind: input, shape index: {}]   ;;  %s13707_s2 = inlined_call_operand.hbm [shape: f32[64,64], index: 2, kind: input, shape index: {}]   ;;  %s13708_s3 = inlined_call_operand.vmem [shape: bf16[32,64], index: 3, kind: input, shape index: {}]   ;;  %s13709_s4 = inlined_call_operand.vmem [shape: f32[1,64], index: 4, kind: input, shape index: {}]   ;;  %s13710_s5 = inlined_call_operand.hbm [shape: bf16[3,64,192], index: 5, kind: input, shape index: {}]   ;;  %s13711_s6 = inlined_call_operand.vmem [shape: f32[3,1,192], index: 6, kind: input, shape index: {}]   ;;  %s13712_s7 = inlined_call_operand.vmem [shape: bf16[3,64,64], index: 7, kind: input, shape index: {}]   ;;  %s13713_s8 = inlined_call_operand.vmem [shape: f32[3,1,64], index: 8, kind: input, shape index: {}]   ;;  %s13714_s9 = inlined_call_operand.vmem [shape: f32[3,1,64], index: 9, kind: input, shape index: {}]   ;;  %s13715_s10 = inlined_call_operand.vmem [shape: f32[3,1,64], index: 10, kind: input, shape index: {}]   ;;  %s13716_s11 = inlined_call_operand.hbm [shape: bf16[3,64,128], index: 11, kind: input, shape index: {}]   ;;  %s13717_s12 = inlined_call_operand.vmem [shape: f32[3,1,128], index: 12, kind: input, shape index: {}]   ;;  %s13718_s13 = inlined_call_operand.vmem [shape: bf16[3,128,64], index: 13, kind: input, shape index: {}]   ;;  %s13719_s14 = inlined_call_operand.vmem [shape: f32[3,1,64], index: 14, kind: input, shape index: {}]   ;;  %s13720_s15 = inlined_call_operand.vmem [shape: f32[3,1,64], index: 15, kind: input, shape index: {}]   ;;  %s13721_s16 = inlined_call_operand.vmem [shape: f32[3,1,64], index: 16, kind: input, shape index: {}]   ;;  %s13722_s17 = inlined_call_operand.hbm [shape: bf16[7,64,256], index: 17, kind: input, shape index: {}]   ;;  %s13723_s18 = inlined_call_operand.vmem [shape: f32[1,256], index: 18, kind: input, shape index: {}]   ;;  %s13724_s19 = inlined_call_operand.vmem [shape: bf16[256,256], index: 19, kind: input, shape index: {}]   ;;  %s13725_s20 = inlined_call_operand.vmem [shape: f32[1,256], index: 20, kind: input, shape index: {}]   ;;  %s13726_s21 = inlined_call_operand.hbm [shape: f32[8,256], index: 21, kind: output, shape index: {}]  }
   0x1   :  { %13756 = sst [smem:[#allocation24_spill]] %s13705_s0 }
   0x2   :  { %13757 = sst [smem:[#allocation25_spill]] %s13706_s1 }
   0x3   :  { %13758 = sst [smem:[#allocation26_spill]] %s13707_s2 }
   0x4   :  { %13759 = sst [smem:[#allocation27_spill]] %s13708_s3 }
   0x5   :  { %13760 = sst [smem:[#allocation28_spill]] %s13709_s4 }
   0x6   :  { %13761 = sst [smem:[#allocation29_spill]] %s13710_s5 }
   0x7   :  { %13762 = sst [smem:[#allocation30_spill]] %s13725_s20 }
   0x8   :  { %13763 = sst [smem:[#allocation31_spill]] %s13726_s21 }
   0x9   :  { %26 = vsyncpa [#allocation3], 0 }
   0xa   :  { %27 = vsyncpa [#allocation6], 0 }
   0xb   :  { %28 = vsyncpa [#allocation9], 0 }
   0xc   :  { %29 = vsyncpa [#allocation4], 0  ;;  %s10826_s2 = smov [#allocation5]   ;;  %s10827_s26 = smov [#allocation8]  }
   0xd   :  { %s49_s25 = sshll.u32 %s10826_s2, 4  ;;  %s87_s27 = sshll.u32 %s10827_s26, 4  ;;  %s50_s25 = int_to_ptr.vmem [resolvable:$true] %s49_s25  ;;  %s10955_s27 = int_to_ptr.vmem [resolvable:$true] %s87_s27 }
   0xe   :  { %s13764_s29 = sld [smem:[#allocation26_spill]] }
  0x14   :  { %s10686_s0 = scalar_lea.hbm %s13764_s29, 1024 }
  0x15   :  { %p10687_p0 = scmp.ne.s32.totalorder %s13764_s29, %s10686_s0  ;;  %p10690_p1 = scmp.lt.u32.totalorder %s10686_s0, %s13764_s29 }
  0x17   :  { %p10692_p2 = pnand %p10690_p1, %p10687_p0 }
  0x19   :  { %10695 = shalt.err (!%p10692_p2)
}
  0x1a   :  { %s10696_s23 = scalar_lea.vmem %s50_s25, 1024  ;;  %p10701_p4 = scmp.lt.s32.totalorder %s50_s25, %s50_s25 }
  0x1b   :  { %p10697_p3 = scmp.ne.s32.totalorder %s50_s25, %s10696_s23  ;;  %p10702_p5 = scmp.lt.s32.totalorder %s10696_s23, %s10696_s23 }
  0x1d   :  { %p10703_p6 = por %p10702_p5, %p10701_p4 }
  0x1f   :  { %p10704_p7 = pnand %p10703_p6, %p10697_p3 }
  0x21   :  { %10707 = shalt.err (!%p10704_p7)
}
  0x22   :  { %s13732_s1 = smov 128   ;;  %s13734_s24 = smov 8  }
  0x23   :  { %55 = dma.hbm_to_vmem [thread:$0]  %s13764_s29, 1024, %s50_s25, [#allocation6], %s13732_s1, %s13732_s1, %s13734_s24  }
  0x24   :  { %s10708_s0 = scalar_lea.hbm %s13716_s11, 1536 }
  0x25   :  { %p10709_p8 = scmp.ne.s32.totalorder %s13716_s11, %s10708_s0  ;;  %p10712_p9 = scmp.lt.u32.totalorder %s10708_s0, %s13716_s11 }
  0x27   :  { %p10714_p10 = pnand %p10712_p9, %p10709_p8 }
  0x29   :  { %10717 = shalt.err (!%p10714_p10)
}
  0x2a   :  { %s10718_s23 = scalar_lea.vmem %s10955_s27, 1536  ;;  %p10723_p12 = scmp.lt.s32.totalorder %s10955_s27, %s10955_s27 }
  0x2b   :  { %p10719_p11 = scmp.ne.s32.totalorder %s10955_s27, %s10718_s23  ;;  %p10724_p13 = scmp.lt.s32.totalorder %s10718_s23, %s10718_s23 }
  0x2d   :  { %p10725_p0 = por %p10724_p13, %p10723_p12 }
  0x2f   :  { %p10726_p1 = pnand %p10725_p0, %p10719_p11 }
  0x31   :  { %10729 = shalt.err (!%p10726_p1)
}
  0x32   :  { %s10830_s25 = smov 64   ;;  %s10831_s29 = smov 4  }
  0x33   :  { %93 = dma.hbm_to_vmem [thread:$0]  %s13716_s11, 1536, %s10955_s27, [#allocation9], %s10830_s25, %s10830_s25, %s10831_s29  }
  0x34   :  { %s10832_s3 = smov [#allocation2]   ;;  %s10833_s0 = smov [#allocation7]  }
  0x35   :  { %s37_s28 = sshll.u32 %s10832_s3, 4  ;;  %s65_s4 = sshll.u32 %s10833_s0, 4  ;;  %s38_s28 = int_to_ptr.vmem [resolvable:$true] %s37_s28  ;;  %s10991_s4 = int_to_ptr.vmem [resolvable:$true] %s65_s4 }
  0x36   :  { %s13765_s22 = sld [smem:[#allocation25_spill]] }
  0x3c   :  { %s10730_s23 = scalar_lea.hbm %s13765_s22, 1024 }
  0x3d   :  { %p10731_p2 = scmp.ne.s32.totalorder %s13765_s22, %s10730_s23  ;;  %p10734_p3 = scmp.lt.u32.totalorder %s10730_s23, %s13765_s22 }
  0x3f   :  { %p10736_p4 = pnand %p10734_p3, %p10731_p2 }
  0x41   :  { %10739 = shalt.err (!%p10736_p4)
}
  0x42   :  { %s10740_s11 = scalar_lea.vmem %s38_s28, 1024  ;;  %p10745_p6 = scmp.lt.s32.totalorder %s38_s28, %s38_s28 }
  0x43   :  { %p10741_p5 = scmp.ne.s32.totalorder %s38_s28, %s10740_s11  ;;  %p10746_p7 = scmp.lt.s32.totalorder %s10740_s11, %s10740_s11 }
  0x45   :  { %p10747_p8 = por %p10746_p7, %p10745_p6 }
  0x47   :  { %p10748_p9 = pnand %p10747_p8, %p10741_p5 }
  0x49   :  { %10751 = shalt.err (!%p10748_p9)
}
  0x4a   :  { %s13766_s27 = smov 8   ;;  %s13767_s29 = smov 128  }
  0x4b   :  { %43 = dma.hbm_to_vmem [thread:$0]  %s13765_s22, 1024, %s38_s28, [#allocation3], %s13767_s29, %s13767_s29, %s13766_s27  }
  0x4c   :  { %s13768_s20 = sld [smem:[#allocation29_spill]] }
  0x52   :  { %s10752_s21 = scalar_lea.hbm %s13768_s20, 3072 }
  0x53   :  { %p10753_p10 = scmp.ne.s32.totalorder %s13768_s20, %s10752_s21  ;;  %p10756_p11 = scmp.lt.u32.totalorder %s10752_s21, %s13768_s20 }
  0x55   :  { %p10758_p12 = pnand %p10756_p11, %p10753_p10 }
  0x57   :  { %10761 = shalt.err (!%p10758_p12)
}
  0x58   :  { %s10762_s23 = scalar_lea.vmem %s10991_s4, 3072  ;;  %p10767_p0 = scmp.lt.s32.totalorder %s10991_s4, %s10991_s4 }
  0x59   :  { %p10763_p13 = scmp.ne.s32.totalorder %s10991_s4, %s10762_s23  ;;  %p10768_p1 = scmp.lt.s32.totalorder %s10762_s23, %s10762_s23 }
  0x5b   :  { %p10769_p2 = por %p10768_p1, %p10767_p0 }
  0x5d   :  { %p10770_p3 = pnand %p10769_p2, %p10763_p13 }
  0x5f   :  { %10773 = shalt.err (!%p10770_p3)
}
  0x60   :  { %71 = dma.hbm_to_vmem [thread:$0]  %s13768_s20, 3072, %s10991_s4, [#allocation6], %s13767_s29, %s13767_s29, %s13766_s27  }
  0x61   :  { %s10834_s11 = smov [#allocation10]   ;;  %s10774_s24 = scalar_lea.hbm %s13722_s17, 7168 }
  0x62   :  { %s109_s2 = sshll.u32 %s10834_s11, 4  ;;  %p10775_p4 = scmp.ne.s32.totalorder %s13722_s17, %s10774_s24  ;;  %s110_s2 = int_to_ptr.vmem [resolvable:$true] %s109_s2 }
  0x63   :  { %p10778_p5 = scmp.lt.u32.totalorder %s10774_s24, %s13722_s17 }
  0x65   :  { %p10780_p6 = pnand %p10778_p5, %p10775_p4 }
  0x67   :  { %10783 = shalt.err (!%p10780_p6)
}
  0x68   :  { %s10784_s5 = scalar_lea.vmem %s110_s2, 7168  ;;  %p10789_p8 = scmp.lt.s32.totalorder %s110_s2, %s110_s2 }
  0x69   :  { %p10785_p7 = scmp.ne.s32.totalorder %s110_s2, %s10784_s5  ;;  %p10790_p9 = scmp.lt.s32.totalorder %s10784_s5, %s10784_s5 }
  0x6b   :  { %p10791_p10 = por %p10790_p9, %p10789_p8 }
  0x6d   :  { %p10792_p11 = pnand %p10791_p10, %p10785_p7 }
  0x6f   :  { %10795 = shalt.err (!%p10792_p11)
}
  0x70   :  { %115 = dma.hbm_to_vmem [thread:$0]  %s13722_s17, 7168, %s110_s2, [#allocation9], %s13767_s29, %s13767_s29, %s13766_s27  }
  0x71   :  { %10818 = dma.done.wait [#allocation3], 1024  }
  0x72   :  { %10819 = vsyncadd [#allocation3], 4294966272 }
  0x73   :  { %10820 = dma.done.wait [#allocation6], 4096  }
  0x74   :  { %10821 = vsyncadd [#allocation6], 4294963200 }
  0x75   :  { %10822 = dma.done.wait [#allocation9], 8704  }
  0x76   :  { %10823 = vsyncadd [#allocation9], 4294958592  ;;  %s13769_s22 = sld [smem:[#allocation27_spill]]  ;;  %vm189_vm0 = vcmask 261120   ;;  %s13770_s21 = sld [smem:[#allocation24_spill]]  ;;  %v13738_v14 = vmov 0   ;;  %v13737_v52 = vlaneseq }
  0x77   :  { %v9958_v5 = vld [vmem:[#allocation7 + $0x4] ss:$8 sps:$4 sm:$0xff]   ;;  %v9960_v6 = vld [vmem:[#allocation7] ss:$8 sps:$4 sm:$0xff]   ;;  %v9961_v7 = vld [vmem:[#allocation7 + $0x14] ss:$8 sps:$4 sm:$0xff]   ;;  %392 = vmatprep.mubr.bf16.mxu1 %v13738_v14 }
  0x78   :  { %360 = vmatprep.subr.bf16.mxu1 %v9958_v5  ;;  %v9963_v8 = vld [vmem:[#allocation7 + $0x10] ss:$8 sps:$4 sm:$0xff]   ;;  %v9964_v10 = vld [vmem:[#allocation7 + $0x24] ss:$8 sps:$4 sm:$0xff]   ;;  %v9966_v11 = vld [vmem:[#allocation7 + $0x20] ss:$8 sps:$4 sm:$0xff]  }
  0x79   :  { %361 = vmatpush1.bf16.msra.mxu1 %v9960_v6  ;;  %v9967_v12 = vld [vmem:[#allocation7 + $0x34] ss:$8 sps:$4 sm:$0xff]   ;;  %v9969_v13 = vld [vmem:[#allocation7 + $0x30] ss:$8 sps:$4 sm:$0xff]   ;;  %s13771_s4 = sld [smem:[#allocation28_spill]]  ;;  %v267_v20 = vld [vmem:[#allocation2] sm:$0xff] }
  0x7a   :  { %362 = vmatprep.subr.bf16.mxu1 %v9961_v7  ;;  %v268_v22 = vld [vmem:[#allocation2 + $0x8] sm:$0xff]  ;;  %vm347_vm1 = vcmask 523264   ;;  %v270_v29 = vld [vmem:[#allocation2 + $0x18] sm:$0xff]  ;;  %v269_v33 = vld [vmem:[#allocation2 + $0x10] sm:$0xff]  ;;  %v11101_v53 = vshrl.u32 %v13737_v52, 7  ;;  %vm469_vm2 = vcmask 130048  }
  0x7b   :  { %v271_v40 = vld [vmem:[#allocation2 + $0x20] sm:$0xff]  ;;  %v272_v41 = vld [vmem:[#allocation2 + $0x28] sm:$0xff]  ;;  %v273_v47 = vld [vmem:[#allocation2 + $0x30] sm:$0xff]  ;;  %s10836_s28 = smov 48   ;;  %s10838_s11 = smov 32   ;;  %vm10843_vm3 = vmmov 0  }
  0x7c   :  { %v9952_v0 = vld [vmem:[%s13769_s22] sm:$0xff]   ;;  %v9953_v1 = vld [vmem:[%s13769_s22 + $0x8] sm:$0xff]   ;;  %v9956_v4 = vld [vmem:[%s13770_s21 + $0x10] sm:$0xff]   ;;  %13777 = vst [vmem:[#allocation21_spill] sm:$0xff] %v11101_v53  ;;  %v11104_v54 = vsub.s32 0, %v11101_v53  ;;  %v11110_v56 = vsub.s32 1, %v11101_v53 }
  0x7d   :  { %9093 = vmatprep.subr.bf16.mxu0 %v9952_v0  ;;  %v9954_v2 = vld [vmem:[%s13770_s21] sm:$0xff]   ;;  %v9955_v3 = vld [vmem:[%s13770_s21 + $0x8] sm:$0xff]   ;;  %v9957_v9 = vld [vmem:[%s13770_s21 + $0x18] sm:$0xff]   ;;  %363 = vmatpush1.bf16.msra.mxu1 %v9963_v8  ;;  %s10837_s22 = smov 112   ;;  %s10839_s26 = smov 96  }
  0x7e   :  { %9094 = vmatpush3.bf16.msra.mxu0 %v9952_v0  ;;  %9097 = vmatprep.mubr.msk.bf16.mxu0 %vm189_vm0, %v9954_v2  ;;  %v274_v48 = vld [vmem:[#allocation2 + $0x38] sm:$0xff]  ;;  %13778 = vst [vmem:[#allocation22_spill] sm:$0xff] %v11104_v54  ;;  %v295_v55 = vld [vmem:[%s13711_s6] sm:$0x3]  ;;  %13779 = vst [vmem:[#allocation23_spill] sm:$0xff] %v11110_v56  ;;  %s10840_s1 = smov 16  }
  0x7f   :  { %9095 = vmatprep.subr.bf16.mxu0 %v9953_v1  ;;  %364 = vmatprep.subr.bf16.mxu1 %v9964_v10  ;;  %v8295_v15 = vld [vmem:[%s13771_s4] ss:$0 sm:$0xff]  ;;  %v300_v57 = vrot.slane %v295_v55, %v11104_v54  ;;  %v304_v59 = vrot.slane %v295_v55, %v11110_v56  ;;  %s10841_s24 = smov 80   ;;  %s10844_s27 = smov [#allocation11]  }
  0x80   :  { %s8284_s29 = sshll.u32 %s10844_s27, 4  ;;  %s8285_s29 = int_to_ptr.vmem [resolvable:$true] %s8284_s29 }
  0x81   :  { %365 = vmatpush1.bf16.msra.mxu1 %v9966_v11  ;;  %s10796_s2 = scalar_lea.vmem %s8285_s29, 256  ;;  %p10801_p13 = scmp.lt.s32.totalorder %s8285_s29, %s8285_s29 }
  0x82   :  { %9096 = vmatpush3.bf16.msra.mxu0 %v9953_v1  ;;  %366 = vmatprep.subr.bf16.mxu1 %v9967_v12  ;;  %p10797_p12 = scmp.ne.s32.totalorder %s8285_s29, %s10796_s2  ;;  %p10802_p0 = scmp.lt.s32.totalorder %s10796_s2, %s10796_s2 }
  0x84   :  { %p10803_p1 = por %p10802_p0, %p10801_p13 }
  0x85   :  { %9098 = vmatmul.mubr.msk.bf16.vlgmr.msra.gmra.mrb[0].mxu0 %vm189_vm0, %v9955_v3  ;;  %367 = vmatpush1.bf16.msra.mxu1 %v9969_v13 }
  0x86   :  { %9101 = vmatprep.mubr.msk.bf16.mxu0 %vm189_vm0, %v9956_v4  ;;  %p10804_p2 = pnand %p10803_p1, %p10797_p12 }
  0x8d   :  { %9102 = vmatmul.mubr.msk.bf16.gmra.mrb[4].mxu0 %vm189_vm0, %v9957_v9 }
 0x158   :  { %v9099_v16 = vpop.f32.mrb[0].mxu0 }
 0x159   :  { %v236_v17 = vpop.f32.mrb[1].mxu0  ;;  %v245_v31 = vadd.f32 %v9099_v16, %v8295_v15 }
 0x15a   :  { %v237_v18 = vadd.f32 %v8295_v15, %v236_v17  ;;  %v9100_v19 = vpop.f32.mrb[2].mxu0 }
 0x15b   :  { %v239_v21 = vpop.f32.mrb[3].mxu0  ;;  %v248_v26 = vadd.f32 %v9100_v19, %v8295_v15  ;;  %v11079_v36 = vadd.f32 %v269_v33, %v245_v31 }
 0x15c   :  { %v240_v23 = vadd.f32 %v8295_v15, %v239_v21  ;;  %v11069_v24 = vadd.f32 %v267_v20, %v237_v18 }
 0x15d   :  { %v11077_v35 = vadd.f32 %v270_v29, %v248_v26 }
 0x15e   :  { %v11071_v25 = vadd.f32 %v268_v22, %v240_v23 }
 0x15f   :  { %13772 = vst [vmem:[#allocation16_spill] sm:$0xff] %v11077_v35  ;;  %v292_v37 = vpack.c.bf16 %v11077_v35, %v11079_v36 }
 0x160   :  { %v291_v27 = vpack.c.bf16 %v11071_v25, %v11069_v24  ;;  %v9103_v28 = vpop.f32.mrb[4].mxu0 }
 0x161   :  { %v252_v30 = vpop.f32.mrb[5].mxu0  ;;  %v261_v44 = vadd.f32 %v9103_v28, %v8295_v15 }
 0x162   :  { %8314 = vmatmul.mubr.msk.bf16.vlgmr.msra.gmra.mrb[0].mxu1 %vm347_vm1, %v291_v27  ;;  %v9104_v32 = vpop.f32.mrb[6].mxu0  ;;  %v253_v38 = vadd.f32 %v8295_v15, %v252_v30 }
 0x163   :  { %v255_v34 = vpop.f32.mrb[7].mxu0  ;;  %402 = vmatprep.mubr.bf16.mxu1 %v13738_v14  ;;  %v264_v45 = vadd.f32 %v9104_v32, %v8295_v15  ;;  %v11093_v49 = vadd.f32 %v273_v47, %v261_v44 }
 0x164   :  { %v256_v39 = vadd.f32 %v8295_v15, %v255_v34  ;;  %v11085_v42 = vadd.f32 %v271_v40, %v253_v38 }
 0x165   :  { %13775 = vst [vmem:[#allocation19_spill] sm:$0xff] %v11093_v49  ;;  %v11095_v50 = vadd.f32 %v274_v48, %v264_v45 }
 0x166   :  { %13773 = vst [vmem:[#allocation17_spill] sm:$0xff] %v11085_v42  ;;  %v11087_v43 = vadd.f32 %v272_v41, %v256_v39 }
 0x167   :  { %13776 = vst [vmem:[#allocation20_spill] sm:$0xff] %v11095_v50  ;;  %v294_v51 = vpack.c.bf16 %v11095_v50, %v11093_v49 }
 0x168   :  { %13774 = vst [vmem:[#allocation18_spill] sm:$0xff] %v11087_v43  ;;  %v293_v46 = vpack.c.bf16 %v11087_v43, %v11085_v42 }
 0x16a   :  { %8315 = vmatmul.mubr.msk.bf16.gmra.mrb[4].mxu1 %vm347_vm1, %v292_v37 }
 0x16b   :  { %412 = vmatprep.mubr.bf16.mxu1 %v13738_v14 }
 0x172   :  { %8316 = vmatmul.mubr.msk.bf16.gmra.mrb[8].mxu1 %vm347_vm1, %v293_v46 }
 0x173   :  { %422 = vmatprep.mubr.bf16.mxu1 %v13738_v14 }
 0x17a   :  { %8317 = vmatmul.mubr.msk.bf16.gmra.mrb[12].mxu1 %vm347_vm1, %v294_v51 }
 0x235   :  { %v394_v58 = vpop.f32.mrb[0].mxu1 }
 0x236   :  { %v396_v60 = vpop.f32.mrb[1].mxu1  ;;  %v395_v62 = vadd.f32 %v394_v58, %v300_v57 }
 0x237   :  { %v398_v61 = vpop.f32.mrb[2].mxu1  ;;  %v397_v1 = vadd.f32 %v396_v60, %v304_v59 }
 0x238   :  { %v399_v63 = vadd.f32 %v398_v61, %v300_v57  ;;  %v400_v0 = vpop.f32.mrb[3].mxu1 }
 0x239   :  { %v401_v2 = vadd.f32 %v400_v0, %v304_v59 }
 0x23a   :  { %v11114_v3 = vpack.c.bf16 %v399_v63, %v395_v62 }
 0x23b   :  { %v11116_v4 = vpack.c.bf16 %v401_v2, %v397_v1 }
 0x23c   :  { %461 = vrot.lane.b32.xlu0 %v11114_v3, %s10830_s25  ;;  %9113 = vmatprep.mubr.msk.bf16.mxu1 %vm469_vm2, %v11114_v3 }
 0x23d   :  { %v404_v5 = vpop.f32.mrb[4].mxu1 }
 0x23e   :  { %v406_v6 = vpop.f32.mrb[5].mxu1  ;;  %v405_v8 = vadd.f32 %v404_v5, %v300_v57 }
 0x23f   :  { %v408_v7 = vpop.f32.mrb[6].mxu1  ;;  %v407_v11 = vadd.f32 %v406_v6, %v304_v59 }
 0x240   :  { %v409_v9 = vadd.f32 %v408_v7, %v300_v57  ;;  %v410_v10 = vpop.f32.mrb[7].mxu1 }
 0x241   :  { %v411_v12 = vadd.f32 %v410_v10, %v304_v59 }
 0x242   :  { %v11122_v13 = vpack.c.bf16 %v409_v9, %v405_v8 }
 0x243   :  { %v11124_v15 = vpack.c.bf16 %v411_v12, %v407_v11 }
 0x244   :  { %463 = vrot.lane.b32.xlu0 %v11122_v13, %s10830_s25 }
 0x245   :  { %v414_v16 = vpop.f32.mrb[8].mxu1 }
 0x246   :  { %v416_v17 = vpop.f32.mrb[9].mxu1  ;;  %v415_v19 = vadd.f32 %v414_v16, %v300_v57 }
 0x247   :  { %v418_v18 = vpop.f32.mrb[10].mxu1  ;;  %v417_v22 = vadd.f32 %v416_v17, %v304_v59 }
 0x248   :  { %v419_v20 = vadd.f32 %v418_v18, %v300_v57  ;;  %v420_v21 = vpop.f32.mrb[11].mxu1 }
 0x249   :  { %v421_v23 = vadd.f32 %v420_v21, %v304_v59  ;;  %v11218_v21 = vld [vmem:[#allocation5 + $0x10] sm:$0xff] }
 0x24a   :  { %v11128_v26 = vpack.c.bf16 %v419_v20, %v415_v19 }
 0x24b   :  { %v11130_v27 = vpack.c.bf16 %v421_v23, %v417_v22  ;;  %v11220_v23 = vld [vmem:[#allocation5] sm:$0xff] }
 0x24c   :  { %465 = vrot.lane.b32.xlu1 %v11128_v26, %s10830_s25 }
 0x24d   :  { %v424_v28 = vpop.f32.mrb[12].mxu1 }
 0x24e   :  { %v426_v29 = vpop.f32.mrb[13].mxu1  ;;  %v425_v31 = vadd.f32 %v424_v28, %v300_v57 }
 0x24f   :  { %v428_v30 = vpop.f32.mrb[14].mxu1  ;;  %v427_v34 = vadd.f32 %v426_v29, %v304_v59 }
 0x250   :  { %v429_v32 = vadd.f32 %v428_v30, %v300_v57  ;;  %v430_v33 = vpop.f32.mrb[15].mxu1  ;;  %740 = vrot.lane.b32.xlu1 %v11114_v3, %s10836_s28  ;;  %v11225_v30 = vld [vmem:[#allocation5 + $0x8] sm:$0xff] }
 0x251   :  { %v431_v37 = vadd.f32 %v430_v33, %v304_v59 }
 0x252   :  { %v11136_v38 = vpack.c.bf16 %v429_v32, %v425_v31 }
 0x253   :  { %v11138_v39 = vpack.c.bf16 %v431_v37, %v427_v34  ;;  %v11232_v37 = vld [vmem:[#allocation5 + $0x18] sm:$0xff] }
 0x254   :  { %742 = vrot.lane.b32.xlu1 %v11122_v13, %s10836_s28  ;;  %467 = vrot.lane.b32.xlu0 %v11136_v38, %s10830_s25 }
 0x258   :  { %746 = vrot.lane.b32.xlu1 %v11136_v38, %s10836_s28  ;;  %744 = vrot.lane.b32.xlu0 %v11128_v26, %s10836_s28 }
 0x25c   :  { %734 = vrot.lane.b32.xlu1 %v11122_v13, %s10837_s22  ;;  %732 = vrot.lane.b32.xlu0 %v11114_v3, %s10837_s22 }
 0x260   :  { %738 = vrot.lane.b32.xlu1 %v11136_v38, %s10837_s22  ;;  %736 = vrot.lane.b32.xlu0 %v11128_v26, %s10837_s22 }
 0x264   :  { %1202 = vrot.lane.b32.xlu1 %v11122_v13, %s10838_s11  ;;  %1200 = vrot.lane.b32.xlu0 %v11114_v3, %s10838_s11 }
 0x268   :  { %1194 = vrot.lane.b32.xlu1 %v11122_v13, %s10839_s26  ;;  %1204 = vrot.lane.b32.xlu0 %v11128_v26, %s10838_s11 }
 0x26c   :  { %1206 = vrot.lane.b32.xlu1 %v11136_v38, %s10838_s11  ;;  %1192 = vrot.lane.b32.xlu0 %v11114_v3, %s10839_s26 }
 0x270   :  { %1198 = vrot.lane.b32.xlu1 %v11136_v38, %s10839_s26  ;;  %1196 = vrot.lane.b32.xlu0 %v11128_v26, %s10839_s26 }
 0x2ae   :  { %v462_v40 = vpop.permute.xlu0 %461 }
 0x2af   :  { %9885 = vmatprep.subr.msk.bf16.mxu1 %vm469_vm2, %v462_v40  ;;  %v483_v41 = vsel %vm469_vm2, %v462_v40, 0 }
 0x2b0   :  { %9106 = vmatpush3.bf16.xpose.msra.mxu1 %v483_v41 }
 0x2b6   :  { %v464_v44 = vpop.permute.xlu0 %463 }
 0x2b7   :  { %9886 = vmatprep.subr.msk.bf16.mxu1 %vm469_vm2, %v464_v44  ;;  %v486_v45 = vsel %vm469_vm2, %v464_v44, 0  ;;  %v11239_v44 = vld [vmem:[#allocation5 + $0x30] sm:$0xff] }
 0x2b8   :  { %9108 = vmatpush3.bf16.xpose.msra.mxu1 %v486_v45 }
 0x2be   :  { %v466_v46 = vpop.permute.xlu1 %465 }
 0x2bf   :  { %9887 = vmatprep.subr.msk.bf16.mxu1 %vm469_vm2, %v466_v46  ;;  %v489_v47 = vsel %vm469_vm2, %v466_v46, 0 }
 0x2c0   :  { %9110 = vmatpush3.bf16.xpose.msra.mxu1 %v489_v47 }
 0x2c2   :  { %v741_v48 = vpop.permute.xlu1 %740 }
 0x2c3   :  { %9889 = vmatprep.subr.msk.bf16.mxu0 %vm469_vm2, %v741_v48  ;;  %v761_v51 = vsel %vm469_vm2, %v741_v48, 0  ;;  %v11246_v48 = vld [vmem:[#allocation5 + $0x20] sm:$0xff] }
 0x2c4   :  { %9138 = vmatpush3.bf16.xpose.msra.mxu0 %v761_v51 }
 0x2c6   :  { %v743_v55 = vpop.permute.xlu1 %742  ;;  %v468_v57 = vpop.permute.xlu0 %467 }
 0x2c7   :  { %9888 = vmatprep.subr.msk.bf16.mxu1 %vm469_vm2, %v468_v57  ;;  %9890 = vmatprep.subr.msk.bf16.mxu0 %vm469_vm2, %v743_v55  ;;  %v492_v58 = vsel %vm469_vm2, %v468_v57, 0  ;;  %v764_v60 = vsel %vm469_vm2, %v743_v55, 0  ;;  %v11251_v57 = vld [vmem:[#allocation5 + $0x28] sm:$0xff] }
 0x2c8   :  { %9112 = vmatpush3.bf16.xpose.msra.mxu1 %v492_v58 }
 0x2c9   :  { %9121 = vmatprep.subr.bf16.mxu1 %v11116_v4 }
 0x2ca   :  { %v745_v59 = vpop.permute.xlu0 %744  ;;  %v747_v62 = vpop.permute.xlu1 %746 }
 0x2cb   :  { %v767_v63 = vsel %vm469_vm2, %v745_v59, 0  ;;  %v770_v2 = vsel %vm469_vm2, %v747_v62, 0 }
 0x2cc   :  { %9140 = vmatpush3.bf16.xpose.msra.mxu0 %v764_v60 }
 0x2cd   :  { %9891 = vmatprep.subr.msk.bf16.mxu0 %vm469_vm2, %v745_v59 }
 0x2ce   :  { %v733_v61 = vpop.permute.xlu0 %732  ;;  %v735_v1 = vpop.permute.xlu1 %734 }
 0x2cf   :  { %9114 = vmatmul.mubr.msk.bf16.vlgmr.msra.gmra.mrb[16].mxu1 %vm469_vm2, %v11122_v13  ;;  %9145 = vmatprep.mubr.msk.bf16.mxu0 %vm469_vm2, %v733_v61 }
 0x2d0   :  { %9117 = vmatprep.mubr.msk.bf16.mxu1 %vm469_vm2, %v11128_v26  ;;  %9122 = vmatpush3.bf16.msra.mxu1 %v11116_v4 }
 0x2d1   :  { %9123 = vmatprep.subr.bf16.mxu1 %v11124_v15 }
 0x2d2   :  { %v737_v0 = vpop.permute.xlu0 %736  ;;  %v739_v6 = vpop.permute.xlu1 %738 }
 0x2d4   :  { %9124 = vmatpush3.bf16.msra.mxu1 %v11124_v15  ;;  %9142 = vmatpush3.bf16.xpose.msra.mxu0 %v767_v63  ;;  %v11260_v63 = vld [vmem:[#allocation5 + $0x38] sm:$0xff] }
 0x2d5   :  { %9125 = vmatprep.subr.bf16.mxu1 %v11130_v27  ;;  %9892 = vmatprep.subr.msk.bf16.mxu0 %vm469_vm2, %v747_v62 }
 0x2d6   :  { %v1201_v5 = vpop.permute.xlu0 %1200  ;;  %v1203_v8 = vpop.permute.xlu1 %1202 }
 0x2d7   :  { %9118 = vmatmul.mubr.msk.bf16.gmra.mrb[20].mxu1 %vm469_vm2, %v11136_v38  ;;  %v1221_v7 = vsel %vm469_vm2, %v1201_v5, 0  ;;  %v1224_v11 = vsel %vm469_vm2, %v1203_v8, 0 }
 0x2d8   :  { %9126 = vmatpush3.bf16.msra.mxu1 %v11130_v27 }
 0x2d9   :  { %9127 = vmatprep.subr.bf16.mxu1 %v11138_v39 }
 0x2da   :  { %v1205_v9 = vpop.permute.xlu0 %1204  ;;  %v1195_v12 = vpop.permute.xlu1 %1194 }
 0x2db   :  { %v1227_v16 = vsel %vm469_vm2, %v1205_v9, 0 }
 0x2dc   :  { %9128 = vmatpush3.bf16.msra.mxu1 %v11138_v39  ;;  %9144 = vmatpush3.bf16.xpose.msra.mxu0 %v770_v2 }
 0x2dd   :  { %9893 = vmatprep.subr.msk.bf16.mxu0 %vm469_vm2, %v1201_v5 }
 0x2de   :  { %v1193_v10 = vpop.permute.xlu0 %1192  ;;  %v1207_v17 = vpop.permute.xlu1 %1206 }
 0x2df   :  { %v1230_v18 = vsel %vm469_vm2, %v1207_v17, 0 }
 0x2e2   :  { %v1197_v19 = vpop.permute.xlu0 %1196  ;;  %v1199_v20 = vpop.permute.xlu1 %1198 }
 0x2e3   :  { %9146 = vmatmul.mubr.msk.bf16.vlgmr.msra.gmra.mrb[8].mxu0 %vm469_vm2, %v735_v1 }
 0x2e4   :  { %9149 = vmatprep.mubr.msk.bf16.mxu0 %vm469_vm2, %v737_v0  ;;  %9190 = vmatpush3.bf16.xpose.msra.mxu0 %v1221_v7 }
 0x2e5   :  { %9894 = vmatprep.subr.msk.bf16.mxu0 %vm469_vm2, %v1203_v8 }
 0x2eb   :  { %9150 = vmatmul.mubr.msk.bf16.gmra.mrb[12].mxu0 %vm469_vm2, %v739_v6 }
 0x2ec   :  { %9192 = vmatpush3.bf16.xpose.msra.mxu0 %v1224_v11  ;;  %9197 = vmatprep.mubr.msk.bf16.mxu0 %vm469_vm2, %v1193_v10 }
 0x2ed   :  { %9895 = vmatprep.subr.msk.bf16.mxu0 %vm469_vm2, %v1205_v9 }
 0x2f4   :  { %9194 = vmatpush3.bf16.xpose.msra.mxu0 %v1227_v16 }
 0x2f5   :  { %9896 = vmatprep.subr.msk.bf16.mxu0 %vm469_vm2, %v1207_v17 }
 0x2fc   :  { %9196 = vmatpush3.bf16.xpose.msra.mxu0 %v1230_v18 }
 0x303   :  { %9198 = vmatmul.mubr.msk.bf16.vlgmr.msra.gmra.mrb[16].mxu0 %vm469_vm2, %v1195_v12 }
 0x304   :  { %9201 = vmatprep.mubr.msk.bf16.mxu0 %vm469_vm2, %v1197_v19 }
 0x30b   :  { %9202 = vmatmul.mubr.msk.bf16.gmra.mrb[20].mxu0 %vm469_vm2, %v1199_v20 }
 0x3a2   :  { %v9115_v22 = vpop.f32.mrb[16].mxu1 }
 0x3a3   :  { %v11223_v28 = vadd.f32 %v9115_v22, %v11218_v21  ;;  %v528_v29 = vpop.f32.mrb[17].mxu1 }
 0x3a4   :  { %v9116_v31 = vpop.f32.mrb[18].mxu1  ;;  %v11228_v32 = vadd.f32 %v528_v29, %v11220_v23 }
 0x3a5   :  { %v531_v33 = vpop.f32.mrb[19].mxu1  ;;  %v565_v34 = vsel %vm347_vm1, %v11223_v28, -inf  ;;  %v11242_v45 = vadd.f32 %v9116_v31, %v11232_v37 }
 0x3a6   :  { %v11235_v40 = vadd.f32 %v531_v33, %v11225_v30  ;;  %566 = vmax.xlane.f32.xlu0 %v565_v34  ;;  %v559_v46 = vsel %vm347_vm1, %v11228_v32, -inf }
 0x3a7   :  { %v568_v62 = vsel %vm347_vm1, %v11242_v45, -inf }
 0x3a8   :  { %v562_v41 = vsel %vm347_vm1, %v11235_v40, -inf }
 0x3a9   :  { %563 = vmax.xlane.f32.xlu1 %v562_v41 }
 0x3aa   :  { %v9119_v47 = vpop.f32.mrb[20].mxu1  ;;  %560 = vmax.xlane.f32.xlu0 %v559_v46 }
 0x3ab   :  { %v11249_v51 = vadd.f32 %v9119_v47, %v11239_v44  ;;  %v544_v55 = vpop.f32.mrb[21].mxu1 }
 0x3ac   :  { %v9120_v58 = vpop.f32.mrb[22].mxu1  ;;  %v11254_v59 = vadd.f32 %v544_v55, %v11246_v48 }
 0x3ad   :  { %v547_v60 = vpop.f32.mrb[23].mxu1  ;;  %v577_v61 = vsel %vm347_vm1, %v11249_v51, -inf  ;;  %v11268_v2 = vadd.f32 %v9120_v58, %v11260_v63 }
 0x3ae   :  { %v11263_v0 = vadd.f32 %v547_v60, %v11251_v57  ;;  %578 = vmax.xlane.f32.xlu1 %v577_v61  ;;  %569 = vmax.xlane.f32.xlu0 %v568_v62  ;;  %v571_v5 = vsel %vm347_vm1, %v11254_v59, -inf }
 0x3af   :  { %v580_v6 = vsel %vm347_vm1, %v11268_v2, -inf }
 0x3b0   :  { %v574_v1 = vsel %vm347_vm1, %v11263_v0, -inf }
 0x3b2   :  { %572 = vmax.xlane.f32.xlu1 %v571_v5  ;;  %575 = vmax.xlane.f32.xlu0 %v574_v1 }
 0x3b6   :  { %v9147_v7 = vpop.f32.mrb[8].mxu0  ;;  %581 = vmax.xlane.f32.xlu0 %v580_v6 }
 0x3b7   :  { %v806_v8 = vpop.f32.mrb[9].mxu0  ;;  %v11278_v12 = vadd.f32 %v9147_v7, %v11218_v21 }
 0x3b8   :  { %v11275_v9 = vadd.f32 %v806_v8, %v11220_v23  ;;  %v9148_v10 = vpop.f32.mrb[10].mxu0 }
 0x3b9   :  { %v809_v11 = vpop.f32.mrb[11].mxu0  ;;  %v11286_v18 = vadd.f32 %v9148_v10, %v11232_v37  ;;  %v843_v22 = vsel %vm347_vm1, %v11278_v12, -inf }
 0x3ba   :  { %v11281_v16 = vadd.f32 %v809_v11, %v11225_v30  ;;  %v837_v17 = vsel %vm347_vm1, %v11275_v9, -inf }
 0x3bb   :  { %838 = vmax.xlane.f32.xlu1 %v837_v17  ;;  %v846_v34 = vsel %vm347_vm1, %v11286_v18, -inf }
 0x3bc   :  { %v840_v19 = vsel %vm347_vm1, %v11281_v16, -inf }
 0x3bd   :  { %841 = vmax.xlane.f32.xlu0 %v840_v19 }
 0x3be   :  { %v9151_v20 = vpop.f32.mrb[12].mxu0 }
 0x3bf   :  { %v822_v29 = vpop.f32.mrb[13].mxu0  ;;  %844 = vmax.xlane.f32.xlu1 %v843_v22  ;;  %v11298_v46 = vadd.f32 %v9151_v20, %v11239_v44 }
 0x3c0   :  { %v11293_v31 = vadd.f32 %v822_v29, %v11246_v48  ;;  %v9152_v33 = vpop.f32.mrb[14].mxu0 }
 0x3c1   :  { %v825_v41 = vpop.f32.mrb[15].mxu0  ;;  %847 = vmax.xlane.f32.xlu0 %v846_v34  ;;  %v11306_v58 = vadd.f32 %v9152_v33, %v11260_v63  ;;  %v855_v61 = vsel %vm347_vm1, %v11298_v46, -inf }
 0x3c2   :  { %v11301_v47 = vadd.f32 %v825_v41, %v11251_v57  ;;  %v849_v55 = vsel %vm347_vm1, %v11293_v31, -inf }
 0x3c3   :  { %850 = vmax.xlane.f32.xlu1 %v849_v55  ;;  %v858_v62 = vsel %vm347_vm1, %v11306_v58, -inf }
 0x3c4   :  { %v852_v60 = vsel %vm347_vm1, %v11301_v47, -inf }
 0x3c5   :  { %853 = vmax.xlane.f32.xlu0 %v852_v60 }
 0x3c7   :  { %856 = vmax.xlane.f32.xlu1 %v855_v61 }
 0x3c9   :  { %859 = vmax.xlane.f32.xlu0 %v858_v62 }
 0x3d6   :  { %v11314_v1 = vpop.f32.mrb[16].mxu0 }
 0x3d7   :  { %v11316_v5 = vpop.f32.mrb[17].mxu0 }
 0x3d8   :  { %v11318_v6 = vpop.f32.mrb[18].mxu0  ;;  %933 = vrot.lane.b32.xlu1 %v11116_v4, %s10837_s22 }
 0x3d9   :  { %v11322_v7 = vpop.f32.mrb[19].mxu0 }
 0x3de   :  { %v11324_v8 = vpop.f32.mrb[20].mxu0 }
 0x3df   :  { %v11326_v10 = vpop.f32.mrb[21].mxu0 }
 0x3e0   :  { %v11328_v11 = vpop.f32.mrb[22].mxu0 }
 0x3e1   :  { %v11330_v17 = vpop.f32.mrb[23].mxu0 }
 0x433   :  { %v567_v19 = vpop.xlane.xlu0 %566 }
 0x434   :  { %v585_v20 = vsub.f32 %v11223_v28, %v567_v19 }
 0x436   :  { %v595_v22 = vmul.f32 1.442695, %v585_v20  ;;  %v564_v33 = vpop.xlane.xlu1 %563 }
 0x437   :  { %v561_v29 = vpop.xlane.xlu0 %560 }
 0x438   :  { %10174 = vpow2.f32 %v595_v22  ;;  %v583_v20 = vsub.f32 %v11228_v32, %v561_v29 }
 0x43a   :  { %v591_v56 = vmul.f32 1.442695, %v583_v20 }
 0x43b   :  { %v570_v34 = vpop.xlane.xlu0 %569  ;;  %v579_v55 = vpop.xlane.xlu1 %578 }
 0x43c   :  { %v586_v41 = vsub.f32 %v11242_v45, %v570_v34 }
 0x43e   :  { %v597_v60 = vmul.f32 1.442695, %v586_v41  ;;  %v584_v41 = vsub.f32 %v11235_v40, %v564_v33  ;;  %v589_v40 = vsub.f32 %v11249_v51, %v579_v55 }
 0x43f   :  { %v11334_v61 = vpop.xlane.xlu0 %575  ;;  %v573_v14 = vpop.xlane.xlu1 %572 }
 0x440   :  { %10176 = vpow2.f32 %v597_v60  ;;  %v593_v29 = vmul.f32 1.442695, %v584_v41 }
 0x442   :  { %v11336_v62 = vpop.eup %10174 }
 0x443   :  { %v613_v52 = vsel %vm347_vm1, %v11336_v62, 0.0  ;;  %v582_v28 = vpop.xlane.xlu0 %581 }
 0x444   :  { %614 = vadd.xlane.f32.xlu1 %v613_v52  ;;  %v590_v20 = vsub.f32 %v11268_v2, %v582_v28 }
 0x448   :  { %v839_v19 = vpop.xlane.xlu1 %838 }
 0x449   :  { %v861_v52 = vsub.f32 %v11275_v9, %v839_v19 }
 0x44a   :  { %v842_v22 = vpop.xlane.xlu0 %841  ;;  %v11341_v53 = vpop.eup %10176 }
 0x44b   :  { %v616_v34 = vsel %vm347_vm1, %v11341_v53, 0.0  ;;  %v862_v43 = vsub.f32 %v11281_v16, %v842_v22  ;;  %v869_v33 = vmul.f32 1.442695, %v861_v52 }
 0x44c   :  { %v845_v45 = vpop.xlane.xlu1 %844  ;;  %617 = vadd.xlane.f32.xlu0 %v616_v34 }
 0x44d   :  { %v863_v60 = vsub.f32 %v11278_v12, %v845_v45  ;;  %v871_v9 = vmul.f32 1.442695, %v862_v43  ;;  %v603_v45 = vmul.f32 1.442695, %v589_v40 }
 0x44e   :  { %v848_v54 = vpop.xlane.xlu0 %847 }
 0x44f   :  { %v873_v49 = vmul.f32 1.442695, %v863_v60  ;;  %v864_v50 = vsub.f32 %v11286_v18, %v848_v54 }
 0x450   :  { %v851_v32 = vpop.xlane.xlu1 %850 }
 0x451   :  { %10178 = vpow2.f32 %v873_v49  ;;  %v875_v42 = vmul.f32 1.442695, %v864_v50  ;;  %v605_v49 = vmul.f32 1.442695, %v590_v20 }
 0x452   :  { %10180 = vpow2.f32 %v591_v56  ;;  %v854_v35 = vpop.xlane.xlu0 %853 }
 0x453   :  { %10182 = vpow2.f32 %v875_v42  ;;  %v587_v42 = vsub.f32 %v11254_v59, %v573_v14  ;;  %v865_v59 = vsub.f32 %v11293_v31, %v851_v32 }
 0x454   :  { %v857_v12 = vpop.xlane.xlu1 %856  ;;  %10184 = vpow2.f32 %v593_v29 }
 0x455   :  { %10186 = vpow2.f32 %v869_v33  ;;  %v867_v54 = vsub.f32 %v11298_v46, %v857_v12  ;;  %v588_v46 = vsub.f32 %v11263_v0, %v11334_v61  ;;  %v599_v14 = vmul.f32 1.442695, %v587_v42 }
 0x456   :  { %v860_v19 = vpop.xlane.xlu0 %859  ;;  %10188 = vpow2.f32 %v871_v9  ;;  %v866_v0 = vsub.f32 %v11301_v47, %v854_v35  ;;  %v877_v52 = vmul.f32 1.442695, %v865_v59 }
 0x457   :  { %v868_v50 = vsub.f32 %v11306_v58, %v860_v19  ;;  %10190 = vpow2.f32 %v603_v45  ;;  %v881_v51 = vmul.f32 1.442695, %v867_v54  ;;  %v601_v41 = vmul.f32 1.442695, %v588_v46 }
 0x458   :  { %v11353_v18 = vpop.permute.xlu1 %933  ;;  %10192 = vpow2.f32 %v605_v49  ;;  %v879_v29 = vmul.f32 1.442695, %v866_v0 }
 0x459   :  { %9153 = vmatprep.subr.bf16.mxu1 %v11353_v18  ;;  %v883_v58 = vmul.f32 1.442695, %v868_v50  ;;  %10194 = vpow2.f32 %v881_v51 }
 0x45b   :  { %v11357_v56 = vpop.eup %10178  ;;  %10196 = vpow2.f32 %v883_v58  ;;  %v11442_v58 = vadd.f32 %v11316_v5, %v11220_v23  ;;  %v11462_v5 = vadd.f32 %v11318_v6, %v11232_v37 }
 0x45c   :  { %v11360_v43 = vpop.eup %10180  ;;  %v891_v2 = vsel %vm347_vm1, %v11357_v56, 0.0  ;;  %10198 = vpow2.f32 %v599_v14  ;;  %v11474_v14 = vadd.f32 %v11330_v17, %v11251_v57 }
 0x45d   :  { %v11364_v16 = vpop.eup %10182  ;;  %892 = vadd.xlane.f32.xlu1 %v891_v2  ;;  %v607_v22 = vsel %vm347_vm1, %v11360_v43, 0.0  ;;  %10200 = vpow2.f32 %v601_v41  ;;  %v1306_v6 = vsel %vm347_vm1, %v11462_v5, -inf }
 0x45e   :  { %v894_v55 = vsel %vm347_vm1, %v11364_v16, 0.0  ;;  %v11370_v28 = vpop.eup %10184  ;;  %10202 = vpow2.f32 %v877_v52 }
 0x45f   :  { %895 = vadd.xlane.f32.xlu0 %v894_v55  ;;  %v11375_v34 = vpop.eup %10186  ;;  %v610_v61 = vsel %vm347_vm1, %v11370_v28, 0.0  ;;  %10204 = vpow2.f32 %v879_v29  ;;  %v11446_v55 = vadd.f32 %v11322_v7, %v11225_v30  ;;  %v11468_v7 = vadd.f32 %v11324_v8, %v11239_v44 }
 0x460   :  { %v11380_v60 = vpop.eup %10188  ;;  %v885_v31 = vsel %vm347_vm1, %v11375_v34, 0.0  ;;  %v11482_v8 = vadd.f32 %v11328_v11, %v11260_v63 }
 0x461   :  { %608 = vadd.xlane.f32.xlu1 %v607_v22  ;;  %v11384_v32 = vpop.eup %10190  ;;  %v888_v35 = vsel %vm347_vm1, %v11380_v60, 0.0  ;;  %v1315_v59 = vsel %vm347_vm1, %v11468_v7, -inf  ;;  %v1312_v22 = vsel %vm347_vm1, %v11474_v14, -inf }
 0x462   :  { %v11388_v47 = vpop.eup %10192  ;;  %v625_v40 = vsel %vm347_vm1, %v11384_v32, 0.0  ;;  %v1318_v17 = vsel %vm347_vm1, %v11482_v8, -inf }
 0x463   :  { %611 = vadd.xlane.f32.xlu0 %v610_v61  ;;  %v11392_v33 = vpop.eup %10194  ;;  %v628_v12 = vsel %vm347_vm1, %v11388_v47, 0.0 }
 0x464   :  { %v903_v9 = vsel %vm347_vm1, %v11392_v33, 0.0 }
 0x465   :  { %886 = vadd.xlane.f32.xlu1 %v885_v31  ;;  %v11396_v20 = vpop.eup %10196 }
 0x466   :  { %v11400_v19 = vpop.eup %10198  ;;  %v906_v45 = vsel %vm347_vm1, %v11396_v20, 0.0 }
 0x467   :  { %889 = vadd.xlane.f32.xlu0 %v888_v35  ;;  %v11404_v54 = vpop.eup %10200  ;;  %v619_v49 = vsel %vm347_vm1, %v11400_v19, 0.0 }
 0x468   :  { %v11408_v50 = vpop.eup %10202  ;;  %v622_v42 = vsel %vm347_vm1, %v11404_v54, 0.0 }
 0x469   :  { %626 = vadd.xlane.f32.xlu1 %v625_v40  ;;  %v11412_v51 = vpop.eup %10204  ;;  %v897_v2 = vsel %vm347_vm1, %v11408_v50, 0.0 }
 0x46a   :  { %v900_v46 = vsel %vm347_vm1, %v11412_v51, 0.0 }
 0x46b   :  { %629 = vadd.xlane.f32.xlu0 %v628_v12 }
 0x46d   :  { %904 = vadd.xlane.f32.xlu1 %v903_v9 }
 0x46f   :  { %907 = vadd.xlane.f32.xlu0 %v906_v45 }
 0x471   :  { %620 = vadd.xlane.f32.xlu1 %v619_v49 }
 0x473   :  { %623 = vadd.xlane.f32.xlu0 %v622_v42 }
 0x475   :  { %898 = vadd.xlane.f32.xlu1 %v897_v2 }
 0x477   :  { %901 = vadd.xlane.f32.xlu0 %v900_v46 }
 0x486   :  { %937 = vrot.lane.b32.xlu1 %v11130_v27, %s10837_s22 }
 0x48a   :  { %939 = vrot.lane.b32.xlu1 %v11138_v39, %s10837_s22 }
 0x48d   :  { %935 = vrot.lane.b32.xlu0 %v11124_v15, %s10837_s22 }
 0x48e   :  { %1583 = vrot.lane.b32.xlu1 %v11122_v13, %s10840_s1 }
 0x491   :  { %1581 = vrot.lane.b32.xlu0 %v11114_v3, %s10840_s1 }
 0x492   :  { %1587 = vrot.lane.b32.xlu1 %v11136_v38, %s10840_s1 }
 0x495   :  { %1585 = vrot.lane.b32.xlu0 %v11128_v26, %s10840_s1 }
 0x496   :  { %1575 = vrot.lane.b32.xlu1 %v11122_v13, %s10841_s24  ;;  %v11450_v13 = vadd.f32 %v11314_v1, %v11218_v21 }
 0x498   :  { %v1303_v1 = vsel %vm347_vm1, %v11450_v13, -inf }
 0x499   :  { %1573 = vrot.lane.b32.xlu0 %v11114_v3, %s10841_s24  ;;  %v1297_v3 = vsel %vm347_vm1, %v11442_v58, -inf }
 0x49a   :  { %1579 = vrot.lane.b32.xlu1 %v11136_v38, %s10841_s24  ;;  %v11456_v38 = vadd.f32 %v11326_v10, %v11246_v48 }
 0x49c   :  { %v1309_v10 = vsel %vm347_vm1, %v11456_v38, -inf }
 0x49d   :  { %1577 = vrot.lane.b32.xlu0 %v11128_v26, %s10841_s24  ;;  %v1300_v26 = vsel %vm347_vm1, %v11446_v55, -inf }
 0x4bc   :  { %1298 = vmax.xlane.f32.xlu0 %v1297_v3 }
 0x4be   :  { %1301 = vmax.xlane.f32.xlu1 %v1300_v26 }
 0x4c0   :  { %1304 = vmax.xlane.f32.xlu0 %v1303_v1 }
 0x4c2   :  { %1310 = vmax.xlane.f32.xlu1 %v1309_v10 }
 0x4c4   :  { %1307 = vmax.xlane.f32.xlu0 %v1306_v6 }
 0x4c6   :  { %1316 = vmax.xlane.f32.xlu1 %v1315_v59 }
 0x4c8   :  { %1313 = vmax.xlane.f32.xlu0 %v1312_v22 }
 0x4cc   :  { %1319 = vmax.xlane.f32.xlu0 %v1318_v17 }
 0x4d1   :  { %v615_v41 = vpop.xlane.xlu1 %614 }
 0x4d7   :  { %1389 = vrot.lane.b32.xlu1 %v11116_v4, %s10839_s26 }
 0x4d9   :  { %v618_v0 = vpop.xlane.xlu0 %617 }
 0x4da   :  { %10206 = vrcp.f32 %v618_v0 }
 0x4e4   :  { %v10207_v12 = vpop.eup %10206 }
 0x4e5   :  { %v642_v46 = vmul.f32 %v10207_v12, %v11341_v53 }
 0x4ea   :  { %v893_v61 = vpop.xlane.xlu1 %892 }
 0x4ec   :  { %v896_v52 = vpop.xlane.xlu0 %895 }
 0x4ee   :  { %v609_v31 = vpop.xlane.xlu1 %608 }
 0x4ef   :  { %10208 = vrcp.f32 %v609_v31 }
 0x4f0   :  { %10210 = vrcp.f32 %v615_v41  ;;  %v612_v11 = vpop.xlane.xlu0 %611 }
 0x4f1   :  { %10212 = vrcp.f32 %v612_v11 }
 0x4f2   :  { %v887_v29 = vpop.xlane.xlu1 %886 }
 0x4f3   :  { %10214 = vrcp.f32 %v887_v29 }
 0x4f4   :  { %v890_v35 = vpop.xlane.xlu0 %889 }
 0x4f5   :  { %10216 = vrcp.f32 %v890_v35 }
 0x4f6   :  { %v627_v40 = vpop.xlane.xlu1 %626 }
 0x4f8   :  { %v630_v9 = vpop.xlane.xlu0 %629 }
 0x4f9   :  { %v10209_v45 = vpop.eup %10208  ;;  %10218 = vrcp.f32 %v630_v9 }
 0x4fa   :  { %v10211_v49 = vpop.eup %10210  ;;  %v905_v42 = vpop.xlane.xlu1 %904  ;;  %v639_v26 = vmul.f32 %v10209_v45, %v11360_v43 }
 0x4fb   :  { %v10213_v2 = vpop.eup %10212  ;;  %v641_v10 = vmul.f32 %v10211_v49, %v11336_v62 }
 0x4fc   :  { %v908_v3 = vpop.xlane.xlu0 %907  ;;  %v640_v1 = vmul.f32 %v10213_v2, %v11370_v28 }
 0x4fd   :  { %v648_v22 = vpack.c.bf16 %v642_v46, %v641_v10  ;;  %v10215_v28 = vpop.eup %10214 }
 0x4fe   :  { %v621_v6 = vpop.xlane.xlu1 %620  ;;  %v647_v59 = vpack.c.bf16 %v640_v1, %v639_v26 }
 0x4ff   :  { %10220 = vrcp.f32 %v621_v6  ;;  %v10217_v41 = vpop.eup %10216 }
 0x500   :  { %10222 = vrcp.f32 %v627_v40  ;;  %9129 = vmatprep.mubr.msk.bf16.mxu1 %vm347_vm1, %v647_v59  ;;  %v624_v17 = vpop.xlane.xlu0 %623  ;;  %v918_v45 = vmul.f32 %v10217_v41, %v11380_v60 }
 0x501   :  { %10224 = vrcp.f32 %v624_v17  ;;  %9130 = vmatmul.mubr.msk.bf16.vlgmr.msra.gmra.mrb[24].mxu1 %vm347_vm1, %v648_v22 }
 0x502   :  { %9154 = vmatpush3.bf16.msra.mxu1 %v11353_v18  ;;  %v899_v53 = vpop.xlane.xlu1 %898  ;;  %10226 = vrcp.f32 %v896_v52 }
 0x503   :  { %v10219_v0 = vpop.eup %10218 }
 0x504   :  { %v902_v43 = vpop.xlane.xlu0 %901  ;;  %v646_v18 = vmul.f32 %v10219_v0, %v11388_v47  ;;  %v917_v47 = vmul.f32 %v10215_v28, %v11375_v34 }
 0x505   :  { %10228 = vrcp.f32 %v902_v43 }
 0x506   :  { %v938_v62 = vpop.permute.xlu1 %937  ;;  %10230 = vrcp.f32 %v893_v61  ;;  %v925_v26 = vpack.c.bf16 %v918_v45, %v917_v47 }
 0x507   :  { %10232 = vrcp.f32 %v899_v53 }
 0x508   :  { %v936_v31 = vpop.permute.xlu0 %935  ;;  %10234 = vrcp.f32 %v908_v3 }
 0x509   :  { %v10221_v11 = vpop.eup %10220  ;;  %9155 = vmatprep.subr.bf16.mxu1 %v936_v31  ;;  %10236 = vrcp.f32 %v905_v42 }
 0x50a   :  { %v10223_v29 = vpop.eup %10222  ;;  %v940_v35 = vpop.permute.xlu1 %939  ;;  %9156 = vmatpush3.bf16.msra.mxu1 %v936_v31  ;;  %v643_v9 = vmul.f32 %v10221_v11, %v11400_v19 }
 0x50b   :  { %v10225_v40 = vpop.eup %10224  ;;  %9157 = vmatprep.subr.bf16.mxu1 %v938_v62  ;;  %v645_v49 = vmul.f32 %v10223_v29, %v11384_v32 }
 0x50c   :  { %v1582_v12 = vpop.permute.xlu0 %1581  ;;  %v644_v52 = vmul.f32 %v10225_v40, %v11404_v54  ;;  %v10227_v54 = vpop.eup %10226 }
 0x50d   :  { %9897 = vmatprep.subr.msk.bf16.mxu0 %vm469_vm2, %v1582_v12  ;;  %v1602_v61 = vsel %vm469_vm2, %v1582_v12, 0  ;;  %v650_v19 = vpack.c.bf16 %v646_v18, %v645_v49  ;;  %v920_v34 = vmul.f32 %v10227_v54, %v11364_v16 }
 0x50e   :  { %v1584_v2 = vpop.permute.xlu1 %1583  ;;  %9158 = vmatpush3.bf16.msra.mxu1 %v938_v62  ;;  %9232 = vmatpush3.bf16.xpose.msra.mxu0 %v1602_v61  ;;  %v649_v46 = vpack.c.bf16 %v644_v52, %v643_v9 }
 0x50f   :  { %9159 = vmatprep.subr.bf16.mxu1 %v940_v35  ;;  %9898 = vmatprep.subr.msk.bf16.mxu0 %vm469_vm2, %v1584_v2  ;;  %v10229_v1 = vpop.eup %10228  ;;  %v1605_v42 = vsel %vm469_vm2, %v1584_v2, 0 }
 0x510   :  { %9133 = vmatprep.mubr.msk.bf16.mxu1 %vm347_vm1, %v649_v46  ;;  %v1586_v60 = vpop.permute.xlu0 %1585  ;;  %v10231_v32 = vpop.eup %10230  ;;  %v922_v6 = vmul.f32 %v10229_v1, %v11412_v51 }
 0x511   :  { %9134 = vmatmul.mubr.msk.bf16.gmra.mrb[28].mxu1 %vm347_vm1, %v650_v19  ;;  %v10233_v3 = vpop.eup %10232  ;;  %v919_v59 = vmul.f32 %v10231_v32, %v11357_v56  ;;  %v1608_v56 = vsel %vm469_vm2, %v1586_v60, 0 }
 0x512   :  { %9160 = vmatpush3.bf16.msra.mxu1 %v940_v35  ;;  %9161 = vmatprep.mubr.msk.bf16.mxu1 %vm347_vm1, %v925_v26  ;;  %v921_v22 = vmul.f32 %v10233_v3, %v11408_v50  ;;  %v10235_v53 = vpop.eup %10234  ;;  %v1588_v62 = vpop.permute.xlu1 %1587 }
 0x513   :  { %v926_v17 = vpack.c.bf16 %v920_v34, %v919_v59  ;;  %v10237_v16 = vpop.eup %10236  ;;  %v924_v51 = vmul.f32 %v10235_v53, %v11396_v20  ;;  %v1611_v41 = vsel %vm469_vm2, %v1588_v62, 0 }
 0x514   :  { %v1574_v10 = vpop.permute.xlu0 %1573  ;;  %v927_v43 = vpack.c.bf16 %v922_v6, %v921_v22  ;;  %v923_v28 = vmul.f32 %v10237_v16, %v11392_v33 }
 0x515   :  { %9239 = vmatprep.mubr.msk.bf16.mxu0 %vm469_vm2, %v1574_v10 }
 0x516   :  { %9234 = vmatpush3.bf16.xpose.msra.mxu0 %v1605_v42  ;;  %v928_v50 = vpack.c.bf16 %v924_v51, %v923_v28  ;;  %v1576_v0 = vpop.permute.xlu1 %1575  ;;  %v9970_v51 = vld [vmem:[%s13712_s7 + $0x8] sm:$0xff]  }
 0x517   :  { %9899 = vmatprep.subr.msk.bf16.mxu0 %vm469_vm2, %v1586_v60  ;;  %9169 = vmatprep.subr.bf16.mxu1 %v9970_v51 }
 0x518   :  { %v1578_v31 = vpop.permute.xlu0 %1577 }
 0x519   :  { %9162 = vmatmul.mubr.msk.bf16.vlgmr.msra.gmra.mrb[32].mxu1 %vm347_vm1, %v926_v17 }
 0x51a   :  { %9165 = vmatprep.mubr.msk.bf16.mxu1 %vm347_vm1, %v927_v43  ;;  %v1580_v20 = vpop.permute.xlu1 %1579  ;;  %9170 = vmatpush3.bf16.msra.mxu1 %v9970_v51 }
 0x51e   :  { %9236 = vmatpush3.bf16.xpose.msra.mxu0 %v1608_v56  ;;  %v9971_v56 = vld [vmem:[%s13712_s7] sm:$0xff]  }
 0x51f   :  { %9900 = vmatprep.subr.msk.bf16.mxu0 %vm469_vm2, %v1588_v62  ;;  %9179 = vmatprep.subr.bf16.mxu1 %v9971_v56 }
 0x521   :  { %9166 = vmatmul.mubr.msk.bf16.gmra.mrb[36].mxu1 %vm347_vm1, %v928_v50 }
 0x526   :  { %9238 = vmatpush3.bf16.xpose.msra.mxu0 %v1611_v41 }
 0x52d   :  { %9240 = vmatmul.mubr.msk.bf16.vlgmr.msra.gmra.mrb[24].mxu0 %vm469_vm2, %v1576_v0 }
 0x52e   :  { %9243 = vmatprep.mubr.msk.bf16.mxu0 %vm469_vm2, %v1578_v31 }
 0x535   :  { %9244 = vmatmul.mubr.msk.bf16.gmra.mrb[28].mxu0 %vm469_vm2, %v1580_v20 }
 0x549   :  { %v1299_v33 = vpop.xlane.xlu0 %1298 }
 0x54a   :  { %v1321_v29 = vsub.f32 %v11442_v58, %v1299_v33 }
 0x54b   :  { %v1302_v11 = vpop.xlane.xlu1 %1301 }
 0x54c   :  { %v1322_v18 = vsub.f32 %v11446_v55, %v1302_v11  ;;  %v1329_v9 = vmul.f32 1.442695, %v1321_v29 }
 0x54d   :  { %v1305_v35 = vpop.xlane.xlu0 %1304 }
 0x54e   :  { %v1323_v40 = vsub.f32 %v11450_v13, %v1305_v35  ;;  %v1331_v49 = vmul.f32 1.442695, %v1322_v18 }
 0x54f   :  { %v1311_v12 = vpop.xlane.xlu1 %1310 }
 0x550   :  { %v1333_v52 = vmul.f32 1.442695, %v1323_v40  ;;  %v1325_v46 = vsub.f32 %v11456_v38, %v1311_v12 }
 0x551   :  { %v1308_v45 = vpop.xlane.xlu0 %1307 }
 0x552   :  { %10238 = vpow2.f32 %v1333_v52  ;;  %v1324_v61 = vsub.f32 %v11462_v5, %v1308_v45  ;;  %v1337_v55 = vmul.f32 1.442695, %v1325_v46 }
 0x553   :  { %v1317_v2 = vpop.xlane.xlu1 %1316  ;;  %10240 = vpow2.f32 %v1329_v9 }
 0x554   :  { %v1335_v47 = vmul.f32 1.442695, %v1324_v61  ;;  %v1327_v58 = vsub.f32 %v11468_v7, %v1317_v2 }
 0x555   :  { %v1314_v19 = vpop.xlane.xlu0 %1313 }
 0x556   :  { %10242 = vpow2.f32 %v1335_v47  ;;  %v1341_v13 = vmul.f32 1.442695, %v1327_v58  ;;  %v1326_v54 = vsub.f32 %v11474_v14, %v1314_v19 }
 0x557   :  { %10244 = vpow2.f32 %v1331_v49  ;;  %v1390_v18 = vpop.permute.xlu1 %1389 }
 0x558   :  { %10246 = vpow2.f32 %v1341_v13  ;;  %v1339_v1 = vmul.f32 1.442695, %v1326_v54 }
 0x559   :  { %v1320_v60 = vpop.xlane.xlu0 %1319  ;;  %10248 = vpow2.f32 %v1337_v55 }
 0x55a   :  { %v1328_v26 = vsub.f32 %v11482_v8, %v1320_v60 }
 0x55c   :  { %v11535_v5 = vpop.eup %10238  ;;  %v1343_v32 = vmul.f32 1.442695, %v1328_v26 }
 0x55d   :  { %v1351_v38 = vsel %vm347_vm1, %v11535_v5, 0.0  ;;  %v11539_v7 = vpop.eup %10240 }
 0x55e   :  { %10250 = vpow2.f32 %v1343_v32  ;;  %1352 = vadd.xlane.f32.xlu1 %v1351_v38  ;;  %v1345_v14 = vsel %vm347_vm1, %v11539_v7, 0.0 }
 0x55f   :  { %10252 = vpow2.f32 %v1339_v1 }
 0x560   :  { %v11541_v3 = vpop.eup %10242 }
 0x561   :  { %v11543_v34 = vpop.eup %10244  ;;  %v1354_v8 = vsel %vm347_vm1, %v11541_v3, 0.0 }
 0x562   :  { %v11549_v10 = vpop.eup %10246  ;;  %1346 = vadd.xlane.f32.xlu1 %v1345_v14  ;;  %1355 = vadd.xlane.f32.xlu0 %v1354_v8  ;;  %v1348_v59 = vsel %vm347_vm1, %v11543_v34, 0.0 }
 0x563   :  { %v1363_v6 = vsel %vm347_vm1, %v11549_v10, 0.0  ;;  %v11555_v42 = vpop.eup %10248 }
 0x564   :  { %v1357_v17 = vsel %vm347_vm1, %v11555_v42, 0.0 }
 0x566   :  { %1364 = vadd.xlane.f32.xlu1 %v1363_v6  ;;  %1349 = vadd.xlane.f32.xlu0 %v1348_v59 }
 0x568   :  { %v11557_v22 = vpop.eup %10250 }
 0x569   :  { %v1366_v53 = vsel %vm347_vm1, %v11557_v22, 0.0  ;;  %v11563_v43 = vpop.eup %10252 }
 0x56a   :  { %1358 = vadd.xlane.f32.xlu1 %v1357_v17  ;;  %1367 = vadd.xlane.f32.xlu0 %v1366_v53  ;;  %v1360_v16 = vsel %vm347_vm1, %v11563_v43, 0.0 }
 0x56e   :  { %1361 = vadd.xlane.f32.xlu0 %v1360_v16 }
 0x57b   :  { %1393 = vrot.lane.b32.xlu1 %v11130_v27, %s10839_s26 }
 0x57f   :  { %1395 = vrot.lane.b32.xlu1 %v11138_v39, %s10839_s26 }
 0x584   :  { %1391 = vrot.lane.b32.xlu0 %v11124_v15, %s10839_s26 }
 0x5d4   :  { %v9131_v28 = vpop.f32.mrb[24].mxu1 }
 0x5d5   :  { %v697_v62 = vpop.f32.mrb[25].mxu1 }
 0x5d6   :  { %v9132_v50 = vpop.f32.mrb[26].mxu1 }
 0x5d7   :  { %v729_v41 = vpack.c.bf16 %v9132_v50, %v9131_v28  ;;  %v700_v0 = vpop.f32.mrb[27].mxu1 }
 0x5d8   :  { %v728_v31 = vpack.c.bf16 %v700_v0, %v697_v62 }
 0x5e4   :  { %v11579_v20 = vpop.f32.mrb[28].mxu1 }
 0x5e5   :  { %v713_v33 = vpop.f32.mrb[29].mxu1 }
 0x5e6   :  { %v11581_v11 = vpop.f32.mrb[30].mxu1 }
 0x5e7   :  { %v731_v29 = vpack.c.bf16 %v11581_v11, %v11579_v20  ;;  %v716_v35 = vpop.f32.mrb[31].mxu1 }
 0x5e8   :  { %v730_v40 = vpack.c.bf16 %v716_v35, %v713_v33 }
 0x5eb   :  { %v1353_v9 = vpop.xlane.xlu1 %1352 }
 0x5ec   :  { %v9163_v12 = vpop.f32.mrb[32].mxu1 }
 0x5ed   :  { %v991_v52 = vpop.f32.mrb[33].mxu1 }
 0x5ee   :  { %v9164_v45 = vpop.f32.mrb[34].mxu1 }
 0x5ef   :  { %v1023_v61 = vpack.c.bf16 %v9164_v45, %v9163_v12  ;;  %v994_v49 = vpop.f32.mrb[35].mxu1  ;;  %v1356_v46 = vpop.xlane.xlu0 %1355 }
 0x5f0   :  { %v1022_v2 = vpack.c.bf16 %v994_v49, %v991_v52  ;;  %v1347_v47 = vpop.xlane.xlu1 %1346 }
 0x5f2   :  { %9171 = vmatprep.mubr.msk.bf16.mxu1 %vm469_vm2, %v1022_v2 }
 0x5f3   :  { %9172 = vmatmul.mubr.msk.bf16.vlgmr.msra.gmra.mrb[40].mxu1 %vm469_vm2, %v1023_v61  ;;  %v1350_v58 = vpop.xlane.xlu0 %1349 }
 0x5f4   :  { %9180 = vmatpush3.bf16.msra.mxu1 %v9971_v56  ;;  %v9167_v19 = vpop.f32.mrb[36].mxu1  ;;  %10254 = vrcp.f32 %v1350_v58  ;;  %v1365_v32 = vpop.xlane.xlu1 %1364 }
 0x5f5   :  { %9205 = vmatprep.subr.bf16.mxu1 %v1390_v18  ;;  %v1007_v13 = vpop.f32.mrb[37].mxu1  ;;  %10256 = vrcp.f32 %v1347_v47 }
 0x5f6   :  { %v9168_v55 = vpop.f32.mrb[38].mxu1  ;;  %10258 = vrcp.f32 %v1356_v46 }
 0x5f7   :  { %v1025_v54 = vpack.c.bf16 %v9168_v55, %v9167_v19  ;;  %v1010_v60 = vpop.f32.mrb[39].mxu1  ;;  %v1368_v1 = vpop.xlane.xlu0 %1367  ;;  %v9972_v55 = vld [vmem:[%s13712_s7 + $0x10] sm:$0xff]  }
 0x5f8   :  { %v1024_v26 = vpack.c.bf16 %v1010_v60, %v1007_v13  ;;  %v1359_v14 = vpop.xlane.xlu1 %1358 }
 0x5fa   :  { %9175 = vmatprep.mubr.msk.bf16.mxu1 %vm469_vm2, %v1024_v26 }
 0x5fb   :  { %9176 = vmatmul.mubr.msk.bf16.gmra.mrb[44].mxu1 %vm469_vm2, %v1025_v54  ;;  %v1362_v38 = vpop.xlane.xlu0 %1361 }
 0x5fc   :  { %9181 = vmatprep.mubr.msk.bf16.mxu1 %vm469_vm2, %v728_v31  ;;  %10260 = vrcp.f32 %v1362_v38  ;;  %v1394_v50 = vpop.permute.xlu1 %1393 }
 0x5fd   :  { %10262 = vrcp.f32 %v1353_v9 }
 0x5fe   :  { %v10255_v53 = vpop.eup %10254  ;;  %10264 = vrcp.f32 %v1359_v14 }
 0x5ff   :  { %v1392_v51 = vpop.permute.xlu0 %1391  ;;  %v10257_v62 = vpop.eup %10256  ;;  %v1378_v0 = vmul.f32 %v10255_v53, %v11543_v34  ;;  %10266 = vrcp.f32 %v1368_v1 }
 0x600   :  { %v9241_v8 = vpop.f32.mrb[24].mxu0  ;;  %v1377_v31 = vmul.f32 %v10257_v62, %v11539_v7  ;;  %10268 = vrcp.f32 %v1365_v32 }
 0x601   :  { %v1647_v6 = vpop.f32.mrb[25].mxu0  ;;  %v11595_v56 = vadd.f32 %v9241_v8, %v11218_v21 }
 0x602   :  { %v11591_v59 = vadd.f32 %v1647_v6, %v11220_v23  ;;  %v9242_v17 = vpop.f32.mrb[26].mxu0  ;;  %v1385_v12 = vpack.c.bf16 %v1378_v0, %v1377_v31 }
 0x603   :  { %9182 = vmatmul.mubr.msk.bf16.vlgmr.msra.gmra.mrb[40].mxu1 %vm469_vm2, %v729_v41  ;;  %v1650_v16 = vpop.f32.mrb[27].mxu0  ;;  %v11610_v33 = vadd.f32 %v9242_v17, %v11232_v37  ;;  %v1396_v37 = vpop.permute.xlu1 %1395 }
 0x604   :  { %9206 = vmatpush3.bf16.msra.mxu1 %v1390_v18  ;;  %v11598_v28 = vadd.f32 %v1650_v16, %v11225_v30  ;;  %9185 = vmatprep.mubr.msk.bf16.mxu1 %vm469_vm2, %v730_v40  ;;  %v1678_v23 = vsel %vm347_vm1, %v11591_v59, -inf  ;;  %v1684_v30 = vsel %vm347_vm1, %v11595_v56, -inf  ;;  %v10259_v40 = vpop.eup %10258 }
 0x605   :  { %9207 = vmatprep.subr.bf16.mxu1 %v1392_v51  ;;  %1679 = vmax.xlane.f32.xlu0 %v1678_v23  ;;  %v1380_v49 = vmul.f32 %v10259_v40, %v11541_v3  ;;  %v1687_v20 = vsel %vm347_vm1, %v11610_v33, -inf }
 0x606   :  { %v1681_v41 = vsel %vm347_vm1, %v11598_v28, -inf  ;;  %v10261_v9 = vpop.eup %10260 }
 0x607   :  { %1682 = vmax.xlane.f32.xlu1 %v1681_v41  ;;  %v10263_v52 = vpop.eup %10262 }
 0x608   :  { %9208 = vmatpush3.bf16.msra.mxu1 %v1392_v51  ;;  %v9245_v21 = vpop.f32.mrb[28].mxu0  ;;  %v10265_v61 = vpop.eup %10264  ;;  %v1379_v11 = vmul.f32 %v10263_v52, %v11535_v5 }
 0x609   :  { %9209 = vmatprep.subr.bf16.mxu1 %v1394_v50  ;;  %v1663_v35 = vpop.f32.mrb[29].mxu0  ;;  %1685 = vmax.xlane.f32.xlu0 %v1684_v30  ;;  %v1672_v45 = vadd.f32 %v9245_v21, %v11239_v44  ;;  %v1382_v44 = vmul.f32 %v10261_v9, %v11563_v43  ;;  %v1381_v46 = vmul.f32 %v10265_v61, %v11555_v42  ;;  %v10267_v58 = vpop.eup %10266 }
 0x60a   :  { %v11613_v18 = vadd.f32 %v1663_v35, %v11246_v48  ;;  %v9246_v34 = vpop.f32.mrb[30].mxu0  ;;  %v1386_v47 = vpack.c.bf16 %v1380_v49, %v1379_v11  ;;  %v10269_v43 = vpop.eup %10268  ;;  %v1384_v13 = vmul.f32 %v10267_v58, %v11557_v22 }
 0x60b   :  { %9186 = vmatmul.mubr.msk.bf16.gmra.mrb[44].mxu1 %vm469_vm2, %v731_v29  ;;  %v1666_v7 = vpop.f32.mrb[31].mxu0  ;;  %v1696_v29 = vsel %vm347_vm1, %v1672_v45, -inf  ;;  %v1675_v3 = vadd.f32 %v9246_v34, %v11260_v63  ;;  %v1387_v19 = vpack.c.bf16 %v1382_v44, %v1381_v46  ;;  %v1383_v42 = vmul.f32 %v10269_v43, %v11549_v10 }
 0x60c   :  { %9210 = vmatpush3.bf16.msra.mxu1 %v1394_v50  ;;  %9213 = vmatprep.mubr.msk.bf16.mxu1 %vm347_vm1, %v1385_v12  ;;  %v1690_v48 = vsel %vm347_vm1, %v11613_v18, -inf  ;;  %v11625_v2 = vadd.f32 %v1666_v7, %v11251_v57 }
 0x60d   :  { %9211 = vmatprep.subr.bf16.mxu1 %v1396_v37  ;;  %1691 = vmax.xlane.f32.xlu1 %v1690_v48  ;;  %v1699_v5 = vsel %vm347_vm1, %v1675_v3, -inf  ;;  %v1388_v63 = vpack.c.bf16 %v1384_v13, %v1383_v42 }
 0x60e   :  { %1688 = vmax.xlane.f32.xlu0 %v1687_v20  ;;  %v1693_v57 = vsel %vm347_vm1, %v11625_v2, -inf }
 0x610   :  { %9212 = vmatpush3.bf16.msra.mxu1 %v1396_v37 }
 0x611   :  { %1697 = vmax.xlane.f32.xlu1 %v1696_v29  ;;  %9221 = vmatprep.subr.bf16.mxu1 %v9972_v55 }
 0x612   :  { %1694 = vmax.xlane.f32.xlu0 %v1693_v57 }
 0x613   :  { %9214 = vmatmul.mubr.msk.bf16.vlgmr.msra.gmra.mrb[48].mxu1 %vm347_vm1, %v1386_v47 }
 0x614   :  { %9217 = vmatprep.mubr.msk.bf16.mxu1 %vm347_vm1, %v1387_v19  ;;  %9222 = vmatpush3.bf16.msra.mxu1 %v9972_v55 }
 0x616   :  { %1700 = vmax.xlane.f32.xlu0 %v1699_v5 }
 0x61b   :  { %9218 = vmatmul.mubr.msk.bf16.gmra.mrb[52].mxu1 %vm347_vm1, %v1388_v63 }
 0x622   :  { %1770 = vrot.lane.b32.xlu1 %v11116_v4, %s10841_s24 }
 0x626   :  { %1772 = vrot.lane.b32.xlu1 %v11124_v15, %s10841_s24 }
 0x692   :  { %v1680_v54 = vpop.xlane.xlu0 %1679 }
 0x693   :  { %v1702_v22 = vsub.f32 %v11591_v59, %v1680_v54 }
 0x694   :  { %v1683_v60 = vpop.xlane.xlu1 %1682 }
 0x695   :  { %v1710_v1 = vmul.f32 1.442695, %v1702_v22  ;;  %v1703_v38 = vsub.f32 %v11598_v28, %v1683_v60 }
 0x696   :  { %v1686_v10 = vpop.xlane.xlu0 %1685 }
 0x697   :  { %v1704_v26 = vsub.f32 %v11595_v56, %v1686_v10  ;;  %v1712_v6 = vmul.f32 1.442695, %v1703_v38 }
 0x699   :  { %v1714_v32 = vmul.f32 1.442695, %v1704_v26 }
 0x69a   :  { %v1692_v14 = vpop.xlane.xlu1 %1691 }
 0x69b   :  { %10270 = vpow2.f32 %v1714_v32  ;;  %v1689_v8 = vpop.xlane.xlu0 %1688  ;;  %v1706_v59 = vsub.f32 %v11613_v18, %v1692_v14 }
 0x69c   :  { %v1705_v4 = vsub.f32 %v11610_v33, %v1689_v8  ;;  %10272 = vpow2.f32 %v1710_v1 }
 0x69d   :  { %v1718_v62 = vmul.f32 1.442695, %v1706_v59 }
 0x69e   :  { %v1716_v17 = vmul.f32 1.442695, %v1705_v4  ;;  %v1698_v15 = vpop.xlane.xlu1 %1697 }
 0x69f   :  { %v1708_v53 = vsub.f32 %v1672_v45, %v1698_v15  ;;  %v1695_v16 = vpop.xlane.xlu0 %1694 }
 0x6a0   :  { %10274 = vpow2.f32 %v1716_v17  ;;  %v1707_v30 = vsub.f32 %v11625_v2, %v1695_v16 }
 0x6a1   :  { %10276 = vpow2.f32 %v1712_v6  ;;  %v1722_v51 = vmul.f32 1.442695, %v1708_v53  ;;  %v9973_v6 = vld [vmem:[%s13712_s7 + $0x18] sm:$0xff]  }
 0x6a2   :  { %v1771_v56 = vpop.permute.xlu1 %1770  ;;  %v1720_v18 = vmul.f32 1.442695, %v1707_v30 }
 0x6a3   :  { %v1701_v23 = vpop.xlane.xlu0 %1700  ;;  %9247 = vmatprep.subr.bf16.mxu1 %v1771_v56  ;;  %10278 = vpow2.f32 %v1722_v51 }
 0x6a4   :  { %v1709_v50 = vsub.f32 %v1675_v3, %v1701_v23  ;;  %10280 = vpow2.f32 %v1718_v62 }
 0x6a5   :  { %v11654_v28 = vpop.eup %10270 }
 0x6a6   :  { %v1732_v41 = vsel %vm347_vm1, %v11654_v28, 0.0  ;;  %v11658_v0 = vpop.eup %10272  ;;  %v1724_v31 = vmul.f32 1.442695, %v1709_v50  ;;  %v1773_v46 = vpop.permute.xlu1 %1772 }
 0x6a7   :  { %1733 = vadd.xlane.f32.xlu1 %v1732_v41  ;;  %v1726_v33 = vsel %vm347_vm1, %v11658_v0, 0.0 }
 0x6a8   :  { %10282 = vpow2.f32 %v1724_v31 }
 0x6a9   :  { %10284 = vpow2.f32 %v1720_v18 }
 0x6aa   :  { %v11660_v21 = vpop.eup %10274 }
 0x6ab   :  { %1727 = vadd.xlane.f32.xlu1 %v1726_v33  ;;  %v1735_v35 = vsel %vm347_vm1, %v11660_v21, 0.0  ;;  %v10277_v40 = vpop.eup %10276 }
 0x6ac   :  { %1736 = vadd.xlane.f32.xlu0 %v1735_v35  ;;  %v1729_v34 = vsel %vm347_vm1, %v10277_v40, 0.0 }
 0x6ad   :  { %v11668_v12 = vpop.eup %10278 }
 0x6ae   :  { %v1744_v9 = vsel %vm347_vm1, %v11668_v12, 0.0  ;;  %v11672_v7 = vpop.eup %10280 }
 0x6af   :  { %v1738_v52 = vsel %vm347_vm1, %v11672_v7, 0.0 }
 0x6b0   :  { %1730 = vadd.xlane.f32.xlu0 %v1729_v34 }
 0x6b2   :  { %v11676_v37 = vpop.eup %10282 }
 0x6b3   :  { %v1747_v45 = vsel %vm347_vm1, %v11676_v37, 0.0  ;;  %v11680_v48 = vpop.eup %10284 }
 0x6b4   :  { %1745 = vadd.xlane.f32.xlu0 %v1744_v9  ;;  %v1741_v61 = vsel %vm347_vm1, %v11680_v48, 0.0 }
 0x6b8   :  { %1739 = vadd.xlane.f32.xlu0 %v1738_v52 }
 0x6bc   :  { %1748 = vadd.xlane.f32.xlu0 %v1747_v45  ;;  %1776 = vrot.lane.b32.xlu1 %v11138_v39, %s10841_s24 }
 0x6c0   :  { %1742 = vadd.xlane.f32.xlu0 %v1741_v61 }
 0x6d6   :  { %1774 = vrot.lane.b32.xlu0 %v11130_v27, %s10841_s24 }
 0x6e6   :  { %v9215_v49 = vpop.f32.mrb[48].mxu1 }
 0x6e7   :  { %v1447_v2 = vpop.f32.mrb[49].mxu1 }
 0x6e8   :  { %v9216_v20 = vpop.f32.mrb[50].mxu1 }
 0x6e9   :  { %v1479_v44 = vpack.c.bf16 %v9216_v20, %v9215_v49  ;;  %v1450_v11 = vpop.f32.mrb[51].mxu1 }
 0x6ea   :  { %v1478_v29 = vpack.c.bf16 %v1450_v11, %v1447_v2 }
 0x6ec   :  { %9223 = vmatprep.mubr.msk.bf16.mxu1 %vm469_vm2, %v1478_v29 }
 0x6ed   :  { %9224 = vmatmul.mubr.msk.bf16.vlgmr.msra.gmra.mrb[40].mxu1 %vm469_vm2, %v1479_v44 }
 0x6ee   :  { %9248 = vmatpush3.bf16.msra.mxu1 %v1771_v56  ;;  %v9219_v39 = vpop.f32.mrb[52].mxu1 }
 0x6ef   :  { %9249 = vmatprep.subr.bf16.mxu1 %v1773_v46  ;;  %v1463_v47 = vpop.f32.mrb[53].mxu1 }
 0x6f0   :  { %v9220_v3 = vpop.f32.mrb[54].mxu1 }
 0x6f1   :  { %v1481_v57 = vpack.c.bf16 %v9220_v3, %v9219_v39  ;;  %v1466_v58 = vpop.f32.mrb[55].mxu1 }
 0x6f2   :  { %v1480_v19 = vpack.c.bf16 %v1466_v58, %v1463_v47  ;;  %9250 = vmatpush3.bf16.msra.mxu1 %v1773_v46 }
 0x6f4   :  { %9227 = vmatprep.mubr.msk.bf16.mxu1 %vm469_vm2, %v1480_v19  ;;  %v13781_v19 = vld [vmem:[#allocation16_spill] sm:$0xff] }
 0x6f5   :  { %9228 = vmatmul.mubr.msk.bf16.gmra.mrb[44].mxu1 %vm469_vm2, %v1481_v57 }
 0x734   :  { %v1734_v27 = vpop.xlane.xlu1 %1733 }
 0x738   :  { %v1728_v43 = vpop.xlane.xlu1 %1727 }
 0x739   :  { %v1737_v5 = vpop.xlane.xlu0 %1736  ;;  %10286 = vrcp.f32 %v1728_v43 }
 0x73c   :  { %v1777_v8 = vpop.permute.xlu1 %1776 }
 0x73d   :  { %v1731_v13 = vpop.xlane.xlu0 %1730 }
 0x73e   :  { %10288 = vrcp.f32 %v1731_v13 }
 0x73f   :  { %10290 = vrcp.f32 %v1737_v5 }
 0x740   :  { %10292 = vrcp.f32 %v1734_v27 }
 0x741   :  { %v1746_v42 = vpop.xlane.xlu0 %1745 }
 0x743   :  { %v10287_v55 = vpop.eup %10286 }
 0x744   :  { %v1758_v60 = vmul.f32 %v10287_v55, %v11658_v0 }
 0x745   :  { %v1740_v63 = vpop.xlane.xlu0 %1739 }
 0x746   :  { %10294 = vrcp.f32 %v1740_v63 }
 0x748   :  { %v10289_v54 = vpop.eup %10288 }
 0x749   :  { %v1749_v22 = vpop.xlane.xlu0 %1748  ;;  %v1759_v10 = vmul.f32 %v10289_v54, %v10277_v40  ;;  %v10291_v32 = vpop.eup %10290  ;;  %v13783_v54 = vld [vmem:[#allocation18_spill] sm:$0xff] }
 0x74a   :  { %v10293_v14 = vpop.eup %10292  ;;  %v1761_v4 = vmul.f32 %v10291_v32, %v11660_v21  ;;  %v13785_v32 = vld [vmem:[#allocation19_spill] sm:$0xff] }
 0x74b   :  { %v1766_v26 = vpack.c.bf16 %v1759_v10, %v1758_v60  ;;  %v1760_v15 = vmul.f32 %v10293_v14, %v11654_v28  ;;  %v13784_v10 = vld [vmem:[#allocation20_spill] sm:$0xff] }
 0x74d   :  { %9255 = vmatprep.mubr.msk.bf16.mxu1 %vm347_vm1, %v1766_v26  ;;  %v1743_v1 = vpop.xlane.xlu0 %1742  ;;  %v1767_v16 = vpack.c.bf16 %v1761_v4, %v1760_v15 }
 0x74e   :  { %10296 = vrcp.f32 %v1743_v1 }
 0x74f   :  { %10298 = vrcp.f32 %v1749_v22 }
 0x750   :  { %10300 = vrcp.f32 %v1746_v42  ;;  %v10295_v17 = vpop.eup %10294 }
 0x751   :  { %v1775_v38 = vpop.permute.xlu0 %1774  ;;  %v1762_v51 = vmul.f32 %v10295_v17, %v11672_v7 }
 0x752   :  { %9251 = vmatprep.subr.bf16.mxu1 %v1775_v38 }
 0x753   :  { %9252 = vmatpush3.bf16.msra.mxu1 %v1775_v38 }
 0x754   :  { %9253 = vmatprep.subr.bf16.mxu1 %v1777_v8 }
 0x757   :  { %9254 = vmatpush3.bf16.msra.mxu1 %v1777_v8 }
 0x758   :  { %v10297_v53 = vpop.eup %10296  ;;  %9263 = vmatprep.subr.bf16.mxu1 %v9973_v6 }
 0x759   :  { %v10299_v59 = vpop.eup %10298  ;;  %v1763_v56 = vmul.f32 %v10297_v53, %v11680_v48 }
 0x75a   :  { %9256 = vmatmul.mubr.msk.bf16.vlgmr.msra.gmra.mrb[56].mxu1 %vm347_vm1, %v1767_v16  ;;  %v10301_v23 = vpop.eup %10300  ;;  %v1765_v50 = vmul.f32 %v10299_v59, %v11676_v37  ;;  %v8370_v37 = vld [vmem:[%s13713_s8] ss:$0 sm:$0xff] }
 0x75b   :  { %v1768_v62 = vpack.c.bf16 %v1763_v56, %v1762_v51  ;;  %9264 = vmatpush3.bf16.msra.mxu1 %v9973_v6  ;;  %v1764_v28 = vmul.f32 %v10301_v23, %v11668_v12  ;;  %v13780_v12 = vmov 0  }
 0x75d   :  { %9259 = vmatprep.mubr.msk.bf16.mxu1 %vm347_vm1, %v1768_v62  ;;  %v1769_v41 = vpack.c.bf16 %v1765_v50, %v1764_v28 }
 0x762   :  { %9260 = vmatmul.mubr.msk.bf16.gmra.mrb[60].mxu1 %vm347_vm1, %v1769_v41 }
 0x82d   :  { %v9257_v0 = vpop.f32.mrb[56].mxu1 }
 0x82e   :  { %v1828_v21 = vpop.f32.mrb[57].mxu1 }
 0x82f   :  { %v9258_v30 = vpop.f32.mrb[58].mxu1 }
 0x830   :  { %v1860_v31 = vpack.c.bf16 %v9258_v30, %v9257_v0  ;;  %v1831_v33 = vpop.f32.mrb[59].mxu1 }
 0x831   :  { %v1859_v35 = vpack.c.bf16 %v1831_v33, %v1828_v21 }
 0x833   :  { %9265 = vmatprep.mubr.msk.bf16.mxu1 %vm469_vm2, %v1859_v35 }
 0x834   :  { %9266 = vmatmul.mubr.msk.bf16.vlgmr.msra.gmra.mrb[40].mxu1 %vm469_vm2, %v1860_v31 }
 0x835   :  { %v9261_v40 = vpop.f32.mrb[60].mxu1 }
 0x836   :  { %v1844_v18 = vpop.f32.mrb[61].mxu1 }
 0x837   :  { %v9262_v34 = vpop.f32.mrb[62].mxu1 }
 0x838   :  { %v1862_v9 = vpack.c.bf16 %v9262_v34, %v9261_v40  ;;  %v1847_v7 = vpop.f32.mrb[63].mxu1 }
 0x839   :  { %v1861_v52 = vpack.c.bf16 %v1847_v7, %v1844_v18 }
 0x83b   :  { %9269 = vmatprep.mubr.msk.bf16.mxu1 %vm469_vm2, %v1861_v52 }
 0x83c   :  { %9270 = vmatmul.mubr.msk.bf16.gmra.mrb[44].mxu1 %vm469_vm2, %v1862_v9 }
 0x83d   :  { %2632 = vmatprep.mubr.bf16.mxu1 %v13780_v12 }
 0x907   :  { %v9267_v45 = vpop.f32.mrb[40].mxu1 }
 0x908   :  { %v1915_v48 = vpop.f32.mrb[41].mxu1  ;;  %v1963_v61 = vadd.f32 %v9267_v45, %v8370_v37 }
 0x909   :  { %v1961_v49 = vadd.f32 %v8370_v37, %v1915_v48  ;;  %v9268_v2 = vpop.f32.mrb[42].mxu1 }
 0x90a   :  { %v1918_v20 = vpop.f32.mrb[43].mxu1  ;;  %v1971_v29 = vadd.f32 %v1963_v61, %v11079_v36  ;;  %v1964_v46 = vadd.f32 %v9268_v2, %v8370_v37 }
 0x90b   :  { %v1969_v44 = vadd.f32 %v1961_v49, %v11069_v24  ;;  %v1962_v11 = vadd.f32 %v8370_v37, %v1918_v20 }
 0x90c   :  { %v1972_v27 = vadd.f32 %v1964_v46, %v13781_v19  ;;  %v1985_v24 = vsel %vm347_vm1, %v1971_v29, 0.0  ;;  %v9975_v19 = vld [vmem:[#allocation8 + $0x8] sm:$0xff]  }
 0x90d   :  { %v1970_v39 = vadd.f32 %v1962_v11, %v11071_v25  ;;  %v1979_v47 = vsel %vm347_vm1, %v1969_v44, 0.0  ;;  %v13782_v25 = vld [vmem:[#allocation17_spill] sm:$0xff] }
 0x90e   :  { %1980 = vadd.xlane.f32.xlu1 %v1979_v47  ;;  %v1988_v60 = vsel %vm347_vm1, %v1972_v27, 0.0 }
 0x90f   :  { %v9271_v3 = vpop.f32.mrb[44].mxu1  ;;  %v1982_v57 = vsel %vm347_vm1, %v1970_v39, 0.0 }
 0x910   :  { %1983 = vadd.xlane.f32.xlu0 %v1982_v57  ;;  %v1931_v58 = vpop.f32.mrb[45].mxu1  ;;  %v1967_v63 = vadd.f32 %v9271_v3, %v8370_v37 }
 0x911   :  { %v1965_v43 = vadd.f32 %v8370_v37, %v1931_v58  ;;  %v9272_v5 = vpop.f32.mrb[46].mxu1  ;;  %v9974_v58 = vld [vmem:[#allocation8] sm:$0xff]  }
 0x912   :  { %1986 = vadd.xlane.f32.xlu1 %v1985_v24  ;;  %v1934_v13 = vpop.f32.mrb[47].mxu1  ;;  %v1968_v36 = vadd.f32 %v9272_v5, %v8370_v37  ;;  %v1975_v38 = vadd.f32 %v1967_v63, %v13785_v32  ;;  %9273 = vmatprep.subr.bf16.mxu0 %v9974_v58  ;;  %v11773_v5 = vld [vmem:[%s13718_s13] sm:$0xff]  }
 0x913   :  { %v1966_v42 = vadd.f32 %v8370_v37, %v1934_v13  ;;  %v1973_v55 = vadd.f32 %v1965_v43, %v13782_v25  ;;  %9274 = vmatpush3.bf16.msra.mxu0 %v9974_v58  ;;  %v9977_v43 = vld [vmem:[#allocation8 + $0x18] sm:$0xff]  }
 0x914   :  { %v1976_v26 = vadd.f32 %v1968_v36, %v13784_v10  ;;  %v1997_v4 = vsel %vm347_vm1, %v1975_v38, 0.0  ;;  %9275 = vmatprep.subr.bf16.mxu0 %v9975_v19 }
 0x915   :  { %v1974_v22 = vadd.f32 %v1966_v42, %v13783_v54  ;;  %v1991_v14 = vsel %vm347_vm1, %v1973_v55, 0.0 }
 0x916   :  { %1989 = vadd.xlane.f32.xlu1 %v1988_v60  ;;  %v2000_v8 = vsel %vm347_vm1, %v1976_v26, 0.0 }
 0x917   :  { %v1994_v1 = vsel %vm347_vm1, %v1974_v22, 0.0  ;;  %9276 = vmatpush3.bf16.msra.mxu0 %v9975_v19 }
 0x918   :  { %1995 = vadd.xlane.f32.xlu0 %v1994_v1 }
 0x91a   :  { %1992 = vadd.xlane.f32.xlu1 %v1991_v14 }
 0x91c   :  { %2001 = vadd.xlane.f32.xlu0 %v2000_v8 }
 0x91e   :  { %1998 = vadd.xlane.f32.xlu1 %v1997_v4  ;;  %v8371_v4 = vld [vmem:[%s13714_s9] ss:$0 sm:$0xff] }
 0x99b   :  { %v1981_v6 = vpop.xlane.xlu1 %1980 }
 0x99c   :  { %v2004_v17 = vmul.f32 0.015625, %v1981_v6 }
 0x99d   :  { %v1984_v15 = vpop.xlane.xlu0 %1983 }
 0x99e   :  { %v11730_v53 = vsub.f32 %v1969_v44, %v2004_v17  ;;  %v2005_v16 = vmul.f32 0.015625, %v1984_v15 }
 0x99f   :  { %v1987_v59 = vpop.xlane.xlu1 %1986 }
 0x9a0   :  { %v11732_v51 = vsub.f32 %v1970_v39, %v2005_v16  ;;  %v2006_v56 = vmul.f32 0.015625, %v1987_v59  ;;  %v2020_v23 = vmul.f32 %v11730_v53, %v11730_v53 }
 0x9a2   :  { %v11736_v62 = vsub.f32 %v1971_v29, %v2006_v56  ;;  %v2028_v50 = vsel %vm347_vm1, %v2020_v23, 0.0  ;;  %v2021_v28 = vmul.f32 %v11732_v51, %v11732_v51 }
 0x9a3   :  { %v1990_v41 = vpop.xlane.xlu1 %1989  ;;  %2029 = vadd.xlane.f32.xlu1 %v2028_v50 }
 0x9a4   :  { %v2007_v0 = vmul.f32 0.015625, %v1990_v41  ;;  %v2031_v21 = vsel %vm347_vm1, %v2021_v28, 0.0  ;;  %v2022_v30 = vmul.f32 %v11736_v62, %v11736_v62 }
 0x9a5   :  { %2032 = vadd.xlane.f32.xlu0 %v2031_v21  ;;  %v1996_v31 = vpop.xlane.xlu0 %1995  ;;  %v8372_v21 = vld [vmem:[%s13715_s10] ss:$0 sm:$0xff] }
 0x9a6   :  { %v11744_v33 = vsub.f32 %v1972_v27, %v2007_v0  ;;  %v2009_v35 = vmul.f32 0.015625, %v1996_v31  ;;  %v2034_v40 = vsel %vm347_vm1, %v2022_v30, 0.0  ;;  %v9976_v27 = vld [vmem:[#allocation8 + $0x10] sm:$0xff]  }
 0x9a7   :  { %2035 = vadd.xlane.f32.xlu1 %v2034_v40  ;;  %v1993_v18 = vpop.xlane.xlu1 %1992  ;;  %9277 = vmatprep.subr.bf16.mxu0 %v9976_v27 }
 0x9a8   :  { %v11747_v34 = vsub.f32 %v1974_v22, %v2009_v35  ;;  %v2008_v9 = vmul.f32 0.015625, %v1993_v18  ;;  %v2023_v7 = vmul.f32 %v11744_v33, %v11744_v33  ;;  %9278 = vmatpush3.bf16.msra.mxu0 %v9976_v27  ;;  %v9980_v27 = vld [vmem:[%s13718_s13 + $0x10] sm:$0xff]  }
 0x9a9   :  { %v2002_v52 = vpop.xlane.xlu0 %2001  ;;  %9279 = vmatprep.subr.bf16.mxu0 %v9977_v43 }
 0x9aa   :  { %v11751_v37 = vsub.f32 %v1973_v55, %v2008_v9  ;;  %v2011_v45 = vmul.f32 0.015625, %v2002_v52  ;;  %v2037_v48 = vsel %vm347_vm1, %v2023_v7, 0.0  ;;  %v2025_v61 = vmul.f32 %v11747_v34, %v11747_v34 }
 0x9ab   :  { %v1999_v49 = vpop.xlane.xlu1 %1998  ;;  %2038 = vadd.xlane.f32.xlu0 %v2037_v48 }
 0x9ac   :  { %v11756_v2 = vsub.f32 %v1976_v26, %v2011_v45  ;;  %v2010_v20 = vmul.f32 0.015625, %v1999_v49  ;;  %v2024_v44 = vmul.f32 %v11751_v37, %v11751_v37  ;;  %v2043_v46 = vsel %vm347_vm1, %v2025_v61, 0.0  ;;  %9280 = vmatpush3.bf16.msra.mxu0 %v9977_v43 }
 0x9ad   :  { %9289 = vmatprep.subr.bf16.mxu0 %v11773_v5 }
 0x9ae   :  { %v11760_v11 = vsub.f32 %v1975_v38, %v2010_v20  ;;  %v2040_v29 = vsel %vm347_vm1, %v2024_v44, 0.0  ;;  %v2027_v39 = vmul.f32 %v11756_v2, %v11756_v2 }
 0x9af   :  { %2041 = vadd.xlane.f32.xlu1 %v2040_v29  ;;  %2044 = vadd.xlane.f32.xlu0 %v2043_v46  ;;  %v9979_v46 = vld [vmem:[%s13718_s13 + $0x8] sm:$0xff]  }
 0x9b0   :  { %v2026_v47 = vmul.f32 %v11760_v11, %v11760_v11  ;;  %v2049_v57 = vsel %vm347_vm1, %v2027_v39, 0.0 }
 0x9b2   :  { %v2046_v3 = vsel %vm347_vm1, %v2026_v47, 0.0 }
 0x9b3   :  { %2047 = vadd.xlane.f32.xlu1 %v2046_v3  ;;  %2050 = vadd.xlane.f32.xlu0 %v2049_v57 }
 0xa30   :  { %v2030_v24 = vpop.xlane.xlu1 %2029 }
 0xa31   :  { %v2052_v13 = vmul.f32 0.015625, %v2030_v24 }
 0xa32   :  { %v2033_v36 = vpop.xlane.xlu0 %2032 }
 0xa33   :  { %v2060_v42 = vadd.f32 1e-05, %v2052_v13  ;;  %v2053_v63 = vmul.f32 0.015625, %v2033_v36  ;;  %v9982_v36 = vld [vmem:[%s13718_s13 + $0x20] sm:$0xff]  }
 0xa34   :  { %v2036_v25 = vpop.xlane.xlu1 %2035 }
 0xa35   :  { %10302 = vrsqrt.f32 %v2060_v42  ;;  %v2061_v55 = vadd.f32 1e-05, %v2053_v63  ;;  %v2054_v54 = vmul.f32 0.015625, %v2036_v25  ;;  %v9983_v42 = vld [vmem:[%s13718_s13 + $0x28] sm:$0xff]   ;;  %v9984_v63 = vld [vmem:[%s13718_s13 + $0x30] sm:$0xff]   ;;  %v9985_v25 = vld [vmem:[%s13718_s13 + $0x38] sm:$0xff]  }
 0xa37   :  { %10304 = vrsqrt.f32 %v2061_v55  ;;  %v2062_v22 = vadd.f32 1e-05, %v2054_v54  ;;  %v8373_v55 = vld [vmem:[%s13717_s12] ss:$0 sm:$0xff] }
 0xa38   :  { %v2039_v60 = vpop.xlane.xlu0 %2038 }
 0xa39   :  { %10306 = vrsqrt.f32 %v2062_v22  ;;  %v2055_v10 = vmul.f32 0.015625, %v2039_v60 }
 0xa3b   :  { %v2063_v26 = vadd.f32 1e-05, %v2055_v10 }
 0xa3c   :  { %v2042_v1 = vpop.xlane.xlu1 %2041  ;;  %v2045_v32 = vpop.xlane.xlu0 %2044 }
 0xa3d   :  { %10308 = vrsqrt.f32 %v2063_v26  ;;  %v2056_v38 = vmul.f32 0.015625, %v2042_v1  ;;  %v2057_v14 = vmul.f32 0.015625, %v2045_v32 }
 0xa3f   :  { %v10303_v8 = vpop.eup %10302  ;;  %v2064_v6 = vadd.f32 1e-05, %v2056_v38  ;;  %v2065_v17 = vadd.f32 1e-05, %v2057_v14 }
 0xa40   :  { %v2048_v15 = vpop.xlane.xlu1 %2047  ;;  %v2051_v16 = vpop.xlane.xlu0 %2050  ;;  %v2076_v59 = vmul.f32 %v10303_v8, %v11730_v53 }
 0xa41   :  { %v10305_v56 = vpop.eup %10304  ;;  %10310 = vrsqrt.f32 %v2064_v6  ;;  %v2058_v23 = vmul.f32 0.015625, %v2048_v15  ;;  %v2059_v50 = vmul.f32 0.015625, %v2051_v16 }
 0xa42   :  { %10312 = vrsqrt.f32 %v2065_v17  ;;  %v2077_v28 = vmul.f32 %v10305_v56, %v11732_v51  ;;  %v2090_v41 = vmul.f32 %v8371_v4, %v2076_v59 }
 0xa43   :  { %v10307_v0 = vpop.eup %10306  ;;  %v2066_v30 = vadd.f32 1e-05, %v2058_v23  ;;  %v2067_v31 = vadd.f32 1e-05, %v2059_v50 }
 0xa44   :  { %v2078_v35 = vmul.f32 %v10307_v0, %v11736_v62  ;;  %v2091_v40 = vmul.f32 %v8371_v4, %v2077_v28  ;;  %v11785_v53 = vadd.f32 %v8372_v21, %v2090_v41 }
 0xa45   :  { %10314 = vrsqrt.f32 %v2066_v30 }
 0xa46   :  { %10316 = vrsqrt.f32 %v2067_v31  ;;  %v11787_v18 = vadd.f32 %v8372_v21, %v2091_v40  ;;  %v2092_v7 = vmul.f32 %v8371_v4, %v2078_v35 }
 0xa47   :  { %v10309_v9 = vpop.eup %10308 }
 0xa48   :  { %v2079_v51 = vmul.f32 %v10309_v9, %v11744_v33  ;;  %v2120_v52 = vpack.c.bf16 %v11787_v18, %v11785_v53  ;;  %v11793_v62 = vadd.f32 %v8372_v21, %v2092_v7  ;;  %v8382_v7 = vld [vmem:[%s13719_s14] ss:$0 sm:$0xff] }
 0xa4a   :  { %v2093_v45 = vmul.f32 %v8371_v4, %v2079_v51  ;;  %9281 = vmatprep.mubr.msk.bf16.mxu0 %vm347_vm1, %v2120_v52 }
 0xa4b   :  { %v10311_v48 = vpop.eup %10310 }
 0xa4c   :  { %v10313_v61 = vpop.eup %10312  ;;  %v11795_v49 = vadd.f32 %v8372_v21, %v2093_v45  ;;  %v2080_v20 = vmul.f32 %v10311_v48, %v11751_v37 }
 0xa4d   :  { %v2081_v44 = vmul.f32 %v10313_v61, %v11747_v34 }
 0xa4e   :  { %v2121_v29 = vpack.c.bf16 %v11795_v49, %v11793_v62  ;;  %v2094_v33 = vmul.f32 %v8371_v4, %v2080_v20 }
 0xa4f   :  { %v10315_v39 = vpop.eup %10314  ;;  %v2095_v47 = vmul.f32 %v8371_v4, %v2081_v44 }
 0xa50   :  { %v10317_v3 = vpop.eup %10316  ;;  %9282 = vmatmul.mubr.msk.bf16.vlgmr.msra.gmra.mrb[32].mxu0 %vm347_vm1, %v2121_v29  ;;  %v11805_v57 = vadd.f32 %v8372_v21, %v2094_v33  ;;  %v2082_v58 = vmul.f32 %v10315_v39, %v11760_v11 }
 0xa51   :  { %v11808_v37 = vadd.f32 %v8372_v21, %v2095_v47  ;;  %v2083_v34 = vmul.f32 %v10317_v3, %v11756_v2  ;;  %9290 = vmatpush3.bf16.msra.mxu0 %v11773_v5  ;;  %v9981_v5 = vld [vmem:[%s13718_s13 + $0x18] sm:$0xff]  }
 0xa52   :  { %v2096_v19 = vmul.f32 %v8371_v4, %v2082_v58  ;;  %9291 = vmatprep.subr.bf16.mxu0 %v9979_v46 }
 0xa53   :  { %v2122_v43 = vpack.c.bf16 %v11808_v37, %v11805_v57  ;;  %v2097_v24 = vmul.f32 %v8371_v4, %v2083_v34 }
 0xa54   :  { %v11817_v13 = vadd.f32 %v8372_v21, %v2096_v19 }
 0xa55   :  { %9285 = vmatprep.mubr.msk.bf16.mxu0 %vm347_vm1, %v2122_v43  ;;  %v11820_v11 = vadd.f32 %v8372_v21, %v2097_v24  ;;  %9292 = vmatpush3.bf16.msra.mxu0 %v9979_v46 }
 0xa56   :  { %9293 = vmatprep.subr.bf16.mxu0 %v9980_v27 }
 0xa57   :  { %v2123_v2 = vpack.c.bf16 %v11820_v11, %v11817_v13 }
 0xa59   :  { %9286 = vmatmul.mubr.msk.bf16.gmra.mrb[36].mxu0 %vm347_vm1, %v2123_v2 }
 0xa5a   :  { %9294 = vmatpush3.bf16.msra.mxu0 %v9980_v27 }
 0xa5b   :  { %9295 = vmatprep.subr.bf16.mxu0 %v9981_v5 }
 0xa5e   :  { %9296 = vmatpush3.bf16.msra.mxu0 %v9981_v5 }
 0xa5f   :  { %9297 = vmatprep.subr.bf16.mxu0 %v9982_v36 }
 0xa62   :  { %9298 = vmatpush3.bf16.msra.mxu0 %v9982_v36 }
 0xa63   :  { %9299 = vmatprep.subr.bf16.mxu0 %v9983_v42 }
 0xa66   :  { %9300 = vmatpush3.bf16.msra.mxu0 %v9983_v42 }
 0xa67   :  { %9301 = vmatprep.subr.bf16.mxu0 %v9984_v63 }
 0xa6a   :  { %9302 = vmatpush3.bf16.msra.mxu0 %v9984_v63 }
 0xa6b   :  { %9303 = vmatprep.subr.bf16.mxu0 %v9985_v25 }
 0xa6e   :  { %9304 = vmatpush3.bf16.msra.mxu0 %v9985_v25 }
 0xb23   :  { %v9283_v54 = vpop.f32.mrb[32].mxu0 }
 0xb24   :  { %v2210_v22 = vadd.f32 %v9283_v54, %v8373_v55  ;;  %v2201_v60 = vpop.f32.mrb[33].mxu0 }
 0xb25   :  { %v2202_v10 = vadd.f32 %v8373_v55, %v2201_v60  ;;  %v9284_v26 = vpop.f32.mrb[34].mxu0 }
 0xb26   :  { %v2213_v1 = vadd.f32 %v9284_v26, %v8373_v55  ;;  %v2204_v32 = vpop.f32.mrb[35].mxu0  ;;  %v2234_v14 = vmax.f32 %v2210_v22, 0.0 }
 0xb27   :  { %v2205_v38 = vadd.f32 %v8373_v55, %v2204_v32  ;;  %v2232_v4 = vmax.f32 %v2202_v10, 0.0 }
 0xb28   :  { %v2235_v8 = vmax.f32 %v2213_v1, 0.0 }
 0xb29   :  { %v2233_v6 = vmax.f32 %v2205_v38, 0.0 }
 0xb2a   :  { %v2257_v17 = vpack.c.bf16 %v2235_v8, %v2234_v14 }
 0xb2b   :  { %v2256_v15 = vpack.c.bf16 %v2233_v6, %v2232_v4 }
 0xb2c   :  { %v9287_v16 = vpop.f32.mrb[36].mxu0 }
 0xb2d   :  { %v2226_v59 = vadd.f32 %v9287_v16, %v8373_v55  ;;  %v2217_v56 = vpop.f32.mrb[37].mxu0  ;;  %9305 = vmatprep.mubr.bf16.mxu0 %v2256_v15 }
 0xb2e   :  { %v2218_v23 = vadd.f32 %v8373_v55, %v2217_v56  ;;  %v9288_v50 = vpop.f32.mrb[38].mxu0  ;;  %9306 = vmatmul.mubr.bf16.vlgmr.msra.gmra.mrb[40].mxu0 %v2257_v17 }
 0xb2f   :  { %v2229_v28 = vadd.f32 %v9288_v50, %v8373_v55  ;;  %v2220_v41 = vpop.f32.mrb[39].mxu0  ;;  %v2238_v21 = vmax.f32 %v2226_v59, 0.0 }
 0xb30   :  { %v2221_v0 = vadd.f32 %v8373_v55, %v2220_v41  ;;  %v2236_v31 = vmax.f32 %v2218_v23, 0.0 }
 0xb31   :  { %v2239_v30 = vmax.f32 %v2229_v28, 0.0 }
 0xb32   :  { %v2237_v35 = vmax.f32 %v2221_v0, 0.0 }
 0xb33   :  { %v2259_v40 = vpack.c.bf16 %v2239_v30, %v2238_v21 }
 0xb34   :  { %v2258_v9 = vpack.c.bf16 %v2237_v35, %v2236_v31 }
 0xb36   :  { %9309 = vmatprep.mubr.bf16.mxu0 %v2258_v9 }
 0xb37   :  { %9310 = vmatmul.mubr.bf16.gmra.mrb[44].mxu0 %v2259_v40 }
 0xc01   :  { %v9307_v51 = vpop.f32.mrb[40].mxu0 }
 0xc02   :  { %v2349_v52 = vpop.f32.mrb[41].mxu0  ;;  %v2358_v45 = vadd.f32 %v9307_v51, %v8382_v7 }
 0xc03   :  { %v2350_v48 = vadd.f32 %v8382_v7, %v2349_v52  ;;  %v9308_v61 = vpop.f32.mrb[42].mxu0 }
 0xc04   :  { %v2352_v20 = vpop.f32.mrb[43].mxu0  ;;  %v2361_v29 = vadd.f32 %v9308_v61, %v8382_v7  ;;  %v2382_v46 = vadd.f32 %v2358_v45, %v11793_v62 }
 0xc05   :  { %v2380_v44 = vadd.f32 %v2350_v48, %v11785_v53  ;;  %v2353_v33 = vadd.f32 %v8382_v7, %v2352_v20 }
 0xc06   :  { %v2383_v3 = vadd.f32 %v2361_v29, %v11795_v49  ;;  %v2396_v27 = vsel %vm347_vm1, %v2382_v46, 0.0 }
 0xc07   :  { %v2381_v39 = vadd.f32 %v2353_v33, %v11787_v18  ;;  %v2390_v47 = vsel %vm347_vm1, %v2380_v44, 0.0 }
 0xc08   :  { %2391 = vadd.xlane.f32.xlu1 %v2390_v47  ;;  %v2399_v62 = vsel %vm347_vm1, %v2383_v3, 0.0  ;;  %v9991_v47 = vld [vmem:[#allocation7 + $0x54] ss:$8 sps:$4 sm:$0xff]  }
 0xc09   :  { %v2393_v58 = vsel %vm347_vm1, %v2381_v39, 0.0 }
 0xc0a   :  { %v9311_v34 = vpop.f32.mrb[44].mxu0  ;;  %2394 = vadd.xlane.f32.xlu0 %v2393_v58  ;;  %v9994_v58 = vld [vmem:[#allocation7 + $0x64] ss:$8 sps:$4 sm:$0xff]  }
 0xc0b   :  { %v2365_v19 = vpop.f32.mrb[45].mxu0  ;;  %v2374_v43 = vadd.f32 %v9311_v34, %v8382_v7  ;;  %v9992_v34 = vld [vmem:[#allocation7 + $0x60] ss:$8 sps:$4 sm:$0xff]  }
 0xc0c   :  { %v2366_v53 = vadd.f32 %v8382_v7, %v2365_v19  ;;  %v9312_v24 = vpop.f32.mrb[46].mxu0  ;;  %2397 = vadd.xlane.f32.xlu1 %v2396_v27  ;;  %v9997_v19 = vld [vmem:[#allocation7 + $0x74] ss:$8 sps:$4 sm:$0xff]   ;;  %v9995_v27 = vld [vmem:[#allocation7 + $0x70] ss:$8 sps:$4 sm:$0xff]  }
 0xc0d   :  { %v2368_v2 = vpop.f32.mrb[47].mxu0  ;;  %v2377_v5 = vadd.f32 %v9312_v24, %v8382_v7  ;;  %v2386_v49 = vadd.f32 %v2374_v43, %v11817_v13 }
 0xc0e   :  { %v2384_v18 = vadd.f32 %v2366_v53, %v11805_v57  ;;  %v2369_v36 = vadd.f32 %v8382_v7, %v2368_v2  ;;  %2400 = vadd.xlane.f32.xlu0 %v2399_v62 }
 0xc0f   :  { %v2387_v25 = vadd.f32 %v2377_v5, %v11820_v11  ;;  %v2408_v54 = vsel %vm347_vm1, %v2386_v49, 0.0 }
 0xc10   :  { %v2385_v42 = vadd.f32 %v2369_v36, %v11808_v37  ;;  %v2402_v63 = vsel %vm347_vm1, %v2384_v18, 0.0 }
 0xc11   :  { %2403 = vadd.xlane.f32.xlu1 %v2402_v63  ;;  %v2411_v57 = vsel %vm347_vm1, %v2387_v25, 0.0 }
 0xc12   :  { %v2405_v55 = vsel %vm347_vm1, %v2385_v42, 0.0 }
 0xc13   :  { %2406 = vadd.xlane.f32.xlu0 %v2405_v55 }
 0xc15   :  { %2409 = vadd.xlane.f32.xlu1 %v2408_v54 }
 0xc17   :  { %2412 = vadd.xlane.f32.xlu0 %v2411_v57 }
 0xc95   :  { %v2392_v22 = vpop.xlane.xlu1 %2391 }
 0xc96   :  { %v2414_v60 = vmul.f32 0.015625, %v2392_v22 }
 0xc97   :  { %v2395_v10 = vpop.xlane.xlu0 %2394 }
 0xc98   :  { %v11862_v13 = vsub.f32 %v2380_v44, %v2414_v60  ;;  %v2415_v37 = vmul.f32 0.015625, %v2395_v10 }
 0xc99   :  { %v2398_v26 = vpop.xlane.xlu1 %2397 }
 0xc9a   :  { %v11864_v1 = vsub.f32 %v2381_v39, %v2415_v37  ;;  %v2416_v32 = vmul.f32 0.015625, %v2398_v26  ;;  %v2430_v11 = vmul.f32 %v11862_v13, %v11862_v13  ;;  %v9986_v39 = vld [vmem:[#allocation7 + $0x40] ss:$8 sps:$4 sm:$0xff]  }
 0xc9b   :  { %v2401_v38 = vpop.xlane.xlu0 %2400 }
 0xc9c   :  { %v11868_v14 = vsub.f32 %v2382_v46, %v2416_v32  ;;  %v2417_v8 = vmul.f32 0.015625, %v2401_v38  ;;  %v2438_v4 = vsel %vm347_vm1, %v2430_v11, 0.0  ;;  %v2431_v6 = vmul.f32 %v11864_v1, %v11864_v1  ;;  %v9988_v46 = vld [vmem:[#allocation7 + $0x44] ss:$8 sps:$4 sm:$0xff]   ;;  %v8391_v32 = vld [vmem:[%s13720_s15] ss:$0 sm:$0xff] }
 0xc9d   :  { %2439 = vadd.xlane.f32.xlu1 %v2438_v4  ;;  %2600 = vmatprep.subr.bf16.mxu1 %v9988_v46 }
 0xc9e   :  { %v11873_v17 = vsub.f32 %v2383_v3, %v2417_v8  ;;  %v2404_v15 = vpop.xlane.xlu1 %2403  ;;  %v2441_v16 = vsel %vm347_vm1, %v2431_v6, 0.0  ;;  %v2432_v59 = vmul.f32 %v11868_v14, %v11868_v14  ;;  %2601 = vmatpush1.bf16.msra.mxu1 %v9986_v39  ;;  %v9989_v3 = vld [vmem:[#allocation7 + $0x50] ss:$8 sps:$4 sm:$0xff]  }
 0xc9f   :  { %v2418_v56 = vmul.f32 0.015625, %v2404_v15  ;;  %2442 = vadd.xlane.f32.xlu0 %v2441_v16  ;;  %2602 = vmatprep.subr.bf16.mxu1 %v9991_v47 }
 0xca0   :  { %v2407_v23 = vpop.xlane.xlu0 %2406  ;;  %v2444_v50 = vsel %vm347_vm1, %v2432_v59, 0.0  ;;  %v2433_v28 = vmul.f32 %v11873_v17, %v11873_v17 }
 0xca1   :  { %v11881_v41 = vsub.f32 %v2384_v18, %v2418_v56  ;;  %v2419_v0 = vmul.f32 0.015625, %v2407_v23  ;;  %2445 = vadd.xlane.f32.xlu1 %v2444_v50  ;;  %v8392_v56 = vld [vmem:[%s13721_s16] ss:$0 sm:$0xff] }
 0xca2   :  { %v2410_v21 = vpop.xlane.xlu1 %2409  ;;  %v2447_v30 = vsel %vm347_vm1, %v2433_v28, 0.0  ;;  %2603 = vmatpush1.bf16.msra.mxu1 %v9989_v3 }
 0xca3   :  { %v11884_v31 = vsub.f32 %v2385_v42, %v2419_v0  ;;  %v2420_v35 = vmul.f32 0.015625, %v2410_v21  ;;  %2448 = vadd.xlane.f32.xlu0 %v2447_v30  ;;  %v2434_v40 = vmul.f32 %v11881_v41, %v11881_v41  ;;  %2604 = vmatprep.subr.bf16.mxu1 %v9994_v58 }
 0xca4   :  { %v2413_v9 = vpop.xlane.xlu0 %2412 }
 0xca5   :  { %v11888_v7 = vsub.f32 %v2386_v49, %v2420_v35  ;;  %v2421_v51 = vmul.f32 0.015625, %v2413_v9  ;;  %v2450_v52 = vsel %vm347_vm1, %v2434_v40, 0.0  ;;  %v2435_v45 = vmul.f32 %v11884_v31, %v11884_v31 }
 0xca6   :  { %2451 = vadd.xlane.f32.xlu1 %v2450_v52  ;;  %2605 = vmatpush1.bf16.msra.mxu1 %v9992_v34 }
 0xca7   :  { %v11893_v48 = vsub.f32 %v2387_v25, %v2421_v51  ;;  %v2453_v61 = vsel %vm347_vm1, %v2435_v45, 0.0  ;;  %v2436_v20 = vmul.f32 %v11888_v7, %v11888_v7  ;;  %2606 = vmatprep.subr.bf16.mxu1 %v9997_v19 }
 0xca8   :  { %2454 = vadd.xlane.f32.xlu0 %v2453_v61 }
 0xca9   :  { %v2456_v44 = vsel %vm347_vm1, %v2436_v20, 0.0  ;;  %v2437_v29 = vmul.f32 %v11893_v48, %v11893_v48 }
 0xcaa   :  { %2457 = vadd.xlane.f32.xlu1 %v2456_v44  ;;  %2607 = vmatpush1.bf16.msra.mxu1 %v9995_v27 }
 0xcab   :  { %v2459_v33 = vsel %vm347_vm1, %v2437_v29, 0.0 }
 0xcac   :  { %2460 = vadd.xlane.f32.xlu0 %v2459_v33 }
 0xd2a   :  { %v2440_v43 = vpop.xlane.xlu1 %2439 }
 0xd2b   :  { %v2462_v53 = vmul.f32 0.015625, %v2440_v43  ;;  %v13789_v43 = vld [vmem:[#allocation22_spill] sm:$0xff] }
 0xd2c   :  { %v2443_v24 = vpop.xlane.xlu0 %2442 }
 0xd2d   :  { %v2470_v2 = vadd.f32 1e-05, %v2462_v53  ;;  %v2463_v62 = vmul.f32 0.015625, %v2443_v24 }
 0xd2e   :  { %v2446_v18 = vpop.xlane.xlu1 %2445 }
 0xd2f   :  { %10318 = vrsqrt.f32 %v2470_v2  ;;  %v2471_v5 = vadd.f32 1e-05, %v2463_v62  ;;  %v2464_v36 = vmul.f32 0.015625, %v2446_v18  ;;  %v13790_v2 = vld [vmem:[#allocation23_spill] sm:$0xff] }
 0xd30   :  { %v2449_v49 = vpop.xlane.xlu0 %2448 }
 0xd31   :  { %10320 = vrsqrt.f32 %v2471_v5  ;;  %v2472_v42 = vadd.f32 1e-05, %v2464_v36  ;;  %v2465_v63 = vmul.f32 0.015625, %v2449_v49 }
 0xd33   :  { %10322 = vrsqrt.f32 %v2472_v42  ;;  %v2473_v25 = vadd.f32 1e-05, %v2465_v63  ;;  %v2452_v55 = vpop.xlane.xlu1 %2451 }
 0xd34   :  { %v2466_v54 = vmul.f32 0.015625, %v2452_v55 }
 0xd35   :  { %10324 = vrsqrt.f32 %v2473_v25  ;;  %v2455_v57 = vpop.xlane.xlu0 %2454 }
 0xd36   :  { %v2467_v22 = vmul.f32 0.015625, %v2455_v57  ;;  %v2474_v60 = vadd.f32 1e-05, %v2466_v54 }
 0xd37   :  { %v2458_v37 = vpop.xlane.xlu1 %2457 }
 0xd38   :  { %v2475_v10 = vadd.f32 1e-05, %v2467_v22  ;;  %v2468_v6 = vmul.f32 0.015625, %v2458_v37 }
 0xd39   :  { %v10319_v26 = vpop.eup %10318  ;;  %v2461_v11 = vpop.xlane.xlu0 %2460 }
 0xd3a   :  { %v2486_v38 = vmul.f32 %v10319_v26, %v11862_v13  ;;  %10326 = vrsqrt.f32 %v2475_v10  ;;  %v2469_v8 = vmul.f32 0.015625, %v2461_v11  ;;  %v2476_v0 = vadd.f32 1e-05, %v2468_v6 }
 0xd3b   :  { %v10321_v4 = vpop.eup %10320  ;;  %10328 = vrsqrt.f32 %v2474_v60 }
 0xd3c   :  { %v2500_v15 = vmul.f32 %v8391_v32, %v2486_v38  ;;  %v2487_v16 = vmul.f32 %v10321_v4, %v11864_v1  ;;  %v2477_v23 = vadd.f32 1e-05, %v2469_v8 }
 0xd3d   :  { %v10323_v59 = vpop.eup %10322 }
 0xd3e   :  { %v2501_v50 = vmul.f32 %v8391_v32, %v2487_v16  ;;  %v11910_v21 = vadd.f32 %v8392_v56, %v2500_v15  ;;  %v2488_v30 = vmul.f32 %v10323_v59, %v11868_v14  ;;  %10330 = vrsqrt.f32 %v2477_v23 }
 0xd3f   :  { %v10325_v28 = vpop.eup %10324  ;;  %10332 = vrsqrt.f32 %v2476_v0 }
 0xd40   :  { %v11912_v13 = vadd.f32 %v8392_v56, %v2501_v50  ;;  %v2489_v35 = vmul.f32 %v10325_v28, %v11873_v17  ;;  %v2502_v51 = vmul.f32 %v8391_v32, %v2488_v30 }
 0xd42   :  { %v2531_v1 = vpack.c.bf16 %v11912_v13, %v11910_v21  ;;  %v2503_v40 = vmul.f32 %v8391_v32, %v2489_v35  ;;  %v11923_v14 = vadd.f32 %v8392_v56, %v2502_v51 }
 0xd44   :  { %v10327_v9 = vpop.eup %10326  ;;  %8402 = vmatmul.mubr.msk.bf16.vlgmr.msra.gmra.mrb[64].mxu1 %vm347_vm1, %v2531_v1  ;;  %v11920_v45 = vadd.f32 %v8392_v56, %v2503_v40 }
 0xd45   :  { %v10329_v52 = vpop.eup %10328  ;;  %2642 = vmatprep.mubr.bf16.mxu1 %v13780_v12  ;;  %v2491_v61 = vmul.f32 %v10327_v9, %v11884_v31 }
 0xd46   :  { %v2490_v17 = vmul.f32 %v10329_v52, %v11881_v41  ;;  %v2532_v20 = vpack.c.bf16 %v11920_v45, %v11923_v14 }
 0xd47   :  { %v2505_v44 = vmul.f32 %v8391_v32, %v2491_v61 }
 0xd48   :  { %v10331_v29 = vpop.eup %10330  ;;  %v2504_v33 = vmul.f32 %v8391_v32, %v2490_v17 }
 0xd49   :  { %v10333_v46 = vpop.eup %10332  ;;  %v11930_v39 = vadd.f32 %v8392_v56, %v2505_v44  ;;  %v2493_v47 = vmul.f32 %v10331_v29, %v11893_v48 }
 0xd4a   :  { %v11933_v31 = vadd.f32 %v8392_v56, %v2504_v33  ;;  %v2492_v3 = vmul.f32 %v10333_v46, %v11888_v7  ;;  %v8393_v7 = vld [vmem:[%s13711_s6 + $0x2] sm:$0x3] }
 0xd4b   :  { %13786 = vst [vmem:[#allocation16_spill] sm:$0xff] %v11930_v39  ;;  %v2507_v58 = vmul.f32 %v8391_v32, %v2493_v47  ;;  %v2541_v53 = vrot.slane %v8393_v7, %v13789_v43  ;;  %v2545_v62 = vrot.slane %v8393_v7, %v13790_v2  ;;  %v12000_v7 = vld [vmem:[#allocation5] sm:$0xff] }
 0xd4c   :  { %8403 = vmatmul.mubr.msk.bf16.gmra.mrb[68].mxu1 %vm347_vm1, %v2532_v20  ;;  %v2533_v41 = vpack.c.bf16 %v11930_v39, %v11933_v31  ;;  %v2506_v34 = vmul.f32 %v8391_v32, %v2492_v3 }
 0xd4d   :  { %2652 = vmatprep.mubr.bf16.mxu1 %v13780_v12  ;;  %v11940_v19 = vadd.f32 %v8392_v56, %v2507_v58 }
 0xd4e   :  { %v11942_v27 = vadd.f32 %v8392_v56, %v2506_v34 }
 0xd4f   :  { %13787 = vst [vmem:[#allocation17_spill] sm:$0xff] %v11940_v19 }
 0xd50   :  { %13788 = vst [vmem:[#allocation18_spill] sm:$0xff] %v11942_v27  ;;  %v2534_v48 = vpack.c.bf16 %v11940_v19, %v11942_v27 }
 0xd54   :  { %8404 = vmatmul.mubr.msk.bf16.gmra.mrb[72].mxu1 %vm347_vm1, %v2533_v41 }
 0xd55   :  { %2662 = vmatprep.mubr.bf16.mxu1 %v13780_v12 }
 0xd5c   :  { %8405 = vmatmul.mubr.msk.bf16.gmra.mrb[76].mxu1 %vm347_vm1, %v2534_v48 }
 0xe17   :  { %v2634_v24 = vpop.f32.mrb[64].mxu1 }
 0xe18   :  { %v2636_v18 = vpop.f32.mrb[65].mxu1  ;;  %v2635_v36 = vadd.f32 %v2634_v24, %v2541_v53 }
 0xe19   :  { %v2638_v5 = vpop.f32.mrb[66].mxu1  ;;  %v2637_v63 = vadd.f32 %v2636_v18, %v2545_v62  ;;  %v12003_v18 = vld [vmem:[#allocation5 + $0x10] sm:$0xff] }
 0xe1a   :  { %v2639_v49 = vadd.f32 %v2638_v5, %v2541_v53  ;;  %v2640_v42 = vpop.f32.mrb[67].mxu1 }
 0xe1b   :  { %v2641_v25 = vadd.f32 %v2640_v42, %v2545_v62 }
 0xe1c   :  { %v11952_v55 = vpack.c.bf16 %v2639_v49, %v2635_v36  ;;  %v12006_v36 = vld [vmem:[#allocation5 + $0x8] sm:$0xff] }
 0xe1d   :  { %v11954_v54 = vpack.c.bf16 %v2641_v25, %v2637_v63  ;;  %v12011_v25 = vld [vmem:[#allocation5 + $0x18] sm:$0xff] }
 0xe1e   :  { %2694 = vrot.lane.b32.xlu1 %v11952_v55, %s10830_s25  ;;  %9321 = vmatprep.mubr.msk.bf16.mxu1 %vm469_vm2, %v11952_v55 }
 0xe1f   :  { %v2644_v57 = vpop.f32.mrb[68].mxu1  ;;  %9329 = vmatprep.subr.bf16.mxu0 %v11954_v54 }
 0xe20   :  { %v2646_v22 = vpop.f32.mrb[69].mxu1  ;;  %9330 = vmatpush3.bf16.msra.mxu0 %v11954_v54  ;;  %v2645_v10 = vadd.f32 %v2644_v57, %v2541_v53 }
 0xe21   :  { %v2648_v60 = vpop.f32.mrb[70].mxu1  ;;  %v2647_v32 = vadd.f32 %v2646_v22, %v2545_v62 }
 0xe22   :  { %v2649_v37 = vadd.f32 %v2648_v60, %v2541_v53  ;;  %v2650_v26 = vpop.f32.mrb[71].mxu1 }
 0xe23   :  { %v2651_v11 = vadd.f32 %v2650_v26, %v2545_v62 }
 0xe24   :  { %v11962_v38 = vpack.c.bf16 %v2649_v37, %v2645_v10  ;;  %v12015_v37 = vld [vmem:[#allocation5 + $0x20] sm:$0xff] }
 0xe25   :  { %v11964_v8 = vpack.c.bf16 %v2651_v11, %v2647_v32 }
 0xe26   :  { %2696 = vrot.lane.b32.xlu0 %v11962_v38, %s10830_s25 }
 0xe27   :  { %v2654_v4 = vpop.f32.mrb[72].mxu1  ;;  %9331 = vmatprep.subr.bf16.mxu0 %v11964_v8 }
 0xe28   :  { %v2656_v6 = vpop.f32.mrb[73].mxu1  ;;  %9332 = vmatpush3.bf16.msra.mxu0 %v11964_v8  ;;  %v2655_v16 = vadd.f32 %v2654_v4, %v2541_v53  ;;  %v12020_v4 = vld [vmem:[#allocation5 + $0x30] sm:$0xff] }
 0xe29   :  { %v2658_v15 = vpop.f32.mrb[74].mxu1  ;;  %v2657_v23 = vadd.f32 %v2656_v6, %v2545_v62 }
 0xe2a   :  { %v2659_v59 = vadd.f32 %v2658_v15, %v2541_v53  ;;  %v2660_v56 = vpop.f32.mrb[75].mxu1  ;;  %v12023_v15 = vld [vmem:[#allocation5 + $0x28] sm:$0xff] }
 0xe2b   :  { %v2661_v50 = vadd.f32 %v2660_v56, %v2545_v62 }
 0xe2c   :  { %v11970_v28 = vpack.c.bf16 %v2659_v59, %v2655_v16 }
 0xe2d   :  { %v11972_v0 = vpack.c.bf16 %v2661_v50, %v2657_v23  ;;  %v12029_v23 = vld [vmem:[#allocation5 + $0x38] sm:$0xff] }
 0xe2e   :  { %2698 = vrot.lane.b32.xlu1 %v11970_v28, %s10830_s25 }
 0xe2f   :  { %v2664_v30 = vpop.f32.mrb[76].mxu1  ;;  %9333 = vmatprep.subr.bf16.mxu0 %v11972_v0 }
 0xe30   :  { %v2666_v35 = vpop.f32.mrb[77].mxu1  ;;  %9334 = vmatpush3.bf16.msra.mxu0 %v11972_v0  ;;  %v2665_v40 = vadd.f32 %v2664_v30, %v2541_v53 }
 0xe31   :  { %v2668_v1 = vpop.f32.mrb[78].mxu1  ;;  %v2667_v52 = vadd.f32 %v2666_v35, %v2545_v62 }
 0xe32   :  { %v2669_v9 = vadd.f32 %v2668_v1, %v2541_v53  ;;  %v2670_v51 = vpop.f32.mrb[79].mxu1 }
 0xe33   :  { %v2671_v61 = vadd.f32 %v2670_v51, %v2545_v62 }
 0xe34   :  { %v11978_v17 = vpack.c.bf16 %v2669_v9, %v2665_v40 }
 0xe35   :  { %v11980_v20 = vpack.c.bf16 %v2671_v61, %v2667_v52 }
 0xe36   :  { %2700 = vrot.lane.b32.xlu1 %v11978_v17, %s10830_s25 }
 0xe37   :  { %9335 = vmatprep.subr.bf16.mxu0 %v11980_v20 }
 0xe38   :  { %9336 = vmatpush3.bf16.msra.mxu0 %v11980_v20 }
 0xe90   :  { %v2695_v44 = vpop.permute.xlu1 %2694 }
 0xe91   :  { %9901 = vmatprep.subr.msk.bf16.mxu1 %vm469_vm2, %v2695_v44  ;;  %v2715_v29 = vsel %vm469_vm2, %v2695_v44, 0 }
 0xe92   :  { %9314 = vmatpush3.bf16.xpose.msra.mxu1 %v2715_v29 }
 0xe98   :  { %v2697_v33 = vpop.permute.xlu0 %2696 }
 0xe99   :  { %9902 = vmatprep.subr.msk.bf16.mxu1 %vm469_vm2, %v2697_v33  ;;  %v2718_v46 = vsel %vm469_vm2, %v2697_v33, 0 }
 0xe9a   :  { %9316 = vmatpush3.bf16.xpose.msra.mxu1 %v2718_v46 }
 0xea0   :  { %v2699_v47 = vpop.permute.xlu1 %2698 }
 0xea1   :  { %9903 = vmatprep.subr.msk.bf16.mxu1 %vm469_vm2, %v2699_v47  ;;  %v2721_v3 = vsel %vm469_vm2, %v2699_v47, 0 }
 0xea2   :  { %9318 = vmatpush3.bf16.xpose.msra.mxu1 %v2721_v3 }
 0xea8   :  { %v2701_v41 = vpop.permute.xlu1 %2700 }
 0xea9   :  { %9904 = vmatprep.subr.msk.bf16.mxu1 %vm469_vm2, %v2701_v41  ;;  %v2724_v58 = vsel %vm469_vm2, %v2701_v41, 0 }
 0xeaa   :  { %9320 = vmatpush3.bf16.xpose.msra.mxu1 %v2724_v58 }
 0xeb1   :  { %9322 = vmatmul.mubr.msk.bf16.vlgmr.msra.gmra.mrb[80].mxu1 %vm469_vm2, %v11962_v38 }
 0xeb2   :  { %9325 = vmatprep.mubr.msk.bf16.mxu1 %vm469_vm2, %v11970_v28 }
 0xeb9   :  { %9326 = vmatmul.mubr.msk.bf16.gmra.mrb[84].mxu1 %vm469_vm2, %v11978_v17 }
 0xf84   :  { %v9323_v34 = vpop.f32.mrb[80].mxu1 }
 0xf85   :  { %v2760_v48 = vpop.f32.mrb[81].mxu1  ;;  %v2769_v5 = vadd.f32 %v12003_v18, %v9323_v34 }
 0xf86   :  { %v2761_v53 = vadd.f32 %v12000_v7, %v2760_v48  ;;  %v9324_v24 = vpop.f32.mrb[82].mxu1 }
 0xf87   :  { %v2763_v62 = vpop.f32.mrb[83].mxu1  ;;  %v2772_v57 = vadd.f32 %v12011_v25, %v9324_v24  ;;  %v2797_v60 = vsel %vm347_vm1, %v2769_v5, -inf }
 0xf88   :  { %v2764_v49 = vadd.f32 %v12006_v36, %v2763_v62  ;;  %v2791_v42 = vsel %vm347_vm1, %v2761_v53, -inf }
 0xf89   :  { %2792 = vmax.xlane.f32.xlu0 %v2791_v42  ;;  %v2800_v56 = vsel %vm347_vm1, %v2772_v57, -inf }
 0xf8a   :  { %v2794_v63 = vsel %vm347_vm1, %v2764_v49, -inf }
 0xf8b   :  { %2795 = vmax.xlane.f32.xlu1 %v2794_v63 }
 0xf8c   :  { %v9327_v22 = vpop.f32.mrb[84].mxu1 }
 0xf8d   :  { %v2776_v10 = vpop.f32.mrb[85].mxu1  ;;  %2798 = vmax.xlane.f32.xlu0 %v2797_v60  ;;  %v2785_v6 = vadd.f32 %v12020_v4, %v9327_v22 }
 0xf8e   :  { %v12018_v26 = vadd.f32 %v12015_v37, %v2776_v10  ;;  %v9328_v32 = vpop.f32.mrb[86].mxu1 }
 0xf8f   :  { %v2779_v11 = vpop.f32.mrb[87].mxu1  ;;  %v2788_v50 = vadd.f32 %v12029_v23, %v9328_v32  ;;  %v2809_v30 = vsel %vm347_vm1, %v2785_v6, -inf }
 0xf90   :  { %v2780_v16 = vadd.f32 %v12023_v15, %v2779_v11  ;;  %v2803_v59 = vsel %vm347_vm1, %v12018_v26, -inf }
 0xf91   :  { %2804 = vmax.xlane.f32.xlu1 %v2803_v59  ;;  %2801 = vmax.xlane.f32.xlu0 %v2800_v56  ;;  %v2812_v1 = vsel %vm347_vm1, %v2788_v50, -inf }
 0xf92   :  { %v2806_v35 = vsel %vm347_vm1, %v2780_v16, -inf }
 0xf95   :  { %2810 = vmax.xlane.f32.xlu1 %v2809_v30  ;;  %2807 = vmax.xlane.f32.xlu0 %v2806_v35 }
 0xf99   :  { %2813 = vmax.xlane.f32.xlu0 %v2812_v1 }
0x1016   :  { %v2793_v40 = vpop.xlane.xlu0 %2792 }
0x1017   :  { %v2815_v9 = vsub.f32 %v2761_v53, %v2793_v40 }
0x1018   :  { %v2796_v52 = vpop.xlane.xlu1 %2795 }
0x1019   :  { %v2823_v44 = vmul.f32 1.442695, %v2815_v9  ;;  %v2816_v33 = vsub.f32 %v2764_v49, %v2796_v52 }
0x101a   :  { %v2799_v51 = vpop.xlane.xlu0 %2798 }
0x101b   :  { %v2817_v61 = vsub.f32 %v2769_v5, %v2799_v51  ;;  %v2825_v41 = vmul.f32 1.442695, %v2816_v33 }
0x101d   :  { %v2827_v29 = vmul.f32 1.442695, %v2817_v61 }
0x101e   :  { %v2802_v46 = vpop.xlane.xlu0 %2801  ;;  %v2805_v56 = vpop.xlane.xlu1 %2804 }
0x101f   :  { %10334 = vpow2.f32 %v2827_v29  ;;  %v2818_v47 = vsub.f32 %v2772_v57, %v2802_v46  ;;  %v2819_v35 = vsub.f32 %v12018_v26, %v2805_v56 }
0x1020   :  { %10336 = vpow2.f32 %v2823_v44 }
0x1021   :  { %v2829_v3 = vmul.f32 1.442695, %v2818_v47  ;;  %v2831_v40 = vmul.f32 1.442695, %v2819_v35 }
0x1022   :  { %v2808_v58 = vpop.xlane.xlu0 %2807 }
0x1023   :  { %10338 = vpow2.f32 %v2829_v3  ;;  %v2820_v34 = vsub.f32 %v2780_v16, %v2808_v58 }
0x1024   :  { %10340 = vpow2.f32 %v2825_v41 }
0x1025   :  { %v2833_v42 = vmul.f32 1.442695, %v2820_v34 }
0x1026   :  { %v2814_v48 = vpop.xlane.xlu0 %2813 }
0x1027   :  { %v2822_v24 = vsub.f32 %v2788_v50, %v2814_v48  ;;  %v2811_v50 = vpop.xlane.xlu1 %2810 }
0x1028   :  { %v2821_v30 = vsub.f32 %v2785_v6, %v2811_v50 }
0x1029   :  { %v12035_v62 = vpop.eup %10334  ;;  %v2837_v53 = vmul.f32 1.442695, %v2822_v24 }
0x102a   :  { %v2845_v5 = vsel %vm347_vm1, %v12035_v62, 0.0  ;;  %v12039_v49 = vpop.eup %10336  ;;  %v2835_v1 = vmul.f32 1.442695, %v2821_v30 }
0x102b   :  { %10342 = vpow2.f32 %v2837_v53  ;;  %2846 = vadd.xlane.f32.xlu1 %v2845_v5  ;;  %v2839_v57 = vsel %vm347_vm1, %v12039_v49, 0.0 }
0x102c   :  { %10344 = vpow2.f32 %v2833_v42 }
0x102d   :  { %v10339_v63 = vpop.eup %10338  ;;  %10346 = vpow2.f32 %v2835_v1 }
0x102e   :  { %v2848_v22 = vsel %vm347_vm1, %v10339_v63, 0.0  ;;  %v10341_v60 = vpop.eup %10340  ;;  %10348 = vpow2.f32 %v2831_v40 }
0x102f   :  { %2840 = vadd.xlane.f32.xlu1 %v2839_v57  ;;  %2849 = vadd.xlane.f32.xlu0 %v2848_v22  ;;  %v2842_v10 = vsel %vm347_vm1, %v10341_v60, 0.0 }
0x1033   :  { %2843 = vadd.xlane.f32.xlu0 %v2842_v10 }
0x1035   :  { %v12045_v32 = vpop.eup %10342 }
0x1036   :  { %v2860_v11 = vsel %vm347_vm1, %v12045_v32, 0.0  ;;  %v12049_v16 = vpop.eup %10344 }
0x1037   :  { %2861 = vadd.xlane.f32.xlu0 %v2860_v11  ;;  %v2854_v59 = vsel %vm347_vm1, %v12049_v16, 0.0  ;;  %v12064_v9 = vpop.eup %10346 }
0x1038   :  { %v2857_v26 = vsel %vm347_vm1, %v12064_v9, 0.0  ;;  %v12070_v6 = vpop.eup %10348 }
0x1039   :  { %v2851_v51 = vsel %vm347_vm1, %v12070_v6, 0.0 }
0x103b   :  { %2855 = vadd.xlane.f32.xlu0 %v2854_v59 }
0x1040   :  { %2972 = vrot.lane.b32.xlu1 %v11952_v55, %s10836_s28 }
0x1051   :  { %2974 = vrot.lane.b32.xlu0 %v11962_v38, %s10836_s28 }
0x1055   :  { %2964 = vrot.lane.b32.xlu0 %v11952_v55, %s10837_s22 }
0x1059   :  { %2968 = vrot.lane.b32.xlu0 %v11970_v28, %s10837_s22 }
0x105d   :  { %3432 = vrot.lane.b32.xlu0 %v11952_v55, %s10838_s11 }
0x1061   :  { %3436 = vrot.lane.b32.xlu0 %v11970_v28, %s10838_s11 }
0x1064   :  { %2858 = vadd.xlane.f32.xlu1 %v2857_v26 }
0x1065   :  { %3424 = vrot.lane.b32.xlu0 %v11952_v55, %s10839_s26 }
0x1068   :  { %2852 = vadd.xlane.f32.xlu1 %v2851_v51 }
0x1069   :  { %3428 = vrot.lane.b32.xlu0 %v11970_v28, %s10839_s26 }
0x1079   :  { %2976 = vrot.lane.b32.xlu1 %v11970_v28, %s10836_s28 }
0x107d   :  { %2978 = vrot.lane.b32.xlu1 %v11978_v17, %s10836_s28 }
0x1081   :  { %2966 = vrot.lane.b32.xlu1 %v11962_v38, %s10837_s22 }
0x1085   :  { %2970 = vrot.lane.b32.xlu1 %v11978_v17, %s10837_s22 }
0x1089   :  { %3434 = vrot.lane.b32.xlu1 %v11962_v38, %s10838_s11 }
0x108d   :  { %3438 = vrot.lane.b32.xlu1 %v11978_v17, %s10838_s11 }
0x1091   :  { %3426 = vrot.lane.b32.xlu1 %v11962_v38, %s10839_s26 }
0x1095   :  { %3430 = vrot.lane.b32.xlu1 %v11978_v17, %s10839_s26 }
0x10b8   :  { %v2847_v52 = vpop.xlane.xlu1 %2846 }
0x10bc   :  { %v2841_v61 = vpop.xlane.xlu1 %2840  ;;  %v2850_v44 = vpop.xlane.xlu0 %2849 }
0x10bd   :  { %10350 = vrcp.f32 %v2850_v44 }
0x10be   :  { %10352 = vrcp.f32 %v2841_v61 }
0x10bf   :  { %10354 = vrcp.f32 %v2847_v52 }
0x10c0   :  { %v2973_v29 = vpop.permute.xlu1 %2972  ;;  %v2844_v33 = vpop.xlane.xlu0 %2843 }
0x10c1   :  { %9905 = vmatprep.subr.msk.bf16.mxu0 %vm469_vm2, %v2973_v29  ;;  %10356 = vrcp.f32 %v2844_v33  ;;  %v2993_v22 = vsel %vm469_vm2, %v2973_v29, 0 }
0x10c4   :  { %v2862_v46 = vpop.xlane.xlu0 %2861 }
0x10c7   :  { %v10351_v47 = vpop.eup %10350 }
0x10c8   :  { %v10353_v3 = vpop.eup %10352  ;;  %v2874_v34 = vmul.f32 %v10351_v47, %v10339_v63  ;;  %v2856_v48 = vpop.xlane.xlu0 %2855 }
0x10c9   :  { %v10355_v41 = vpop.eup %10354  ;;  %v2871_v24 = vmul.f32 %v10353_v3, %v12039_v49 }
0x10ca   :  { %v2873_v42 = vmul.f32 %v10355_v41, %v12035_v62 }
0x10cb   :  { %v10357_v58 = vpop.eup %10356 }
0x10cc   :  { %v2872_v53 = vmul.f32 %v10357_v58, %v10341_v60  ;;  %v2880_v57 = vpack.c.bf16 %v2874_v34, %v2873_v42  ;;  %v2975_v10 = vpop.permute.xlu0 %2974 }
0x10cd   :  { %v2996_v63 = vsel %vm469_vm2, %v2975_v10, 0 }
0x10ce   :  { %v2879_v5 = vpack.c.bf16 %v2872_v53, %v2871_v24 }
0x10d0   :  { %9337 = vmatprep.mubr.msk.bf16.mxu0 %vm347_vm1, %v2879_v5  ;;  %v2965_v49 = vpop.permute.xlu0 %2964 }
0x10d1   :  { %9338 = vmatmul.mubr.msk.bf16.vlgmr.msra.gmra.mrb[48].mxu0 %vm347_vm1, %v2880_v57 }
0x10d2   :  { %9346 = vmatpush3.bf16.xpose.msra.mxu0 %v2993_v22 }
0x10d3   :  { %9906 = vmatprep.subr.msk.bf16.mxu0 %vm469_vm2, %v2975_v10 }
0x10d4   :  { %v2969_v50 = vpop.permute.xlu0 %2968 }
0x10d8   :  { %v3433_v29 = vpop.permute.xlu0 %3432 }
0x10da   :  { %9348 = vmatpush3.bf16.xpose.msra.mxu0 %v2996_v63 }
0x10f1   :  { %v2859_v11 = vpop.xlane.xlu1 %2858 }
0x10f2   :  { %10358 = vrcp.f32 %v2859_v11 }
0x10f3   :  { %10360 = vrcp.f32 %v2856_v48 }
0x10f4   :  { %10362 = vrcp.f32 %v2862_v46 }
0x10f5   :  { %v2853_v62 = vpop.xlane.xlu1 %2852 }
0x10f6   :  { %10364 = vrcp.f32 %v2853_v62 }
0x10f9   :  { %v2977_v60 = vpop.permute.xlu1 %2976 }
0x10fa   :  { %9907 = vmatprep.subr.msk.bf16.mxu0 %vm469_vm2, %v2977_v60  ;;  %v2999_v59 = vsel %vm469_vm2, %v2977_v60, 0 }
0x10fb   :  { %9350 = vmatpush3.bf16.xpose.msra.mxu0 %v2999_v59 }
0x10fc   :  { %v10359_v56 = vpop.eup %10358 }
0x10fd   :  { %v2979_v30 = vpop.permute.xlu1 %2978  ;;  %v10361_v35 = vpop.eup %10360  ;;  %v2877_v26 = vmul.f32 %v10359_v56, %v12064_v9 }
0x10fe   :  { %9908 = vmatprep.subr.msk.bf16.mxu0 %vm469_vm2, %v2979_v30  ;;  %v10363_v1 = vpop.eup %10362  ;;  %v2876_v52 = vmul.f32 %v10361_v35, %v12049_v16  ;;  %v3002_v61 = vsel %vm469_vm2, %v2979_v30, 0  ;;  %v3453_v16 = vsel %vm469_vm2, %v3433_v29, 0 }
0x10ff   :  { %v2878_v44 = vmul.f32 %v10363_v1, %v12045_v32  ;;  %v3437_v32 = vpop.permute.xlu0 %3436 }
0x1100   :  { %v10365_v40 = vpop.eup %10364  ;;  %v3459_v58 = vsel %vm469_vm2, %v3437_v32, 0 }
0x1101   :  { %v2875_v51 = vmul.f32 %v10365_v40, %v12070_v6  ;;  %v2967_v33 = vpop.permute.xlu1 %2966  ;;  %v2882_v47 = vpack.c.bf16 %v2878_v44, %v2877_v26 }
0x1103   :  { %9352 = vmatpush3.bf16.xpose.msra.mxu0 %v3002_v61  ;;  %v2881_v46 = vpack.c.bf16 %v2876_v52, %v2875_v51  ;;  %v3425_v3 = vpop.permute.xlu0 %3424 }
0x1104   :  { %9909 = vmatprep.subr.msk.bf16.mxu0 %vm469_vm2, %v3433_v29 }
0x1105   :  { %9341 = vmatprep.mubr.msk.bf16.mxu0 %vm347_vm1, %v2881_v46  ;;  %v2971_v9 = vpop.permute.xlu1 %2970 }
0x1106   :  { %9342 = vmatmul.mubr.msk.bf16.gmra.mrb[52].mxu0 %vm347_vm1, %v2882_v47 }
0x1107   :  { %9353 = vmatprep.mubr.msk.bf16.mxu0 %vm469_vm2, %v2965_v49  ;;  %v3429_v53 = vpop.permute.xlu0 %3428 }
0x1109   :  { %v3435_v6 = vpop.permute.xlu1 %3434 }
0x110a   :  { %v3456_v41 = vsel %vm469_vm2, %v3435_v6, 0 }
0x110d   :  { %v3439_v34 = vpop.permute.xlu1 %3438 }
0x110e   :  { %9354 = vmatmul.mubr.msk.bf16.vlgmr.msra.gmra.mrb[56].mxu0 %vm469_vm2, %v2967_v33  ;;  %v3462_v48 = vsel %vm469_vm2, %v3439_v34, 0 }
0x110f   :  { %9398 = vmatpush3.bf16.xpose.msra.mxu0 %v3453_v16  ;;  %9357 = vmatprep.mubr.msk.bf16.mxu0 %vm469_vm2, %v2969_v50 }
0x1110   :  { %9910 = vmatprep.subr.msk.bf16.mxu0 %vm469_vm2, %v3435_v6 }
0x1111   :  { %v3427_v24 = vpop.permute.xlu1 %3426 }
0x1115   :  { %v3431_v42 = vpop.permute.xlu1 %3430 }
0x1116   :  { %9358 = vmatmul.mubr.msk.bf16.gmra.mrb[60].mxu0 %vm469_vm2, %v2971_v9 }
0x1117   :  { %9400 = vmatpush3.bf16.xpose.msra.mxu0 %v3456_v41  ;;  %9405 = vmatprep.mubr.msk.bf16.mxu0 %vm469_vm2, %v3425_v3 }
0x1118   :  { %9911 = vmatprep.subr.msk.bf16.mxu0 %vm469_vm2, %v3437_v32 }
0x111f   :  { %9402 = vmatpush3.bf16.xpose.msra.mxu0 %v3459_v58 }
0x1120   :  { %9912 = vmatprep.subr.msk.bf16.mxu0 %vm469_vm2, %v3439_v34 }
0x1127   :  { %9404 = vmatpush3.bf16.xpose.msra.mxu0 %v3462_v48 }
0x112e   :  { %9406 = vmatmul.mubr.msk.bf16.vlgmr.msra.gmra.mrb[64].mxu0 %vm469_vm2, %v3427_v24 }
0x112f   :  { %9409 = vmatprep.mubr.msk.bf16.mxu0 %vm469_vm2, %v3429_v53 }
0x1136   :  { %9410 = vmatmul.mubr.msk.bf16.gmra.mrb[68].mxu0 %vm469_vm2, %v3431_v42 }
0x11a4   :  { %v12128_v5 = vpop.f32.mrb[48].mxu0 }
0x11a5   :  { %v12130_v57 = vpop.f32.mrb[49].mxu0 }
0x11a6   :  { %v12132_v22 = vpop.f32.mrb[50].mxu0 }
0x11a7   :  { %v12136_v63 = vpop.f32.mrb[51].mxu0 }
0x11d9   :  { %v12140_v62 = vpop.f32.mrb[52].mxu0 }
0x11da   :  { %v12142_v49 = vpop.f32.mrb[53].mxu0 }
0x11db   :  { %v12144_v60 = vpop.f32.mrb[54].mxu0 }
0x11dc   :  { %v12148_v56 = vpop.f32.mrb[55].mxu0 }
0x11e1   :  { %v9355_v30 = vpop.f32.mrb[56].mxu0 }
0x11e2   :  { %v3038_v35 = vpop.f32.mrb[57].mxu0  ;;  %v3047_v51 = vadd.f32 %v12003_v18, %v9355_v30 }
0x11e3   :  { %v3039_v1 = vadd.f32 %v12000_v7, %v3038_v35  ;;  %v9356_v40 = vpop.f32.mrb[58].mxu0 }
0x11e4   :  { %v3041_v26 = vpop.f32.mrb[59].mxu0  ;;  %v3050_v29 = vadd.f32 %v12011_v25, %v9356_v40  ;;  %v3075_v46 = vsel %vm347_vm1, %v3047_v51, -inf }
0x11e5   :  { %v3042_v52 = vadd.f32 %v12006_v36, %v3041_v26  ;;  %v3069_v61 = vsel %vm347_vm1, %v3039_v1, -inf }
0x11e6   :  { %3070 = vmax.xlane.f32.xlu0 %v3069_v61  ;;  %v3078_v41 = vsel %vm347_vm1, %v3050_v29, -inf }
0x11e7   :  { %v3072_v44 = vsel %vm347_vm1, %v3042_v52, -inf }
0x11e8   :  { %3073 = vmax.xlane.f32.xlu1 %v3072_v44 }
0x11e9   :  { %v9359_v33 = vpop.f32.mrb[60].mxu0 }
0x11ea   :  { %3076 = vmax.xlane.f32.xlu0 %v3075_v46  ;;  %v3054_v47 = vpop.f32.mrb[61].mxu0  ;;  %v3063_v32 = vadd.f32 %v12020_v4, %v9359_v33 }
0x11eb   :  { %v3055_v9 = vadd.f32 %v12015_v37, %v3054_v47  ;;  %v9360_v16 = vpop.f32.mrb[62].mxu0 }
0x11ec   :  { %v3057_v6 = vpop.f32.mrb[63].mxu0  ;;  %v3066_v34 = vadd.f32 %v12029_v23, %v9360_v16  ;;  %v3087_v24 = vsel %vm347_vm1, %v3063_v32, -inf }
0x11ed   :  { %v3058_v3 = vadd.f32 %v12023_v15, %v3057_v6  ;;  %v3081_v58 = vsel %vm347_vm1, %v3055_v9, -inf }
0x11ee   :  { %3079 = vmax.xlane.f32.xlu0 %v3078_v41  ;;  %3082 = vmax.xlane.f32.xlu1 %v3081_v58  ;;  %v3090_v53 = vsel %vm347_vm1, %v3066_v34, -inf }
0x11ef   :  { %v3084_v48 = vsel %vm347_vm1, %v3058_v3, -inf }
0x11f2   :  { %3085 = vmax.xlane.f32.xlu0 %v3084_v48  ;;  %3088 = vmax.xlane.f32.xlu1 %v3087_v24 }
0x11f6   :  { %3091 = vmax.xlane.f32.xlu0 %v3090_v53 }
0x1201   :  { %v12168_v42 = vpop.f32.mrb[64].mxu0 }
0x1202   :  { %v12170_v30 = vpop.f32.mrb[65].mxu0 }
0x1203   :  { %v12172_v35 = vpop.f32.mrb[66].mxu0  ;;  %3165 = vrot.lane.b32.xlu1 %v11954_v54, %s10837_s22 }
0x1204   :  { %v12176_v40 = vpop.f32.mrb[67].mxu0 }
0x1209   :  { %v12178_v26 = vpop.f32.mrb[68].mxu0 }
0x120a   :  { %v12180_v61 = vpop.f32.mrb[69].mxu0 }
0x120b   :  { %v12182_v44 = vpop.f32.mrb[70].mxu0 }
0x120c   :  { %v12184_v33 = vpop.f32.mrb[71].mxu0 }
0x1273   :  { %v3071_v46 = vpop.xlane.xlu0 %3070 }
0x1274   :  { %v3093_v47 = vsub.f32 %v3039_v1, %v3071_v46 }
0x1275   :  { %v3074_v16 = vpop.xlane.xlu1 %3073 }
0x1276   :  { %v3101_v58 = vmul.f32 1.442695, %v3093_v47  ;;  %v3094_v24 = vsub.f32 %v3042_v52, %v3074_v16 }
0x1277   :  { %v3077_v6 = vpop.xlane.xlu0 %3076 }
0x1278   :  { %v3095_v41 = vsub.f32 %v3047_v51, %v3077_v6  ;;  %v3103_v2 = vmul.f32 1.442695, %v3094_v24  ;;  %v12246_v24 = vadd.f32 %v12000_v7, %v12170_v30  ;;  %v12262_v7 = vadd.f32 %v12020_v4, %v12178_v26 }
0x1279   :  { %v12276_v30 = vadd.f32 %v12023_v15, %v12184_v33 }
0x127a   :  { %v3105_v48 = vmul.f32 1.442695, %v3095_v41 }
0x127b   :  { %v3083_v53 = vpop.xlane.xlu1 %3082  ;;  %v3080_v59 = vpop.xlane.xlu0 %3079 }
0x127c   :  { %10366 = vpow2.f32 %v3105_v48  ;;  %v3096_v50 = vsub.f32 %v3050_v29, %v3080_v59  ;;  %v3097_v10 = vsub.f32 %v3055_v9, %v3083_v53  ;;  %v12242_v48 = vadd.f32 %v12006_v36, %v12176_v40 }
0x127d   :  { %10368 = vpow2.f32 %v3101_v58 }
0x127e   :  { %v3107_v11 = vmul.f32 1.442695, %v3096_v50  ;;  %v3109_v39 = vmul.f32 1.442695, %v3097_v10 }
0x127f   :  { %v3089_v43 = vpop.xlane.xlu1 %3088  ;;  %v3086_v27 = vpop.xlane.xlu0 %3085 }
0x1280   :  { %v3099_v19 = vsub.f32 %v3063_v32, %v3089_v43  ;;  %10370 = vpow2.f32 %v3107_v11  ;;  %v3098_v46 = vsub.f32 %v3058_v3, %v3086_v27 }
0x1281   :  { %10372 = vpow2.f32 %v3103_v2 }
0x1282   :  { %v3113_v1 = vmul.f32 1.442695, %v3099_v19  ;;  %v3111_v50 = vmul.f32 1.442695, %v3098_v46 }
0x1283   :  { %v3166_v51 = vpop.permute.xlu1 %3165  ;;  %v3092_v47 = vpop.xlane.xlu0 %3091 }
0x1284   :  { %10374 = vpow2.f32 %v3113_v1  ;;  %v3100_v52 = vsub.f32 %v3066_v34, %v3092_v47  ;;  %9361 = vmatprep.subr.bf16.mxu1 %v3166_v51 }
0x1285   :  { %9362 = vmatpush3.bf16.msra.mxu1 %v3166_v51  ;;  %10376 = vpow2.f32 %v3109_v39 }
0x1286   :  { %v12186_v16 = vpop.eup %10366  ;;  %v3115_v59 = vmul.f32 1.442695, %v3100_v52 }
0x1287   :  { %v3123_v29 = vsel %vm347_vm1, %v12186_v16, 0.0  ;;  %v12190_v43 = vpop.eup %10368 }
0x1288   :  { %10378 = vpow2.f32 %v3115_v59  ;;  %3124 = vadd.xlane.f32.xlu1 %v3123_v29  ;;  %v3117_v27 = vsel %vm347_vm1, %v12190_v43, 0.0 }
0x1289   :  { %10380 = vpow2.f32 %v3111_v50 }
0x128a   :  { %v12192_v19 = vpop.eup %10370 }
0x128b   :  { %v3126_v2 = vsel %vm347_vm1, %v12192_v19, 0.0  ;;  %v12198_v39 = vpop.eup %10372 }
0x128c   :  { %3118 = vadd.xlane.f32.xlu1 %v3117_v27  ;;  %3127 = vadd.xlane.f32.xlu0 %v3126_v2  ;;  %v3120_v32 = vsel %vm347_vm1, %v12198_v39, 0.0 }
0x128e   :  { %v12200_v10 = vpop.eup %10374 }
0x128f   :  { %v3135_v11 = vsel %vm347_vm1, %v12200_v10, 0.0  ;;  %v12204_v9 = vpop.eup %10376 }
0x1290   :  { %3136 = vadd.xlane.f32.xlu1 %v3135_v11  ;;  %3121 = vadd.xlane.f32.xlu0 %v3120_v32  ;;  %v3129_v34 = vsel %vm347_vm1, %v12204_v9, 0.0 }
0x1292   :  { %v12208_v3 = vpop.eup %10378 }
0x1293   :  { %v3138_v6 = vsel %vm347_vm1, %v12208_v3, 0.0  ;;  %v12214_v41 = vpop.eup %10380 }
0x1294   :  { %3130 = vadd.xlane.f32.xlu1 %v3129_v34  ;;  %3139 = vadd.xlane.f32.xlu0 %v3138_v6  ;;  %v3132_v58 = vsel %vm347_vm1, %v12214_v41, 0.0 }
0x1298   :  { %3133 = vadd.xlane.f32.xlu0 %v3132_v58 }
0x12a5   :  { %3169 = vrot.lane.b32.xlu1 %v11972_v0, %s10837_s22 }
0x12a9   :  { %3171 = vrot.lane.b32.xlu1 %v11980_v20, %s10837_s22 }
0x12ad   :  { %3815 = vrot.lane.b32.xlu1 %v11962_v38, %s10840_s1 }
0x12ae   :  { %3167 = vrot.lane.b32.xlu0 %v11964_v8, %s10837_s22 }
0x12b1   :  { %3819 = vrot.lane.b32.xlu1 %v11978_v17, %s10840_s1 }
0x12b2   :  { %3813 = vrot.lane.b32.xlu0 %v11952_v55, %s10840_s1 }
0x12b5   :  { %3807 = vrot.lane.b32.xlu1 %v11962_v38, %s10841_s24  ;;  %v12250_v38 = vadd.f32 %v12015_v37, %v12180_v61  ;;  %v12268_v37 = vadd.f32 %v12011_v25, %v12172_v35  ;;  %v12282_v25 = vadd.f32 %v12029_v23, %v12182_v44  ;;  %v3544_v35 = vsel %vm347_vm1, %v12276_v30, -inf }
0x12b6   :  { %3817 = vrot.lane.b32.xlu0 %v11970_v28, %s10840_s1 }
0x12b7   :  { %v3541_v36 = vsel %vm347_vm1, %v12250_v38, -inf  ;;  %v3538_v4 = vsel %vm347_vm1, %v12268_v37, -inf  ;;  %v3550_v40 = vsel %vm347_vm1, %v12282_v25, -inf }
0x12b9   :  { %3811 = vrot.lane.b32.xlu1 %v11978_v17, %s10841_s24  ;;  %v3532_v17 = vsel %vm347_vm1, %v12242_v48, -inf }
0x12ba   :  { %3805 = vrot.lane.b32.xlu0 %v11952_v55, %s10841_s24  ;;  %v12256_v55 = vadd.f32 %v12003_v18, %v12168_v42  ;;  %v3547_v42 = vsel %vm347_vm1, %v12262_v7, -inf }
0x12bc   :  { %v3535_v18 = vsel %vm347_vm1, %v12256_v55, -inf }
0x12be   :  { %3809 = vrot.lane.b32.xlu0 %v11970_v28, %s10841_s24  ;;  %v3529_v28 = vsel %vm347_vm1, %v12246_v24, -inf }
0x12dd   :  { %3533 = vmax.xlane.f32.xlu1 %v3532_v17  ;;  %3530 = vmax.xlane.f32.xlu0 %v3529_v28 }
0x12e1   :  { %3542 = vmax.xlane.f32.xlu1 %v3541_v36  ;;  %3536 = vmax.xlane.f32.xlu0 %v3535_v18 }
0x12e5   :  { %3548 = vmax.xlane.f32.xlu1 %v3547_v42  ;;  %3539 = vmax.xlane.f32.xlu0 %v3538_v4 }
0x12e9   :  { %3545 = vmax.xlane.f32.xlu0 %v3544_v35 }
0x12ed   :  { %3551 = vmax.xlane.f32.xlu0 %v3550_v40 }
0x12f6   :  { %3621 = vrot.lane.b32.xlu1 %v11954_v54, %s10839_s26 }
0x1315   :  { %v3125_v15 = vpop.xlane.xlu1 %3124 }
0x1319   :  { %v3119_v26 = vpop.xlane.xlu1 %3118  ;;  %v3128_v61 = vpop.xlane.xlu0 %3127 }
0x131a   :  { %10382 = vrcp.f32 %v3119_v26 }
0x131d   :  { %v3137_v33 = vpop.xlane.xlu1 %3136  ;;  %v3122_v53 = vpop.xlane.xlu0 %3121 }
0x131e   :  { %10384 = vrcp.f32 %v3122_v53 }
0x131f   :  { %10386 = vrcp.f32 %v3128_v61 }
0x1320   :  { %10388 = vrcp.f32 %v3125_v15 }
0x1321   :  { %v3131_v23 = vpop.xlane.xlu1 %3130  ;;  %v3140_v44 = vpop.xlane.xlu0 %3139 }
0x1322   :  { %10390 = vrcp.f32 %v3131_v23 }
0x1324   :  { %v10383_v51 = vpop.eup %10382 }
0x1325   :  { %v3170_v1 = vpop.permute.xlu1 %3169  ;;  %v3134_v46 = vpop.xlane.xlu0 %3133  ;;  %v3149_v50 = vmul.f32 %v10383_v51, %v12190_v43 }
0x1326   :  { %10392 = vrcp.f32 %v3134_v46 }
0x1327   :  { %10394 = vrcp.f32 %v3140_v44 }
0x1328   :  { %v10385_v47 = vpop.eup %10384  ;;  %10396 = vrcp.f32 %v3137_v33 }
0x1329   :  { %v3172_v52 = vpop.permute.xlu1 %3171  ;;  %v3168_v59 = vpop.permute.xlu0 %3167  ;;  %v3150_v29 = vmul.f32 %v10385_v47, %v12198_v39 }
0x132a   :  { %9363 = vmatprep.subr.bf16.mxu1 %v3168_v59  ;;  %v10387_v2 = vpop.eup %10386 }
0x132b   :  { %9364 = vmatpush3.bf16.msra.mxu1 %v3168_v59  ;;  %v3157_v27 = vpack.c.bf16 %v3150_v29, %v3149_v50  ;;  %v10389_v32 = vpop.eup %10388  ;;  %v3152_v39 = vmul.f32 %v10387_v2, %v12192_v19 }
0x132c   :  { %9365 = vmatprep.subr.bf16.mxu1 %v3170_v1  ;;  %v10391_v6 = vpop.eup %10390  ;;  %v3151_v36 = vmul.f32 %v10389_v32, %v12186_v16 }
0x132d   :  { %9369 = vmatprep.mubr.msk.bf16.mxu1 %vm347_vm1, %v3157_v27  ;;  %v3814_v11 = vpop.permute.xlu0 %3813  ;;  %v3816_v58 = vpop.permute.xlu1 %3815  ;;  %v3153_v18 = vmul.f32 %v10391_v6, %v12204_v9 }
0x132e   :  { %9913 = vmatprep.subr.msk.bf16.mxu0 %vm469_vm2, %v3814_v11  ;;  %v3834_v34 = vsel %vm469_vm2, %v3814_v11, 0  ;;  %v3158_v42 = vpack.c.bf16 %v3152_v39, %v3151_v36  ;;  %v3837_v19 = vsel %vm469_vm2, %v3816_v58, 0 }
0x132f   :  { %9366 = vmatpush3.bf16.msra.mxu1 %v3170_v1  ;;  %9440 = vmatpush3.bf16.xpose.msra.mxu0 %v3834_v34 }
0x1330   :  { %v10393_v43 = vpop.eup %10392  ;;  %9367 = vmatprep.subr.bf16.mxu1 %v3172_v52  ;;  %9914 = vmatprep.subr.msk.bf16.mxu0 %vm469_vm2, %v3816_v58 }
0x1331   :  { %v3818_v17 = vpop.permute.xlu0 %3817  ;;  %v3154_v28 = vmul.f32 %v10393_v43, %v12214_v41  ;;  %v10395_v4 = vpop.eup %10394 }
0x1332   :  { %v10397_v15 = vpop.eup %10396  ;;  %v3156_v16 = vmul.f32 %v10395_v4, %v12208_v3  ;;  %v3840_v26 = vsel %vm469_vm2, %v3818_v17, 0  ;;  %v3820_v61 = vpop.permute.xlu1 %3819 }
0x1333   :  { %9368 = vmatpush3.bf16.msra.mxu1 %v3172_v52  ;;  %v3159_v40 = vpack.c.bf16 %v3154_v28, %v3153_v18  ;;  %v3155_v9 = vmul.f32 %v10397_v15, %v12200_v10  ;;  %v3843_v33 = vsel %vm469_vm2, %v3820_v61, 0 }
0x1335   :  { %v3806_v35 = vpop.permute.xlu0 %3805  ;;  %v3160_v41 = vpack.c.bf16 %v3156_v16, %v3155_v9  ;;  %v9998_v9 = vld [vmem:[%s13712_s7 + $0x28] sm:$0xff]  }
0x1336   :  { %9370 = vmatmul.mubr.msk.bf16.vlgmr.msra.gmra.mrb[88].mxu1 %vm347_vm1, %v3158_v42  ;;  %9447 = vmatprep.mubr.msk.bf16.mxu0 %vm469_vm2, %v3806_v35  ;;  %v3808_v53 = vpop.permute.xlu1 %3807 }
0x1337   :  { %9373 = vmatprep.mubr.msk.bf16.mxu1 %vm347_vm1, %v3159_v40  ;;  %9442 = vmatpush3.bf16.xpose.msra.mxu0 %v3837_v19 }
0x1338   :  { %9915 = vmatprep.subr.msk.bf16.mxu0 %vm469_vm2, %v3818_v17  ;;  %9377 = vmatprep.subr.bf16.mxu1 %v9998_v9 }
0x1339   :  { %v3810_v23 = vpop.permute.xlu0 %3809  ;;  %9378 = vmatpush3.bf16.msra.mxu1 %v9998_v9 }
0x133a   :  { %v3812_v3 = vpop.permute.xlu1 %3811 }
0x133e   :  { %9374 = vmatmul.mubr.msk.bf16.gmra.mrb[92].mxu1 %vm347_vm1, %v3160_v41 }
0x133f   :  { %9444 = vmatpush3.bf16.xpose.msra.mxu0 %v3840_v26 }
0x1340   :  { %9916 = vmatprep.subr.msk.bf16.mxu0 %vm469_vm2, %v3820_v61  ;;  %v9999_v61 = vld [vmem:[%s13712_s7 + $0x20] sm:$0xff]  }
0x1341   :  { %9387 = vmatprep.subr.bf16.mxu1 %v9999_v61 }
0x1347   :  { %9446 = vmatpush3.bf16.xpose.msra.mxu0 %v3843_v33 }
0x134e   :  { %9448 = vmatmul.mubr.msk.bf16.vlgmr.msra.gmra.mrb[72].mxu0 %vm469_vm2, %v3808_v53 }
0x134f   :  { %9451 = vmatprep.mubr.msk.bf16.mxu0 %vm469_vm2, %v3810_v23 }
0x1356   :  { %9452 = vmatmul.mubr.msk.bf16.gmra.mrb[76].mxu0 %vm469_vm2, %v3812_v3 }
0x136a   :  { %v3534_v10 = vpop.xlane.xlu1 %3533  ;;  %v3531_v44 = vpop.xlane.xlu0 %3530 }
0x136b   :  { %v3553_v1 = vsub.f32 %v12246_v24, %v3531_v44  ;;  %v3554_v52 = vsub.f32 %v12242_v48, %v3534_v10 }
0x136d   :  { %v3561_v59 = vmul.f32 1.442695, %v3553_v1  ;;  %v3563_v32 = vmul.f32 1.442695, %v3554_v52 }
0x136e   :  { %v3543_v46 = vpop.xlane.xlu1 %3542  ;;  %v3537_v51 = vpop.xlane.xlu0 %3536 }
0x136f   :  { %v3555_v47 = vsub.f32 %v12256_v55, %v3537_v51  ;;  %v3557_v34 = vsub.f32 %v12250_v38, %v3543_v46 }
0x1371   :  { %v3565_v50 = vmul.f32 1.442695, %v3555_v47  ;;  %v3569_v55 = vmul.f32 1.442695, %v3557_v34 }
0x1372   :  { %v3549_v29 = vpop.xlane.xlu1 %3548  ;;  %v3540_v2 = vpop.xlane.xlu0 %3539 }
0x1373   :  { %v3559_v27 = vsub.f32 %v12262_v7, %v3549_v29  ;;  %10398 = vpow2.f32 %v3565_v50  ;;  %v3556_v11 = vsub.f32 %v12268_v37, %v3540_v2 }
0x1374   :  { %10400 = vpow2.f32 %v3561_v59 }
0x1375   :  { %v3573_v24 = vmul.f32 1.442695, %v3559_v27  ;;  %v3567_v6 = vmul.f32 1.442695, %v3556_v11 }
0x1376   :  { %v3546_v58 = vpop.xlane.xlu0 %3545  ;;  %v3622_v33 = vpop.permute.xlu1 %3621 }
0x1377   :  { %10402 = vpow2.f32 %v3567_v6  ;;  %v3558_v48 = vsub.f32 %v12276_v30, %v3546_v58 }
0x1378   :  { %10404 = vpow2.f32 %v3563_v32 }
0x1379   :  { %10406 = vpow2.f32 %v3573_v24  ;;  %v3571_v37 = vmul.f32 1.442695, %v3558_v48  ;;  %v13791_v24 = vpack.c.bf16 %v12136_v63, %v12130_v57  ;;  %v13792_v48 = vpack.c.bf16 %v12132_v22, %v12128_v5 }
0x137a   :  { %v3552_v43 = vpop.xlane.xlu0 %3551  ;;  %10408 = vpow2.f32 %v3569_v55 }
0x137b   :  { %v3560_v7 = vsub.f32 %v12282_v25, %v3552_v43 }
0x137d   :  { %v12322_v39 = vpop.eup %10398  ;;  %v3575_v17 = vmul.f32 1.442695, %v3560_v7  ;;  %v13793_v7 = vpack.c.bf16 %v12148_v56, %v12142_v49  ;;  %v10664_v49 = vld [vmem:[#allocation5 + $0x8] sm:$0xff] }
0x137e   :  { %v3583_v38 = vsel %vm347_vm1, %v12322_v39, 0.0  ;;  %v12326_v28 = vpop.eup %10400 }
0x137f   :  { %10410 = vpow2.f32 %v3575_v17  ;;  %3584 = vadd.xlane.f32.xlu1 %v3583_v38  ;;  %v3577_v30 = vsel %vm347_vm1, %v12326_v28, 0.0  ;;  %v10662_v38 = vld [vmem:[#allocation5] sm:$0xff] }
0x1380   :  { %10412 = vpow2.f32 %v3571_v37 }
0x1381   :  { %v12328_v36 = vpop.eup %10402 }
0x1382   :  { %v12330_v18 = vpop.eup %10404  ;;  %v3586_v25 = vsel %vm347_vm1, %v12328_v36, 0.0 }
0x1383   :  { %v12336_v42 = vpop.eup %10406  ;;  %3578 = vadd.xlane.f32.xlu1 %v3577_v30  ;;  %3587 = vadd.xlane.f32.xlu0 %v3586_v25  ;;  %v3580_v35 = vsel %vm347_vm1, %v12330_v18, 0.0 }
0x1384   :  { %v3595_v4 = vsel %vm347_vm1, %v12336_v42, 0.0  ;;  %v12342_v40 = vpop.eup %10408 }
0x1385   :  { %v3589_v15 = vsel %vm347_vm1, %v12342_v40, 0.0 }
0x1387   :  { %3596 = vadd.xlane.f32.xlu1 %v3595_v4  ;;  %3581 = vadd.xlane.f32.xlu0 %v3580_v35  ;;  %v10663_v4 = vld [vmem:[#allocation5 + $0x10] sm:$0xff] }
0x1389   :  { %v12344_v19 = vpop.eup %10410 }
0x138a   :  { %v3598_v16 = vsel %vm347_vm1, %v12344_v19, 0.0  ;;  %v12353_v41 = vpop.eup %10412 }
0x138b   :  { %3590 = vadd.xlane.f32.xlu1 %v3589_v15  ;;  %3599 = vadd.xlane.f32.xlu0 %v3598_v16  ;;  %v3592_v26 = vsel %vm347_vm1, %v12353_v41, 0.0 }
0x138f   :  { %3593 = vadd.xlane.f32.xlu0 %v3592_v26 }
0x139c   :  { %3625 = vrot.lane.b32.xlu1 %v11972_v0, %s10839_s26 }
0x13a0   :  { %3627 = vrot.lane.b32.xlu1 %v11980_v20, %s10839_s26 }
0x13a5   :  { %3623 = vrot.lane.b32.xlu0 %v11964_v8, %s10839_s26 }
0x1409   :  { %v9371_v53 = vpop.f32.mrb[88].mxu1 }
0x140a   :  { %v3223_v23 = vpop.f32.mrb[89].mxu1 }
0x140b   :  { %v9372_v3 = vpop.f32.mrb[90].mxu1 }
0x140c   :  { %v3255_v10 = vpack.c.bf16 %v9372_v3, %v9371_v53  ;;  %v3226_v44 = vpop.f32.mrb[91].mxu1  ;;  %v3585_v1 = vpop.xlane.xlu1 %3584  ;;  %v13794_v53 = vpack.c.bf16 %v12144_v60, %v12140_v62  ;;  %v10666_v62 = vld [vmem:[#allocation5 + $0x20] sm:$0xff] }
0x140d   :  { %v3254_v46 = vpack.c.bf16 %v3226_v44, %v3223_v23 }
0x140f   :  { %9379 = vmatprep.mubr.msk.bf16.mxu1 %vm469_vm2, %v3254_v46 }
0x1410   :  { %9380 = vmatmul.mubr.msk.bf16.vlgmr.msra.gmra.mrb[96].mxu1 %vm469_vm2, %v3255_v10  ;;  %v3579_v51 = vpop.xlane.xlu1 %3578  ;;  %v3588_v47 = vpop.xlane.xlu0 %3587  ;;  %v10665_v10 = vld [vmem:[#allocation5 + $0x18] sm:$0xff] }
0x1411   :  { %9388 = vmatpush3.bf16.msra.mxu1 %v9999_v61  ;;  %v9375_v52 = vpop.f32.mrb[92].mxu1 }
0x1412   :  { %9413 = vmatprep.subr.bf16.mxu1 %v3622_v33  ;;  %v3239_v59 = vpop.f32.mrb[93].mxu1 }
0x1413   :  { %v9376_v50 = vpop.f32.mrb[94].mxu1 }
0x1414   :  { %v3257_v29 = vpack.c.bf16 %v9376_v50, %v9375_v52  ;;  %v3242_v27 = vpop.f32.mrb[95].mxu1  ;;  %v3582_v11 = vpop.xlane.xlu0 %3581 }
0x1415   :  { %v3256_v2 = vpack.c.bf16 %v3242_v27, %v3239_v59  ;;  %v3597_v32 = vpop.xlane.xlu1 %3596  ;;  %10414 = vrcp.f32 %v3582_v11  ;;  %v10667_v27 = vld [vmem:[#allocation5 + $0x30] sm:$0xff]  ;;  %v10668_v11 = vld [vmem:[#allocation5 + $0x28] sm:$0xff] }
0x1416   :  { %10416 = vrcp.f32 %v3579_v51 }
0x1417   :  { %9383 = vmatprep.mubr.msk.bf16.mxu1 %vm469_vm2, %v3256_v2  ;;  %10418 = vrcp.f32 %v3585_v1 }
0x1418   :  { %9384 = vmatmul.mubr.msk.bf16.gmra.mrb[100].mxu1 %vm469_vm2, %v3257_v29  ;;  %v3600_v34 = vpop.xlane.xlu0 %3599  ;;  %10420 = vrcp.f32 %v3588_v47 }
0x1419   :  { %9389 = vmatprep.mubr.msk.bf16.mxu1 %vm469_vm2, %v13791_v24  ;;  %v3591_v6 = vpop.xlane.xlu1 %3590 }
0x141c   :  { %v3594_v58 = vpop.xlane.xlu0 %3593 }
0x141d   :  { %10422 = vrcp.f32 %v3594_v58  ;;  %v3626_v17 = vpop.permute.xlu1 %3625 }
0x141e   :  { %10424 = vrcp.f32 %v3591_v6 }
0x141f   :  { %v10415_v55 = vpop.eup %10414  ;;  %10426 = vrcp.f32 %v3600_v34 }
0x1420   :  { %9390 = vmatmul.mubr.msk.bf16.vlgmr.msra.gmra.mrb[96].mxu1 %vm469_vm2, %v13792_v48  ;;  %v3624_v43 = vpop.permute.xlu0 %3623  ;;  %v10417_v63 = vpop.eup %10416  ;;  %v3610_v5 = vmul.f32 %v10415_v55, %v12330_v18  ;;  %10428 = vrcp.f32 %v3597_v32 }
0x1421   :  { %9414 = vmatpush3.bf16.msra.mxu1 %v3622_v33  ;;  %9393 = vmatprep.mubr.msk.bf16.mxu1 %vm469_vm2, %v13793_v7  ;;  %v9449_v57 = vpop.f32.mrb[72].mxu0  ;;  %v3609_v16 = vmul.f32 %v10417_v63, %v12326_v28  ;;  %v10419_v9 = vpop.eup %10418 }
0x1422   :  { %9415 = vmatprep.subr.bf16.mxu1 %v3624_v43  ;;  %v3879_v37 = vpop.f32.mrb[73].mxu0  ;;  %v12385_v35 = vadd.f32 %v10663_v4, %v9449_v57  ;;  %v10421_v26 = vpop.eup %10420  ;;  %v3611_v59 = vmul.f32 %v10419_v9, %v12322_v39 }
0x1423   :  { %v12382_v30 = vadd.f32 %v10662_v38, %v3879_v37  ;;  %v9450_v25 = vpop.f32.mrb[74].mxu0  ;;  %v3617_v61 = vpack.c.bf16 %v3610_v5, %v3609_v16  ;;  %v3628_v3 = vpop.permute.xlu1 %3627  ;;  %v3612_v46 = vmul.f32 %v10421_v26, %v12328_v36  ;;  %v10000_v37 = vld [vmem:[%s13712_s7 + $0x30] sm:$0xff]  }
0x1424   :  { %v3882_v22 = vpop.f32.mrb[75].mxu0  ;;  %v3891_v28 = vadd.f32 %v10665_v10, %v9450_v25  ;;  %v3916_v1 = vsel %vm347_vm1, %v12385_v35, -inf }
0x1425   :  { %9416 = vmatpush3.bf16.msra.mxu1 %v3624_v43  ;;  %v12387_v56 = vadd.f32 %v10664_v49, %v3882_v22  ;;  %v3910_v15 = vsel %vm347_vm1, %v12382_v30, -inf  ;;  %v3618_v6 = vpack.c.bf16 %v3612_v46, %v3611_v59 }
0x1426   :  { %9417 = vmatprep.subr.bf16.mxu1 %v3626_v17  ;;  %3911 = vmax.xlane.f32.xlu0 %v3910_v15  ;;  %v3919_v34 = vsel %vm347_vm1, %v3891_v28, -inf }
0x1427   :  { %v3913_v18 = vsel %vm347_vm1, %v12387_v56, -inf  ;;  %v10423_v33 = vpop.eup %10422 }
0x1428   :  { %9394 = vmatmul.mubr.msk.bf16.gmra.mrb[100].mxu1 %vm469_vm2, %v13794_v53  ;;  %3914 = vmax.xlane.f32.xlu1 %v3913_v18  ;;  %v10425_v23 = vpop.eup %10424  ;;  %v3614_v52 = vmul.f32 %v10423_v33, %v12353_v41 }
0x1429   :  { %9418 = vmatpush3.bf16.msra.mxu1 %v3626_v17  ;;  %9421 = vmatprep.mubr.msk.bf16.mxu1 %vm347_vm1, %v3617_v61  ;;  %v9453_v44 = vpop.f32.mrb[76].mxu0  ;;  %v3613_v29 = vmul.f32 %v10425_v23, %v12342_v40  ;;  %v10427_v24 = vpop.eup %10426  ;;  %v10669_v40 = vld [vmem:[#allocation5 + $0x38] sm:$0xff] }
0x142a   :  { %9419 = vmatprep.subr.bf16.mxu1 %v3628_v3  ;;  %v3895_v51 = vpop.f32.mrb[77].mxu0  ;;  %3917 = vmax.xlane.f32.xlu0 %v3916_v1  ;;  %v3904_v2 = vadd.f32 %v10667_v27, %v9453_v44  ;;  %v10429_v39 = vpop.eup %10428  ;;  %v3616_v43 = vmul.f32 %v10427_v24, %v12344_v19 }
0x142b   :  { %v12402_v60 = vadd.f32 %v10666_v62, %v3895_v51  ;;  %v9454_v47 = vpop.f32.mrb[78].mxu0  ;;  %v3619_v41 = vpack.c.bf16 %v3614_v52, %v3613_v29  ;;  %v3615_v7 = vmul.f32 %v10429_v39, %v12336_v42 }
0x142c   :  { %v3898_v50 = vpop.f32.mrb[79].mxu0  ;;  %v3907_v58 = vadd.f32 %v10669_v40, %v9454_v47  ;;  %v3928_v55 = vsel %vm347_vm1, %v3904_v2, -inf }
0x142d   :  { %9420 = vmatpush3.bf16.msra.mxu1 %v3628_v3  ;;  %v12407_v32 = vadd.f32 %v10668_v11, %v3898_v50  ;;  %v3922_v36 = vsel %vm347_vm1, %v12402_v60, -inf  ;;  %v3620_v63 = vpack.c.bf16 %v3616_v43, %v3615_v7 }
0x142e   :  { %3923 = vmax.xlane.f32.xlu1 %v3922_v36  ;;  %3920 = vmax.xlane.f32.xlu0 %v3919_v34  ;;  %v3931_v57 = vsel %vm347_vm1, %v3907_v58, -inf }
0x142f   :  { %v3925_v48 = vsel %vm347_vm1, %v12407_v32, -inf  ;;  %9429 = vmatprep.subr.bf16.mxu1 %v10000_v37 }
0x1430   :  { %9422 = vmatmul.mubr.msk.bf16.vlgmr.msra.gmra.mrb[104].mxu1 %vm347_vm1, %v3618_v6 }
0x1431   :  { %9425 = vmatprep.mubr.msk.bf16.mxu1 %vm347_vm1, %v3619_v41  ;;  %9430 = vmatpush3.bf16.msra.mxu1 %v10000_v37 }
0x1432   :  { %3929 = vmax.xlane.f32.xlu1 %v3928_v55  ;;  %3926 = vmax.xlane.f32.xlu0 %v3925_v48 }
0x1436   :  { %3932 = vmax.xlane.f32.xlu0 %v3931_v57 }
0x1438   :  { %9426 = vmatmul.mubr.msk.bf16.gmra.mrb[108].mxu1 %vm347_vm1, %v3620_v63 }
0x1443   :  { %4002 = vrot.lane.b32.xlu1 %v11954_v54, %s10841_s24 }
0x1447   :  { %4004 = vrot.lane.b32.xlu1 %v11964_v8, %s10841_s24 }
0x14b3   :  { %v3912_v19 = vpop.xlane.xlu0 %3911 }
0x14b4   :  { %v3934_v42 = vsub.f32 %v12382_v30, %v3912_v19 }
0x14b5   :  { %v3915_v17 = vpop.xlane.xlu1 %3914 }
0x14b6   :  { %v3942_v5 = vmul.f32 1.442695, %v3934_v42  ;;  %v3935_v4 = vsub.f32 %v12387_v56, %v3915_v17 }
0x14b7   :  { %v3918_v38 = vpop.xlane.xlu0 %3917 }
0x14b8   :  { %v3936_v25 = vsub.f32 %v12385_v35, %v3918_v38  ;;  %v3944_v9 = vmul.f32 1.442695, %v3935_v4 }
0x14ba   :  { %v3946_v22 = vmul.f32 1.442695, %v3936_v25 }
0x14bb   :  { %v3924_v49 = vpop.xlane.xlu1 %3923  ;;  %v3921_v15 = vpop.xlane.xlu0 %3920 }
0x14bc   :  { %10430 = vpow2.f32 %v3946_v22  ;;  %v3937_v54 = vsub.f32 %v3891_v28, %v3921_v15  ;;  %v3938_v30 = vsub.f32 %v12402_v60, %v3924_v49 }
0x14bd   :  { %10432 = vpow2.f32 %v3942_v5 }
0x14be   :  { %v3948_v16 = vmul.f32 1.442695, %v3937_v54  ;;  %v3950_v56 = vmul.f32 1.442695, %v3938_v30 }
0x14bf   :  { %v3930_v26 = vpop.xlane.xlu1 %3929  ;;  %v3927_v8 = vpop.xlane.xlu0 %3926 }
0x14c0   :  { %v3940_v18 = vsub.f32 %v3904_v2, %v3930_v26  ;;  %10434 = vpow2.f32 %v3948_v16  ;;  %v3939_v44 = vsub.f32 %v12407_v32, %v3927_v8  ;;  %v10001_v8 = vld [vmem:[%s13712_s7 + $0x38] sm:$0xff]  }
0x14c1   :  { %10436 = vpow2.f32 %v3944_v9 }
0x14c2   :  { %v3954_v61 = vmul.f32 1.442695, %v3940_v18  ;;  %v3952_v60 = vmul.f32 1.442695, %v3939_v44 }
0x14c3   :  { %v4003_v35 = vpop.permute.xlu1 %4002  ;;  %v3933_v33 = vpop.xlane.xlu0 %3932 }
0x14c4   :  { %9455 = vmatprep.subr.bf16.mxu1 %v4003_v35  ;;  %10438 = vpow2.f32 %v3954_v61  ;;  %v3941_v23 = vsub.f32 %v3907_v58, %v3933_v33 }
0x14c5   :  { %10440 = vpow2.f32 %v3950_v56 }
0x14c6   :  { %v12432_v53 = vpop.eup %10430  ;;  %v3956_v1 = vmul.f32 1.442695, %v3941_v23 }
0x14c7   :  { %v3964_v3 = vsel %vm347_vm1, %v12432_v53, 0.0  ;;  %v12436_v10 = vpop.eup %10432  ;;  %v4005_v40 = vpop.permute.xlu1 %4004 }
0x14c8   :  { %3965 = vadd.xlane.f32.xlu1 %v3964_v3  ;;  %v3958_v46 = vsel %vm347_vm1, %v12436_v10, 0.0  ;;  %10442 = vpow2.f32 %v3956_v1 }
0x14c9   :  { %10444 = vpow2.f32 %v3952_v60 }
0x14ca   :  { %v12438_v28 = vpop.eup %10434 }
0x14cb   :  { %v3967_v51 = vsel %vm347_vm1, %v12438_v28, 0.0  ;;  %v10437_v62 = vpop.eup %10436 }
0x14cc   :  { %3959 = vadd.xlane.f32.xlu1 %v3958_v46  ;;  %3968 = vadd.xlane.f32.xlu0 %v3967_v51  ;;  %v3961_v47 = vsel %vm347_vm1, %v10437_v62, 0.0 }
0x14ce   :  { %v12446_v52 = vpop.eup %10438 }
0x14cf   :  { %v3976_v59 = vsel %vm347_vm1, %v12446_v52, 0.0  ;;  %v12450_v50 = vpop.eup %10440 }
0x14d0   :  { %3962 = vadd.xlane.f32.xlu0 %v3961_v47  ;;  %v3970_v29 = vsel %vm347_vm1, %v12450_v50, 0.0 }
0x14d2   :  { %v12454_v27 = vpop.eup %10442 }
0x14d3   :  { %v3979_v2 = vsel %vm347_vm1, %v12454_v27, 0.0  ;;  %v12458_v11 = vpop.eup %10444 }
0x14d4   :  { %3977 = vadd.xlane.f32.xlu0 %v3976_v59  ;;  %v3973_v32 = vsel %vm347_vm1, %v12458_v11, 0.0 }
0x14d8   :  { %3971 = vadd.xlane.f32.xlu0 %v3970_v29 }
0x14dc   :  { %3980 = vadd.xlane.f32.xlu0 %v3979_v2 }
0x14dd   :  { %4008 = vrot.lane.b32.xlu1 %v11980_v20, %s10841_s24 }
0x14e0   :  { %3974 = vadd.xlane.f32.xlu0 %v3973_v32 }
0x14f6   :  { %4006 = vrot.lane.b32.xlu0 %v11972_v0, %s10841_s24 }
0x1503   :  { %v9423_v36 = vpop.f32.mrb[104].mxu1 }
0x1504   :  { %v3679_v34 = vpop.f32.mrb[105].mxu1 }
0x1505   :  { %v9424_v24 = vpop.f32.mrb[106].mxu1 }
0x1506   :  { %v3711_v6 = vpack.c.bf16 %v9424_v24, %v9423_v36  ;;  %v3682_v41 = vpop.f32.mrb[107].mxu1 }
0x1507   :  { %v3710_v39 = vpack.c.bf16 %v3682_v41, %v3679_v34 }
0x1509   :  { %9431 = vmatprep.mubr.msk.bf16.mxu1 %vm469_vm2, %v3710_v39 }
0x150a   :  { %9432 = vmatmul.mubr.msk.bf16.vlgmr.msra.gmra.mrb[96].mxu1 %vm469_vm2, %v3711_v6 }
0x150b   :  { %9456 = vmatpush3.bf16.msra.mxu1 %v4003_v35  ;;  %v9427_v20 = vpop.f32.mrb[108].mxu1 }
0x150c   :  { %9457 = vmatprep.subr.bf16.mxu1 %v4005_v40  ;;  %v3695_v58 = vpop.f32.mrb[109].mxu1 }
0x150d   :  { %v9428_v55 = vpop.f32.mrb[110].mxu1 }
0x150e   :  { %v3713_v48 = vpack.c.bf16 %v9428_v55, %v9427_v20  ;;  %v3698_v43 = vpop.f32.mrb[111].mxu1 }
0x150f   :  { %v3712_v7 = vpack.c.bf16 %v3698_v43, %v3695_v58  ;;  %9458 = vmatpush3.bf16.msra.mxu1 %v4005_v40 }
0x1511   :  { %9435 = vmatprep.mubr.msk.bf16.mxu1 %vm469_vm2, %v3712_v7 }
0x1512   :  { %9436 = vmatmul.mubr.msk.bf16.gmra.mrb[100].mxu1 %vm469_vm2, %v3713_v48 }
0x1555   :  { %v3966_v0 = vpop.xlane.xlu1 %3965 }
0x1559   :  { %v3960_v57 = vpop.xlane.xlu1 %3959  ;;  %v3969_v63 = vpop.xlane.xlu0 %3968 }
0x155a   :  { %10446 = vrcp.f32 %v3960_v57 }
0x155d   :  { %v3963_v37 = vpop.xlane.xlu0 %3962  ;;  %v4009_v9 = vpop.permute.xlu1 %4008 }
0x155e   :  { %10448 = vrcp.f32 %v3963_v37 }
0x155f   :  { %10450 = vrcp.f32 %v3969_v63 }
0x1560   :  { %10452 = vrcp.f32 %v3966_v0 }
0x1561   :  { %v3978_v19 = vpop.xlane.xlu0 %3977 }
0x1564   :  { %v10447_v17 = vpop.eup %10446 }
0x1565   :  { %v3972_v42 = vpop.xlane.xlu0 %3971  ;;  %v3990_v5 = vmul.f32 %v10447_v17, %v12436_v10 }
0x1566   :  { %10454 = vrcp.f32 %v3972_v42 }
0x1568   :  { %v10449_v38 = vpop.eup %10448 }
0x1569   :  { %v3981_v25 = vpop.xlane.xlu0 %3980  ;;  %v3991_v22 = vmul.f32 %v10449_v38, %v10437_v62  ;;  %v10451_v15 = vpop.eup %10450  ;;  %v13795_v38 = vld [vmem:[#allocation16_spill] sm:$0xff] }
0x156a   :  { %v10453_v16 = vpop.eup %10452  ;;  %v3993_v26 = vmul.f32 %v10451_v15, %v12438_v28 }
0x156b   :  { %v3998_v4 = vpack.c.bf16 %v3991_v22, %v3990_v5  ;;  %v3992_v30 = vmul.f32 %v10453_v16, %v12432_v53  ;;  %v13796_v22 = vld [vmem:[#allocation17_spill] sm:$0xff] }
0x156d   :  { %9463 = vmatprep.mubr.msk.bf16.mxu1 %vm347_vm1, %v3998_v4  ;;  %v3975_v49 = vpop.xlane.xlu0 %3974  ;;  %v3999_v35 = vpack.c.bf16 %v3993_v26, %v3992_v30 }
0x156e   :  { %10456 = vrcp.f32 %v3975_v49  ;;  %v13797_v49 = vld [vmem:[#allocation18_spill] sm:$0xff] }
0x156f   :  { %10458 = vrcp.f32 %v3981_v25 }
0x1570   :  { %10460 = vrcp.f32 %v3978_v19  ;;  %v10455_v18 = vpop.eup %10454 }
0x1571   :  { %v4007_v54 = vpop.permute.xlu0 %4006  ;;  %v3994_v56 = vmul.f32 %v10455_v18, %v12450_v50 }
0x1572   :  { %9459 = vmatprep.subr.bf16.mxu1 %v4007_v54 }
0x1573   :  { %9460 = vmatpush3.bf16.msra.mxu1 %v4007_v54 }
0x1574   :  { %9461 = vmatprep.subr.bf16.mxu1 %v4009_v9 }
0x1577   :  { %9462 = vmatpush3.bf16.msra.mxu1 %v4009_v9 }
0x1578   :  { %v10457_v61 = vpop.eup %10456  ;;  %9471 = vmatprep.subr.bf16.mxu1 %v10001_v8 }
0x1579   :  { %v10459_v33 = vpop.eup %10458  ;;  %v3995_v23 = vmul.f32 %v10457_v61, %v12458_v11 }
0x157a   :  { %9464 = vmatmul.mubr.msk.bf16.vlgmr.msra.gmra.mrb[112].mxu1 %vm347_vm1, %v3999_v35  ;;  %v10461_v3 = vpop.eup %10460  ;;  %v3997_v28 = vmul.f32 %v10459_v33, %v12454_v27 }
0x157b   :  { %v4000_v10 = vpack.c.bf16 %v3995_v23, %v3994_v56  ;;  %9472 = vmatpush3.bf16.msra.mxu1 %v10001_v8  ;;  %v3996_v53 = vmul.f32 %v10461_v3, %v12446_v52  ;;  %v8467_v52 = vld [vmem:[%s13713_s8 + $0x1] ss:$0 sm:$0xff] }
0x157d   :  { %9467 = vmatprep.mubr.msk.bf16.mxu1 %vm347_vm1, %v4000_v10  ;;  %v4001_v44 = vpack.c.bf16 %v3997_v28, %v3996_v53 }
0x1582   :  { %9468 = vmatmul.mubr.msk.bf16.gmra.mrb[116].mxu1 %vm347_vm1, %v4001_v44 }
0x164d   :  { %v9465_v1 = vpop.f32.mrb[112].mxu1 }
0x164e   :  { %v4060_v46 = vpop.f32.mrb[113].mxu1 }
0x164f   :  { %v9466_v51 = vpop.f32.mrb[114].mxu1 }
0x1650   :  { %v4092_v62 = vpack.c.bf16 %v9466_v51, %v9465_v1  ;;  %v4063_v60 = vpop.f32.mrb[115].mxu1 }
0x1651   :  { %v4091_v47 = vpack.c.bf16 %v4063_v60, %v4060_v46 }
0x1653   :  { %9473 = vmatprep.mubr.msk.bf16.mxu1 %vm469_vm2, %v4091_v47 }
0x1654   :  { %9474 = vmatmul.mubr.msk.bf16.vlgmr.msra.gmra.mrb[96].mxu1 %vm469_vm2, %v4092_v62 }
0x1655   :  { %v9469_v59 = vpop.f32.mrb[116].mxu1 }
0x1656   :  { %v4076_v50 = vpop.f32.mrb[117].mxu1 }
0x1657   :  { %v9470_v29 = vpop.f32.mrb[118].mxu1 }
0x1658   :  { %v4094_v27 = vpack.c.bf16 %v9470_v29, %v9469_v59  ;;  %v4079_v2 = vpop.f32.mrb[119].mxu1 }
0x1659   :  { %v4093_v11 = vpack.c.bf16 %v4079_v2, %v4076_v50 }
0x165b   :  { %9477 = vmatprep.mubr.msk.bf16.mxu1 %vm469_vm2, %v4093_v11 }
0x165c   :  { %9478 = vmatmul.mubr.msk.bf16.gmra.mrb[100].mxu1 %vm469_vm2, %v4094_v27 }
0x165d   :  { %4872 = vmatprep.mubr.bf16.mxu1 %v13780_v12 }
0x1727   :  { %v9475_v32 = vpop.f32.mrb[96].mxu1 }
0x1728   :  { %v4147_v36 = vpop.f32.mrb[97].mxu1  ;;  %v4196_v34 = vadd.f32 %v9475_v32, %v8467_v52 }
0x1729   :  { %v4194_v24 = vadd.f32 %v8467_v52, %v4147_v36  ;;  %v9476_v6 = vpop.f32.mrb[98].mxu1 }
0x172a   :  { %v4150_v41 = vpop.f32.mrb[99].mxu1  ;;  %v4204_v20 = vadd.f32 %v4196_v34, %v11923_v14  ;;  %v4197_v58 = vadd.f32 %v9476_v6, %v8467_v52 }
0x172b   :  { %v4202_v39 = vadd.f32 %v4194_v24, %v11910_v21  ;;  %v4195_v40 = vadd.f32 %v8467_v52, %v4150_v41 }
0x172c   :  { %v4205_v57 = vadd.f32 %v4197_v58, %v11920_v45  ;;  %v4220_v21 = vsel %vm347_vm1, %v4204_v20, 0.0 }
0x172d   :  { %v4203_v55 = vadd.f32 %v4195_v40, %v11912_v13  ;;  %v4214_v48 = vsel %vm347_vm1, %v4202_v39, 0.0 }
0x172e   :  { %4215 = vadd.xlane.f32.xlu1 %v4214_v48  ;;  %v4223_v5 = vsel %vm347_vm1, %v4205_v57, 0.0 }
0x172f   :  { %v9479_v43 = vpop.f32.mrb[100].mxu1  ;;  %v4217_v7 = vsel %vm347_vm1, %v4203_v55, 0.0 }
0x1730   :  { %4218 = vadd.xlane.f32.xlu0 %v4217_v7  ;;  %v4163_v0 = vpop.f32.mrb[101].mxu1  ;;  %v4200_v17 = vadd.f32 %v9479_v43, %v8467_v52  ;;  %v10002_v43 = vld [vmem:[#allocation8 + $0x20] sm:$0xff]   ;;  %v10003_v7 = vld [vmem:[#allocation8 + $0x28] sm:$0xff]  }
0x1731   :  { %v4198_v63 = vadd.f32 %v8467_v52, %v4163_v0  ;;  %v9480_v37 = vpop.f32.mrb[102].mxu1  ;;  %9481 = vmatprep.subr.bf16.mxu0 %v10002_v43  ;;  %v10004_v0 = vld [vmem:[#allocation8 + $0x30] sm:$0xff]  }
0x1732   :  { %4221 = vadd.xlane.f32.xlu1 %v4220_v21  ;;  %v4166_v19 = vpop.f32.mrb[103].mxu1  ;;  %v4201_v14 = vadd.f32 %v9480_v37, %v8467_v52  ;;  %v4208_v15 = vadd.f32 %v4200_v17, %v13797_v49  ;;  %9482 = vmatpush3.bf16.msra.mxu0 %v10002_v43 }
0x1733   :  { %v4199_v42 = vadd.f32 %v8467_v52, %v4166_v19  ;;  %v4206_v13 = vadd.f32 %v4198_v63, %v11933_v31  ;;  %9483 = vmatprep.subr.bf16.mxu0 %v10003_v7  ;;  %v12551_v63 = vld [vmem:[%s13718_s13 + $0x40] sm:$0xff]  }
0x1734   :  { %v4209_v4 = vadd.f32 %v4201_v14, %v13796_v22  ;;  %v4232_v31 = vsel %vm347_vm1, %v4208_v15, 0.0 }
0x1735   :  { %v4207_v25 = vadd.f32 %v4199_v42, %v13795_v38  ;;  %v4226_v54 = vsel %vm347_vm1, %v4206_v13, 0.0 }
0x1736   :  { %4224 = vadd.xlane.f32.xlu1 %v4223_v5  ;;  %v4235_v16 = vsel %vm347_vm1, %v4209_v4, 0.0  ;;  %9484 = vmatpush3.bf16.msra.mxu0 %v10003_v7 }
0x1737   :  { %v4229_v45 = vsel %vm347_vm1, %v4207_v25, 0.0  ;;  %9485 = vmatprep.subr.bf16.mxu0 %v10004_v0 }
0x1738   :  { %4230 = vadd.xlane.f32.xlu0 %v4229_v45 }
0x173a   :  { %4227 = vadd.xlane.f32.xlu1 %v4226_v54  ;;  %9486 = vmatpush3.bf16.msra.mxu0 %v10004_v0  ;;  %v10008_v0 = vld [vmem:[%s13718_s13 + $0x50] sm:$0xff]  }
0x173c   :  { %4236 = vadd.xlane.f32.xlu0 %v4235_v16 }
0x173e   :  { %4233 = vadd.xlane.f32.xlu1 %v4232_v31  ;;  %v8470_v31 = vld [vmem:[%s13714_s9 + $0x1] ss:$0 sm:$0xff] }
0x17bb   :  { %v4216_v9 = vpop.xlane.xlu1 %4215 }
0x17bc   :  { %v4238_v26 = vmul.f32 0.015625, %v4216_v9 }
0x17bd   :  { %v4219_v8 = vpop.xlane.xlu0 %4218 }
0x17be   :  { %v12508_v18 = vsub.f32 %v4202_v39, %v4238_v26  ;;  %v4239_v30 = vmul.f32 0.015625, %v4219_v8 }
0x17bf   :  { %v4222_v61 = vpop.xlane.xlu1 %4221 }
0x17c0   :  { %v12510_v35 = vsub.f32 %v4203_v55, %v4239_v30  ;;  %v4240_v33 = vmul.f32 0.015625, %v4222_v61  ;;  %v4254_v56 = vmul.f32 %v12508_v18, %v12508_v18 }
0x17c2   :  { %v12514_v23 = vsub.f32 %v4204_v20, %v4240_v33  ;;  %v4262_v3 = vsel %vm347_vm1, %v4254_v56, 0.0  ;;  %v4255_v10 = vmul.f32 %v12510_v35, %v12510_v35 }
0x17c3   :  { %v4225_v28 = vpop.xlane.xlu1 %4224  ;;  %4263 = vadd.xlane.f32.xlu1 %v4262_v3 }
0x17c4   :  { %v4241_v53 = vmul.f32 0.015625, %v4225_v28  ;;  %v4265_v44 = vsel %vm347_vm1, %v4255_v10, 0.0  ;;  %v4256_v1 = vmul.f32 %v12514_v23, %v12514_v23 }
0x17c5   :  { %4266 = vadd.xlane.f32.xlu0 %v4265_v44  ;;  %v4231_v46 = vpop.xlane.xlu0 %4230  ;;  %v8471_v44 = vld [vmem:[%s13715_s10 + $0x1] ss:$0 sm:$0xff] }
0x17c6   :  { %v12522_v51 = vsub.f32 %v4205_v57, %v4241_v53  ;;  %v4243_v62 = vmul.f32 0.015625, %v4231_v46  ;;  %v4268_v60 = vsel %vm347_vm1, %v4256_v1, 0.0  ;;  %v10005_v57 = vld [vmem:[#allocation8 + $0x38] sm:$0xff]  }
0x17c7   :  { %4269 = vadd.xlane.f32.xlu1 %v4268_v60  ;;  %v4228_v47 = vpop.xlane.xlu1 %4227  ;;  %9487 = vmatprep.subr.bf16.mxu0 %v10005_v57 }
0x17c8   :  { %v12525_v59 = vsub.f32 %v4207_v25, %v4243_v62  ;;  %v4242_v50 = vmul.f32 0.015625, %v4228_v47  ;;  %v4257_v29 = vmul.f32 %v12522_v51, %v12522_v51  ;;  %9488 = vmatpush3.bf16.msra.mxu0 %v10005_v57 }
0x17c9   :  { %v4237_v27 = vpop.xlane.xlu0 %4236  ;;  %9497 = vmatprep.subr.bf16.mxu0 %v12551_v63 }
0x17ca   :  { %v12529_v2 = vsub.f32 %v4206_v13, %v4242_v50  ;;  %v4245_v11 = vmul.f32 0.015625, %v4237_v27  ;;  %v4271_v52 = vsel %vm347_vm1, %v4257_v29, 0.0  ;;  %v4259_v32 = vmul.f32 %v12525_v59, %v12525_v59 }
0x17cb   :  { %v4234_v36 = vpop.xlane.xlu1 %4233  ;;  %4272 = vadd.xlane.f32.xlu0 %v4271_v52 }
0x17cc   :  { %v12534_v34 = vsub.f32 %v4209_v4, %v4245_v11  ;;  %v4244_v24 = vmul.f32 0.015625, %v4234_v36  ;;  %v4258_v6 = vmul.f32 %v12529_v2, %v12529_v2  ;;  %v4277_v40 = vsel %vm347_vm1, %v4259_v32, 0.0 }
0x17ce   :  { %v12538_v41 = vsub.f32 %v4208_v15, %v4244_v24  ;;  %v4274_v39 = vsel %vm347_vm1, %v4258_v6, 0.0  ;;  %v4261_v20 = vmul.f32 %v12534_v34, %v12534_v34 }
0x17cf   :  { %4275 = vadd.xlane.f32.xlu1 %v4274_v39  ;;  %4278 = vadd.xlane.f32.xlu0 %v4277_v40  ;;  %v10007_v40 = vld [vmem:[%s13718_s13 + $0x48] sm:$0xff]  }
0x17d0   :  { %v4260_v58 = vmul.f32 %v12538_v41, %v12538_v41  ;;  %v4283_v48 = vsel %vm347_vm1, %v4261_v20, 0.0 }
0x17d2   :  { %v4280_v55 = vsel %vm347_vm1, %v4260_v58, 0.0 }
0x17d3   :  { %4281 = vadd.xlane.f32.xlu1 %v4280_v55  ;;  %4284 = vadd.xlane.f32.xlu0 %v4283_v48 }
0x1850   :  { %v4264_v37 = vpop.xlane.xlu1 %4263 }
0x1851   :  { %v4286_v21 = vmul.f32 0.015625, %v4264_v37 }
0x1852   :  { %v4267_v19 = vpop.xlane.xlu0 %4266 }
0x1853   :  { %v4294_v14 = vadd.f32 1e-05, %v4286_v21  ;;  %v4287_v42 = vmul.f32 0.015625, %v4267_v19  ;;  %v10010_v19 = vld [vmem:[%s13718_s13 + $0x60] sm:$0xff]  }
0x1854   :  { %v4270_v17 = vpop.xlane.xlu1 %4269 }
0x1855   :  { %10462 = vrsqrt.f32 %v4294_v14  ;;  %v4295_v13 = vadd.f32 1e-05, %v4287_v42  ;;  %v4288_v38 = vmul.f32 0.015625, %v4270_v17  ;;  %v10011_v14 = vld [vmem:[%s13718_s13 + $0x68] sm:$0xff]   ;;  %v10012_v42 = vld [vmem:[%s13718_s13 + $0x70] sm:$0xff]   ;;  %v10013_v17 = vld [vmem:[%s13718_s13 + $0x78] sm:$0xff]  }
0x1857   :  { %10464 = vrsqrt.f32 %v4295_v13  ;;  %v4296_v25 = vadd.f32 1e-05, %v4288_v38  ;;  %v8473_v13 = vld [vmem:[%s13717_s12 + $0x1] ss:$0 sm:$0xff] }
0x1858   :  { %v4273_v5 = vpop.xlane.xlu0 %4272 }
0x1859   :  { %10466 = vrsqrt.f32 %v4296_v25  ;;  %v4289_v22 = vmul.f32 0.015625, %v4273_v5 }
0x185b   :  { %v4297_v4 = vadd.f32 1e-05, %v4289_v22 }
0x185c   :  { %v4276_v45 = vpop.xlane.xlu1 %4275  ;;  %v4279_v49 = vpop.xlane.xlu0 %4278 }
0x185d   :  { %10468 = vrsqrt.f32 %v4297_v4  ;;  %v4290_v15 = vmul.f32 0.015625, %v4276_v45  ;;  %v4291_v54 = vmul.f32 0.015625, %v4279_v49 }
0x185f   :  { %v10463_v16 = vpop.eup %10462  ;;  %v4298_v9 = vadd.f32 1e-05, %v4290_v15  ;;  %v4299_v26 = vadd.f32 1e-05, %v4291_v54 }
0x1860   :  { %v4282_v8 = vpop.xlane.xlu1 %4281  ;;  %v4285_v30 = vpop.xlane.xlu0 %4284  ;;  %v4310_v61 = vmul.f32 %v10463_v16, %v12508_v18 }
0x1861   :  { %v10465_v33 = vpop.eup %10464  ;;  %10470 = vrsqrt.f32 %v4298_v9  ;;  %v4292_v56 = vmul.f32 0.015625, %v4282_v8  ;;  %v4293_v3 = vmul.f32 0.015625, %v4285_v30 }
0x1862   :  { %10472 = vrsqrt.f32 %v4299_v26  ;;  %v4311_v10 = vmul.f32 %v10465_v33, %v12510_v35  ;;  %v4324_v28 = vmul.f32 %v8470_v31, %v4310_v61 }
0x1863   :  { %v10467_v53 = vpop.eup %10466  ;;  %v4300_v1 = vadd.f32 1e-05, %v4292_v56  ;;  %v4301_v46 = vadd.f32 1e-05, %v4293_v3 }
0x1864   :  { %v4312_v62 = vmul.f32 %v10467_v53, %v12514_v23  ;;  %v4325_v60 = vmul.f32 %v8470_v31, %v4311_v10  ;;  %v12563_v18 = vadd.f32 %v8471_v44, %v4324_v28 }
0x1865   :  { %10474 = vrsqrt.f32 %v4300_v1 }
0x1866   :  { %10476 = vrsqrt.f32 %v4301_v46  ;;  %v12565_v47 = vadd.f32 %v8471_v44, %v4325_v60  ;;  %v4326_v29 = vmul.f32 %v8470_v31, %v4312_v62 }
0x1867   :  { %v10469_v50 = vpop.eup %10468 }
0x1868   :  { %v4313_v35 = vmul.f32 %v10469_v50, %v12522_v51  ;;  %v4355_v27 = vpack.c.bf16 %v12565_v47, %v12563_v18  ;;  %v12571_v23 = vadd.f32 %v8471_v44, %v4326_v29  ;;  %v8499_v29 = vld [vmem:[%s13719_s14 + $0x1] ss:$0 sm:$0xff] }
0x186a   :  { %v4327_v11 = vmul.f32 %v8470_v31, %v4313_v35  ;;  %9489 = vmatprep.mubr.msk.bf16.mxu0 %vm347_vm1, %v4355_v27 }
0x186b   :  { %v10471_v52 = vpop.eup %10470 }
0x186c   :  { %v10473_v32 = vpop.eup %10472  ;;  %v12573_v36 = vadd.f32 %v8471_v44, %v4327_v11  ;;  %v4314_v24 = vmul.f32 %v10471_v52, %v12529_v2 }
0x186d   :  { %v4315_v6 = vmul.f32 %v10473_v32, %v12525_v59 }
0x186e   :  { %v4356_v39 = vpack.c.bf16 %v12573_v36, %v12571_v23  ;;  %v4328_v51 = vmul.f32 %v8470_v31, %v4314_v24 }
0x186f   :  { %v10475_v20 = vpop.eup %10474  ;;  %v4329_v58 = vmul.f32 %v8470_v31, %v4315_v6 }
0x1870   :  { %v10477_v55 = vpop.eup %10476  ;;  %9490 = vmatmul.mubr.msk.bf16.vlgmr.msra.gmra.mrb[80].mxu0 %vm347_vm1, %v4356_v39  ;;  %v12583_v48 = vadd.f32 %v8471_v44, %v4328_v51  ;;  %v4316_v43 = vmul.f32 %v10475_v20, %v12538_v41 }
0x1871   :  { %v12586_v2 = vadd.f32 %v8471_v44, %v4329_v58  ;;  %v4317_v59 = vmul.f32 %v10477_v55, %v12534_v34  ;;  %9498 = vmatpush3.bf16.msra.mxu0 %v12551_v63  ;;  %v10009_v63 = vld [vmem:[%s13718_s13 + $0x58] sm:$0xff]  }
0x1872   :  { %v4330_v7 = vmul.f32 %v8470_v31, %v4316_v43  ;;  %9499 = vmatprep.subr.bf16.mxu0 %v10007_v40 }
0x1873   :  { %v4357_v57 = vpack.c.bf16 %v12586_v2, %v12583_v48  ;;  %v4331_v37 = vmul.f32 %v8470_v31, %v4317_v59 }
0x1874   :  { %v12595_v21 = vadd.f32 %v8471_v44, %v4330_v7 }
0x1875   :  { %9493 = vmatprep.mubr.msk.bf16.mxu0 %vm347_vm1, %v4357_v57  ;;  %v12598_v41 = vadd.f32 %v8471_v44, %v4331_v37  ;;  %9500 = vmatpush3.bf16.msra.mxu0 %v10007_v40 }
0x1876   :  { %9501 = vmatprep.subr.bf16.mxu0 %v10008_v0 }
0x1877   :  { %v4358_v34 = vpack.c.bf16 %v12598_v41, %v12595_v21 }
0x1879   :  { %9494 = vmatmul.mubr.msk.bf16.gmra.mrb[84].mxu0 %vm347_vm1, %v4358_v34 }
0x187a   :  { %9502 = vmatpush3.bf16.msra.mxu0 %v10008_v0 }
0x187b   :  { %9503 = vmatprep.subr.bf16.mxu0 %v10009_v63 }
0x187e   :  { %9504 = vmatpush3.bf16.msra.mxu0 %v10009_v63 }
0x187f   :  { %9505 = vmatprep.subr.bf16.mxu0 %v10010_v19 }
0x1882   :  { %9506 = vmatpush3.bf16.msra.mxu0 %v10010_v19 }
0x1883   :  { %9507 = vmatprep.subr.bf16.mxu0 %v10011_v14 }
0x1886   :  { %9508 = vmatpush3.bf16.msra.mxu0 %v10011_v14 }
0x1887   :  { %9509 = vmatprep.subr.bf16.mxu0 %v10012_v42 }
0x188a   :  { %9510 = vmatpush3.bf16.msra.mxu0 %v10012_v42 }
0x188b   :  { %9511 = vmatprep.subr.bf16.mxu0 %v10013_v17 }
0x188e   :  { %9512 = vmatpush3.bf16.msra.mxu0 %v10013_v17 }
0x1943   :  { %v9491_v38 = vpop.f32.mrb[80].mxu0 }
0x1944   :  { %v4446_v25 = vadd.f32 %v9491_v38, %v8473_v13  ;;  %v4437_v5 = vpop.f32.mrb[81].mxu0 }
0x1945   :  { %v4438_v22 = vadd.f32 %v8473_v13, %v4437_v5  ;;  %v9492_v4 = vpop.f32.mrb[82].mxu0 }
0x1946   :  { %v4449_v45 = vadd.f32 %v9492_v4, %v8473_v13  ;;  %v4440_v49 = vpop.f32.mrb[83].mxu0  ;;  %v4470_v54 = vmax.f32 %v4446_v25, 0.0 }
0x1947   :  { %v4441_v15 = vadd.f32 %v8473_v13, %v4440_v49  ;;  %v4468_v31 = vmax.f32 %v4438_v22, 0.0 }
0x1948   :  { %v4471_v16 = vmax.f32 %v4449_v45, 0.0 }
0x1949   :  { %v4469_v9 = vmax.f32 %v4441_v15, 0.0 }
0x194a   :  { %v4494_v26 = vpack.c.bf16 %v4471_v16, %v4470_v54 }
0x194b   :  { %v4493_v8 = vpack.c.bf16 %v4469_v9, %v4468_v31 }
0x194c   :  { %v9495_v30 = vpop.f32.mrb[84].mxu0 }
0x194d   :  { %v4462_v61 = vadd.f32 %v9495_v30, %v8473_v13  ;;  %v4453_v33 = vpop.f32.mrb[85].mxu0  ;;  %9513 = vmatprep.mubr.bf16.mxu0 %v4493_v8 }
0x194e   :  { %v4454_v56 = vadd.f32 %v8473_v13, %v4453_v33  ;;  %v9496_v3 = vpop.f32.mrb[86].mxu0  ;;  %9514 = vmatmul.mubr.bf16.vlgmr.msra.gmra.mrb[88].mxu0 %v4494_v26 }
0x194f   :  { %v4465_v10 = vadd.f32 %v9496_v3, %v8473_v13  ;;  %v4456_v28 = vpop.f32.mrb[87].mxu0  ;;  %v4474_v44 = vmax.f32 %v4462_v61, 0.0 }
0x1950   :  { %v4457_v53 = vadd.f32 %v8473_v13, %v4456_v28  ;;  %v4472_v46 = vmax.f32 %v4454_v56, 0.0 }
0x1951   :  { %v4475_v1 = vmax.f32 %v4465_v10, 0.0 }
0x1952   :  { %v4473_v62 = vmax.f32 %v4457_v53, 0.0 }
0x1953   :  { %v4496_v60 = vpack.c.bf16 %v4475_v1, %v4474_v44 }
0x1954   :  { %v4495_v50 = vpack.c.bf16 %v4473_v62, %v4472_v46 }
0x1956   :  { %9517 = vmatprep.mubr.bf16.mxu0 %v4495_v50 }
0x1957   :  { %9518 = vmatmul.mubr.bf16.gmra.mrb[92].mxu0 %v4496_v60 }
0x1a21   :  { %v9515_v35 = vpop.f32.mrb[88].mxu0 }
0x1a22   :  { %v4587_v27 = vpop.f32.mrb[89].mxu0  ;;  %v4596_v11 = vadd.f32 %v9515_v35, %v8499_v29 }
0x1a23   :  { %v4588_v52 = vadd.f32 %v8499_v29, %v4587_v27  ;;  %v9516_v32 = vpop.f32.mrb[90].mxu0 }
0x1a24   :  { %v4590_v24 = vpop.f32.mrb[91].mxu0  ;;  %v4599_v39 = vadd.f32 %v9516_v32, %v8499_v29  ;;  %v4620_v40 = vadd.f32 %v4596_v11, %v12571_v23 }
0x1a25   :  { %v4618_v6 = vadd.f32 %v4588_v52, %v12563_v18  ;;  %v4591_v51 = vadd.f32 %v8499_v29, %v4590_v24 }
0x1a26   :  { %v4621_v55 = vadd.f32 %v4599_v39, %v12573_v36  ;;  %v4636_v0 = vsel %vm347_vm1, %v4620_v40, 0.0 }
0x1a27   :  { %v4619_v20 = vadd.f32 %v4591_v51, %v12565_v47  ;;  %v4630_v58 = vsel %vm347_vm1, %v4618_v6, 0.0 }
0x1a28   :  { %4631 = vadd.xlane.f32.xlu1 %v4630_v58  ;;  %v4639_v23 = vsel %vm347_vm1, %v4621_v55, 0.0  ;;  %v10019_v58 = vld [vmem:[#allocation7 + $0x94] ss:$8 sps:$4 sm:$0xff]  }
0x1a29   :  { %v4633_v43 = vsel %vm347_vm1, %v4619_v20, 0.0 }
0x1a2a   :  { %v9519_v59 = vpop.f32.mrb[92].mxu0  ;;  %4634 = vadd.xlane.f32.xlu0 %v4633_v43  ;;  %v10022_v43 = vld [vmem:[#allocation7 + $0xa4] ss:$8 sps:$4 sm:$0xff]  }
0x1a2b   :  { %v4603_v7 = vpop.f32.mrb[93].mxu0  ;;  %v4612_v57 = vadd.f32 %v9519_v59, %v8499_v29  ;;  %v10020_v59 = vld [vmem:[#allocation7 + $0xa0] ss:$8 sps:$4 sm:$0xff]  }
0x1a2c   :  { %v4604_v18 = vadd.f32 %v8499_v29, %v4603_v7  ;;  %v9520_v37 = vpop.f32.mrb[94].mxu0  ;;  %4637 = vadd.xlane.f32.xlu1 %v4636_v0  ;;  %v10025_v7 = vld [vmem:[#allocation7 + $0xb4] ss:$8 sps:$4 sm:$0xff]   ;;  %v10023_v0 = vld [vmem:[#allocation7 + $0xb0] ss:$8 sps:$4 sm:$0xff]  }
0x1a2d   :  { %v4606_v34 = vpop.f32.mrb[95].mxu0  ;;  %v4615_v63 = vadd.f32 %v9520_v37, %v8499_v29  ;;  %v4624_v36 = vadd.f32 %v4612_v57, %v12595_v21 }
0x1a2e   :  { %v4622_v47 = vadd.f32 %v4604_v18, %v12583_v48  ;;  %v4607_v19 = vadd.f32 %v8499_v29, %v4606_v34  ;;  %4640 = vadd.xlane.f32.xlu0 %v4639_v23 }
0x1a2f   :  { %v4625_v17 = vadd.f32 %v4615_v63, %v12598_v41  ;;  %v4648_v38 = vsel %vm347_vm1, %v4624_v36, 0.0 }
0x1a30   :  { %v4623_v14 = vadd.f32 %v4607_v19, %v12586_v2  ;;  %v4642_v42 = vsel %vm347_vm1, %v4622_v47, 0.0 }
0x1a31   :  { %4643 = vadd.xlane.f32.xlu1 %v4642_v42  ;;  %v4651_v48 = vsel %vm347_vm1, %v4625_v17, 0.0 }
0x1a32   :  { %v4645_v13 = vsel %vm347_vm1, %v4623_v14, 0.0 }
0x1a33   :  { %4646 = vadd.xlane.f32.xlu0 %v4645_v13 }
0x1a35   :  { %4649 = vadd.xlane.f32.xlu1 %v4648_v38 }
0x1a37   :  { %4652 = vadd.xlane.f32.xlu0 %v4651_v48 }
0x1ab5   :  { %v4632_v25 = vpop.xlane.xlu1 %4631 }
0x1ab6   :  { %v4654_v5 = vmul.f32 0.015625, %v4632_v25 }
0x1ab7   :  { %v4635_v22 = vpop.xlane.xlu0 %4634 }
0x1ab8   :  { %v12640_v21 = vsub.f32 %v4618_v6, %v4654_v5  ;;  %v4655_v2 = vmul.f32 0.015625, %v4635_v22 }
0x1ab9   :  { %v4638_v4 = vpop.xlane.xlu1 %4637 }
0x1aba   :  { %v12642_v45 = vsub.f32 %v4619_v20, %v4655_v2  ;;  %v4656_v49 = vmul.f32 0.015625, %v4638_v4  ;;  %v4670_v41 = vmul.f32 %v12640_v21, %v12640_v21  ;;  %v10014_v20 = vld [vmem:[#allocation7 + $0x80] ss:$8 sps:$4 sm:$0xff]  }
0x1abb   :  { %v4641_v15 = vpop.xlane.xlu0 %4640 }
0x1abc   :  { %v12646_v54 = vsub.f32 %v4620_v40, %v4656_v49  ;;  %v4657_v16 = vmul.f32 0.015625, %v4641_v15  ;;  %v4678_v31 = vsel %vm347_vm1, %v4670_v41, 0.0  ;;  %v4671_v9 = vmul.f32 %v12642_v45, %v12642_v45  ;;  %v10016_v40 = vld [vmem:[#allocation7 + $0x84] ss:$8 sps:$4 sm:$0xff]   ;;  %v8510_v49 = vld [vmem:[%s13720_s15 + $0x1] ss:$0 sm:$0xff] }
0x1abd   :  { %4679 = vadd.xlane.f32.xlu1 %v4678_v31  ;;  %4840 = vmatprep.subr.bf16.mxu1 %v10016_v40 }
0x1abe   :  { %v12651_v26 = vsub.f32 %v4621_v55, %v4657_v16  ;;  %v4644_v8 = vpop.xlane.xlu1 %4643  ;;  %v4681_v30 = vsel %vm347_vm1, %v4671_v9, 0.0  ;;  %v4672_v61 = vmul.f32 %v12646_v54, %v12646_v54  ;;  %4841 = vmatpush1.bf16.msra.mxu1 %v10014_v20  ;;  %v10017_v55 = vld [vmem:[#allocation7 + $0x90] ss:$8 sps:$4 sm:$0xff]  }
0x1abf   :  { %v4658_v33 = vmul.f32 0.015625, %v4644_v8  ;;  %4682 = vadd.xlane.f32.xlu0 %v4681_v30  ;;  %4842 = vmatprep.subr.bf16.mxu1 %v10019_v58 }
0x1ac0   :  { %v4647_v56 = vpop.xlane.xlu0 %4646  ;;  %v4684_v3 = vsel %vm347_vm1, %v4672_v61, 0.0  ;;  %v4673_v10 = vmul.f32 %v12651_v26, %v12651_v26 }
0x1ac1   :  { %v12659_v28 = vsub.f32 %v4622_v47, %v4658_v33  ;;  %v4659_v53 = vmul.f32 0.015625, %v4647_v56  ;;  %4685 = vadd.xlane.f32.xlu1 %v4684_v3  ;;  %v8511_v33 = vld [vmem:[%s13721_s16 + $0x1] ss:$0 sm:$0xff] }
0x1ac2   :  { %v4650_v44 = vpop.xlane.xlu1 %4649  ;;  %v4687_v1 = vsel %vm347_vm1, %v4673_v10, 0.0  ;;  %4843 = vmatpush1.bf16.msra.mxu1 %v10017_v55 }
0x1ac3   :  { %v12662_v46 = vsub.f32 %v4623_v14, %v4659_v53  ;;  %v4660_v62 = vmul.f32 0.015625, %v4650_v44  ;;  %4688 = vadd.xlane.f32.xlu0 %v4687_v1  ;;  %v4674_v60 = vmul.f32 %v12659_v28, %v12659_v28  ;;  %4844 = vmatprep.subr.bf16.mxu1 %v10022_v43 }
0x1ac4   :  { %v4653_v50 = vpop.xlane.xlu0 %4652 }
0x1ac5   :  { %v12666_v29 = vsub.f32 %v4624_v36, %v4660_v62  ;;  %v4661_v35 = vmul.f32 0.015625, %v4653_v50  ;;  %v4690_v27 = vsel %vm347_vm1, %v4674_v60, 0.0  ;;  %v4675_v11 = vmul.f32 %v12662_v46, %v12662_v46 }
0x1ac6   :  { %4691 = vadd.xlane.f32.xlu1 %v4690_v27  ;;  %4845 = vmatpush1.bf16.msra.mxu1 %v10020_v59 }
0x1ac7   :  { %v12671_v52 = vsub.f32 %v4625_v17, %v4661_v35  ;;  %v4693_v32 = vsel %vm347_vm1, %v4675_v11, 0.0  ;;  %v4676_v24 = vmul.f32 %v12666_v29, %v12666_v29  ;;  %4846 = vmatprep.subr.bf16.mxu1 %v10025_v7 }
0x1ac8   :  { %4694 = vadd.xlane.f32.xlu0 %v4693_v32 }
0x1ac9   :  { %v4696_v6 = vsel %vm347_vm1, %v4676_v24, 0.0  ;;  %v4677_v39 = vmul.f32 %v12671_v52, %v12671_v52 }
0x1aca   :  { %4697 = vadd.xlane.f32.xlu1 %v4696_v6  ;;  %4847 = vmatpush1.bf16.msra.mxu1 %v10023_v0 }
0x1acb   :  { %v4699_v51 = vsel %vm347_vm1, %v4677_v39, 0.0 }
0x1acc   :  { %4700 = vadd.xlane.f32.xlu0 %v4699_v51 }
0x1b4a   :  { %v4680_v57 = vpop.xlane.xlu1 %4679 }
0x1b4b   :  { %v4702_v18 = vmul.f32 0.015625, %v4680_v57  ;;  %v13800_v57 = vld [vmem:[#allocation22_spill] sm:$0xff] }
0x1b4c   :  { %v4683_v37 = vpop.xlane.xlu0 %4682 }
0x1b4d   :  { %v4710_v34 = vadd.f32 1e-05, %v4702_v18  ;;  %v4703_v23 = vmul.f32 0.015625, %v4683_v37 }
0x1b4e   :  { %v4686_v47 = vpop.xlane.xlu1 %4685 }
0x1b4f   :  { %10478 = vrsqrt.f32 %v4710_v34  ;;  %v4711_v63 = vadd.f32 1e-05, %v4703_v23  ;;  %v4704_v19 = vmul.f32 0.015625, %v4686_v47  ;;  %v13801_v34 = vld [vmem:[#allocation23_spill] sm:$0xff] }
0x1b50   :  { %v4689_v36 = vpop.xlane.xlu0 %4688 }
0x1b51   :  { %10480 = vrsqrt.f32 %v4711_v63  ;;  %v4712_v14 = vadd.f32 1e-05, %v4704_v19  ;;  %v4705_v42 = vmul.f32 0.015625, %v4689_v36 }
0x1b53   :  { %10482 = vrsqrt.f32 %v4712_v14  ;;  %v4713_v17 = vadd.f32 1e-05, %v4705_v42  ;;  %v4692_v13 = vpop.xlane.xlu1 %4691 }
0x1b54   :  { %v4706_v38 = vmul.f32 0.015625, %v4692_v13 }
0x1b55   :  { %10484 = vrsqrt.f32 %v4713_v17  ;;  %v4695_v48 = vpop.xlane.xlu0 %4694 }
0x1b56   :  { %v4707_v25 = vmul.f32 0.015625, %v4695_v48  ;;  %v4714_v5 = vadd.f32 1e-05, %v4706_v38 }
0x1b57   :  { %v4698_v2 = vpop.xlane.xlu1 %4697 }
0x1b58   :  { %v4715_v22 = vadd.f32 1e-05, %v4707_v25  ;;  %v4708_v9 = vmul.f32 0.015625, %v4698_v2 }
0x1b59   :  { %v10479_v4 = vpop.eup %10478  ;;  %v4701_v41 = vpop.xlane.xlu0 %4700 }
0x1b5a   :  { %v4726_v15 = vmul.f32 %v10479_v4, %v12640_v21  ;;  %10486 = vrsqrt.f32 %v4715_v22  ;;  %v4709_v16 = vmul.f32 0.015625, %v4701_v41  ;;  %v4716_v53 = vadd.f32 1e-05, %v4708_v9 }
0x1b5b   :  { %v10481_v31 = vpop.eup %10480  ;;  %10488 = vrsqrt.f32 %v4714_v5 }
0x1b5c   :  { %v4740_v8 = vmul.f32 %v8510_v49, %v4726_v15  ;;  %v4727_v30 = vmul.f32 %v10481_v31, %v12642_v45  ;;  %v4717_v56 = vadd.f32 1e-05, %v4709_v16 }
0x1b5d   :  { %v10483_v61 = vpop.eup %10482 }
0x1b5e   :  { %v4741_v3 = vmul.f32 %v8510_v49, %v4727_v30  ;;  %v12688_v44 = vadd.f32 %v8511_v33, %v4740_v8  ;;  %v4728_v1 = vmul.f32 %v10483_v61, %v12646_v54  ;;  %10490 = vrsqrt.f32 %v4717_v56 }
0x1b5f   :  { %v10485_v10 = vpop.eup %10484  ;;  %10492 = vrsqrt.f32 %v4716_v53 }
0x1b60   :  { %v12690_v21 = vadd.f32 %v8511_v33, %v4741_v3  ;;  %v4729_v62 = vmul.f32 %v10485_v10, %v12651_v26  ;;  %v4742_v35 = vmul.f32 %v8510_v49, %v4728_v1 }
0x1b62   :  { %v4771_v45 = vpack.c.bf16 %v12690_v21, %v12688_v44  ;;  %v4743_v60 = vmul.f32 %v8510_v49, %v4729_v62  ;;  %v12701_v54 = vadd.f32 %v8511_v33, %v4742_v35 }
0x1b64   :  { %v10487_v50 = vpop.eup %10486  ;;  %8521 = vmatmul.mubr.msk.bf16.vlgmr.msra.gmra.mrb[120].mxu1 %vm347_vm1, %v4771_v45  ;;  %v12698_v11 = vadd.f32 %v8511_v33, %v4743_v60 }
0x1b65   :  { %v10489_v27 = vpop.eup %10488  ;;  %4882 = vmatprep.mubr.bf16.mxu1 %v13780_v12  ;;  %v4731_v32 = vmul.f32 %v10487_v50, %v12662_v46 }
0x1b66   :  { %v4730_v26 = vmul.f32 %v10489_v27, %v12659_v28  ;;  %v4772_v24 = vpack.c.bf16 %v12698_v11, %v12701_v54 }
0x1b67   :  { %v4745_v6 = vmul.f32 %v8510_v49, %v4731_v32 }
0x1b68   :  { %v10491_v39 = vpop.eup %10490  ;;  %v4744_v51 = vmul.f32 %v8510_v49, %v4730_v26 }
0x1b69   :  { %v10493_v40 = vpop.eup %10492  ;;  %v12708_v20 = vadd.f32 %v8511_v33, %v4745_v6  ;;  %v4733_v58 = vmul.f32 %v10491_v39, %v12671_v52 }
0x1b6a   :  { %v12711_v46 = vadd.f32 %v8511_v33, %v4744_v51  ;;  %v4732_v55 = vmul.f32 %v10493_v40, %v12666_v29  ;;  %v8512_v29 = vld [vmem:[%s13711_s6 + $0x4] sm:$0x3] }
0x1b6b   :  { %13798 = vst [vmem:[#allocation20_spill] sm:$0xff] %v12708_v20  ;;  %v4747_v43 = vmul.f32 %v8510_v49, %v4733_v58  ;;  %v4781_v18 = vrot.slane %v8512_v29, %v13800_v57  ;;  %v4785_v23 = vrot.slane %v8512_v29, %v13801_v34  ;;  %v12778_v29 = vld [vmem:[#allocation5] sm:$0xff] }
0x1b6c   :  { %8522 = vmatmul.mubr.msk.bf16.gmra.mrb[124].mxu1 %vm347_vm1, %v4772_v24  ;;  %v4773_v28 = vpack.c.bf16 %v12708_v20, %v12711_v46  ;;  %v4746_v59 = vmul.f32 %v8510_v49, %v4732_v55 }
0x1b6d   :  { %4892 = vmatprep.mubr.bf16.mxu1 %v13780_v12  ;;  %v12718_v7 = vadd.f32 %v8511_v33, %v4747_v43 }
0x1b6e   :  { %v12720_v0 = vadd.f32 %v8511_v33, %v4746_v59 }
0x1b6f   :  { %13799 = vst [vmem:[#allocation19_spill] sm:$0xff] %v12718_v7 }
0x1b70   :  { %v4774_v52 = vpack.c.bf16 %v12718_v7, %v12720_v0 }
0x1b74   :  { %8523 = vmatmul.mubr.msk.bf16.gmra.mrb[128].mxu1 %vm347_vm1, %v4773_v28 }
0x1b75   :  { %4902 = vmatprep.mubr.bf16.mxu1 %v13780_v12 }
0x1b7c   :  { %8524 = vmatmul.mubr.msk.bf16.gmra.mrb[132].mxu1 %vm347_vm1, %v4774_v52 }
0x1c37   :  { %v4874_v37 = vpop.f32.mrb[120].mxu1 }
0x1c38   :  { %v4876_v47 = vpop.f32.mrb[121].mxu1  ;;  %v4875_v19 = vadd.f32 %v4874_v37, %v4781_v18 }
0x1c39   :  { %v4878_v63 = vpop.f32.mrb[122].mxu1  ;;  %v4877_v42 = vadd.f32 %v4876_v47, %v4785_v23  ;;  %v12781_v47 = vld [vmem:[#allocation5 + $0x10] sm:$0xff] }
0x1c3a   :  { %v4879_v36 = vadd.f32 %v4878_v63, %v4781_v18  ;;  %v4880_v14 = vpop.f32.mrb[123].mxu1 }
0x1c3b   :  { %v4881_v17 = vadd.f32 %v4880_v14, %v4785_v23 }
0x1c3c   :  { %v12730_v13 = vpack.c.bf16 %v4879_v36, %v4875_v19  ;;  %v12784_v19 = vld [vmem:[#allocation5 + $0x8] sm:$0xff] }
0x1c3d   :  { %v12732_v38 = vpack.c.bf16 %v4881_v17, %v4877_v42  ;;  %v12789_v17 = vld [vmem:[#allocation5 + $0x18] sm:$0xff] }
0x1c3e   :  { %4934 = vrot.lane.b32.xlu1 %v12730_v13, %s10830_s25  ;;  %9529 = vmatprep.mubr.msk.bf16.mxu1 %vm469_vm2, %v12730_v13 }
0x1c3f   :  { %v4884_v48 = vpop.f32.mrb[124].mxu1  ;;  %9537 = vmatprep.subr.bf16.mxu0 %v12732_v38 }
0x1c40   :  { %v4886_v25 = vpop.f32.mrb[125].mxu1  ;;  %9538 = vmatpush3.bf16.msra.mxu0 %v12732_v38  ;;  %v4885_v22 = vadd.f32 %v4884_v48, %v4781_v18 }
0x1c41   :  { %v4888_v5 = vpop.f32.mrb[126].mxu1  ;;  %v4887_v49 = vadd.f32 %v4886_v25, %v4785_v23 }
0x1c42   :  { %v4889_v2 = vadd.f32 %v4888_v5, %v4781_v18  ;;  %v4890_v4 = vpop.f32.mrb[127].mxu1 }
0x1c43   :  { %v4891_v41 = vadd.f32 %v4890_v4, %v4785_v23 }
0x1c44   :  { %v12740_v15 = vpack.c.bf16 %v4889_v2, %v4885_v22  ;;  %v12793_v2 = vld [vmem:[#allocation5 + $0x20] sm:$0xff] }
0x1c45   :  { %v12742_v16 = vpack.c.bf16 %v4891_v41, %v4887_v49 }
0x1c46   :  { %4936 = vrot.lane.b32.xlu0 %v12740_v15, %s10830_s25 }
0x1c47   :  { %v4894_v31 = vpop.f32.mrb[128].mxu1  ;;  %9539 = vmatprep.subr.bf16.mxu0 %v12742_v16 }
0x1c48   :  { %v4896_v9 = vpop.f32.mrb[129].mxu1  ;;  %9540 = vmatpush3.bf16.msra.mxu0 %v12742_v16  ;;  %v4895_v30 = vadd.f32 %v4894_v31, %v4781_v18  ;;  %v12798_v31 = vld [vmem:[#allocation5 + $0x30] sm:$0xff] }
0x1c49   :  { %v4898_v8 = vpop.f32.mrb[130].mxu1  ;;  %v4897_v56 = vadd.f32 %v4896_v9, %v4785_v23 }
0x1c4a   :  { %v4899_v61 = vadd.f32 %v4898_v8, %v4781_v18  ;;  %v4900_v33 = vpop.f32.mrb[131].mxu1  ;;  %v12801_v8 = vld [vmem:[#allocation5 + $0x28] sm:$0xff] }
0x1c4b   :  { %v4901_v3 = vadd.f32 %v4900_v33, %v4785_v23 }
0x1c4c   :  { %v12748_v10 = vpack.c.bf16 %v4899_v61, %v4895_v30 }
0x1c4d   :  { %v12750_v53 = vpack.c.bf16 %v4901_v3, %v4897_v56  ;;  %v12807_v56 = vld [vmem:[#allocation5 + $0x38] sm:$0xff] }
0x1c4e   :  { %4938 = vrot.lane.b32.xlu1 %v12748_v10, %s10830_s25 }
0x1c4f   :  { %v4904_v1 = vpop.f32.mrb[132].mxu1  ;;  %9541 = vmatprep.subr.bf16.mxu0 %v12750_v53 }
0x1c50   :  { %v4906_v62 = vpop.f32.mrb[133].mxu1  ;;  %9542 = vmatpush3.bf16.msra.mxu0 %v12750_v53  ;;  %v4905_v60 = vadd.f32 %v4904_v1, %v4781_v18 }
0x1c51   :  { %v4908_v45 = vpop.f32.mrb[134].mxu1  ;;  %v4907_v27 = vadd.f32 %v4906_v62, %v4785_v23 }
0x1c52   :  { %v4909_v50 = vadd.f32 %v4908_v45, %v4781_v18  ;;  %v4910_v35 = vpop.f32.mrb[135].mxu1 }
0x1c53   :  { %v4911_v32 = vadd.f32 %v4910_v35, %v4785_v23 }
0x1c54   :  { %v12756_v26 = vpack.c.bf16 %v4909_v50, %v4905_v60 }
0x1c55   :  { %v12758_v24 = vpack.c.bf16 %v4911_v32, %v4907_v27 }
0x1c56   :  { %4940 = vrot.lane.b32.xlu1 %v12756_v26, %s10830_s25 }
0x1c57   :  { %9543 = vmatprep.subr.bf16.mxu0 %v12758_v24 }
0x1c58   :  { %9544 = vmatpush3.bf16.msra.mxu0 %v12758_v24 }
0x1cb0   :  { %v4935_v6 = vpop.permute.xlu1 %4934 }
0x1cb1   :  { %9917 = vmatprep.subr.msk.bf16.mxu1 %vm469_vm2, %v4935_v6  ;;  %v4955_v39 = vsel %vm469_vm2, %v4935_v6, 0 }
0x1cb2   :  { %9522 = vmatpush3.bf16.xpose.msra.mxu1 %v4955_v39 }
0x1cb8   :  { %v4937_v51 = vpop.permute.xlu0 %4936 }
0x1cb9   :  { %9918 = vmatprep.subr.msk.bf16.mxu1 %vm469_vm2, %v4937_v51  ;;  %v4958_v40 = vsel %vm469_vm2, %v4937_v51, 0 }
0x1cba   :  { %9524 = vmatpush3.bf16.xpose.msra.mxu1 %v4958_v40 }
0x1cc0   :  { %v4939_v58 = vpop.permute.xlu1 %4938 }
0x1cc1   :  { %9919 = vmatprep.subr.msk.bf16.mxu1 %vm469_vm2, %v4939_v58  ;;  %v4961_v55 = vsel %vm469_vm2, %v4939_v58, 0 }
0x1cc2   :  { %9526 = vmatpush3.bf16.xpose.msra.mxu1 %v4961_v55 }
0x1cc8   :  { %v4941_v28 = vpop.permute.xlu1 %4940 }
0x1cc9   :  { %9920 = vmatprep.subr.msk.bf16.mxu1 %vm469_vm2, %v4941_v28  ;;  %v4964_v43 = vsel %vm469_vm2, %v4941_v28, 0 }
0x1cca   :  { %9528 = vmatpush3.bf16.xpose.msra.mxu1 %v4964_v43 }
0x1cd1   :  { %9530 = vmatmul.mubr.msk.bf16.vlgmr.msra.gmra.mrb[136].mxu1 %vm469_vm2, %v12740_v15 }
0x1cd2   :  { %9533 = vmatprep.mubr.msk.bf16.mxu1 %vm469_vm2, %v12748_v10 }
0x1cd9   :  { %9534 = vmatmul.mubr.msk.bf16.gmra.mrb[140].mxu1 %vm469_vm2, %v12756_v26 }
0x1da4   :  { %v9531_v59 = vpop.f32.mrb[136].mxu1 }
0x1da5   :  { %v5000_v52 = vpop.f32.mrb[137].mxu1  ;;  %v5009_v63 = vadd.f32 %v12781_v47, %v9531_v59 }
0x1da6   :  { %v5001_v18 = vadd.f32 %v12778_v29, %v5000_v52  ;;  %v9532_v37 = vpop.f32.mrb[138].mxu1 }
0x1da7   :  { %v5003_v23 = vpop.f32.mrb[139].mxu1  ;;  %v5012_v48 = vadd.f32 %v12789_v17, %v9532_v37  ;;  %v5037_v5 = vsel %vm347_vm1, %v5009_v63, -inf }
0x1da8   :  { %v5004_v36 = vadd.f32 %v12784_v19, %v5003_v23  ;;  %v5031_v14 = vsel %vm347_vm1, %v5001_v18, -inf }
0x1da9   :  { %5032 = vmax.xlane.f32.xlu0 %v5031_v14  ;;  %v5040_v33 = vsel %vm347_vm1, %v5012_v48, -inf }
0x1daa   :  { %v5034_v42 = vsel %vm347_vm1, %v5004_v36, -inf }
0x1dab   :  { %5035 = vmax.xlane.f32.xlu1 %v5034_v42 }
0x1dac   :  { %v9535_v25 = vpop.f32.mrb[140].mxu1 }
0x1dad   :  { %v5016_v22 = vpop.f32.mrb[141].mxu1  ;;  %5038 = vmax.xlane.f32.xlu0 %v5037_v5  ;;  %v5025_v9 = vadd.f32 %v12798_v31, %v9535_v25 }
0x1dae   :  { %v12796_v4 = vadd.f32 %v12793_v2, %v5016_v22  ;;  %v9536_v49 = vpop.f32.mrb[142].mxu1 }
0x1daf   :  { %v5019_v41 = vpop.f32.mrb[143].mxu1  ;;  %v5028_v3 = vadd.f32 %v12807_v56, %v9536_v49  ;;  %v5049_v1 = vsel %vm347_vm1, %v5025_v9, -inf }
0x1db0   :  { %v5020_v30 = vadd.f32 %v12801_v8, %v5019_v41  ;;  %v5043_v61 = vsel %vm347_vm1, %v12796_v4, -inf }
0x1db1   :  { %5044 = vmax.xlane.f32.xlu1 %v5043_v61  ;;  %5041 = vmax.xlane.f32.xlu0 %v5040_v33  ;;  %v5052_v45 = vsel %vm347_vm1, %v5028_v3, -inf }
0x1db2   :  { %v5046_v62 = vsel %vm347_vm1, %v5020_v30, -inf }
0x1db5   :  { %5050 = vmax.xlane.f32.xlu1 %v5049_v1  ;;  %5047 = vmax.xlane.f32.xlu0 %v5046_v62 }
0x1db9   :  { %5053 = vmax.xlane.f32.xlu0 %v5052_v45 }
0x1e36   :  { %v5033_v60 = vpop.xlane.xlu0 %5032 }
0x1e37   :  { %v5055_v50 = vsub.f32 %v5001_v18, %v5033_v60 }
0x1e38   :  { %v5036_v27 = vpop.xlane.xlu1 %5035 }
0x1e39   :  { %v5063_v6 = vmul.f32 1.442695, %v5055_v50  ;;  %v5056_v51 = vsub.f32 %v5004_v36, %v5036_v27 }
0x1e3a   :  { %v5039_v35 = vpop.xlane.xlu0 %5038 }
0x1e3b   :  { %v5057_v32 = vsub.f32 %v5009_v63, %v5039_v35  ;;  %v5065_v28 = vmul.f32 1.442695, %v5056_v51 }
0x1e3d   :  { %v5067_v39 = vmul.f32 1.442695, %v5057_v32 }
0x1e3e   :  { %v5042_v40 = vpop.xlane.xlu0 %5041  ;;  %v5045_v33 = vpop.xlane.xlu1 %5044 }
0x1e3f   :  { %10494 = vpow2.f32 %v5067_v39  ;;  %v5058_v58 = vsub.f32 %v5012_v48, %v5042_v40  ;;  %v5059_v62 = vsub.f32 %v12796_v4, %v5045_v33 }
0x1e40   :  { %10496 = vpow2.f32 %v5063_v6 }
0x1e41   :  { %v5069_v55 = vmul.f32 1.442695, %v5058_v58  ;;  %v5071_v60 = vmul.f32 1.442695, %v5059_v62 }
0x1e42   :  { %v5048_v43 = vpop.xlane.xlu0 %5047 }
0x1e43   :  { %10498 = vpow2.f32 %v5069_v55  ;;  %v5060_v59 = vsub.f32 %v5020_v30, %v5048_v43 }
0x1e44   :  { %10500 = vpow2.f32 %v5065_v28 }
0x1e45   :  { %v5073_v14 = vmul.f32 1.442695, %v5060_v59 }
0x1e46   :  { %v5054_v52 = vpop.xlane.xlu0 %5053 }
0x1e47   :  { %v5062_v37 = vsub.f32 %v5028_v3, %v5054_v52  ;;  %v5051_v3 = vpop.xlane.xlu1 %5050 }
0x1e48   :  { %v5061_v1 = vsub.f32 %v5025_v9, %v5051_v3 }
0x1e49   :  { %v12813_v23 = vpop.eup %10494  ;;  %v5077_v18 = vmul.f32 1.442695, %v5062_v37 }
0x1e4a   :  { %v5085_v63 = vsel %vm347_vm1, %v12813_v23, 0.0  ;;  %v12817_v36 = vpop.eup %10496  ;;  %v5075_v45 = vmul.f32 1.442695, %v5061_v1 }
0x1e4b   :  { %10502 = vpow2.f32 %v5077_v18  ;;  %5086 = vadd.xlane.f32.xlu1 %v5085_v63  ;;  %v5079_v48 = vsel %vm347_vm1, %v12817_v36, 0.0 }
0x1e4c   :  { %10504 = vpow2.f32 %v5073_v14 }
0x1e4d   :  { %v10499_v42 = vpop.eup %10498  ;;  %10506 = vpow2.f32 %v5075_v45 }
0x1e4e   :  { %v5088_v25 = vsel %vm347_vm1, %v10499_v42, 0.0  ;;  %v10501_v5 = vpop.eup %10500  ;;  %10508 = vpow2.f32 %v5071_v60 }
0x1e4f   :  { %5080 = vadd.xlane.f32.xlu1 %v5079_v48  ;;  %5089 = vadd.xlane.f32.xlu0 %v5088_v25  ;;  %v5082_v22 = vsel %vm347_vm1, %v10501_v5, 0.0 }
0x1e53   :  { %5083 = vadd.xlane.f32.xlu0 %v5082_v22 }
0x1e55   :  { %v12823_v49 = vpop.eup %10502 }
0x1e56   :  { %v5100_v41 = vsel %vm347_vm1, %v12823_v49, 0.0  ;;  %v12827_v30 = vpop.eup %10504 }
0x1e57   :  { %5101 = vadd.xlane.f32.xlu0 %v5100_v41  ;;  %v5094_v61 = vsel %vm347_vm1, %v12827_v30, 0.0  ;;  %v12842_v50 = vpop.eup %10506 }
0x1e58   :  { %v5097_v4 = vsel %vm347_vm1, %v12842_v50, 0.0  ;;  %v12848_v9 = vpop.eup %10508 }
0x1e59   :  { %v5091_v35 = vsel %vm347_vm1, %v12848_v9, 0.0 }
0x1e5b   :  { %5095 = vadd.xlane.f32.xlu0 %v5094_v61 }
0x1e60   :  { %5212 = vrot.lane.b32.xlu1 %v12730_v13, %s10836_s28 }
0x1e71   :  { %5214 = vrot.lane.b32.xlu0 %v12740_v15, %s10836_s28 }
0x1e75   :  { %5204 = vrot.lane.b32.xlu0 %v12730_v13, %s10837_s22 }
0x1e79   :  { %5208 = vrot.lane.b32.xlu0 %v12748_v10, %s10837_s22 }
0x1e7d   :  { %5672 = vrot.lane.b32.xlu0 %v12730_v13, %s10838_s11 }
0x1e81   :  { %5676 = vrot.lane.b32.xlu0 %v12748_v10, %s10838_s11 }
0x1e84   :  { %5098 = vadd.xlane.f32.xlu1 %v5097_v4 }
0x1e85   :  { %5664 = vrot.lane.b32.xlu0 %v12730_v13, %s10839_s26 }
0x1e88   :  { %5092 = vadd.xlane.f32.xlu1 %v5091_v35 }
0x1e89   :  { %5668 = vrot.lane.b32.xlu0 %v12748_v10, %s10839_s26 }
0x1e99   :  { %5216 = vrot.lane.b32.xlu1 %v12748_v10, %s10836_s28 }
0x1e9d   :  { %5218 = vrot.lane.b32.xlu1 %v12756_v26, %s10836_s28 }
0x1ea1   :  { %5206 = vrot.lane.b32.xlu1 %v12740_v15, %s10837_s22 }
0x1ea5   :  { %5210 = vrot.lane.b32.xlu1 %v12756_v26, %s10837_s22 }
0x1ea9   :  { %5674 = vrot.lane.b32.xlu1 %v12740_v15, %s10838_s11 }
0x1ead   :  { %5678 = vrot.lane.b32.xlu1 %v12756_v26, %s10838_s11 }
0x1eb1   :  { %5666 = vrot.lane.b32.xlu1 %v12740_v15, %s10839_s26 }
0x1eb5   :  { %5670 = vrot.lane.b32.xlu1 %v12756_v26, %s10839_s26 }
0x1ed8   :  { %v5087_v27 = vpop.xlane.xlu1 %5086 }
0x1edc   :  { %v5081_v32 = vpop.xlane.xlu1 %5080  ;;  %v5090_v6 = vpop.xlane.xlu0 %5089 }
0x1edd   :  { %10510 = vrcp.f32 %v5090_v6 }
0x1ede   :  { %10512 = vrcp.f32 %v5081_v32 }
0x1edf   :  { %10514 = vrcp.f32 %v5087_v27 }
0x1ee0   :  { %v5213_v39 = vpop.permute.xlu1 %5212  ;;  %v5084_v51 = vpop.xlane.xlu0 %5083 }
0x1ee1   :  { %9921 = vmatprep.subr.msk.bf16.mxu0 %vm469_vm2, %v5213_v39  ;;  %10516 = vrcp.f32 %v5084_v51  ;;  %v5233_v25 = vsel %vm469_vm2, %v5213_v39, 0 }
0x1ee4   :  { %v5102_v40 = vpop.xlane.xlu0 %5101 }
0x1ee7   :  { %v10511_v58 = vpop.eup %10510 }
0x1ee8   :  { %v10513_v55 = vpop.eup %10512  ;;  %v5114_v59 = vmul.f32 %v10511_v58, %v10499_v42  ;;  %v5096_v52 = vpop.xlane.xlu0 %5095 }
0x1ee9   :  { %v10515_v28 = vpop.eup %10514  ;;  %v5111_v37 = vmul.f32 %v10513_v55, %v12817_v36 }
0x1eea   :  { %v5113_v14 = vmul.f32 %v10515_v28, %v12813_v23 }
0x1eeb   :  { %v10517_v43 = vpop.eup %10516 }
0x1eec   :  { %v5112_v18 = vmul.f32 %v10517_v43, %v10501_v5  ;;  %v5120_v48 = vpack.c.bf16 %v5114_v59, %v5113_v14  ;;  %v5215_v22 = vpop.permute.xlu0 %5214 }
0x1eed   :  { %v5236_v42 = vsel %vm469_vm2, %v5215_v22, 0 }
0x1eee   :  { %v5119_v63 = vpack.c.bf16 %v5112_v18, %v5111_v37 }
0x1ef0   :  { %9545 = vmatprep.mubr.msk.bf16.mxu0 %vm347_vm1, %v5119_v63  ;;  %v5205_v36 = vpop.permute.xlu0 %5204 }
0x1ef1   :  { %9546 = vmatmul.mubr.msk.bf16.vlgmr.msra.gmra.mrb[96].mxu0 %vm347_vm1, %v5120_v48 }
0x1ef2   :  { %9554 = vmatpush3.bf16.xpose.msra.mxu0 %v5233_v25 }
0x1ef3   :  { %9922 = vmatprep.subr.msk.bf16.mxu0 %vm469_vm2, %v5215_v22 }
0x1ef4   :  { %v5209_v3 = vpop.permute.xlu0 %5208 }
0x1ef8   :  { %v5673_v39 = vpop.permute.xlu0 %5672 }
0x1efa   :  { %9556 = vmatpush3.bf16.xpose.msra.mxu0 %v5236_v42 }
0x1f11   :  { %v5099_v41 = vpop.xlane.xlu1 %5098 }
0x1f12   :  { %10518 = vrcp.f32 %v5099_v41 }
0x1f13   :  { %10520 = vrcp.f32 %v5096_v52 }
0x1f14   :  { %10522 = vrcp.f32 %v5102_v40 }
0x1f15   :  { %v5093_v23 = vpop.xlane.xlu1 %5092 }
0x1f16   :  { %10524 = vrcp.f32 %v5093_v23 }
0x1f19   :  { %v5217_v5 = vpop.permute.xlu1 %5216 }
0x1f1a   :  { %9923 = vmatprep.subr.msk.bf16.mxu0 %vm469_vm2, %v5217_v5  ;;  %v5239_v61 = vsel %vm469_vm2, %v5217_v5, 0 }
0x1f1b   :  { %9558 = vmatpush3.bf16.xpose.msra.mxu0 %v5239_v61 }
0x1f1c   :  { %v10519_v33 = vpop.eup %10518 }
0x1f1d   :  { %v5219_v1 = vpop.permute.xlu1 %5218  ;;  %v10521_v62 = vpop.eup %10520  ;;  %v5117_v4 = vmul.f32 %v10519_v33, %v12842_v50 }
0x1f1e   :  { %9924 = vmatprep.subr.msk.bf16.mxu0 %vm469_vm2, %v5219_v1  ;;  %v10523_v45 = vpop.eup %10522  ;;  %v5116_v27 = vmul.f32 %v10521_v62, %v12827_v30  ;;  %v5242_v32 = vsel %vm469_vm2, %v5219_v1, 0  ;;  %v5693_v30 = vsel %vm469_vm2, %v5673_v39, 0 }
0x1f1f   :  { %v5118_v6 = vmul.f32 %v10523_v45, %v12823_v49  ;;  %v5677_v49 = vpop.permute.xlu0 %5676 }
0x1f20   :  { %v10525_v60 = vpop.eup %10524  ;;  %v5699_v43 = vsel %vm469_vm2, %v5677_v49, 0 }
0x1f21   :  { %v5115_v35 = vmul.f32 %v10525_v60, %v12848_v9  ;;  %v5207_v51 = vpop.permute.xlu1 %5206  ;;  %v5122_v58 = vpack.c.bf16 %v5118_v6, %v5117_v4 }
0x1f23   :  { %9560 = vmatpush3.bf16.xpose.msra.mxu0 %v5242_v32  ;;  %v5121_v40 = vpack.c.bf16 %v5116_v27, %v5115_v35  ;;  %v5665_v55 = vpop.permute.xlu0 %5664 }
0x1f24   :  { %9925 = vmatprep.subr.msk.bf16.mxu0 %vm469_vm2, %v5673_v39 }
0x1f25   :  { %9549 = vmatprep.mubr.msk.bf16.mxu0 %vm347_vm1, %v5121_v40  ;;  %v5211_v50 = vpop.permute.xlu1 %5210 }
0x1f26   :  { %9550 = vmatmul.mubr.msk.bf16.gmra.mrb[100].mxu0 %vm347_vm1, %v5122_v58 }
0x1f27   :  { %9561 = vmatprep.mubr.msk.bf16.mxu0 %vm469_vm2, %v5205_v36  ;;  %v5669_v18 = vpop.permute.xlu0 %5668 }
0x1f29   :  { %v5675_v9 = vpop.permute.xlu1 %5674 }
0x1f2a   :  { %v5696_v28 = vsel %vm469_vm2, %v5675_v9, 0 }
0x1f2d   :  { %v5679_v59 = vpop.permute.xlu1 %5678 }
0x1f2e   :  { %9562 = vmatmul.mubr.msk.bf16.vlgmr.msra.gmra.mrb[104].mxu0 %vm469_vm2, %v5207_v51  ;;  %v5702_v52 = vsel %vm469_vm2, %v5679_v59, 0 }
0x1f2f   :  { %9606 = vmatpush3.bf16.xpose.msra.mxu0 %v5693_v30  ;;  %9565 = vmatprep.mubr.msk.bf16.mxu0 %vm469_vm2, %v5209_v3 }
0x1f30   :  { %9926 = vmatprep.subr.msk.bf16.mxu0 %vm469_vm2, %v5675_v9 }
0x1f31   :  { %v5667_v37 = vpop.permute.xlu1 %5666 }
0x1f35   :  { %v5671_v14 = vpop.permute.xlu1 %5670 }
0x1f36   :  { %9566 = vmatmul.mubr.msk.bf16.gmra.mrb[108].mxu0 %vm469_vm2, %v5211_v50 }
0x1f37   :  { %9608 = vmatpush3.bf16.xpose.msra.mxu0 %v5696_v28  ;;  %9613 = vmatprep.mubr.msk.bf16.mxu0 %vm469_vm2, %v5665_v55 }
0x1f38   :  { %9927 = vmatprep.subr.msk.bf16.mxu0 %vm469_vm2, %v5677_v49 }
0x1f3f   :  { %9610 = vmatpush3.bf16.xpose.msra.mxu0 %v5699_v43 }
0x1f40   :  { %9928 = vmatprep.subr.msk.bf16.mxu0 %vm469_vm2, %v5679_v59 }
0x1f47   :  { %9612 = vmatpush3.bf16.xpose.msra.mxu0 %v5702_v52 }
0x1f4e   :  { %9614 = vmatmul.mubr.msk.bf16.vlgmr.msra.gmra.mrb[112].mxu0 %vm469_vm2, %v5667_v37 }
0x1f4f   :  { %9617 = vmatprep.mubr.msk.bf16.mxu0 %vm469_vm2, %v5669_v18 }
0x1f56   :  { %9618 = vmatmul.mubr.msk.bf16.gmra.mrb[116].mxu0 %vm469_vm2, %v5671_v14 }
0x1fc4   :  { %v12906_v63 = vpop.f32.mrb[96].mxu0 }
0x1fc5   :  { %v12908_v48 = vpop.f32.mrb[97].mxu0 }
0x1fc6   :  { %v12910_v25 = vpop.f32.mrb[98].mxu0 }
0x1fc7   :  { %v12914_v42 = vpop.f32.mrb[99].mxu0 }
0x1ff9   :  { %v12918_v23 = vpop.f32.mrb[100].mxu0 }
0x1ffa   :  { %v12920_v36 = vpop.f32.mrb[101].mxu0 }
0x1ffb   :  { %v12922_v5 = vpop.f32.mrb[102].mxu0 }
0x1ffc   :  { %v12926_v33 = vpop.f32.mrb[103].mxu0 }
0x2001   :  { %v9563_v1 = vpop.f32.mrb[104].mxu0 }
0x2002   :  { %v5278_v62 = vpop.f32.mrb[105].mxu0  ;;  %v5287_v35 = vadd.f32 %v12781_v47, %v9563_v1 }
0x2003   :  { %v5279_v45 = vadd.f32 %v12778_v29, %v5278_v62  ;;  %v9564_v60 = vpop.f32.mrb[106].mxu0 }
0x2004   :  { %v5281_v4 = vpop.f32.mrb[107].mxu0  ;;  %v5290_v39 = vadd.f32 %v12789_v17, %v9564_v60  ;;  %v5315_v40 = vsel %vm347_vm1, %v5287_v35, -inf }
0x2005   :  { %v5282_v27 = vadd.f32 %v12784_v19, %v5281_v4  ;;  %v5309_v32 = vsel %vm347_vm1, %v5279_v45, -inf }
0x2006   :  { %5310 = vmax.xlane.f32.xlu0 %v5309_v32  ;;  %v5318_v28 = vsel %vm347_vm1, %v5290_v39, -inf }
0x2007   :  { %v5312_v6 = vsel %vm347_vm1, %v5282_v27, -inf }
0x2008   :  { %5313 = vmax.xlane.f32.xlu1 %v5312_v6 }
0x2009   :  { %v9567_v51 = vpop.f32.mrb[108].mxu0 }
0x200a   :  { %5316 = vmax.xlane.f32.xlu0 %v5315_v40  ;;  %v5294_v58 = vpop.f32.mrb[109].mxu0  ;;  %v5303_v49 = vadd.f32 %v12798_v31, %v9567_v51 }
0x200b   :  { %v5295_v50 = vadd.f32 %v12793_v2, %v5294_v58  ;;  %v9568_v30 = vpop.f32.mrb[110].mxu0 }
0x200c   :  { %v5297_v9 = vpop.f32.mrb[111].mxu0  ;;  %v5306_v59 = vadd.f32 %v12807_v56, %v9568_v30  ;;  %v5327_v37 = vsel %vm347_vm1, %v5303_v49, -inf }
0x200d   :  { %v5298_v55 = vadd.f32 %v12801_v8, %v5297_v9  ;;  %v5321_v43 = vsel %vm347_vm1, %v5295_v50, -inf }
0x200e   :  { %5319 = vmax.xlane.f32.xlu0 %v5318_v28  ;;  %5322 = vmax.xlane.f32.xlu1 %v5321_v43  ;;  %v5330_v18 = vsel %vm347_vm1, %v5306_v59, -inf }
0x200f   :  { %v5324_v52 = vsel %vm347_vm1, %v5298_v55, -inf }
0x2012   :  { %5325 = vmax.xlane.f32.xlu0 %v5324_v52  ;;  %5328 = vmax.xlane.f32.xlu1 %v5327_v37 }
0x2016   :  { %5331 = vmax.xlane.f32.xlu0 %v5330_v18 }
0x2021   :  { %v12946_v14 = vpop.f32.mrb[112].mxu0 }
0x2022   :  { %v12948_v1 = vpop.f32.mrb[113].mxu0 }
0x2023   :  { %v12950_v62 = vpop.f32.mrb[114].mxu0  ;;  %5405 = vrot.lane.b32.xlu1 %v12732_v38, %s10837_s22 }
0x2024   :  { %v12954_v60 = vpop.f32.mrb[115].mxu0 }
0x2029   :  { %v12956_v4 = vpop.f32.mrb[116].mxu0 }
0x202a   :  { %v12958_v32 = vpop.f32.mrb[117].mxu0 }
0x202b   :  { %v12960_v6 = vpop.f32.mrb[118].mxu0 }
0x202c   :  { %v12962_v51 = vpop.f32.mrb[119].mxu0 }
0x2093   :  { %v5311_v40 = vpop.xlane.xlu0 %5310 }
0x2094   :  { %v5333_v58 = vsub.f32 %v5279_v45, %v5311_v40 }
0x2095   :  { %v5314_v30 = vpop.xlane.xlu1 %5313 }
0x2096   :  { %v5341_v43 = vmul.f32 1.442695, %v5333_v58  ;;  %v5334_v37 = vsub.f32 %v5282_v27, %v5314_v30 }
0x2097   :  { %v5317_v9 = vpop.xlane.xlu0 %5316 }
0x2098   :  { %v5335_v28 = vsub.f32 %v5287_v35, %v5317_v9  ;;  %v5343_v34 = vmul.f32 1.442695, %v5334_v37  ;;  %v13024_v37 = vadd.f32 %v12778_v29, %v12948_v1  ;;  %v13040_v29 = vadd.f32 %v12798_v31, %v12956_v4 }
0x2099   :  { %v13054_v1 = vadd.f32 %v12801_v8, %v12962_v51 }
0x209a   :  { %v5345_v52 = vmul.f32 1.442695, %v5335_v28 }
0x209b   :  { %v5323_v18 = vpop.xlane.xlu1 %5322  ;;  %v5320_v61 = vpop.xlane.xlu0 %5319 }
0x209c   :  { %10526 = vpow2.f32 %v5345_v52  ;;  %v5336_v3 = vsub.f32 %v5290_v39, %v5320_v61  ;;  %v5337_v22 = vsub.f32 %v5295_v50, %v5323_v18  ;;  %v13020_v52 = vadd.f32 %v12784_v19, %v12954_v60 }
0x209d   :  { %10528 = vpow2.f32 %v5341_v43 }
0x209e   :  { %v5347_v41 = vmul.f32 1.442695, %v5336_v3  ;;  %v5349_v20 = vmul.f32 1.442695, %v5337_v22 }
0x209f   :  { %v5329_v57 = vpop.xlane.xlu1 %5328  ;;  %v5326_v12 = vpop.xlane.xlu0 %5325 }
0x20a0   :  { %v5339_v7 = vsub.f32 %v5303_v49, %v5329_v57  ;;  %10530 = vpow2.f32 %v5347_v41  ;;  %v5338_v40 = vsub.f32 %v5298_v55, %v5326_v12 }
0x20a1   :  { %10532 = vpow2.f32 %v5343_v34 }
0x20a2   :  { %v5353_v45 = vmul.f32 1.442695, %v5339_v7  ;;  %v5351_v3 = vmul.f32 1.442695, %v5338_v40 }
0x20a3   :  { %v5406_v35 = vpop.permute.xlu1 %5405  ;;  %v5332_v58 = vpop.xlane.xlu0 %5331 }
0x20a4   :  { %10534 = vpow2.f32 %v5353_v45  ;;  %v5340_v27 = vsub.f32 %v5306_v59, %v5332_v58  ;;  %9569 = vmatprep.subr.bf16.mxu1 %v5406_v35 }
0x20a5   :  { %9570 = vmatpush3.bf16.msra.mxu1 %v5406_v35  ;;  %10536 = vpow2.f32 %v5349_v20 }
0x20a6   :  { %v12964_v30 = vpop.eup %10526  ;;  %v5355_v61 = vmul.f32 1.442695, %v5340_v27 }
0x20a7   :  { %v5363_v39 = vsel %vm347_vm1, %v12964_v30, 0.0  ;;  %v12968_v57 = vpop.eup %10528 }
0x20a8   :  { %10538 = vpow2.f32 %v5355_v61  ;;  %5364 = vadd.xlane.f32.xlu1 %v5363_v39  ;;  %v5357_v12 = vsel %vm347_vm1, %v12968_v57, 0.0 }
0x20a9   :  { %10540 = vpow2.f32 %v5351_v3 }
0x20aa   :  { %v12970_v7 = vpop.eup %10530 }
0x20ab   :  { %v5366_v34 = vsel %vm347_vm1, %v12970_v7, 0.0  ;;  %v12976_v20 = vpop.eup %10532 }
0x20ac   :  { %5358 = vadd.xlane.f32.xlu1 %v5357_v12  ;;  %5367 = vadd.xlane.f32.xlu0 %v5366_v34  ;;  %v5360_v49 = vsel %vm347_vm1, %v12976_v20, 0.0 }
0x20ae   :  { %v12978_v22 = vpop.eup %10534 }
0x20af   :  { %v5375_v41 = vsel %vm347_vm1, %v12978_v22, 0.0  ;;  %v12982_v50 = vpop.eup %10536 }
0x20b0   :  { %5376 = vadd.xlane.f32.xlu1 %v5375_v41  ;;  %5361 = vadd.xlane.f32.xlu0 %v5360_v49  ;;  %v5369_v59 = vsel %vm347_vm1, %v12982_v50, 0.0 }
0x20b2   :  { %v12986_v55 = vpop.eup %10538 }
0x20b3   :  { %v5378_v9 = vsel %vm347_vm1, %v12986_v55, 0.0  ;;  %v12992_v28 = vpop.eup %10540 }
0x20b4   :  { %5370 = vadd.xlane.f32.xlu1 %v5369_v59  ;;  %5379 = vadd.xlane.f32.xlu0 %v5378_v9  ;;  %v5372_v43 = vsel %vm347_vm1, %v12992_v28, 0.0 }
0x20b8   :  { %5373 = vadd.xlane.f32.xlu0 %v5372_v43 }
0x20c5   :  { %5409 = vrot.lane.b32.xlu1 %v12750_v53, %s10837_s22 }
0x20c9   :  { %5411 = vrot.lane.b32.xlu1 %v12758_v24, %s10837_s22 }
0x20cd   :  { %6055 = vrot.lane.b32.xlu1 %v12740_v15, %s10840_s1 }
0x20ce   :  { %5407 = vrot.lane.b32.xlu0 %v12742_v16, %s10837_s22 }
0x20d1   :  { %6059 = vrot.lane.b32.xlu1 %v12756_v26, %s10840_s1 }
0x20d2   :  { %6053 = vrot.lane.b32.xlu0 %v12730_v13, %s10840_s1 }
0x20d5   :  { %6047 = vrot.lane.b32.xlu1 %v12740_v15, %s10841_s24  ;;  %v13028_v15 = vadd.f32 %v12793_v2, %v12958_v32  ;;  %v13046_v2 = vadd.f32 %v12789_v17, %v12950_v62  ;;  %v13060_v17 = vadd.f32 %v12807_v56, %v12960_v6  ;;  %v5784_v62 = vsel %vm347_vm1, %v13054_v1, -inf }
0x20d6   :  { %6057 = vrot.lane.b32.xlu0 %v12748_v10, %s10840_s1 }
0x20d7   :  { %v5781_v19 = vsel %vm347_vm1, %v13028_v15, -inf  ;;  %v5778_v31 = vsel %vm347_vm1, %v13046_v2, -inf  ;;  %v5790_v60 = vsel %vm347_vm1, %v13060_v17, -inf }
0x20d9   :  { %6051 = vrot.lane.b32.xlu1 %v12756_v26, %s10841_s24  ;;  %v5772_v26 = vsel %vm347_vm1, %v13020_v52, -inf }
0x20da   :  { %6045 = vrot.lane.b32.xlu0 %v12730_v13, %s10841_s24  ;;  %v13034_v13 = vadd.f32 %v12781_v47, %v12946_v14  ;;  %v5787_v14 = vsel %vm347_vm1, %v13040_v29, -inf }
0x20dc   :  { %v5775_v47 = vsel %vm347_vm1, %v13034_v13, -inf }
0x20de   :  { %6049 = vrot.lane.b32.xlu0 %v12748_v10, %s10841_s24  ;;  %v5769_v10 = vsel %vm347_vm1, %v13024_v37, -inf }
0x20fd   :  { %5773 = vmax.xlane.f32.xlu1 %v5772_v26  ;;  %5770 = vmax.xlane.f32.xlu0 %v5769_v10 }
0x2101   :  { %5782 = vmax.xlane.f32.xlu1 %v5781_v19  ;;  %5776 = vmax.xlane.f32.xlu0 %v5775_v47 }
0x2105   :  { %5788 = vmax.xlane.f32.xlu1 %v5787_v14  ;;  %5779 = vmax.xlane.f32.xlu0 %v5778_v31 }
0x2109   :  { %5785 = vmax.xlane.f32.xlu0 %v5784_v62 }
0x210d   :  { %5791 = vmax.xlane.f32.xlu0 %v5790_v60 }
0x2116   :  { %5861 = vrot.lane.b32.xlu1 %v12732_v38, %s10839_s26 }
0x2135   :  { %v5365_v8 = vpop.xlane.xlu1 %5364 }
0x2139   :  { %v5359_v4 = vpop.xlane.xlu1 %5358  ;;  %v5368_v32 = vpop.xlane.xlu0 %5367 }
0x213a   :  { %10542 = vrcp.f32 %v5359_v4 }
0x213d   :  { %v5377_v51 = vpop.xlane.xlu1 %5376  ;;  %v5362_v18 = vpop.xlane.xlu0 %5361 }
0x213e   :  { %10544 = vrcp.f32 %v5362_v18 }
0x213f   :  { %10546 = vrcp.f32 %v5368_v32 }
0x2140   :  { %10548 = vrcp.f32 %v5365_v8 }
0x2141   :  { %v5371_v56 = vpop.xlane.xlu1 %5370  ;;  %v5380_v6 = vpop.xlane.xlu0 %5379 }
0x2142   :  { %10550 = vrcp.f32 %v5371_v56 }
0x2144   :  { %v10543_v35 = vpop.eup %10542 }
0x2145   :  { %v5410_v45 = vpop.permute.xlu1 %5409  ;;  %v5374_v40 = vpop.xlane.xlu0 %5373  ;;  %v5389_v3 = vmul.f32 %v10543_v35, %v12968_v57 }
0x2146   :  { %10552 = vrcp.f32 %v5374_v40 }
0x2147   :  { %10554 = vrcp.f32 %v5380_v6 }
0x2148   :  { %v10545_v58 = vpop.eup %10544  ;;  %10556 = vrcp.f32 %v5377_v51 }
0x2149   :  { %v5412_v27 = vpop.permute.xlu1 %5411  ;;  %v5408_v61 = vpop.permute.xlu0 %5407  ;;  %v5390_v39 = vmul.f32 %v10545_v58, %v12976_v20 }
0x214a   :  { %9571 = vmatprep.subr.bf16.mxu1 %v5408_v61  ;;  %v10547_v34 = vpop.eup %10546 }
0x214b   :  { %9572 = vmatpush3.bf16.msra.mxu1 %v5408_v61  ;;  %v5397_v12 = vpack.c.bf16 %v5390_v39, %v5389_v3  ;;  %v10549_v49 = vpop.eup %10548  ;;  %v5392_v20 = vmul.f32 %v10547_v34, %v12970_v7 }
0x214c   :  { %9573 = vmatprep.subr.bf16.mxu1 %v5410_v45  ;;  %v10551_v9 = vpop.eup %10550  ;;  %v5391_v19 = vmul.f32 %v10549_v49, %v12964_v30 }
0x214d   :  { %9577 = vmatprep.mubr.msk.bf16.mxu1 %vm347_vm1, %v5397_v12  ;;  %v6054_v41 = vpop.permute.xlu0 %6053  ;;  %v6056_v43 = vpop.permute.xlu1 %6055  ;;  %v5393_v47 = vmul.f32 %v10551_v9, %v12982_v50 }
0x214e   :  { %v6074_v59 = vsel %vm469_vm2, %v6054_v41, 0  ;;  %9929 = vmatprep.subr.msk.bf16.mxu0 %vm469_vm2, %v6054_v41  ;;  %v5398_v14 = vpack.c.bf16 %v5392_v20, %v5391_v19  ;;  %v6077_v8 = vsel %vm469_vm2, %v6056_v43, 0 }
0x214f   :  { %9574 = vmatpush3.bf16.msra.mxu1 %v5410_v45  ;;  %9648 = vmatpush3.bf16.xpose.msra.mxu0 %v6074_v59 }
0x2150   :  { %v10553_v57 = vpop.eup %10552  ;;  %9575 = vmatprep.subr.bf16.mxu1 %v5412_v27  ;;  %9930 = vmatprep.subr.msk.bf16.mxu0 %vm469_vm2, %v6056_v43 }
0x2151   :  { %v6058_v26 = vpop.permute.xlu0 %6057  ;;  %v5394_v10 = vmul.f32 %v10553_v57, %v12992_v28  ;;  %v10555_v31 = vpop.eup %10554 }
0x2152   :  { %v10557_v7 = vpop.eup %10556  ;;  %v5396_v30 = vmul.f32 %v10555_v31, %v12986_v55  ;;  %v6080_v4 = vsel %vm469_vm2, %v6058_v26, 0  ;;  %v6060_v32 = vpop.permute.xlu1 %6059 }
0x2153   :  { %9576 = vmatpush3.bf16.msra.mxu1 %v5412_v27  ;;  %v5399_v60 = vpack.c.bf16 %v5394_v10, %v5393_v47  ;;  %v5395_v50 = vmul.f32 %v10557_v7, %v12978_v22  ;;  %v6083_v51 = vsel %vm469_vm2, %v6060_v32, 0 }
0x2155   :  { %v6046_v62 = vpop.permute.xlu0 %6045  ;;  %v5400_v28 = vpack.c.bf16 %v5396_v30, %v5395_v50  ;;  %v10026_v50 = vld [vmem:[%s13712_s7 + $0x48] sm:$0xff]  }
0x2156   :  { %9578 = vmatmul.mubr.msk.bf16.vlgmr.msra.gmra.mrb[144].mxu1 %vm347_vm1, %v5398_v14  ;;  %9655 = vmatprep.mubr.msk.bf16.mxu0 %vm469_vm2, %v6046_v62  ;;  %v6048_v18 = vpop.permute.xlu1 %6047 }
0x2157   :  { %9581 = vmatprep.mubr.msk.bf16.mxu1 %vm347_vm1, %v5399_v60  ;;  %9650 = vmatpush3.bf16.xpose.msra.mxu0 %v6077_v8 }
0x2158   :  { %9931 = vmatprep.subr.msk.bf16.mxu0 %vm469_vm2, %v6058_v26  ;;  %9585 = vmatprep.subr.bf16.mxu1 %v10026_v50 }
0x2159   :  { %v6050_v56 = vpop.permute.xlu0 %6049  ;;  %9586 = vmatpush3.bf16.msra.mxu1 %v10026_v50 }
0x215a   :  { %v6052_v55 = vpop.permute.xlu1 %6051 }
0x215e   :  { %9582 = vmatmul.mubr.msk.bf16.gmra.mrb[148].mxu1 %vm347_vm1, %v5400_v28 }
0x215f   :  { %9652 = vmatpush3.bf16.xpose.msra.mxu0 %v6080_v4 }
0x2160   :  { %9932 = vmatprep.subr.msk.bf16.mxu0 %vm469_vm2, %v6060_v32  ;;  %v10027_v32 = vld [vmem:[%s13712_s7 + $0x40] sm:$0xff]  }
0x2161   :  { %9595 = vmatprep.subr.bf16.mxu1 %v10027_v32 }
0x2167   :  { %9654 = vmatpush3.bf16.xpose.msra.mxu0 %v6083_v51 }
0x216e   :  { %9656 = vmatmul.mubr.msk.bf16.vlgmr.msra.gmra.mrb[120].mxu0 %vm469_vm2, %v6048_v18 }
0x216f   :  { %9659 = vmatprep.mubr.msk.bf16.mxu0 %vm469_vm2, %v6050_v56 }
0x2176   :  { %9660 = vmatmul.mubr.msk.bf16.gmra.mrb[124].mxu0 %vm469_vm2, %v6052_v55 }
0x218a   :  { %v5774_v22 = vpop.xlane.xlu1 %5773  ;;  %v5771_v6 = vpop.xlane.xlu0 %5770 }
0x218b   :  { %v5793_v45 = vsub.f32 %v13024_v37, %v5771_v6  ;;  %v5794_v27 = vsub.f32 %v13020_v52, %v5774_v22 }
0x218d   :  { %v5801_v61 = vmul.f32 1.442695, %v5793_v45  ;;  %v5803_v49 = vmul.f32 1.442695, %v5794_v27 }
0x218e   :  { %v5783_v40 = vpop.xlane.xlu1 %5782  ;;  %v5777_v35 = vpop.xlane.xlu0 %5776 }
0x218f   :  { %v5795_v58 = vsub.f32 %v13034_v13, %v5777_v35  ;;  %v5797_v59 = vsub.f32 %v13028_v15, %v5783_v40 }
0x2191   :  { %v5805_v3 = vmul.f32 1.442695, %v5795_v58  ;;  %v5809_v13 = vmul.f32 1.442695, %v5797_v59 }
0x2192   :  { %v5789_v39 = vpop.xlane.xlu1 %5788  ;;  %v5780_v34 = vpop.xlane.xlu0 %5779 }
0x2193   :  { %v5799_v12 = vsub.f32 %v13040_v29, %v5789_v39  ;;  %10558 = vpow2.f32 %v5805_v3  ;;  %v5796_v41 = vsub.f32 %v13046_v2, %v5780_v34 }
0x2194   :  { %10560 = vpow2.f32 %v5801_v61 }
0x2195   :  { %v5813_v37 = vmul.f32 1.442695, %v5799_v12  ;;  %v5807_v9 = vmul.f32 1.442695, %v5796_v41 }
0x2196   :  { %v5786_v43 = vpop.xlane.xlu0 %5785  ;;  %v5862_v51 = vpop.permute.xlu1 %5861 }
0x2197   :  { %10562 = vpow2.f32 %v5807_v9  ;;  %v5798_v52 = vsub.f32 %v13054_v1, %v5786_v43 }
0x2198   :  { %10564 = vpow2.f32 %v5803_v49 }
0x2199   :  { %10566 = vpow2.f32 %v5813_v37  ;;  %v5811_v2 = vmul.f32 1.442695, %v5798_v52  ;;  %v13802_v37 = vpack.c.bf16 %v12914_v42, %v12908_v48  ;;  %v13803_v52 = vpack.c.bf16 %v12910_v25, %v12906_v63 }
0x219a   :  { %v5792_v57 = vpop.xlane.xlu0 %5791  ;;  %10568 = vpow2.f32 %v5809_v13 }
0x219b   :  { %v5800_v29 = vsub.f32 %v13060_v17, %v5792_v57 }
0x219d   :  { %v13100_v20 = vpop.eup %10558  ;;  %v5815_v26 = vmul.f32 1.442695, %v5800_v29  ;;  %v13804_v29 = vpack.c.bf16 %v12926_v33, %v12920_v36  ;;  %v10680_v36 = vld [vmem:[#allocation5 + $0x8] sm:$0xff] }
0x219e   :  { %v5823_v15 = vsel %vm347_vm1, %v13100_v20, 0.0  ;;  %v13104_v10 = vpop.eup %10560 }
0x219f   :  { %10570 = vpow2.f32 %v5815_v26  ;;  %5824 = vadd.xlane.f32.xlu1 %v5823_v15  ;;  %v5817_v1 = vsel %vm347_vm1, %v13104_v10, 0.0  ;;  %v10678_v15 = vld [vmem:[#allocation5] sm:$0xff] }
0x21a0   :  { %10572 = vpow2.f32 %v5811_v2 }
0x21a1   :  { %v13106_v19 = vpop.eup %10562 }
0x21a2   :  { %v13108_v47 = vpop.eup %10564  ;;  %v5826_v17 = vsel %vm347_vm1, %v13106_v19, 0.0 }
0x21a3   :  { %v13114_v14 = vpop.eup %10566  ;;  %5818 = vadd.xlane.f32.xlu1 %v5817_v1  ;;  %5827 = vadd.xlane.f32.xlu0 %v5826_v17  ;;  %v5820_v62 = vsel %vm347_vm1, %v13108_v47, 0.0 }
0x21a4   :  { %v5835_v31 = vsel %vm347_vm1, %v13114_v14, 0.0  ;;  %v13120_v60 = vpop.eup %10568 }
0x21a5   :  { %v5829_v7 = vsel %vm347_vm1, %v13120_v60, 0.0 }
0x21a7   :  { %5836 = vadd.xlane.f32.xlu1 %v5835_v31  ;;  %5821 = vadd.xlane.f32.xlu0 %v5820_v62  ;;  %v10679_v31 = vld [vmem:[#allocation5 + $0x10] sm:$0xff] }
0x21a9   :  { %v13122_v8 = vpop.eup %10570 }
0x21aa   :  { %v5838_v30 = vsel %vm347_vm1, %v13122_v8, 0.0  ;;  %v13131_v28 = vpop.eup %10572 }
0x21ab   :  { %5830 = vadd.xlane.f32.xlu1 %v5829_v7  ;;  %5839 = vadd.xlane.f32.xlu0 %v5838_v30  ;;  %v5832_v4 = vsel %vm347_vm1, %v13131_v28, 0.0 }
0x21af   :  { %5833 = vadd.xlane.f32.xlu0 %v5832_v4 }
0x21bc   :  { %5865 = vrot.lane.b32.xlu1 %v12750_v53, %s10839_s26 }
0x21c0   :  { %5867 = vrot.lane.b32.xlu1 %v12758_v24, %s10839_s26 }
0x21c5   :  { %5863 = vrot.lane.b32.xlu0 %v12742_v16, %s10839_s26 }
0x2229   :  { %v9579_v18 = vpop.f32.mrb[144].mxu1 }
0x222a   :  { %v5463_v56 = vpop.f32.mrb[145].mxu1 }
0x222b   :  { %v9580_v55 = vpop.f32.mrb[146].mxu1 }
0x222c   :  { %v5495_v22 = vpack.c.bf16 %v9580_v55, %v9579_v18  ;;  %v5466_v6 = vpop.f32.mrb[147].mxu1  ;;  %v5825_v45 = vpop.xlane.xlu1 %5824  ;;  %v13805_v18 = vpack.c.bf16 %v12922_v5, %v12918_v23  ;;  %v10682_v23 = vld [vmem:[#allocation5 + $0x20] sm:$0xff] }
0x222d   :  { %v5494_v40 = vpack.c.bf16 %v5466_v6, %v5463_v56 }
0x222f   :  { %9587 = vmatprep.mubr.msk.bf16.mxu1 %vm469_vm2, %v5494_v40 }
0x2230   :  { %9588 = vmatmul.mubr.msk.bf16.vlgmr.msra.gmra.mrb[152].mxu1 %vm469_vm2, %v5495_v22  ;;  %v5819_v35 = vpop.xlane.xlu1 %5818  ;;  %v5828_v58 = vpop.xlane.xlu0 %5827  ;;  %v10681_v22 = vld [vmem:[#allocation5 + $0x18] sm:$0xff] }
0x2231   :  { %9596 = vmatpush3.bf16.msra.mxu1 %v10027_v32  ;;  %v9583_v27 = vpop.f32.mrb[148].mxu1 }
0x2232   :  { %9621 = vmatprep.subr.bf16.mxu1 %v5862_v51  ;;  %v5479_v61 = vpop.f32.mrb[149].mxu1 }
0x2233   :  { %v9584_v3 = vpop.f32.mrb[150].mxu1 }
0x2234   :  { %v5497_v39 = vpack.c.bf16 %v9584_v3, %v9583_v27  ;;  %v5482_v12 = vpop.f32.mrb[151].mxu1  ;;  %v5822_v41 = vpop.xlane.xlu0 %5821 }
0x2235   :  { %v5496_v34 = vpack.c.bf16 %v5482_v12, %v5479_v61  ;;  %v5837_v49 = vpop.xlane.xlu1 %5836  ;;  %10574 = vrcp.f32 %v5822_v41  ;;  %v10683_v12 = vld [vmem:[#allocation5 + $0x30] sm:$0xff]  ;;  %v10684_v41 = vld [vmem:[#allocation5 + $0x28] sm:$0xff] }
0x2236   :  { %10576 = vrcp.f32 %v5819_v35 }
0x2237   :  { %9591 = vmatprep.mubr.msk.bf16.mxu1 %vm469_vm2, %v5496_v34  ;;  %10578 = vrcp.f32 %v5825_v45 }
0x2238   :  { %9592 = vmatmul.mubr.msk.bf16.gmra.mrb[156].mxu1 %vm469_vm2, %v5497_v39  ;;  %v5840_v59 = vpop.xlane.xlu0 %5839  ;;  %10580 = vrcp.f32 %v5828_v58 }
0x2239   :  { %9597 = vmatprep.mubr.msk.bf16.mxu1 %vm469_vm2, %v13802_v37  ;;  %v5831_v9 = vpop.xlane.xlu1 %5830 }
0x223c   :  { %v5834_v43 = vpop.xlane.xlu0 %5833 }
0x223d   :  { %10582 = vrcp.f32 %v5834_v43  ;;  %v5866_v26 = vpop.permute.xlu1 %5865 }
0x223e   :  { %10584 = vrcp.f32 %v5831_v9 }
0x223f   :  { %v10575_v13 = vpop.eup %10574  ;;  %10586 = vrcp.f32 %v5840_v59 }
0x2240   :  { %9598 = vmatmul.mubr.msk.bf16.vlgmr.msra.gmra.mrb[152].mxu1 %vm469_vm2, %v13803_v52  ;;  %v5864_v57 = vpop.permute.xlu0 %5863  ;;  %v10577_v42 = vpop.eup %10576  ;;  %v5850_v63 = vmul.f32 %v10575_v13, %v13108_v47  ;;  %10588 = vrcp.f32 %v5837_v49 }
0x2241   :  { %9622 = vmatpush3.bf16.msra.mxu1 %v5862_v51  ;;  %9601 = vmatprep.mubr.msk.bf16.mxu1 %vm469_vm2, %v13804_v29  ;;  %v9657_v48 = vpop.f32.mrb[120].mxu0  ;;  %v5849_v30 = vmul.f32 %v10577_v42, %v13104_v10  ;;  %v10579_v50 = vpop.eup %10578 }
0x2242   :  { %9623 = vmatprep.subr.bf16.mxu1 %v5864_v57  ;;  %v6119_v2 = vpop.f32.mrb[121].mxu0  ;;  %v13163_v62 = vadd.f32 %v10679_v31, %v9657_v48  ;;  %v10581_v4 = vpop.eup %10580  ;;  %v5851_v61 = vmul.f32 %v10579_v50, %v13100_v20 }
0x2243   :  { %v13160_v1 = vadd.f32 %v10678_v15, %v6119_v2  ;;  %v9658_v17 = vpop.f32.mrb[122].mxu0  ;;  %v5857_v32 = vpack.c.bf16 %v5850_v63, %v5849_v30  ;;  %v5868_v55 = vpop.permute.xlu1 %5867  ;;  %v5852_v40 = vmul.f32 %v10581_v4, %v13106_v19  ;;  %v10028_v2 = vld [vmem:[%s13712_s7 + $0x50] sm:$0xff]  }
0x2244   :  { %v6122_v25 = vpop.f32.mrb[123].mxu0  ;;  %v6131_v10 = vadd.f32 %v10681_v22, %v9658_v17  ;;  %v6156_v45 = vsel %vm347_vm1, %v13163_v62, -inf }
0x2245   :  { %9624 = vmatpush3.bf16.msra.mxu1 %v5864_v57  ;;  %v13165_v33 = vadd.f32 %v10680_v36, %v6122_v25  ;;  %v6150_v7 = vsel %vm347_vm1, %v13160_v1, -inf  ;;  %v5858_v9 = vpack.c.bf16 %v5852_v40, %v5851_v61 }
0x2246   :  { %9625 = vmatprep.subr.bf16.mxu1 %v5866_v26  ;;  %6151 = vmax.xlane.f32.xlu0 %v6150_v7  ;;  %v6159_v59 = vsel %vm347_vm1, %v6131_v10, -inf }
0x2247   :  { %v6153_v47 = vsel %vm347_vm1, %v13165_v33, -inf  ;;  %v10583_v51 = vpop.eup %10582 }
0x2248   :  { %9602 = vmatmul.mubr.msk.bf16.gmra.mrb[156].mxu1 %vm469_vm2, %v13805_v18  ;;  %6154 = vmax.xlane.f32.xlu1 %v6153_v47  ;;  %v10585_v56 = vpop.eup %10584  ;;  %v5854_v27 = vmul.f32 %v10583_v51, %v13131_v28  ;;  %v10685_v28 = vld [vmem:[#allocation5 + $0x38] sm:$0xff] }
0x2249   :  { %9626 = vmatpush3.bf16.msra.mxu1 %v5866_v26  ;;  %9629 = vmatprep.mubr.msk.bf16.mxu1 %vm347_vm1, %v5857_v32  ;;  %v9661_v6 = vpop.f32.mrb[124].mxu0  ;;  %v5853_v39 = vmul.f32 %v10585_v56, %v13120_v60  ;;  %v10587_v37 = vpop.eup %10586 }
0x224a   :  { %9627 = vmatprep.subr.bf16.mxu1 %v5868_v55  ;;  %v6135_v35 = vpop.f32.mrb[125].mxu0  ;;  %6157 = vmax.xlane.f32.xlu0 %v6156_v45  ;;  %v6144_v34 = vadd.f32 %v10683_v12, %v9661_v6  ;;  %v10589_v20 = vpop.eup %10588  ;;  %v5856_v57 = vmul.f32 %v10587_v37, %v13122_v8 }
0x224b   :  { %v6136_v5 = vadd.f32 %v10682_v23, %v6135_v35  ;;  %v9662_v58 = vpop.f32.mrb[126].mxu0  ;;  %v5859_v43 = vpack.c.bf16 %v5854_v27, %v5853_v39  ;;  %v5855_v29 = vmul.f32 %v10589_v20, %v13114_v14 }
0x224c   :  { %v6138_v3 = vpop.f32.mrb[127].mxu0  ;;  %v6147_v13 = vadd.f32 %v10685_v28, %v9662_v58  ;;  %v6168_v60 = vsel %vm347_vm1, %v6144_v34, -inf }
0x224d   :  { %9628 = vmatpush3.bf16.msra.mxu1 %v5868_v55  ;;  %v6139_v49 = vadd.f32 %v10684_v41, %v6138_v3  ;;  %v6162_v19 = vsel %vm347_vm1, %v6136_v5, -inf  ;;  %v5860_v42 = vpack.c.bf16 %v5856_v57, %v5855_v29 }
0x224e   :  { %6163 = vmax.xlane.f32.xlu1 %v6162_v19  ;;  %6160 = vmax.xlane.f32.xlu0 %v6159_v59  ;;  %v6171_v48 = vsel %vm347_vm1, %v6147_v13, -inf }
0x224f   :  { %v6165_v52 = vsel %vm347_vm1, %v6139_v49, -inf  ;;  %9637 = vmatprep.subr.bf16.mxu1 %v10028_v2 }
0x2250   :  { %9630 = vmatmul.mubr.msk.bf16.vlgmr.msra.gmra.mrb[160].mxu1 %vm347_vm1, %v5858_v9 }
0x2251   :  { %9633 = vmatprep.mubr.msk.bf16.mxu1 %vm347_vm1, %v5859_v43  ;;  %9638 = vmatpush3.bf16.msra.mxu1 %v10028_v2 }
0x2252   :  { %6169 = vmax.xlane.f32.xlu1 %v6168_v60  ;;  %6166 = vmax.xlane.f32.xlu0 %v6165_v52 }
0x2256   :  { %6172 = vmax.xlane.f32.xlu0 %v6171_v48 }
0x2258   :  { %9634 = vmatmul.mubr.msk.bf16.gmra.mrb[164].mxu1 %vm347_vm1, %v5860_v42 }
0x2263   :  { %6242 = vrot.lane.b32.xlu1 %v12732_v38, %s10841_s24 }
0x22d3   :  { %v6152_v26 = vpop.xlane.xlu0 %6151 }
0x22d4   :  { %v6174_v8 = vsub.f32 %v13160_v1, %v6152_v26 }
0x22d5   :  { %v6155_v15 = vpop.xlane.xlu1 %6154 }
0x22d6   :  { %v6182_v63 = vmul.f32 1.442695, %v6174_v8  ;;  %v6175_v31 = vsub.f32 %v13165_v33, %v6155_v15 }
0x22d7   :  { %v6158_v14 = vpop.xlane.xlu0 %6157 }
0x22d8   :  { %v6176_v17 = vsub.f32 %v13163_v62, %v6158_v14  ;;  %v6184_v4 = vmul.f32 1.442695, %v6175_v31 }
0x22da   :  { %v6186_v25 = vmul.f32 1.442695, %v6176_v17 }
0x22db   :  { %v6164_v36 = vpop.xlane.xlu1 %6163  ;;  %v6161_v7 = vpop.xlane.xlu0 %6160 }
0x22dc   :  { %10590 = vpow2.f32 %v6186_v25  ;;  %v6177_v30 = vsub.f32 %v6131_v10, %v6161_v7  ;;  %v6178_v50 = vsub.f32 %v6136_v5, %v6164_v36 }
0x22dd   :  { %10592 = vpow2.f32 %v6182_v63 }
0x22de   :  { %v6188_v38 = vmul.f32 1.442695, %v6177_v30  ;;  %v6190_v1 = vmul.f32 1.442695, %v6178_v50 }
0x22df   :  { %v6170_v47 = vpop.xlane.xlu1 %6169  ;;  %v6167_v32 = vpop.xlane.xlu0 %6166 }
0x22e0   :  { %v6180_v51 = vsub.f32 %v6144_v34, %v6170_v47  ;;  %10594 = vpow2.f32 %v6188_v38  ;;  %v6179_v62 = vsub.f32 %v6139_v49, %v6167_v32 }
0x22e1   :  { %10596 = vpow2.f32 %v6184_v4 }
0x22e2   :  { %v6194_v18 = vmul.f32 1.442695, %v6180_v51  ;;  %v6192_v6 = vmul.f32 1.442695, %v6179_v62  ;;  %v10029_v51 = vld [vmem:[%s13712_s7 + $0x58] sm:$0xff]  }
0x22e3   :  { %v6243_v56 = vpop.permute.xlu1 %6242  ;;  %v6173_v55 = vpop.xlane.xlu0 %6172 }
0x22e4   :  { %10598 = vpow2.f32 %v6194_v18  ;;  %v6181_v33 = vsub.f32 %v6147_v13, %v6173_v55  ;;  %9663 = vmatprep.subr.bf16.mxu1 %v6243_v56 }
0x22e5   :  { %10600 = vpow2.f32 %v6190_v1 }
0x22e6   :  { %v13201_v22 = vpop.eup %10590  ;;  %v6196_v10 = vmul.f32 1.442695, %v6181_v33 }
0x22e7   :  { %v6204_v45 = vsel %vm347_vm1, %v13201_v22, 0.0  ;;  %v10593_v40 = vpop.eup %10592 }
0x22e8   :  { %10602 = vpow2.f32 %v6196_v10  ;;  %6205 = vadd.xlane.f32.xlu1 %v6204_v45  ;;  %v6198_v23 = vsel %vm347_vm1, %v10593_v40, 0.0 }
0x22e9   :  { %10604 = vpow2.f32 %v6192_v6 }
0x22ea   :  { %v13205_v35 = vpop.eup %10594 }
0x22eb   :  { %v6207_v5 = vsel %vm347_vm1, %v13205_v35, 0.0  ;;  %v10597_v58 = vpop.eup %10596 }
0x22ec   :  { %6199 = vadd.xlane.f32.xlu1 %v6198_v23  ;;  %6208 = vadd.xlane.f32.xlu0 %v6207_v5  ;;  %v6201_v39 = vsel %vm347_vm1, %v10597_v58, 0.0 }
0x22ee   :  { %v13210_v27 = vpop.eup %10598 }
0x22ef   :  { %v6216_v61 = vsel %vm347_vm1, %v13210_v27, 0.0  ;;  %v13214_v3 = vpop.eup %10600 }
0x22f0   :  { %6217 = vadd.xlane.f32.xlu1 %v6216_v61  ;;  %6202 = vadd.xlane.f32.xlu0 %v6201_v39  ;;  %v6210_v34 = vsel %vm347_vm1, %v13214_v3, 0.0 }
0x22f2   :  { %v13217_v12 = vpop.eup %10602 }
0x22f3   :  { %v6219_v41 = vsel %vm347_vm1, %v13217_v12, 0.0  ;;  %v10605_v49 = vpop.eup %10604 }
0x22f4   :  { %6211 = vadd.xlane.f32.xlu1 %v6210_v34  ;;  %6220 = vadd.xlane.f32.xlu0 %v6219_v41  ;;  %v6213_v19 = vsel %vm347_vm1, %v10605_v49, 0.0 }
0x22f8   :  { %6214 = vadd.xlane.f32.xlu0 %v6213_v19 }
0x2305   :  { %6246 = vrot.lane.b32.xlu1 %v12750_v53, %s10841_s24 }
0x2309   :  { %6248 = vrot.lane.b32.xlu1 %v12758_v24, %s10841_s24 }
0x230e   :  { %6244 = vrot.lane.b32.xlu0 %v12742_v16, %s10841_s24 }
0x2323   :  { %v9631_v59 = vpop.f32.mrb[160].mxu1 }
0x2324   :  { %v5919_v37 = vpop.f32.mrb[161].mxu1 }
0x2325   :  { %v9632_v9 = vpop.f32.mrb[162].mxu1 }
0x2326   :  { %v5951_v43 = vpack.c.bf16 %v9632_v9, %v9631_v59  ;;  %v5922_v20 = vpop.f32.mrb[163].mxu1 }
0x2327   :  { %v5950_v28 = vpack.c.bf16 %v5922_v20, %v5919_v37 }
0x2329   :  { %9639 = vmatprep.mubr.msk.bf16.mxu1 %vm469_vm2, %v5950_v28 }
0x232a   :  { %9640 = vmatmul.mubr.msk.bf16.vlgmr.msra.gmra.mrb[152].mxu1 %vm469_vm2, %v5951_v43 }
0x232b   :  { %9664 = vmatpush3.bf16.msra.mxu1 %v6243_v56  ;;  %v9635_v13 = vpop.f32.mrb[164].mxu1 }
0x232c   :  { %v5935_v60 = vpop.f32.mrb[165].mxu1 }
0x232d   :  { %v9636_v53 = vpop.f32.mrb[166].mxu1 }
0x232e   :  { %v5953_v52 = vpack.c.bf16 %v9636_v53, %v9635_v13  ;;  %v5938_v57 = vpop.f32.mrb[167].mxu1 }
0x232f   :  { %v5952_v24 = vpack.c.bf16 %v5938_v57, %v5935_v60 }
0x2331   :  { %9643 = vmatprep.mubr.msk.bf16.mxu1 %vm469_vm2, %v5952_v24 }
0x2332   :  { %9644 = vmatmul.mubr.msk.bf16.gmra.mrb[156].mxu1 %vm469_vm2, %v5953_v52 }
0x2375   :  { %v6206_v16 = vpop.xlane.xlu1 %6205 }
0x2379   :  { %v6200_v29 = vpop.xlane.xlu1 %6199  ;;  %v6209_v48 = vpop.xlane.xlu0 %6208 }
0x237a   :  { %10606 = vrcp.f32 %v6200_v29 }
0x237d   :  { %v6218_v42 = vpop.xlane.xlu1 %6217  ;;  %v6203_v2 = vpop.xlane.xlu0 %6202 }
0x237e   :  { %10608 = vrcp.f32 %v6203_v2 }
0x237f   :  { %10610 = vrcp.f32 %v6209_v48 }
0x2380   :  { %10612 = vrcp.f32 %v6206_v16 }
0x2381   :  { %v6221_v26 = vpop.xlane.xlu0 %6220  ;;  %v6212_v8 = vpop.xlane.xlu1 %6211 }
0x2382   :  { %10614 = vrcp.f32 %v6212_v8 }
0x2384   :  { %v10607_v14 = vpop.eup %10606 }
0x2385   :  { %v6215_v15 = vpop.xlane.xlu0 %6214  ;;  %v6247_v63 = vpop.permute.xlu1 %6246  ;;  %v6230_v31 = vmul.f32 %v10607_v14, %v10593_v40 }
0x2386   :  { %10616 = vrcp.f32 %v6215_v15 }
0x2387   :  { %10618 = vrcp.f32 %v6221_v26 }
0x2388   :  { %v10609_v17 = vpop.eup %10608  ;;  %10620 = vrcp.f32 %v6218_v42 }
0x2389   :  { %v6245_v25 = vpop.permute.xlu0 %6244  ;;  %v6231_v36 = vmul.f32 %v10609_v17, %v10597_v58  ;;  %v10611_v30 = vpop.eup %10610 }
0x238a   :  { %9665 = vmatprep.subr.bf16.mxu1 %v6245_v25  ;;  %v10613_v50 = vpop.eup %10612  ;;  %v6249_v4 = vpop.permute.xlu1 %6248  ;;  %v6233_v32 = vmul.f32 %v10611_v30, %v13205_v35 }
0x238b   :  { %9666 = vmatpush3.bf16.msra.mxu1 %v6245_v25  ;;  %v6238_v7 = vpack.c.bf16 %v6231_v36, %v6230_v31  ;;  %v6232_v18 = vmul.f32 %v10613_v50, %v13201_v22  ;;  %v13807_v31 = vld [vmem:[#allocation19_spill] sm:$0xff] }
0x238c   :  { %9667 = vmatprep.subr.bf16.mxu1 %v6247_v63  ;;  %v10615_v38 = vpop.eup %10614 }
0x238d   :  { %9671 = vmatprep.mubr.msk.bf16.mxu1 %vm347_vm1, %v6238_v7  ;;  %v6234_v62 = vmul.f32 %v10615_v38, %v13214_v3  ;;  %v6239_v56 = vpack.c.bf16 %v6233_v32, %v6232_v18 }
0x238f   :  { %9668 = vmatpush3.bf16.msra.mxu1 %v6247_v63  ;;  %v13806_v63 = vld [vmem:[#allocation20_spill] sm:$0xff] }
0x2390   :  { %v10617_v47 = vpop.eup %10616  ;;  %9669 = vmatprep.subr.bf16.mxu1 %v6249_v4 }
0x2391   :  { %v6235_v1 = vmul.f32 %v10617_v47, %v10605_v49  ;;  %v10619_v55 = vpop.eup %10618 }
0x2392   :  { %v10621_v10 = vpop.eup %10620  ;;  %v6237_v6 = vmul.f32 %v10619_v55, %v13217_v12 }
0x2393   :  { %9670 = vmatpush3.bf16.msra.mxu1 %v6249_v4  ;;  %v6240_v33 = vpack.c.bf16 %v6235_v1, %v6234_v62  ;;  %v6236_v45 = vmul.f32 %v10621_v10, %v13210_v27  ;;  %v8586_v27 = vld [vmem:[%s13713_s8 + $0x2] ss:$0 sm:$0xff] }
0x2394   :  { %9679 = vmatprep.subr.bf16.mxu1 %v10029_v51 }
0x2395   :  { %v6241_v40 = vpack.c.bf16 %v6237_v6, %v6236_v45 }
0x2396   :  { %9672 = vmatmul.mubr.msk.bf16.vlgmr.msra.gmra.mrb[168].mxu1 %vm347_vm1, %v6239_v56 }
0x2397   :  { %9675 = vmatprep.mubr.msk.bf16.mxu1 %vm347_vm1, %v6240_v33  ;;  %9680 = vmatpush3.bf16.msra.mxu1 %v10029_v51 }
0x239e   :  { %9676 = vmatmul.mubr.msk.bf16.gmra.mrb[172].mxu1 %vm347_vm1, %v6241_v40 }
0x2469   :  { %v9673_v22 = vpop.f32.mrb[168].mxu1 }
0x246a   :  { %v6300_v35 = vpop.f32.mrb[169].mxu1 }
0x246b   :  { %v9674_v23 = vpop.f32.mrb[170].mxu1 }
0x246c   :  { %v6332_v5 = vpack.c.bf16 %v9674_v23, %v9673_v22  ;;  %v6303_v58 = vpop.f32.mrb[171].mxu1 }
0x246d   :  { %v6331_v61 = vpack.c.bf16 %v6303_v58, %v6300_v35 }
0x246f   :  { %9681 = vmatprep.mubr.msk.bf16.mxu1 %vm469_vm2, %v6331_v61 }
0x2470   :  { %9682 = vmatmul.mubr.msk.bf16.vlgmr.msra.gmra.mrb[152].mxu1 %vm469_vm2, %v6332_v5 }
0x2471   :  { %v9677_v3 = vpop.f32.mrb[172].mxu1 }
0x2472   :  { %v6316_v39 = vpop.f32.mrb[173].mxu1 }
0x2473   :  { %v9678_v34 = vpop.f32.mrb[174].mxu1 }
0x2474   :  { %v6334_v41 = vpack.c.bf16 %v9678_v34, %v9677_v3  ;;  %v6319_v12 = vpop.f32.mrb[175].mxu1 }
0x2475   :  { %v6333_v49 = vpack.c.bf16 %v6319_v12, %v6316_v39 }
0x2477   :  { %9685 = vmatprep.mubr.msk.bf16.mxu1 %vm469_vm2, %v6333_v49 }
0x2478   :  { %9686 = vmatmul.mubr.msk.bf16.gmra.mrb[156].mxu1 %vm469_vm2, %v6334_v41 }
0x2543   :  { %v9683_v19 = vpop.f32.mrb[152].mxu1 }
0x2544   :  { %v6387_v59 = vpop.f32.mrb[153].mxu1  ;;  %v6436_v37 = vadd.f32 %v9683_v19, %v8586_v27 }
0x2545   :  { %v6434_v9 = vadd.f32 %v8586_v27, %v6387_v59  ;;  %v9684_v43 = vpop.f32.mrb[154].mxu1 }
0x2546   :  { %v6390_v20 = vpop.f32.mrb[155].mxu1  ;;  %v6437_v60 = vadd.f32 %v9684_v43, %v8586_v27  ;;  %v6444_v53 = vadd.f32 %v6436_v37, %v12701_v54 }
0x2547   :  { %v6442_v28 = vadd.f32 %v6434_v9, %v12688_v44  ;;  %v6435_v13 = vadd.f32 %v8586_v27, %v6390_v20 }
0x2548   :  { %v6445_v29 = vadd.f32 %v6437_v60, %v12698_v11  ;;  %v6460_v44 = vsel %vm347_vm1, %v6444_v53, 0.0 }
0x2549   :  { %v6443_v52 = vadd.f32 %v6435_v13, %v12690_v21  ;;  %v6454_v57 = vsel %vm347_vm1, %v6442_v28, 0.0 }
0x254a   :  { %6455 = vadd.xlane.f32.xlu0 %v6454_v57  ;;  %v6463_v15 = vsel %vm347_vm1, %v6445_v29, 0.0  ;;  %v10031_v57 = vld [vmem:[#allocation8 + $0x48] sm:$0xff]  }
0x254b   :  { %v9687_v24 = vpop.f32.mrb[156].mxu1  ;;  %v6457_v16 = vsel %vm347_vm1, %v6443_v52, 0.0 }
0x254c   :  { %6458 = vadd.xlane.f32.xlu1 %v6457_v16  ;;  %v6403_v48 = vpop.f32.mrb[157].mxu1  ;;  %v6440_v42 = vadd.f32 %v9687_v24, %v8586_v27  ;;  %v10032_v24 = vld [vmem:[#allocation8 + $0x50] sm:$0xff]   ;;  %v10033_v16 = vld [vmem:[#allocation8 + $0x58] sm:$0xff]  }
0x254d   :  { %v6438_v2 = vadd.f32 %v8586_v27, %v6403_v48  ;;  %v9688_v26 = vpop.f32.mrb[158].mxu1 }
0x254e   :  { %6461 = vadd.xlane.f32.xlu0 %v6460_v44  ;;  %v6406_v8 = vpop.f32.mrb[159].mxu1  ;;  %v6448_v14 = vadd.f32 %v6440_v42, %v12720_v0  ;;  %v6441_v17 = vadd.f32 %v9688_v26, %v8586_v27 }
0x254f   :  { %v6446_v54 = vadd.f32 %v6438_v2, %v12711_v46  ;;  %v6439_v21 = vadd.f32 %v8586_v27, %v6406_v8 }
0x2550   :  { %v6449_v36 = vadd.f32 %v6441_v17, %v13807_v31  ;;  %v6472_v7 = vsel %vm347_vm1, %v6448_v14, 0.0 }
0x2551   :  { %v6447_v25 = vadd.f32 %v6439_v21, %v13806_v63  ;;  %v6466_v11 = vsel %vm347_vm1, %v6446_v54, 0.0 }
0x2552   :  { %6464 = vadd.xlane.f32.xlu0 %v6463_v15  ;;  %6467 = vadd.xlane.f32.xlu1 %v6466_v11  ;;  %v6475_v46 = vsel %vm347_vm1, %v6449_v36, 0.0 }
0x2553   :  { %v6469_v30 = vsel %vm347_vm1, %v6447_v25, 0.0 }
0x2556   :  { %6473 = vadd.xlane.f32.xlu1 %v6472_v7  ;;  %6470 = vadd.xlane.f32.xlu0 %v6469_v30 }
0x255a   :  { %6476 = vadd.xlane.f32.xlu0 %v6475_v46 }
0x25d7   :  { %v6456_v50 = vpop.xlane.xlu0 %6455 }
0x25d8   :  { %v6478_v0 = vmul.f32 0.015625, %v6456_v50 }
0x25d9   :  { %v6459_v38 = vpop.xlane.xlu1 %6458 }
0x25da   :  { %v13269_v4 = vsub.f32 %v6442_v28, %v6478_v0  ;;  %v6479_v47 = vmul.f32 0.015625, %v6459_v38  ;;  %v8589_v0 = vld [vmem:[%s13714_s9 + $0x2] ss:$0 sm:$0xff] }
0x25db   :  { %v6462_v32 = vpop.xlane.xlu0 %6461 }
0x25dc   :  { %v13271_v51 = vsub.f32 %v6443_v52, %v6479_v47  ;;  %v6480_v1 = vmul.f32 0.015625, %v6462_v32  ;;  %v6494_v18 = vmul.f32 %v13269_v4, %v13269_v4  ;;  %v10030_v52 = vld [vmem:[#allocation8 + $0x40] sm:$0xff]  }
0x25dd   :  { %9689 = vmatprep.subr.bf16.mxu0 %v10030_v52 }
0x25de   :  { %v13275_v62 = vsub.f32 %v6444_v53, %v6480_v1  ;;  %v6502_v56 = vsel %vm347_vm1, %v6494_v18, 0.0  ;;  %v6495_v55 = vmul.f32 %v13271_v51, %v13271_v51  ;;  %9690 = vmatpush3.bf16.msra.mxu0 %v10030_v52 }
0x25df   :  { %v6465_v33 = vpop.xlane.xlu0 %6464  ;;  %6503 = vadd.xlane.f32.xlu1 %v6502_v56  ;;  %v6468_v10 = vpop.xlane.xlu1 %6467  ;;  %9691 = vmatprep.subr.bf16.mxu0 %v10031_v57 }
0x25e0   :  { %v6481_v6 = vmul.f32 0.015625, %v6465_v33  ;;  %v6482_v45 = vmul.f32 0.015625, %v6468_v10  ;;  %v6505_v40 = vsel %vm347_vm1, %v6495_v55, 0.0  ;;  %v6496_v22 = vmul.f32 %v13275_v62, %v13275_v62 }
0x25e1   :  { %6506 = vadd.xlane.f32.xlu0 %v6505_v40 }
0x25e2   :  { %v13283_v35 = vsub.f32 %v6445_v29, %v6481_v6  ;;  %v13285_v23 = vsub.f32 %v6446_v54, %v6482_v45  ;;  %v6508_v5 = vsel %vm347_vm1, %v6496_v22, 0.0  ;;  %9692 = vmatpush3.bf16.msra.mxu0 %v10031_v57  ;;  %v13312_v29 = vld [vmem:[%s13718_s13 + $0x80] sm:$0xff]  }
0x25e3   :  { %6509 = vadd.xlane.f32.xlu1 %v6508_v5  ;;  %v6474_v58 = vpop.xlane.xlu1 %6473  ;;  %v6471_v61 = vpop.xlane.xlu0 %6470  ;;  %9693 = vmatprep.subr.bf16.mxu0 %v10032_v24  ;;  %v8590_v6 = vld [vmem:[%s13715_s10 + $0x2] ss:$0 sm:$0xff]  ;;  %s13813_s10 = sld [smem:[#allocation30_spill]] }
0x25e4   :  { %v6484_v3 = vmul.f32 0.015625, %v6474_v58  ;;  %v6483_v39 = vmul.f32 0.015625, %v6471_v61  ;;  %v6498_v34 = vmul.f32 %v13285_v23, %v13285_v23  ;;  %v6497_v41 = vmul.f32 %v13283_v35, %v13283_v35 }
0x25e6   :  { %v13292_v12 = vsub.f32 %v6448_v14, %v6484_v3  ;;  %v13294_v49 = vsub.f32 %v6447_v25, %v6483_v39  ;;  %v6514_v27 = vsel %vm347_vm1, %v6498_v34, 0.0  ;;  %v6511_v19 = vsel %vm347_vm1, %v6497_v41, 0.0  ;;  %9694 = vmatpush3.bf16.msra.mxu0 %v10032_v24  ;;  %v10036_v24 = vld [vmem:[%s13718_s13 + $0x90] sm:$0xff]  }
0x25e7   :  { %6515 = vadd.xlane.f32.xlu1 %v6514_v27  ;;  %6512 = vadd.xlane.f32.xlu0 %v6511_v19  ;;  %v6477_v59 = vpop.xlane.xlu0 %6476 }
0x25e8   :  { %v6485_v37 = vmul.f32 0.015625, %v6477_v59  ;;  %v6500_v9 = vmul.f32 %v13292_v12, %v13292_v12  ;;  %v6499_v43 = vmul.f32 %v13294_v49, %v13294_v49  ;;  %9695 = vmatprep.subr.bf16.mxu0 %v10033_v16 }
0x25ea   :  { %v13302_v20 = vsub.f32 %v6449_v36, %v6485_v37  ;;  %v6520_v28 = vsel %vm347_vm1, %v6500_v9, 0.0  ;;  %v6517_v13 = vsel %vm347_vm1, %v6499_v43, 0.0  ;;  %9696 = vmatpush3.bf16.msra.mxu0 %v10033_v16 }
0x25eb   :  { %6521 = vadd.xlane.f32.xlu1 %v6520_v28  ;;  %6518 = vadd.xlane.f32.xlu0 %v6517_v13 }
0x25ec   :  { %v6501_v60 = vmul.f32 %v13302_v20, %v13302_v20  ;;  %9705 = vmatprep.subr.bf16.mxu0 %v13312_v29 }
0x25ee   :  { %v6523_v53 = vsel %vm347_vm1, %v6501_v60, 0.0 }
0x25ef   :  { %6524 = vadd.xlane.f32.xlu0 %v6523_v53 }
0x266c   :  { %v6504_v48 = vpop.xlane.xlu1 %6503 }
0x266d   :  { %v6526_v42 = vmul.f32 0.015625, %v6504_v48 }
0x266e   :  { %v6507_v2 = vpop.xlane.xlu0 %6506 }
0x266f   :  { %v6534_v26 = vadd.f32 1e-05, %v6526_v42  ;;  %v6527_v44 = vmul.f32 0.015625, %v6507_v2  ;;  %v10038_v42 = vld [vmem:[%s13718_s13 + $0xa0] sm:$0xff]   ;;  %v10039_v2 = vld [vmem:[%s13718_s13 + $0xa8] sm:$0xff]  }
0x2670   :  { %v6510_v8 = vpop.xlane.xlu1 %6509 }
0x2671   :  { %10622 = vrsqrt.f32 %v6534_v26  ;;  %v6535_v54 = vadd.f32 1e-05, %v6527_v44  ;;  %v6528_v21 = vmul.f32 0.015625, %v6510_v8  ;;  %v10040_v26 = vld [vmem:[%s13718_s13 + $0xb0] sm:$0xff]   ;;  %v10041_v44 = vld [vmem:[%s13718_s13 + $0xb8] sm:$0xff]  }
0x2672   :  { %v8592_v8 = vld [vmem:[%s13717_s12 + $0x2] ss:$0 sm:$0xff] }
0x2673   :  { %10624 = vrsqrt.f32 %v6535_v54  ;;  %v6536_v15 = vadd.f32 1e-05, %v6528_v21 }
0x2674   :  { %v6516_v14 = vpop.xlane.xlu1 %6515  ;;  %v6513_v17 = vpop.xlane.xlu0 %6512 }
0x2675   :  { %10626 = vrsqrt.f32 %v6536_v15  ;;  %v6530_v63 = vmul.f32 0.015625, %v6516_v14  ;;  %v6529_v25 = vmul.f32 0.015625, %v6513_v17 }
0x2677   :  { %v6538_v11 = vadd.f32 1e-05, %v6530_v63  ;;  %v6537_v31 = vadd.f32 1e-05, %v6529_v25 }
0x2678   :  { %v6522_v36 = vpop.xlane.xlu1 %6521  ;;  %v6519_v7 = vpop.xlane.xlu0 %6518 }
0x2679   :  { %10628 = vrsqrt.f32 %v6538_v11  ;;  %v6532_v30 = vmul.f32 0.015625, %v6522_v36  ;;  %v6531_v46 = vmul.f32 0.015625, %v6519_v7 }
0x267a   :  { %10630 = vrsqrt.f32 %v6537_v31 }
0x267b   :  { %v10623_v50 = vpop.eup %10622  ;;  %v6540_v38 = vadd.f32 1e-05, %v6532_v30  ;;  %v6539_v47 = vadd.f32 1e-05, %v6531_v46 }
0x267c   :  { %v6550_v32 = vmul.f32 %v10623_v50, %v13269_v4  ;;  %v6525_v1 = vpop.xlane.xlu0 %6524 }
0x267d   :  { %v10625_v18 = vpop.eup %10624  ;;  %10632 = vrsqrt.f32 %v6540_v38  ;;  %v6533_v56 = vmul.f32 0.015625, %v6525_v1 }
0x267e   :  { %v6551_v55 = vmul.f32 %v10625_v18, %v13271_v51  ;;  %10634 = vrsqrt.f32 %v6539_v47  ;;  %v6564_v33 = vmul.f32 %v8589_v0, %v6550_v32 }
0x267f   :  { %v10627_v10 = vpop.eup %10626  ;;  %v6541_v45 = vadd.f32 1e-05, %v6533_v56 }
0x2680   :  { %v6565_v40 = vmul.f32 %v8589_v0, %v6551_v55  ;;  %v6552_v22 = vmul.f32 %v10627_v10, %v13275_v62  ;;  %v13324_v5 = vadd.f32 %v8590_v6, %v6564_v33 }
0x2681   :  { %10636 = vrsqrt.f32 %v6541_v45 }
0x2682   :  { %v13326_v4 = vadd.f32 %v8590_v6, %v6565_v40  ;;  %v6566_v3 = vmul.f32 %v8589_v0, %v6552_v22 }
0x2683   :  { %v10629_v58 = vpop.eup %10628 }
0x2684   :  { %v10631_v61 = vpop.eup %10630  ;;  %v6595_v51 = vpack.c.bf16 %v13326_v4, %v13324_v5  ;;  %v6554_v39 = vmul.f32 %v10629_v58, %v13285_v23  ;;  %v13334_v59 = vadd.f32 %v8590_v6, %v6566_v3  ;;  %v13808_v58 = vmov 0  }
0x2685   :  { %v6553_v34 = vmul.f32 %v10631_v61, %v13283_v35  ;;  %v10035_v35 = vld [vmem:[%s13718_s13 + $0x88] sm:$0xff]   ;;  %v8618_v61 = vld [vmem:[%s13719_s14 + $0x2] ss:$0 sm:$0xff] }
0x2686   :  { %9697 = vmatprep.mubr.msk.bf16.mxu0 %vm347_vm1, %v6595_v51  ;;  %v6568_v43 = vmul.f32 %v8589_v0, %v6554_v39 }
0x2687   :  { %v10633_v41 = vpop.eup %10632  ;;  %v6567_v27 = vmul.f32 %v8589_v0, %v6553_v34 }
0x2688   :  { %v10635_v62 = vpop.eup %10634  ;;  %v6556_v19 = vmul.f32 %v10633_v41, %v13292_v12  ;;  %v13346_v12 = vadd.f32 %v8590_v6, %v6568_v43 }
0x2689   :  { %v13336_v37 = vadd.f32 %v8590_v6, %v6567_v27  ;;  %v6555_v9 = vmul.f32 %v10635_v62, %v13294_v49 }
0x268a   :  { %v6570_v53 = vmul.f32 %v8589_v0, %v6556_v19 }
0x268b   :  { %v10637_v28 = vpop.eup %10636  ;;  %v6596_v23 = vpack.c.bf16 %v13336_v37, %v13334_v59  ;;  %v6569_v13 = vmul.f32 %v8589_v0, %v6555_v9 }
0x268c   :  { %v6557_v60 = vmul.f32 %v10637_v28, %v13302_v20  ;;  %v13356_v16 = vadd.f32 %v8590_v6, %v6570_v53 }
0x268d   :  { %9698 = vmatmul.mubr.msk.bf16.vlgmr.msra.gmra.mrb[128].mxu0 %vm347_vm1, %v6596_v23  ;;  %v13348_v52 = vadd.f32 %v8590_v6, %v6569_v13 }
0x268e   :  { %v6571_v49 = vmul.f32 %v8589_v0, %v6557_v60  ;;  %9706 = vmatpush3.bf16.msra.mxu0 %v13312_v29  ;;  %v10037_v29 = vld [vmem:[%s13718_s13 + $0x98] sm:$0xff]  }
0x268f   :  { %v6597_v57 = vpack.c.bf16 %v13348_v52, %v13346_v12  ;;  %9707 = vmatprep.subr.bf16.mxu0 %v10035_v35 }
0x2690   :  { %v13358_v20 = vadd.f32 %v8590_v6, %v6571_v49 }
0x2691   :  { %9701 = vmatprep.mubr.msk.bf16.mxu0 %vm347_vm1, %v6597_v57 }
0x2692   :  { %v6598_v48 = vpack.c.bf16 %v13358_v20, %v13356_v16  ;;  %9708 = vmatpush3.bf16.msra.mxu0 %v10035_v35 }
0x2693   :  { %9709 = vmatprep.subr.bf16.mxu0 %v10036_v24 }
0x2695   :  { %9702 = vmatmul.mubr.msk.bf16.gmra.mrb[132].mxu0 %vm347_vm1, %v6598_v48 }
0x2696   :  { %9710 = vmatpush3.bf16.msra.mxu0 %v10036_v24 }
0x2697   :  { %9711 = vmatprep.subr.bf16.mxu0 %v10037_v29 }
0x269a   :  { %9712 = vmatpush3.bf16.msra.mxu0 %v10037_v29 }
0x269b   :  { %9713 = vmatprep.subr.bf16.mxu0 %v10038_v42 }
0x269e   :  { %9714 = vmatpush3.bf16.msra.mxu0 %v10038_v42 }
0x269f   :  { %9715 = vmatprep.subr.bf16.mxu0 %v10039_v2 }
0x26a2   :  { %9716 = vmatpush3.bf16.msra.mxu0 %v10039_v2 }
0x26a3   :  { %9717 = vmatprep.subr.bf16.mxu0 %v10040_v26 }
0x26a6   :  { %9718 = vmatpush3.bf16.msra.mxu0 %v10040_v26 }
0x26a7   :  { %9719 = vmatprep.subr.bf16.mxu0 %v10041_v44 }
0x26aa   :  { %9720 = vmatpush3.bf16.msra.mxu0 %v10041_v44 }
0x2760   :  { %v9699_v54 = vpop.f32.mrb[128].mxu0 }
0x2761   :  { %v6686_v21 = vadd.f32 %v9699_v54, %v8592_v8  ;;  %v6677_v15 = vpop.f32.mrb[129].mxu0 }
0x2762   :  { %v6678_v14 = vadd.f32 %v8592_v8, %v6677_v15  ;;  %v9700_v17 = vpop.f32.mrb[130].mxu0 }
0x2763   :  { %v6689_v63 = vadd.f32 %v9700_v17, %v8592_v8  ;;  %v6680_v25 = vpop.f32.mrb[131].mxu0  ;;  %v6710_v31 = vmax.f32 %v6686_v21, 0.0 }
0x2764   :  { %v6681_v11 = vadd.f32 %v8592_v8, %v6680_v25  ;;  %v6708_v7 = vmax.f32 %v6678_v14, 0.0 }
0x2765   :  { %v6711_v36 = vmax.f32 %v6689_v63, 0.0 }
0x2766   :  { %v6709_v30 = vmax.f32 %v6681_v11, 0.0 }
0x2767   :  { %v6734_v46 = vpack.c.bf16 %v6711_v36, %v6710_v31 }
0x2768   :  { %v6733_v50 = vpack.c.bf16 %v6709_v30, %v6708_v7  ;;  %v9703_v0 = vpop.f32.mrb[132].mxu0 }
0x2769   :  { %v6702_v38 = vadd.f32 %v9703_v0, %v8592_v8  ;;  %v6693_v47 = vpop.f32.mrb[133].mxu0 }
0x276a   :  { %v6694_v32 = vadd.f32 %v8592_v8, %v6693_v47  ;;  %v9704_v1 = vpop.f32.mrb[134].mxu0  ;;  %9721 = vmatprep.mubr.bf16.mxu0 %v6733_v50 }
0x276b   :  { %v6705_v18 = vadd.f32 %v9704_v1, %v8592_v8  ;;  %v6696_v56 = vpop.f32.mrb[135].mxu0  ;;  %9722 = vmatmul.mubr.bf16.vlgmr.msra.gmra.mrb[136].mxu0 %v6734_v46  ;;  %v6714_v33 = vmax.f32 %v6702_v38, 0.0 }
0x276c   :  { %v6697_v55 = vadd.f32 %v8592_v8, %v6696_v56  ;;  %v6712_v6 = vmax.f32 %v6694_v32, 0.0 }
0x276d   :  { %v6715_v10 = vmax.f32 %v6705_v18, 0.0 }
0x276e   :  { %v6713_v45 = vmax.f32 %v6697_v55, 0.0 }
0x276f   :  { %v6736_v40 = vpack.c.bf16 %v6715_v10, %v6714_v33 }
0x2770   :  { %v6735_v22 = vpack.c.bf16 %v6713_v45, %v6712_v6 }
0x2772   :  { %9725 = vmatprep.mubr.bf16.mxu0 %v6735_v22 }
0x2773   :  { %9726 = vmatmul.mubr.bf16.gmra.mrb[140].mxu0 %v6736_v40 }
0x2774   :  { %7200 = vmatprep.mubr.bf16.mxu0 %v13808_v58 }
0x283e   :  { %v9723_v51 = vpop.f32.mrb[136].mxu0 }
0x283f   :  { %v6827_v3 = vpop.f32.mrb[137].mxu0  ;;  %v6836_v39 = vadd.f32 %v9723_v51, %v8618_v61 }
0x2840   :  { %v6828_v34 = vadd.f32 %v8618_v61, %v6827_v3  ;;  %v9724_v41 = vpop.f32.mrb[138].mxu0 }
0x2841   :  { %v6830_v27 = vpop.f32.mrb[139].mxu0  ;;  %v6839_v19 = vadd.f32 %v9724_v41, %v8618_v61  ;;  %v6860_v43 = vadd.f32 %v6836_v39, %v13334_v59 }
0x2842   :  { %v6858_v62 = vadd.f32 %v6828_v34, %v13324_v5  ;;  %v6831_v9 = vadd.f32 %v8618_v61, %v6830_v27 }
0x2843   :  { %v6861_v13 = vadd.f32 %v6839_v19, %v13336_v37  ;;  %v6876_v5 = vsel %vm347_vm1, %v6860_v43, 0.0 }
0x2844   :  { %v6859_v28 = vadd.f32 %v6831_v9, %v13326_v4  ;;  %v6870_v23 = vsel %vm347_vm1, %v6858_v62, 0.0 }
0x2845   :  { %6871 = vadd.xlane.f32.xlu1 %v6870_v23  ;;  %v6879_v42 = vsel %vm347_vm1, %v6861_v13, 0.0 }
0x2846   :  { %v9727_v35 = vpop.f32.mrb[140].mxu0  ;;  %v6873_v60 = vsel %vm347_vm1, %v6859_v28, 0.0 }
0x2847   :  { %6874 = vadd.xlane.f32.xlu0 %v6873_v60  ;;  %v6843_v53 = vpop.f32.mrb[141].mxu0  ;;  %v6852_v49 = vadd.f32 %v9727_v35, %v8618_v61 }
0x2848   :  { %v6844_v57 = vadd.f32 %v8618_v61, %v6843_v53  ;;  %v9728_v24 = vpop.f32.mrb[142].mxu0 }
0x2849   :  { %6877 = vadd.xlane.f32.xlu1 %v6876_v5  ;;  %v6846_v48 = vpop.f32.mrb[143].mxu0  ;;  %v6855_v4 = vadd.f32 %v9728_v24, %v8618_v61  ;;  %v6864_v37 = vadd.f32 %v6852_v49, %v13356_v16 }
0x284a   :  { %v6862_v59 = vadd.f32 %v6844_v57, %v13346_v12  ;;  %v6847_v29 = vadd.f32 %v8618_v61, %v6846_v48 }
0x284b   :  { %6880 = vadd.xlane.f32.xlu0 %v6879_v42  ;;  %v6865_v44 = vadd.f32 %v6855_v4, %v13358_v20  ;;  %v6888_v54 = vsel %vm347_vm1, %v6864_v37, 0.0 }
0x284c   :  { %v6863_v2 = vadd.f32 %v6847_v29, %v13348_v52  ;;  %v6882_v26 = vsel %vm347_vm1, %v6862_v59, 0.0 }
0x284d   :  { %6883 = vadd.xlane.f32.xlu1 %v6882_v26  ;;  %v6891_v12 = vsel %vm347_vm1, %v6865_v44, 0.0 }
0x284e   :  { %v6885_v8 = vsel %vm347_vm1, %v6863_v2, 0.0 }
0x284f   :  { %6886 = vadd.xlane.f32.xlu0 %v6885_v8 }
0x2851   :  { %6889 = vadd.xlane.f32.xlu1 %v6888_v54 }
0x2853   :  { %6892 = vadd.xlane.f32.xlu0 %v6891_v12 }
0x28d2   :  { %v6872_v21 = vpop.xlane.xlu1 %6871 }
0x28d3   :  { %v6894_v15 = vmul.f32 0.015625, %v6872_v21  ;;  %v8629_v21 = vld [vmem:[%s13720_s15 + $0x2] ss:$0 sm:$0xff] }
0x28d4   :  { %v6875_v14 = vpop.xlane.xlu0 %6874 }
0x28d5   :  { %v13402_v16 = vsub.f32 %v6858_v62, %v6894_v15  ;;  %v6895_v52 = vmul.f32 0.015625, %v6875_v14 }
0x28d6   :  { %v6878_v17 = vpop.xlane.xlu1 %6877 }
0x28d7   :  { %v13404_v63 = vsub.f32 %v6859_v28, %v6895_v52  ;;  %v6896_v25 = vmul.f32 0.015625, %v6878_v17  ;;  %v6910_v20 = vmul.f32 %v13402_v16, %v13402_v16 }
0x28d8   :  { %v6881_v11 = vpop.xlane.xlu0 %6880 }
0x28d9   :  { %v13408_v31 = vsub.f32 %v6860_v43, %v6896_v25  ;;  %v6897_v36 = vmul.f32 0.015625, %v6881_v11  ;;  %v6918_v7 = vsel %vm347_vm1, %v6910_v20, 0.0  ;;  %v6911_v30 = vmul.f32 %v13404_v63, %v13404_v63 }
0x28da   :  { %6919 = vadd.xlane.f32.xlu1 %v6918_v7  ;;  %v6884_v46 = vpop.xlane.xlu1 %6883  ;;  %v10842_v43 = vmov 0.0   ;;  %v8630_v7 = vld [vmem:[%s13721_s16 + $0x2] ss:$0 sm:$0xff] }
0x28db   :  { %v13413_v50 = vsub.f32 %v6861_v13, %v6897_v36  ;;  %v6898_v0 = vmul.f32 0.015625, %v6884_v46  ;;  %v6921_v38 = vsel %vm347_vm1, %v6911_v30, 0.0  ;;  %v6912_v47 = vmul.f32 %v13408_v31, %v13408_v31  ;;  %9729 = vmatprep.subr.bf16.mxu1 %v10842_v43  ;;  %9737 = vmatprep.mubr.msk.bf16.mxu1 %vm10843_vm3, %v10842_v43 }
0x28dc   :  { %6922 = vadd.xlane.f32.xlu0 %v6921_v38  ;;  %v6887_v32 = vpop.xlane.xlu0 %6886 }
0x28dd   :  { %v13418_v1 = vsub.f32 %v6862_v59, %v6898_v0  ;;  %v6899_v18 = vmul.f32 0.015625, %v6887_v32  ;;  %v6924_v56 = vsel %vm347_vm1, %v6912_v47, 0.0  ;;  %v6913_v55 = vmul.f32 %v13413_v50, %v13413_v50 }
0x28de   :  { %6925 = vadd.xlane.f32.xlu1 %v6924_v56  ;;  %v6890_v33 = vpop.xlane.xlu1 %6889 }
0x28df   :  { %v13423_v10 = vsub.f32 %v6863_v2, %v6899_v18  ;;  %v6900_v6 = vmul.f32 0.015625, %v6890_v33  ;;  %v6927_v45 = vsel %vm347_vm1, %v6913_v55, 0.0  ;;  %v6914_v40 = vmul.f32 %v13418_v1, %v13418_v1 }
0x28e0   :  { %6928 = vadd.xlane.f32.xlu0 %v6927_v45  ;;  %v6893_v22 = vpop.xlane.xlu0 %6892 }
0x28e1   :  { %v13428_v61 = vsub.f32 %v6864_v37, %v6900_v6  ;;  %v6901_v51 = vmul.f32 0.015625, %v6893_v22  ;;  %v6930_v3 = vsel %vm347_vm1, %v6914_v40, 0.0  ;;  %v6915_v39 = vmul.f32 %v13423_v10, %v13423_v10 }
0x28e2   :  { %6931 = vadd.xlane.f32.xlu1 %v6930_v3 }
0x28e3   :  { %v13433_v34 = vsub.f32 %v6865_v44, %v6901_v51  ;;  %v6933_v41 = vsel %vm347_vm1, %v6915_v39, 0.0  ;;  %v6916_v27 = vmul.f32 %v13428_v61, %v13428_v61  ;;  %v13809_v51 = vlaneseq }
0x28e4   :  { %6934 = vadd.xlane.f32.xlu0 %v6933_v41 }
0x28e5   :  { %v6936_v62 = vsel %vm347_vm1, %v6916_v27, 0.0  ;;  %v6917_v19 = vmul.f32 %v13433_v34, %v13433_v34  ;;  %v13462_v3 = vand.u32 127, %v13809_v51 }
0x28e6   :  { %6937 = vadd.xlane.f32.xlu1 %v6936_v62 }
0x28e7   :  { %v6939_v9 = vsel %vm347_vm1, %v6917_v19, 0.0 }
0x28e8   :  { %6940 = vadd.xlane.f32.xlu0 %v6939_v9 }
0x2967   :  { %v6920_v28 = vpop.xlane.xlu1 %6919 }
0x2968   :  { %v6942_v23 = vmul.f32 0.015625, %v6920_v28 }
0x2969   :  { %v6923_v13 = vpop.xlane.xlu0 %6922 }
0x296a   :  { %v6950_v35 = vadd.f32 1e-05, %v6942_v23  ;;  %v6943_v60 = vmul.f32 0.015625, %v6923_v13 }
0x296b   :  { %v6926_v53 = vpop.xlane.xlu1 %6925 }
0x296c   :  { %10638 = vrsqrt.f32 %v6950_v35  ;;  %v6951_v49 = vadd.f32 1e-05, %v6943_v60  ;;  %v6944_v57 = vmul.f32 0.015625, %v6926_v53 }
0x296d   :  { %v6929_v24 = vpop.xlane.xlu0 %6928 }
0x296e   :  { %10640 = vrsqrt.f32 %v6951_v49  ;;  %v6952_v5 = vadd.f32 1e-05, %v6944_v57  ;;  %v6945_v48 = vmul.f32 0.015625, %v6929_v24  ;;  %v10044_v24 = vld [vmem:[#allocation10 + $0x4] ss:$8 sps:$4 sm:$0xff]  }
0x296f   :  { %v6932_v59 = vpop.xlane.xlu1 %6931 }
0x2970   :  { %10642 = vrsqrt.f32 %v6952_v5  ;;  %v6953_v4 = vadd.f32 1e-05, %v6945_v48  ;;  %v6946_v29 = vmul.f32 0.015625, %v6932_v59  ;;  %v10042_v48 = vld [vmem:[#allocation10] ss:$8 sps:$4 sm:$0xff]  }
0x2971   :  { %v6935_v42 = vpop.xlane.xlu0 %6934  ;;  %v10047_v59 = vld [vmem:[#allocation10 + $0x14] ss:$8 sps:$4 sm:$0xff]  }
0x2972   :  { %10644 = vrsqrt.f32 %v6953_v4  ;;  %v6954_v37 = vadd.f32 1e-05, %v6946_v29  ;;  %v6947_v2 = vmul.f32 0.015625, %v6935_v42  ;;  %v10045_v4 = vld [vmem:[#allocation10 + $0x10] ss:$8 sps:$4 sm:$0xff]  }
0x2973   :  { %v6938_v26 = vpop.xlane.xlu1 %6937  ;;  %v10050_v29 = vld [vmem:[#allocation10 + $0x24] ss:$8 sps:$4 sm:$0xff]   ;;  %v10048_v42 = vld [vmem:[#allocation10 + $0x20] ss:$8 sps:$4 sm:$0xff]  }
0x2974   :  { %10646 = vrsqrt.f32 %v6954_v37  ;;  %v6955_v44 = vadd.f32 1e-05, %v6947_v2  ;;  %v6948_v8 = vmul.f32 0.015625, %v6938_v26  ;;  %v10053_v37 = vld [vmem:[#allocation10 + $0x34] ss:$8 sps:$4 sm:$0xff]  }
0x2975   :  { %v6941_v54 = vpop.xlane.xlu0 %6940  ;;  %v10051_v2 = vld [vmem:[#allocation10 + $0x30] ss:$8 sps:$4 sm:$0xff]   ;;  %v10056_v26 = vld [vmem:[#allocation10 + $0x44] ss:$8 sps:$4 sm:$0xff]  }
0x2976   :  { %v10639_v12 = vpop.eup %10638  ;;  %10648 = vrsqrt.f32 %v6955_v44  ;;  %v6956_v15 = vadd.f32 1e-05, %v6948_v8  ;;  %v6949_v14 = vmul.f32 0.015625, %v6941_v54  ;;  %v10054_v44 = vld [vmem:[#allocation10 + $0x40] ss:$8 sps:$4 sm:$0xff]   ;;  %7168 = vmatprep.subr.bf16.mxu0 %v10056_v26 }
0x2977   :  { %v6966_v52 = vmul.f32 %v10639_v12, %v13402_v16  ;;  %7169 = vmatpush1.bf16.msra.mxu0 %v10054_v44  ;;  %v10057_v8 = vld [vmem:[#allocation10 + $0x50] ss:$8 sps:$4 sm:$0xff]   ;;  %v10059_v54 = vld [vmem:[#allocation10 + $0x54] ss:$8 sps:$4 sm:$0xff]   ;;  %v10062_v12 = vld [vmem:[#allocation10 + $0x64] ss:$8 sps:$4 sm:$0xff]  }
0x2978   :  { %v10641_v17 = vpop.eup %10640  ;;  %10650 = vrsqrt.f32 %v6956_v15  ;;  %v6957_v25 = vadd.f32 1e-05, %v6949_v14  ;;  %7170 = vmatprep.subr.bf16.mxu0 %v10059_v54  ;;  %v10065_v15 = vld [vmem:[#allocation10 + $0x74] ss:$8 sps:$4 sm:$0xff]   ;;  %v10063_v14 = vld [vmem:[#allocation10 + $0x70] ss:$8 sps:$4 sm:$0xff]  }
0x2979   :  { %v6980_v20 = vmul.f32 %v8629_v21, %v6966_v52  ;;  %v6967_v11 = vmul.f32 %v10641_v17, %v13404_v63  ;;  %v10087_v26 = vld [vmem:[#allocation10 + $0xf0] ss:$8 sps:$4 sm:$0xff]   ;;  %v10092_v44 = vld [vmem:[#allocation10 + $0x104] ss:$8 sps:$4 sm:$0xff]   ;;  %v10090_v54 = vld [vmem:[#allocation10 + $0x100] ss:$8 sps:$4 sm:$0xff]  }
0x297a   :  { %v10643_v36 = vpop.eup %10642  ;;  %10652 = vrsqrt.f32 %v6957_v25 }
0x297b   :  { %v6981_v30 = vmul.f32 %v8629_v21, %v6967_v11  ;;  %v6968_v46 = vmul.f32 %v10643_v36, %v13408_v31  ;;  %v6994_v38 = vadd.f32 %v8630_v7, %v6980_v20  ;;  %7171 = vmatpush1.bf16.msra.mxu0 %v10057_v8 }
0x297c   :  { %v10645_v0 = vpop.eup %10644  ;;  %7172 = vmatprep.subr.bf16.mxu0 %v10062_v12 }
0x297d   :  { %v6995_v47 = vadd.f32 %v8630_v7, %v6981_v30  ;;  %v6982_v32 = vmul.f32 %v8629_v21, %v6968_v46  ;;  %v6969_v16 = vmul.f32 %v10645_v0, %v13413_v50  ;;  %v13810_v50 = vld [vmem:[#allocation21_spill] sm:$0xff] }
0x297e   :  { %v10647_v18 = vpop.eup %10646  ;;  %v13465_v39 = vmul.u32 8, %v13810_v50  ;;  %v10068_v50 = vld [vmem:[#allocation10 + $0x84] ss:$8 sps:$4 sm:$0xff]  }
0x297f   :  { %v13455_v56 = vpack.c.bf16 %v6995_v47, %v6994_v38  ;;  %v6983_v55 = vmul.f32 %v8629_v21, %v6969_v16  ;;  %v6970_v63 = vmul.f32 %v10647_v18, %v13418_v1  ;;  %v6996_v6 = vadd.f32 %v8630_v7, %v6982_v32 }
0x2980   :  { %v10649_v33 = vpop.eup %10648  ;;  %vm7011_vm4 = vcmp.eq.s32.totalorder %v13462_v3, %v13465_v39  ;;  %v7067_v49 = vadd.s32 1, %v13465_v39  ;;  %v7293_v38 = vadd.s32 2, %v13465_v39  ;;  %v7437_v16 = vadd.s32 3, %v13465_v39 }
0x2981   :  { %v6997_v45 = vadd.f32 %v8630_v7, %v6983_v55  ;;  %v6984_v40 = vmul.f32 %v8629_v21, %v6970_v63  ;;  %v6971_v22 = vmul.f32 %v10649_v33, %v13423_v10  ;;  %9730 = vmatpush3.bf16.msra.mxu1 %v13455_v56  ;;  %v7581_v63 = vadd.s32 4, %v13465_v39 }
0x2982   :  { %v10651_v31 = vpop.eup %10650  ;;  %9731 = vmatprep.subr.bf16.mxu1 %v10842_v43  ;;  %vm7068_vm5 = vcmp.eq.s32.totalorder %v13462_v3, %v7067_v49  ;;  %vm7294_vm6 = vcmp.eq.s32.totalorder %v13462_v3, %v7293_v38  ;;  %vm7438_vm7 = vcmp.eq.s32.totalorder %v13462_v3, %v7437_v16 }
0x2983   :  { %v13467_v41 = vpack.c.bf16 %v6997_v45, %v6996_v6  ;;  %v6985_v1 = vmul.f32 %v8629_v21, %v6971_v22  ;;  %v6972_v27 = vmul.f32 %v10651_v31, %v13428_v61  ;;  %v6998_v19 = vadd.f32 %v8630_v7, %v6984_v40 }
0x2984   :  { %v10653_v62 = vpop.eup %10652  ;;  %v8631_v61 = vsel %vm7011_vm4, 1.0, %v10842_v43  ;;  %v8633_v57 = vsel %vm7068_vm5, 1.0, %v10842_v43  ;;  %v8653_v47 = vsel %vm7294_vm6, 1.0, %v10842_v43  ;;  %v8664_v18 = vsel %vm7438_vm7, 1.0, %v10842_v43 }
0x2985   :  { %v6999_v9 = vadd.f32 %v8630_v7, %v6985_v1  ;;  %v6986_v10 = vmul.f32 %v8629_v21, %v6972_v27  ;;  %v6973_v28 = vmul.f32 %v10653_v62, %v13433_v34  ;;  %9732 = vmatpush3.bf16.msra.mxu1 %v13467_v41  ;;  %v7014_v34 = vpack.c.bf16 %v8631_v61, %v8631_v61  ;;  %v10066_v1 = vld [vmem:[#allocation10 + $0x80] ss:$8 sps:$4 sm:$0xff]   ;;  %v10074_v27 = vld [vmem:[#allocation10 + $0xa4] ss:$8 sps:$4 sm:$0xff]   ;;  %v10077_v62 = vld [vmem:[#allocation10 + $0xb4] ss:$8 sps:$4 sm:$0xff]  }
0x2986   :  { %9733 = vmatprep.subr.bf16.mxu1 %v10842_v43  ;;  %v7071_v5 = vpack.c.bf16 %v8633_v57, %v8633_v57  ;;  %v7297_v32 = vpack.c.bf16 %v8653_v47, %v8653_v47  ;;  %v7441_v55 = vpack.c.bf16 %v8664_v18, %v8664_v18  ;;  %vm7582_vm8 = vcmp.eq.s32.totalorder %v13462_v3, %v7581_v63  ;;  %v10078_v57 = vld [vmem:[#allocation10 + $0xc0] ss:$8 sps:$4 sm:$0xff]   ;;  %v10107_v47 = vld [vmem:[#allocation10 + $0x154] ss:$8 sps:$4 sm:$0xff]   ;;  %v10105_v18 = vld [vmem:[#allocation10 + $0x150] ss:$8 sps:$4 sm:$0xff]  }
0x2987   :  { %v13475_v23 = vpack.c.bf16 %v6999_v9, %v6998_v19  ;;  %v6987_v13 = vmul.f32 %v8629_v21, %v6973_v28  ;;  %v7000_v35 = vadd.f32 %v8630_v7, %v6986_v10  ;;  %v10060_v21 = vld [vmem:[#allocation10 + $0x60] ss:$8 sps:$4 sm:$0xff]   ;;  %v8675_v33 = vsel %vm7582_vm8, 1.0, %v10842_v43  ;;  %v10075_v19 = vld [vmem:[#allocation10 + $0xb0] ss:$8 sps:$4 sm:$0xff]  }
0x2988   :  { %7173 = vmatpush1.bf16.msra.mxu0 %v10060_v21  ;;  %v7585_v6 = vpack.c.bf16 %v8675_v33, %v8675_v33  ;;  %v7725_v45 = vadd.s32 5, %v13465_v39  ;;  %v7869_v31 = vadd.s32 6, %v13465_v39  ;;  %v10071_v39 = vld [vmem:[#allocation10 + $0x94] ss:$8 sps:$4 sm:$0xff]   ;;  %v10108_v63 = vld [vmem:[#allocation10 + $0x160] ss:$8 sps:$4 sm:$0xff]  }
0x2989   :  { %v7001_v60 = vadd.f32 %v8630_v7, %v6987_v13  ;;  %9734 = vmatpush3.bf16.msra.mxu1 %v13475_v23  ;;  %7174 = vmatprep.subr.bf16.mxu0 %v10065_v15  ;;  %v10095_v15 = vld [vmem:[#allocation10 + $0x114] ss:$8 sps:$4 sm:$0xff]  }
0x298a   :  { %9735 = vmatprep.subr.bf16.mxu1 %v10842_v43  ;;  %vm7726_vm9 = vcmp.eq.s32.totalorder %v13462_v3, %v7725_v45  ;;  %vm7870_vm10 = vcmp.eq.s32.totalorder %v13462_v3, %v7869_v31  ;;  %v10072_v3 = vld [vmem:[#allocation10 + $0xa0] ss:$8 sps:$4 sm:$0xff]   ;;  %v10113_v33 = vld [vmem:[#allocation10 + $0x174] ss:$8 sps:$4 sm:$0xff]   ;;  %v10116_v45 = vld [vmem:[#allocation10 + $0x184] ss:$8 sps:$4 sm:$0xff]  }
0x298b   :  { %v13480_v53 = vpack.c.bf16 %v7001_v60, %v7000_v35  ;;  %v8686_v40 = vsel %vm7726_vm9, 1.0, %v10842_v43  ;;  %v8697_v51 = vsel %vm7870_vm10, 1.0, %v10842_v43 }
0x298c   :  { %7175 = vmatpush1.bf16.msra.mxu0 %v10063_v14  ;;  %v7729_v22 = vpack.c.bf16 %v8686_v40, %v8686_v40 }
0x298d   :  { %9736 = vmatpush3.bf16.msra.mxu1 %v13480_v53  ;;  %9753 = vmatprep.subr.bf16.mxu0 %v10842_v43 }
0x298e   :  { %9741 = vmatprep.subr.bf16.mxu1 %v10842_v43 }
0x2990   :  { %9738 = vmatmul.mubr.msk.bf16.vlgmr.msra.gmra.mrb[176].mxu1 %vm347_vm1, %v7014_v34 }
0x2991   :  { %9742 = vmatpush3.bf16.msra.mxu1 %v13455_v56  ;;  %9749 = vmatprep.mubr.msk.bf16.mxu1 %vm10843_vm3, %v10842_v43 }
0x2992   :  { %9743 = vmatprep.subr.bf16.mxu1 %v10842_v43 }
0x2995   :  { %9744 = vmatpush3.bf16.msra.mxu1 %v13467_v41 }
0x2996   :  { %9745 = vmatprep.subr.bf16.mxu1 %v10842_v43 }
0x2999   :  { %9746 = vmatpush3.bf16.msra.mxu1 %v13475_v23 }
0x299a   :  { %9747 = vmatprep.subr.bf16.mxu1 %v10842_v43 }
0x299d   :  { %9748 = vmatpush3.bf16.msra.mxu1 %v13480_v53 }
0x299e   :  { %7252 = vmatprep.subr.bf16.mxu1 %v10044_v24 }
0x29a0   :  { %9750 = vmatmul.mubr.msk.bf16.vlgmr.msra.gmra.mrb[180].mxu1 %vm347_vm1, %v7071_v5 }
0x29a1   :  { %7253 = vmatpush1.bf16.msra.mxu1 %v10042_v48  ;;  %7284 = vmatprep.mubr.bf16.mxu1 %v13808_v58  ;;  %v10083_v48 = vld [vmem:[#allocation10 + $0xd4] ss:$8 sps:$4 sm:$0xff]  }
0x29a2   :  { %7254 = vmatprep.subr.bf16.mxu1 %v10047_v59 }
0x29a5   :  { %7255 = vmatpush1.bf16.msra.mxu1 %v10045_v4 }
0x29a6   :  { %7256 = vmatprep.subr.bf16.mxu1 %v10050_v29  ;;  %v10081_v29 = vld [vmem:[#allocation10 + $0xd0] ss:$8 sps:$4 sm:$0xff]  }
0x29a9   :  { %7257 = vmatpush1.bf16.msra.mxu1 %v10048_v42  ;;  %v10086_v42 = vld [vmem:[#allocation10 + $0xe4] ss:$8 sps:$4 sm:$0xff]  }
0x29aa   :  { %7258 = vmatprep.subr.bf16.mxu1 %v10053_v37  ;;  %v10084_v37 = vld [vmem:[#allocation10 + $0xe0] ss:$8 sps:$4 sm:$0xff]  }
0x29ad   :  { %7259 = vmatpush1.bf16.msra.mxu1 %v10051_v2  ;;  %v10089_v2 = vld [vmem:[#allocation10 + $0xf4] ss:$8 sps:$4 sm:$0xff]  }
0x29ae   :  { %7394 = vmatprep.subr.bf16.mxu1 %v10068_v50 }
0x2a63   :  { %v7052_v52 = vpop.f32.mrb[176].mxu1 }
0x2a64   :  { %v7066_v17 = vpack.c.bf16 %v7052_v52, %v7052_v52  ;;  %v9739_v25 = vpop.f32.mrb[177].mxu1 }
0x2a65   :  { %v7055_v20 = vpop.f32.mrb[178].mxu1  ;;  %v10098_v25 = vld [vmem:[#allocation10 + $0x124] ss:$8 sps:$4 sm:$0xff]  }
0x2a66   :  { %v9740_v11 = vpop.f32.mrb[179].mxu1  ;;  %8652 = vmatmul.mubr.msk.bf16.vlgmr.msra.gmra.mrb[184].mxu1 %vm347_vm1, %v7066_v17  ;;  %v10093_v17 = vld [vmem:[#allocation10 + $0x110] ss:$8 sps:$4 sm:$0xff]   ;;  %v10096_v20 = vld [vmem:[#allocation10 + $0x120] ss:$8 sps:$4 sm:$0xff]  }
0x2a67   :  { %7426 = vmatprep.mubr.bf16.mxu1 %v13808_v58  ;;  %7395 = vmatpush1.bf16.msra.mxu1 %v10066_v1  ;;  %v10101_v11 = vld [vmem:[#allocation10 + $0x134] ss:$8 sps:$4 sm:$0xff]  }
0x2a68   :  { %7396 = vmatprep.subr.bf16.mxu1 %v10071_v39  ;;  %v10117_v39 = vld [vmem:[#allocation10 + $0x190] ss:$8 sps:$4 sm:$0xff]  }
0x2a73   :  { %v7109_v36 = vpop.f32.mrb[180].mxu1 }
0x2a74   :  { %v7124_v7 = vpack.c.bf16 %v7109_v36, %v7109_v36  ;;  %v9751_v30 = vpop.f32.mrb[181].mxu1  ;;  %v10099_v36 = vld [vmem:[#allocation10 + $0x130] ss:$8 sps:$4 sm:$0xff]  }
0x2a75   :  { %v7112_v46 = vpop.f32.mrb[182].mxu1 }
0x2a76   :  { %v9752_v0 = vpop.f32.mrb[183].mxu1  ;;  %8643 = vmatmul.mubr.msk.bf16.vlgmr.msra.gmra.mrb[144].mxu0 %vm347_vm1, %v7124_v7  ;;  %v10104_v7 = vld [vmem:[#allocation10 + $0x144] ss:$8 sps:$4 sm:$0xff]   ;;  %v10102_v46 = vld [vmem:[#allocation10 + $0x140] ss:$8 sps:$4 sm:$0xff]  }
0x2a77   :  { %9754 = vmatpush3.bf16.msra.mxu0 %v13455_v56  ;;  %9761 = vmatprep.mubr.msk.bf16.mxu0 %vm10843_vm3, %v10842_v43 }
0x2a78   :  { %9755 = vmatprep.subr.bf16.mxu0 %v10842_v43 }
0x2a7b   :  { %9756 = vmatpush3.bf16.msra.mxu0 %v13467_v41 }
0x2a7c   :  { %9757 = vmatprep.subr.bf16.mxu0 %v10842_v43 }
0x2a7f   :  { %9758 = vmatpush3.bf16.msra.mxu0 %v13475_v23 }
0x2a80   :  { %9759 = vmatprep.subr.bf16.mxu0 %v10842_v43 }
0x2a83   :  { %9760 = vmatpush3.bf16.msra.mxu0 %v13480_v53 }
0x2a84   :  { %9765 = vmatprep.subr.bf16.mxu0 %v10842_v43 }
0x2a86   :  { %9762 = vmatmul.mubr.msk.bf16.vlgmr.msra.gmra.mrb[148].mxu0 %vm347_vm1, %v7297_v32 }
0x2a87   :  { %9766 = vmatpush3.bf16.msra.mxu0 %v13455_v56  ;;  %9773 = vmatprep.mubr.msk.bf16.mxu0 %vm10843_vm3, %v10842_v43 }
0x2a88   :  { %9767 = vmatprep.subr.bf16.mxu0 %v10842_v43 }
0x2a8b   :  { %9768 = vmatpush3.bf16.msra.mxu0 %v13467_v41 }
0x2a8c   :  { %9769 = vmatprep.subr.bf16.mxu0 %v10842_v43 }
0x2a8f   :  { %9770 = vmatpush3.bf16.msra.mxu0 %v13475_v23 }
0x2a90   :  { %9771 = vmatprep.subr.bf16.mxu0 %v10842_v43 }
0x2a93   :  { %9772 = vmatpush3.bf16.msra.mxu0 %v13480_v53 }
0x2a94   :  { %9777 = vmatprep.subr.bf16.mxu0 %v10842_v43 }
0x2a96   :  { %9774 = vmatmul.mubr.msk.bf16.vlgmr.msra.gmra.mrb[152].mxu0 %vm347_vm1, %v7441_v55  ;;  %v10110_v55 = vld [vmem:[#allocation10 + $0x164] ss:$8 sps:$4 sm:$0xff]  }
0x2a97   :  { %9778 = vmatpush3.bf16.msra.mxu0 %v13455_v56  ;;  %9785 = vmatprep.mubr.msk.bf16.mxu0 %vm10843_vm3, %v10842_v43 }
0x2a98   :  { %9779 = vmatprep.subr.bf16.mxu0 %v10842_v43 }
0x2a9b   :  { %9780 = vmatpush3.bf16.msra.mxu0 %v13467_v41 }
0x2a9c   :  { %9781 = vmatprep.subr.bf16.mxu0 %v10842_v43 }
0x2a9f   :  { %9782 = vmatpush3.bf16.msra.mxu0 %v13475_v23 }
0x2aa0   :  { %9783 = vmatprep.subr.bf16.mxu0 %v10842_v43 }
0x2aa3   :  { %9784 = vmatpush3.bf16.msra.mxu0 %v13480_v53 }
0x2aa4   :  { %9789 = vmatprep.subr.bf16.mxu0 %v10842_v43 }
0x2aa6   :  { %9786 = vmatmul.mubr.msk.bf16.vlgmr.msra.gmra.mrb[156].mxu0 %vm347_vm1, %v7585_v6  ;;  %v10111_v6 = vld [vmem:[#allocation10 + $0x170] ss:$8 sps:$4 sm:$0xff]  }
0x2aa7   :  { %9790 = vmatpush3.bf16.msra.mxu0 %v13455_v56  ;;  %9797 = vmatprep.mubr.msk.bf16.mxu0 %vm10843_vm3, %v10842_v43 }
0x2aa8   :  { %9791 = vmatprep.subr.bf16.mxu0 %v10842_v43 }
0x2aab   :  { %9792 = vmatpush3.bf16.msra.mxu0 %v13467_v41 }
0x2aac   :  { %9793 = vmatprep.subr.bf16.mxu0 %v10842_v43 }
0x2aaf   :  { %9794 = vmatpush3.bf16.msra.mxu0 %v13475_v23 }
0x2ab0   :  { %9795 = vmatprep.subr.bf16.mxu0 %v10842_v43 }
0x2ab3   :  { %9796 = vmatpush3.bf16.msra.mxu0 %v13480_v53 }
0x2ab4   :  { %9801 = vmatprep.subr.bf16.mxu0 %v10842_v43 }
0x2ab6   :  { %9798 = vmatmul.mubr.msk.bf16.vlgmr.msra.gmra.mrb[160].mxu0 %vm347_vm1, %v7729_v22  ;;  %v10114_v22 = vld [vmem:[#allocation10 + $0x180] ss:$8 sps:$4 sm:$0xff]  }
0x2ab7   :  { %9802 = vmatpush3.bf16.msra.mxu0 %v13455_v56  ;;  %9809 = vmatprep.mubr.msk.bf16.mxu0 %vm10843_vm3, %v10842_v43  ;;  %v7873_v56 = vpack.c.bf16 %v8697_v51, %v8697_v51 }
0x2ab8   :  { %9803 = vmatprep.subr.bf16.mxu0 %v10842_v43 }
0x2abb   :  { %9804 = vmatpush3.bf16.msra.mxu0 %v13467_v41  ;;  %v10069_v41 = vld [vmem:[#allocation10 + $0x90] ss:$8 sps:$4 sm:$0xff]  }
0x2abc   :  { %9805 = vmatprep.subr.bf16.mxu0 %v10842_v43  ;;  %7397 = vmatpush1.bf16.msra.mxu1 %v10069_v41  ;;  %v10122_v41 = vld [vmem:[#allocation10 + $0x1a4] ss:$8 sps:$4 sm:$0xff]  }
0x2abd   :  { %7398 = vmatprep.subr.bf16.mxu1 %v10074_v27  ;;  %v10120_v27 = vld [vmem:[#allocation10 + $0x1a0] ss:$8 sps:$4 sm:$0xff]  }
0x2abf   :  { %9806 = vmatpush3.bf16.msra.mxu0 %v13475_v23 }
0x2ac0   :  { %9807 = vmatprep.subr.bf16.mxu0 %v10842_v43  ;;  %7399 = vmatpush1.bf16.msra.mxu1 %v10072_v3  ;;  %v10080_v43 = vld [vmem:[#allocation10 + $0xc4] ss:$8 sps:$4 sm:$0xff]   ;;  %v10125_v3 = vld [vmem:[#allocation10 + $0x1b4] ss:$8 sps:$4 sm:$0xff]  }
0x2ac1   :  { %7400 = vmatprep.subr.bf16.mxu1 %v10077_v62  ;;  %v10123_v62 = vld [vmem:[#allocation10 + $0x1b0] ss:$8 sps:$4 sm:$0xff]  }
0x2ac3   :  { %9808 = vmatpush3.bf16.msra.mxu0 %v13480_v53 }
0x2ac4   :  { %7401 = vmatpush1.bf16.msra.mxu1 %v10075_v19 }
0x2ac5   :  { %7538 = vmatprep.subr.bf16.mxu1 %v10080_v43 }
0x2ac6   :  { %9810 = vmatmul.mubr.msk.bf16.vlgmr.msra.gmra.mrb[164].mxu0 %vm347_vm1, %v7873_v56  ;;  %v10119_v56 = vld [vmem:[#allocation10 + $0x194] ss:$8 sps:$4 sm:$0xff]  }
0x2b39   :  { %v7286_v9 = vpop.f32.mrb[184].mxu1 }
0x2b3a   :  { %v7288_v10 = vpop.f32.mrb[185].mxu1 }
0x2b3b   :  { %v7290_v28 = vpop.f32.mrb[186].mxu1 }
0x2b3c   :  { %v7291_v23 = vpop.f32.mrb[187].mxu1 }
0x2b3d   :  { %v10128_v23 = vld [vmem:[%s13724_s19 + $0x4] ss:$8 sps:$4 sm:$0xff]  }
0x2b3e   :  { %8235 = vmatprep.subr.bf16.mxu0 %v10128_v23 }
0x2b49   :  { %v7202_v13 = vpop.f32.mrb[144].mxu0 }
0x2b4a   :  { %v13572_v35 = vadd.f32 %v7286_v9, %v7202_v13  ;;  %v7204_v60 = vpop.f32.mrb[145].mxu0  ;;  %v10131_v13 = vld [vmem:[%s13724_s19 + $0x14] ss:$8 sps:$4 sm:$0xff]  }
0x2b4b   :  { %v13574_v61 = vadd.f32 %v7288_v10, %v7204_v60  ;;  %v7206_v53 = vpop.f32.mrb[146].mxu0  ;;  %v10129_v60 = vld [vmem:[%s13724_s19 + $0x10] ss:$8 sps:$4 sm:$0xff]  }
0x2b4c   :  { %v7207_v34 = vpop.f32.mrb[147].mxu0  ;;  %v10134_v53 = vld [vmem:[%s13724_s19 + $0x24] ss:$8 sps:$4 sm:$0xff]  }
0x2b4d   :  { %v10132_v34 = vld [vmem:[%s13724_s19 + $0x20] ss:$8 sps:$4 sm:$0xff]  }
0x2b59   :  { %v7335_v49 = vpop.f32.mrb[148].mxu0 }
0x2b5a   :  { %v7350_v24 = vpack.c.bf16 %v7335_v49, %v7335_v49  ;;  %v9763_v5 = vpop.f32.mrb[149].mxu0  ;;  %v10137_v49 = vld [vmem:[%s13724_s19 + $0x34] ss:$8 sps:$4 sm:$0xff]  }
0x2b5b   :  { %v7338_v59 = vpop.f32.mrb[150].mxu0  ;;  %v10138_v5 = vld [vmem:[%s13724_s19 + $0x40] ss:$8 sps:$4 sm:$0xff]  }
0x2b5c   :  { %v9764_v4 = vpop.f32.mrb[151].mxu0  ;;  %8663 = vmatmul.mubr.msk.bf16.vlgmr.msra.gmra.mrb[188].mxu1 %vm347_vm1, %v7350_v24  ;;  %v10140_v24 = vld [vmem:[%s13724_s19 + $0x44] ss:$8 sps:$4 sm:$0xff]   ;;  %v10141_v59 = vld [vmem:[%s13724_s19 + $0x50] ss:$8 sps:$4 sm:$0xff]  }
0x2b5d   :  { %7539 = vmatpush1.bf16.msra.mxu1 %v10078_v57  ;;  %7570 = vmatprep.mubr.bf16.mxu1 %v13808_v58  ;;  %v10135_v57 = vld [vmem:[%s13724_s19 + $0x30] ss:$8 sps:$4 sm:$0xff]   ;;  %v10146_v4 = vld [vmem:[%s13724_s19 + $0x64] ss:$8 sps:$4 sm:$0xff]  }
0x2b5e   :  { %7540 = vmatprep.subr.bf16.mxu1 %v10083_v48  ;;  %v10143_v48 = vld [vmem:[%s13724_s19 + $0x54] ss:$8 sps:$4 sm:$0xff]  }
0x2b61   :  { %7541 = vmatpush1.bf16.msra.mxu1 %v10081_v29  ;;  %v10144_v29 = vld [vmem:[%s13724_s19 + $0x60] ss:$8 sps:$4 sm:$0xff]  }
0x2b62   :  { %7542 = vmatprep.subr.bf16.mxu1 %v10086_v42  ;;  %v10149_v42 = vld [vmem:[%s13724_s19 + $0x74] ss:$8 sps:$4 sm:$0xff]  }
0x2b65   :  { %7543 = vmatpush1.bf16.msra.mxu1 %v10084_v37  ;;  %v10147_v37 = vld [vmem:[%s13724_s19 + $0x70] ss:$8 sps:$4 sm:$0xff]  }
0x2b66   :  { %7544 = vmatprep.subr.bf16.mxu1 %v10089_v2  ;;  %v10152_v2 = vld [vmem:[%s13724_s19 + $0x84] ss:$8 sps:$4 sm:$0xff]  }
0x2b69   :  { %v7479_v8 = vpop.f32.mrb[152].mxu0  ;;  %7545 = vmatpush1.bf16.msra.mxu1 %v10087_v26  ;;  %v10150_v26 = vld [vmem:[%s13724_s19 + $0x80] ss:$8 sps:$4 sm:$0xff]  }
0x2b6a   :  { %v7494_v12 = vpack.c.bf16 %v7479_v8, %v7479_v8  ;;  %v9775_v21 = vpop.f32.mrb[153].mxu0  ;;  %7682 = vmatprep.subr.bf16.mxu1 %v10092_v44  ;;  %v10155_v44 = vld [vmem:[%s13724_s19 + $0x94] ss:$8 sps:$4 sm:$0xff]   ;;  %v10153_v8 = vld [vmem:[%s13724_s19 + $0x90] ss:$8 sps:$4 sm:$0xff]  }
0x2b6b   :  { %v7482_v14 = vpop.f32.mrb[154].mxu0  ;;  %v10161_v21 = vld [vmem:[%s13724_s19 + $0xb4] ss:$8 sps:$4 sm:$0xff]  }
0x2b6c   :  { %v9776_v52 = vpop.f32.mrb[155].mxu0  ;;  %8674 = vmatmul.mubr.msk.bf16.vlgmr.msra.gmra.mrb[192].mxu1 %vm347_vm1, %v7494_v12  ;;  %v10156_v12 = vld [vmem:[%s13724_s19 + $0xa0] ss:$8 sps:$4 sm:$0xff]   ;;  %v10164_v14 = vld [vmem:[%s13724_s19 + $0xc4] ss:$8 sps:$4 sm:$0xff]  }
0x2b6d   :  { %7683 = vmatpush1.bf16.msra.mxu1 %v10090_v54  ;;  %7714 = vmatprep.mubr.bf16.mxu1 %v13808_v58  ;;  %v10158_v54 = vld [vmem:[%s13724_s19 + $0xa4] ss:$8 sps:$4 sm:$0xff]   ;;  %v10162_v52 = vld [vmem:[%s13724_s19 + $0xc0] ss:$8 sps:$4 sm:$0xff]  }
0x2b6e   :  { %7684 = vmatprep.subr.bf16.mxu1 %v10095_v15  ;;  %v10159_v15 = vld [vmem:[%s13724_s19 + $0xb0] ss:$8 sps:$4 sm:$0xff]  }
0x2b71   :  { %7685 = vmatpush1.bf16.msra.mxu1 %v10093_v17  ;;  %v10167_v17 = vld [vmem:[%s13724_s19 + $0xd4] ss:$8 sps:$4 sm:$0xff]  }
0x2b72   :  { %7686 = vmatprep.subr.bf16.mxu1 %v10098_v25  ;;  %v10165_v25 = vld [vmem:[%s13724_s19 + $0xd0] ss:$8 sps:$4 sm:$0xff]  }
0x2b75   :  { %7687 = vmatpush1.bf16.msra.mxu1 %v10096_v20  ;;  %v10170_v20 = vld [vmem:[%s13724_s19 + $0xe4] ss:$8 sps:$4 sm:$0xff]  }
0x2b76   :  { %7688 = vmatprep.subr.bf16.mxu1 %v10101_v11  ;;  %v10168_v11 = vld [vmem:[%s13724_s19 + $0xe0] ss:$8 sps:$4 sm:$0xff]  }
0x2b79   :  { %v7623_v30 = vpop.f32.mrb[156].mxu0  ;;  %7689 = vmatpush1.bf16.msra.mxu1 %v10099_v36  ;;  %v10173_v36 = vld [vmem:[%s13724_s19 + $0xf4] ss:$8 sps:$4 sm:$0xff]  }
0x2b7a   :  { %v7638_v0 = vpack.c.bf16 %v7623_v30, %v7623_v30  ;;  %v9787_v38 = vpop.f32.mrb[157].mxu0  ;;  %7826 = vmatprep.subr.bf16.mxu1 %v10104_v7  ;;  %v10171_v7 = vld [vmem:[%s13724_s19 + $0xf0] ss:$8 sps:$4 sm:$0xff]  }
0x2b7b   :  { %v7626_v32 = vpop.f32.mrb[158].mxu0 }
0x2b7c   :  { %v9788_v16 = vpop.f32.mrb[159].mxu0  ;;  %8685 = vmatmul.mubr.msk.bf16.vlgmr.msra.gmra.mrb[196].mxu1 %vm347_vm1, %v7638_v0 }
0x2b7d   :  { %7827 = vmatpush1.bf16.msra.mxu1 %v10102_v46  ;;  %7858 = vmatprep.mubr.bf16.mxu1 %v13808_v58 }
0x2b7e   :  { %7828 = vmatprep.subr.bf16.mxu1 %v10107_v47 }
0x2b81   :  { %7829 = vmatpush1.bf16.msra.mxu1 %v10105_v18 }
0x2b82   :  { %7830 = vmatprep.subr.bf16.mxu1 %v10110_v55 }
0x2b85   :  { %7831 = vmatpush1.bf16.msra.mxu1 %v10108_v63 }
0x2b86   :  { %7832 = vmatprep.subr.bf16.mxu1 %v10113_v33 }
0x2b89   :  { %v7767_v40 = vpop.f32.mrb[160].mxu0  ;;  %7833 = vmatpush1.bf16.msra.mxu1 %v10111_v6 }
0x2b8a   :  { %v7782_v31 = vpack.c.bf16 %v7767_v40, %v7767_v40  ;;  %v9799_v51 = vpop.f32.mrb[161].mxu0  ;;  %7970 = vmatprep.subr.bf16.mxu1 %v10116_v45 }
0x2b8b   :  { %v7770_v50 = vpop.f32.mrb[162].mxu0 }
0x2b8c   :  { %v9800_v1 = vpop.f32.mrb[163].mxu0  ;;  %8696 = vmatmul.mubr.msk.bf16.vlgmr.msra.gmra.mrb[200].mxu1 %vm347_vm1, %v7782_v31 }
0x2b8d   :  { %7971 = vmatpush1.bf16.msra.mxu1 %v10114_v22  ;;  %8002 = vmatprep.mubr.bf16.mxu1 %v13808_v58  ;;  %v10126_v58 = vld [vmem:[%s13724_s19] ss:$8 sps:$4 sm:$0xff]  }
0x2b8e   :  { %7972 = vmatprep.subr.bf16.mxu1 %v10119_v56  ;;  %8236 = vmatpush1.bf16.msra.mxu0 %v10126_v58 }
0x2b8f   :  { %8237 = vmatprep.subr.bf16.mxu0 %v10131_v13 }
0x2b91   :  { %7973 = vmatpush1.bf16.msra.mxu1 %v10117_v39 }
0x2b92   :  { %7974 = vmatprep.subr.bf16.mxu1 %v10122_v41  ;;  %8238 = vmatpush1.bf16.msra.mxu0 %v10129_v60 }
0x2b93   :  { %8239 = vmatprep.subr.bf16.mxu0 %v10134_v53 }
0x2b95   :  { %7975 = vmatpush1.bf16.msra.mxu1 %v10120_v27  ;;  %v8013_v27 = vld [vmem:[%s13723_s18] sm:$0x3] }
0x2b96   :  { %7976 = vmatprep.subr.bf16.mxu1 %v10125_v3  ;;  %8240 = vmatpush1.bf16.msra.mxu0 %v10132_v34  ;;  %v13811_v3 = vld [vmem:[#allocation22_spill] sm:$0xff] }
0x2b97   :  { %8241 = vmatprep.subr.bf16.mxu0 %v10137_v49 }
0x2b99   :  { %v7911_v19 = vpop.f32.mrb[164].mxu0  ;;  %7977 = vmatpush1.bf16.msra.mxu1 %v10123_v62  ;;  %v8018_v62 = vrot.slane %v8013_v27, %v13811_v3 }
0x2b9a   :  { %v7926_v43 = vpack.c.bf16 %v7911_v19, %v7911_v19  ;;  %v9811_v9 = vpop.f32.mrb[165].mxu0  ;;  %8242 = vmatpush1.bf16.msra.mxu0 %v10135_v57 }
0x2b9b   :  { %v7914_v10 = vpop.f32.mrb[166].mxu0  ;;  %8243 = vmatprep.subr.bf16.mxu0 %v10140_v24 }
0x2b9c   :  { %v9812_v28 = vpop.f32.mrb[167].mxu0  ;;  %8707 = vmatmul.mubr.msk.bf16.vlgmr.msra.gmra.mrb[204].mxu1 %vm347_vm1, %v7926_v43  ;;  %v13812_v43 = vld [vmem:[#allocation23_spill] sm:$0xff] }
0x2b9d   :  { %v8022_v9 = vrot.slane %v8013_v27, %v13812_v43 }
0x2b9e   :  { %8244 = vmatpush1.bf16.msra.mxu0 %v10138_v5  ;;  %v8063_v5 = vld [vmem:[%s13813_s10] sm:$0x3] }
0x2b9f   :  { %8245 = vmatprep.subr.bf16.mxu0 %v10143_v48  ;;  %v8068_v48 = vrot.slane %v8063_v5, %v13811_v3 }
0x2ba2   :  { %8246 = vmatpush1.bf16.msra.mxu0 %v10141_v59  ;;  %v8072_v59 = vrot.slane %v8063_v5, %v13812_v43 }
0x2ba3   :  { %8247 = vmatprep.subr.bf16.mxu0 %v10146_v4 }
0x2ba6   :  { %8248 = vmatpush1.bf16.msra.mxu0 %v10144_v29 }
0x2ba7   :  { %8249 = vmatprep.subr.bf16.mxu0 %v10149_v42 }
0x2baa   :  { %8250 = vmatpush1.bf16.msra.mxu0 %v10147_v37 }
0x2bab   :  { %8251 = vmatprep.subr.bf16.mxu0 %v10152_v2 }
0x2bae   :  { %8252 = vmatpush1.bf16.msra.mxu0 %v10150_v26 }
0x2baf   :  { %8253 = vmatprep.subr.bf16.mxu0 %v10155_v44 }
0x2bb2   :  { %8254 = vmatpush1.bf16.msra.mxu0 %v10153_v8 }
0x2bb3   :  { %8255 = vmatprep.subr.bf16.mxu0 %v10158_v54 }
0x2bb6   :  { %8256 = vmatpush1.bf16.msra.mxu0 %v10156_v12 }
0x2bb7   :  { %8257 = vmatprep.subr.bf16.mxu0 %v10161_v21 }
0x2bba   :  { %8258 = vmatpush1.bf16.msra.mxu0 %v10159_v15 }
0x2bbb   :  { %8259 = vmatprep.subr.bf16.mxu0 %v10164_v14 }
0x2bbe   :  { %8260 = vmatpush1.bf16.msra.mxu0 %v10162_v52 }
0x2bbf   :  { %8261 = vmatprep.subr.bf16.mxu0 %v10167_v17 }
0x2bc2   :  { %8262 = vmatpush1.bf16.msra.mxu0 %v10165_v25 }
0x2bc3   :  { %8263 = vmatprep.subr.bf16.mxu0 %v10170_v20 }
0x2bc6   :  { %8264 = vmatpush1.bf16.msra.mxu0 %v10168_v11 }
0x2bc7   :  { %8265 = vmatprep.subr.bf16.mxu0 %v10173_v36 }
0x2bca   :  { %8266 = vmatpush1.bf16.msra.mxu0 %v10171_v7 }
0x2c2f   :  { %v7428_v30 = vpop.f32.mrb[188].mxu1 }
0x2c30   :  { %v7435_v46 = vadd.f32 %v7428_v30, %v13572_v35  ;;  %v7430_v0 = vpop.f32.mrb[189].mxu1 }
0x2c31   :  { %v7436_v38 = vadd.f32 %v7430_v0, %v13574_v61  ;;  %v7432_v47 = vpop.f32.mrb[190].mxu1 }
0x2c32   :  { %v7433_v32 = vpop.f32.mrb[191].mxu1 }
0x2c3f   :  { %v7572_v16 = vpop.f32.mrb[192].mxu1 }
0x2c40   :  { %v7579_v18 = vadd.f32 %v7572_v16, %v7435_v46  ;;  %v7574_v55 = vpop.f32.mrb[193].mxu1 }
0x2c41   :  { %v7580_v63 = vadd.f32 %v7574_v55, %v7436_v38  ;;  %v7576_v33 = vpop.f32.mrb[194].mxu1 }
0x2c42   :  { %v7577_v6 = vpop.f32.mrb[195].mxu1 }
0x2c4f   :  { %v7716_v45 = vpop.f32.mrb[196].mxu1 }
0x2c50   :  { %v7723_v40 = vadd.f32 %v7716_v45, %v7579_v18  ;;  %v7718_v22 = vpop.f32.mrb[197].mxu1 }
0x2c51   :  { %v7724_v31 = vadd.f32 %v7718_v22, %v7580_v63  ;;  %v7720_v51 = vpop.f32.mrb[198].mxu1 }
0x2c52   :  { %v7721_v56 = vpop.f32.mrb[199].mxu1 }
0x2c5f   :  { %v7860_v50 = vpop.f32.mrb[200].mxu1 }
0x2c60   :  { %v7867_v1 = vadd.f32 %v7860_v50, %v7723_v40  ;;  %v7862_v35 = vpop.f32.mrb[201].mxu1 }
0x2c61   :  { %v7868_v39 = vadd.f32 %v7862_v35, %v7724_v31  ;;  %v7864_v41 = vpop.f32.mrb[202].mxu1 }
0x2c62   :  { %v7865_v61 = vpop.f32.mrb[203].mxu1 }
0x2c6f   :  { %v8004_v19 = vpop.f32.mrb[204].mxu1 }
0x2c70   :  { %v8011_v10 = vadd.f32 %v8004_v19, %v7867_v1  ;;  %v8006_v28 = vpop.f32.mrb[205].mxu1 }
0x2c71   :  { %v8012_v58 = vadd.f32 %v8006_v28, %v7868_v39  ;;  %v8008_v23 = vpop.f32.mrb[206].mxu1 }
0x2c72   :  { %v8025_v13 = vadd.f32 %v8018_v62, %v8011_v10  ;;  %v8009_v60 = vpop.f32.mrb[207].mxu1 }
0x2c73   :  { %v8026_v53 = vadd.f32 %v8022_v9, %v8012_v58 }
0x2c74   :  { %v8027_v34 = vmax.f32 %v8025_v13, 0.0 }
0x2c75   :  { %v8028_v49 = vmax.f32 %v8026_v53, 0.0 }
0x2c76   :  { %v8061_v24 = vpack.c.bf16 %v8027_v34, %v8027_v34 }
0x2c77   :  { %v8062_v57 = vpack.c.bf16 %v8028_v49, %v8028_v49 }
0x2c79   :  { %8267 = vmatprep.mubr.bf16.mxu0 %v8062_v57 }
0x2c7a   :  { %8268 = vmatmul.mubr.bf16.vlgmr.msra.gmra.mrb[168].mxu0 %v8061_v24 }
0x2d4d   :  { %v8269_v4 = vpop.f32.mrb[168].mxu0 }
0x2d4e   :  { %v8270_v29 = vadd.f32 %v8269_v4, %v8068_v48  ;;  %v8271_v42 = vpop.f32.mrb[169].mxu0 }
0x2d4f   :  { %v8272_v37 = vadd.f32 %v8271_v42, %v8072_v59  ;;  %v8273_v2 = vpop.f32.mrb[170].mxu0 }
0x2d50   :  { %8276 = vst [vmem:[#allocation11] sm:$0xff] %v8270_v29  ;;  %v8274_v26 = vpop.f32.mrb[171].mxu0 }
0x2d51   :  { %8277 = vst [vmem:[#allocation11 + $0x8] sm:$0xff] %v8272_v37 }
0x2d52   :  { %10807 = shalt.err (!%p10804_p2)
}
0x2d53   :  { %s13814_s30 = sld [smem:[#allocation31_spill]] }
0x2d59   :  { %s10808_s6 = scalar_lea.hbm %s13814_s30, 256 }
0x2d5a   :  { %p10809_p3 = scmp.ne.s32.totalorder %s13814_s30, %s10808_s6  ;;  %p10812_p4 = scmp.lt.u32.totalorder %s10808_s6, %s13814_s30 }
0x2d5c   :  { %p10814_p5 = pnand %p10812_p4, %p10809_p3 }
0x2d5e   :  { %10817 = shalt.err (!%p10814_p5)
}
0x2d5f   :  { %8287 = dma.vmem_to_hbm [thread:$0]  %s8285_s29, 256, %s13814_s30, [#allocation4]  }
0x2d60   :  { %10824 = dma.done.wait [#allocation4], 256  }
0x2d61   :  { %10825 = vsyncadd [#allocation4], 4294967040 }
0x2d62   :  { %8291 = vsyncpa [#allocation3], 1 }
0x2d63   :  { %8292 = vsyncpa [#allocation6], 1 }
0x2d64   :  { %8293 = vsyncpa [#allocation9], 1 }
0x2d65   :  { %8294 = vsyncpa [#allocation4], 1 }

</bundles_post_ra>
